<compile_context>
chip_gen: v6e
topology: v6e:2x2x1
jax: 0.10.0
libtpu: 0.0.40
codegen_flags: <defaults>
</compile_context>

<pallas_src>
import functools

import jax
import jax.numpy as jnp
from jax import lax
from jax.experimental import pallas as pl
from jax.experimental.pallas import tpu as pltpu


# ------------------------------ fused kernel --------------------------------

def _lenet_kernel(n_task_l, batch_b, *refs):
    (xp_ref, w1_ref, b1_ref, w2_ref, b2_ref, s1_ref, s2_ref,
     wt_ref, bt_ref, wf_ref, bf_ref) = refs[:11]
    head_refs = refs[11:-1]       # flattened (w, b) pairs, n_task_l of them
    o_ref = refs[-1]              # (1, B, n_tasks)

    def mm(a, b):
        return jnp.dot(a, b, preferred_element_type=jnp.float32)

    # Small operands hoisted out of the per-sample loop (the grid is a
    # sequential loop; broadcasts/loads are not CSE'd for us).
    se1, so1 = s1_ref[0], s1_ref[1]            # (17, 34) row-pool selectors
    se2, so2 = s2_ref[0], s2_ref[1]            # (6, 13)  row-pool selectors
    b1 = b1_ref[...]                           # (1, 256)
    b2 = b2_ref[...]                           # (1, 256)

    rows = []
    for b in range(batch_b):                   # unrolled per-sample conv path
        x = xp_ref[b]                          # (36, 128), cols = w*3 + c (+pad)

        # conv1 3x3 (input pre-padded by 2) + bias + ReLU + 2x2 max-pool.
        # Banded weights emit [even-wo | odd-wo] halves, each 128-lane
        # aligned, so the W-pool is a tile-aligned half split.
        y = mm(x[0:34, :], w1_ref[0])
        for i in range(1, 3):
            y = y + mm(x[i:i + 34, :], w1_ref[i])
        y = jnp.maximum(y + b1, 0.0)                 # (34, 256)
        y = jnp.maximum(y[:, :128], y[:, 128:])      # W-pool -> (34, 128)
        h1 = jnp.maximum(mm(se1, y), mm(so1, y))     # H-pool -> (17, 128)

        # conv2 5x5 + bias + ReLU + 2x2 max-pool (floor mode).
        y = mm(h1[0:13, :], w2_ref[0])
        for i in range(1, 5):
            y = y + mm(h1[i:i + 13, :], w2_ref[i])
        y = jnp.maximum(y + b2, 0.0)                 # (13, 256)
        y = jnp.maximum(y[:, :128], y[:, 128:])      # W-pool -> (13, 128)
        h2 = jnp.maximum(mm(se2, y), mm(so2, y))     # H-pool -> (6, 128)

        # Flatten (6, 128) -> (1, 768) by lane-aligned concat of the 6 rows.
        rows.append(jnp.concatenate([h2[r:r + 1, :] for r in range(6)], axis=1))

    hs = jnp.concatenate(rows, axis=0)               # (B, 768) stacked samples

    # ---- per-task 5x5 convs as ONE batched linear (all tasks fused) --------
    z = jnp.maximum(mm(hs, wt_ref[...]) + bt_ref[...], 0.0)   # (B, 512*nt)
    # ---- Linear(512, 84) for all tasks, block-diagonal weights -------------
    z = jnp.maximum(mm(z, wf_ref[...]) + bf_ref[...], 0.0)    # (B, 84*nt)
    # ---- task heads, block-diagonal across tasks ---------------------------
    for j in range(n_task_l):
        z = mm(z, head_refs[2 * j][...]) + head_refs[2 * j + 1][...]
        if j == n_task_l - 1:
            z = 1.0 / (1.0 + jnp.exp(-z))            # sigmoid
        else:
            z = jnp.maximum(z, 0.0)

    o_ref[0] = z                                     # (B, n_tasks)


# --------------------------- weight preparation ------------------------------

def _band_from_conv(w_oihw, win, in_pad, w_even, w_odd, half_pad):
    """Banded ('Toeplitz over W') conv weights with 128-lane-aligned halves.

    Returns (kh, in_pad, 2*half_pad).  For activations laid out rows=H,
    cols=(w*cin + ci) (zero-padded to in_pad), accumulating
        out[ho] += act[i + ho, :] @ band[i]
    gives the stride-1 PyTorch Conv2d result where output column
    k*cout + co (k-th entry of w_even) sits in the first half and the odd
    positions sit in the second half; padded columns are exactly zero.
    """
    cout, cin, kh, kw = w_oihw.shape
    w = jnp.transpose(jnp.asarray(w_oihw, jnp.float32), (2, 3, 1, 0))  # (kh,kw,cin,cout)

    def half(w_out_list):
        k = len(w_out_list)
        w_in = jnp.arange(win, dtype=jnp.int32)[:, None]               # (win, 1)
        w_out = jnp.asarray(w_out_list, dtype=jnp.int32)[None, :]      # (1, K)
        d = w_in - w_out
        valid = (d >= 0) & (d < kw)
        g = w[:, jnp.clip(d, 0, kw - 1), :, :]                         # (kh,win,K,cin,cout)
        g = jnp.where(valid[None, :, :, None, None], g, 0.0)
        g = jnp.transpose(g, (0, 1, 3, 2, 4)).reshape(kh, win * cin, k * cout)
        return jnp.pad(g, ((0, 0), (0, in_pad - win * cin),
                           (0, half_pad - k * cout)))

    return jnp.concatenate([half(w_even), half(w_odd)], axis=-1)


def _band_bias(b, k_half, half_pad):
    v = jnp.tile(jnp.asarray(b, jnp.float32), k_half)
    v = jnp.pad(v, (0, half_pad - v.shape[0]))
    return jnp.concatenate([v, v]).reshape(1, 2 * half_pad)


def _pool_select(rows_out, rows_in):
    """0/1 selection matrices for H-direction max-pool via two matmuls."""
    r = jnp.arange(rows_out, dtype=jnp.int32)[:, None]
    c = jnp.arange(rows_in, dtype=jnp.int32)[None, :]
    se = (c == 2 * r).astype(jnp.float32)
    so = (c == 2 * r + 1).astype(jnp.float32)
    return jnp.stack([se, so], axis=0)                                 # (2, ro, ri)


def _taskconv_as_linear(w_oihw):
    """Task Conv2d(16,128,5) on a 6x6x16 input as a (768 -> 512) linear map.

    Input row index  = r*128 + w*16 + ci  (rows 96..127 of each 128 block zero)
    Output col index = co*4 + ho*2 + wo   (== torch.flatten(NCHW) order).
    """
    cout, cin, kh, kw = w_oihw.shape                                   # 128,16,5,5
    wt = jnp.transpose(jnp.asarray(w_oihw, jnp.float32), (2, 3, 1, 0))  # (kh,kw,ci,co)
    r = jnp.arange(6)
    ho = jnp.arange(2)
    dh = r[:, None] - ho[None, :]                                      # (6,2)
    vh = (dh >= 0) & (dh < kh)
    wi = jnp.arange(6)
    wo = jnp.arange(2)
    dw = wi[:, None] - wo[None, :]                                     # (6,2)
    vw = (dw >= 0) & (dw < kw)
    g = wt[jnp.clip(dh, 0, kh - 1)]                                    # (6,2,kw,ci,co)
    g = g[:, :, jnp.clip(dw, 0, kw - 1)]                               # (6,2,6,2,ci,co)
    valid = vh[:, :, None, None] & vw[None, None, :, :]
    g = jnp.where(valid[..., None, None], g, 0.0)
    g = jnp.transpose(g, (0, 2, 4, 5, 1, 3))                           # (r,w,ci,co,ho,wo)
    g = g.reshape(6, 6 * cin, cout * 4)                                # (6, 96, 512)
    g = jnp.pad(g, ((0, 0), (0, 128 - 6 * cin), (0, 0)))               # (6, 128, 512)
    return g.reshape(6 * 128, cout * 4)                                # (768, 512)


def prepare_params(params, n_tasks, n_task_l):
    """One-time transform of PyTorch-layout params into the fused-kernel layout."""
    p = {}
    # conv1: padded 36x36x3 -> 34x34x6; halves [even wo | odd wo], 128-aligned
    p["w1"] = _band_from_conv(params["conv1_w"], win=36, in_pad=128,
                              w_even=list(range(0, 34, 2)),
                              w_odd=list(range(1, 34, 2)), half_pad=128)   # (3,128,256)
    p["b1"] = _band_bias(params["conv1_b"], 17, 128)
    # conv2: 17x17x6 -> 13x12x16 (wo=12 dropped by the floor-mode pool)
    p["w2"] = _band_from_conv(params["conv2_w"], win=17, in_pad=128,
                              w_even=list(range(0, 12, 2)),
                              w_odd=list(range(1, 12, 2)), half_pad=128)   # (5,128,256)
    p["b2"] = _band_bias(params["conv2_b"], 6, 128)
    # precomputed H-pool selection matrices (pinned kernel inputs)
    p["s1"] = _pool_select(17, 34)
    p["s2"] = _pool_select(6, 13)
    # per-task 5x5 convs fused along Cout as one (768 -> 512*nt) linear,
    # output columns in torch-flatten order per task
    p["wt"] = jnp.concatenate(
        [_taskconv_as_linear(tp["convt_w"]) for tp in params["tasks"]], axis=1)
    p["bt"] = jnp.concatenate(
        [jnp.repeat(jnp.asarray(tp["convt_b"], jnp.float32), 4)
         for tp in params["tasks"]]).reshape(1, -1)
    # fc1 (512 -> 84) per task, block-diagonal
    wf = jnp.zeros((n_tasks, 512, n_tasks, 84), jnp.float32)
    for t, tp in enumerate(params["tasks"]):
        wf = wf.at[t, :, t, :].set(tp["fc1_w"])
    p["wf"] = wf.reshape(512 * n_tasks, 84 * n_tasks)
    p["bf"] = jnp.concatenate([tp["fc1_b"] for tp in params["tasks"]]).reshape(1, -1)
    # heads: block-diagonal across tasks
    heads = []
    for j in range(n_task_l):
        d_out = 1 if j == n_task_l - 1 else 84
        w = jnp.zeros((n_tasks, 84, n_tasks, d_out), jnp.float32)
        for t, tp in enumerate(params["tasks"]):
            w = w.at[t, :, t, :].set(tp["head"][j][0])
        b = jnp.concatenate([tp["head"][j][1] for tp in params["tasks"]])
        heads.append((w.reshape(n_tasks * 84, n_tasks * d_out), b.reshape(1, -1)))
    p["heads"] = heads
    return p


# --------------------------- parameter initialization ------------------------

def _uniform(key, shape, fan_in):
    bound = 1.0 / jnp.sqrt(jnp.float32(fan_in))
    return jax.random.uniform(key, shape, jnp.float32, -bound, bound)


def init_lenet_params(key, n_tasks=2, n_task_l=2):
    keys = iter(jax.random.split(key, 256))

    def conv_init(cout, cin, k):
        fan_in = cin * k * k
        return (_uniform(next(keys), (cout, cin, k, k), fan_in),
                _uniform(next(keys), (cout,), fan_in))

    def linear_init(fin, fout):
        # stored (in, out); fc1 row order == torch.flatten(NCHW) order
        return (_uniform(next(keys), (fin, fout), fin),
                _uniform(next(keys), (fout,), fin))

    p = {}
    p["conv1_w"], p["conv1_b"] = conv_init(6, 3, 3)       # Conv2d(3, 6, 3, pad=2)
    p["conv2_w"], p["conv2_b"] = conv_init(16, 6, 5)      # Conv2d(6, 16, 5)
    tasks = []
    for _ in range(n_tasks):
        tp = {}
        tp["convt_w"], tp["convt_b"] = conv_init(128, 16, 5)   # Conv2d(16, 128, 5)
        tp["fc1_w"], tp["fc1_b"] = linear_init(512, 84)        # Linear(512, 84)
        head = []
        for j in range(n_task_l):
            if j == n_task_l - 1:
                head.append(linear_init(84, 1))                # Linear(84, 1)+Sigmoid
            else:
                head.append(linear_init(84, 84))               # Linear(84, 84)+ReLU
        tp["head"] = head
        tasks.append(tp)
    p["tasks"] = tasks
    return p


# --------------------------------- forward -----------------------------------

def lenet_forward(prepared, x_nchw, *, n_tasks, n_task_l, block_batch=8):
    n = x_nchw.shape[0]
    assert x_nchw.shape[1:] == (3, 32, 32), "LeNet requires 3x32x32 input"

    bb = max(1, min(block_batch, n))          # samples per grid step
    g = pl.cdiv(n, bb)
    n_pad = g * bb

    # NCHW -> per-sample (H, W*C) layout, zero-padded by 2 for conv1, lane-pad
    # the 108 columns to 128 and the batch to a multiple of bb.
    x = jnp.transpose(x_nchw.astype(jnp.float32), (0, 2, 3, 1))
    xp = jnp.pad(x, ((0, 0), (2, 2), (2, 2), (0, 0))).reshape(n, 36, 108)
    xp = jnp.pad(xp, ((0, n_pad - n), (0, 0), (0, 128 - 108)))      # (Npad,36,128)

    heads_flat = [a for wb in prepared["heads"] for a in wb]
    inputs = [xp, prepared["w1"], prepared["b1"], prepared["w2"], prepared["b2"],
              prepared["s1"], prepared["s2"], prepared["wt"], prepared["bt"],
              prepared["wf"], prepared["bf"], *heads_flat]

    def pinned(a):
        nd = a.ndim
        return pl.BlockSpec(a.shape, lambda i: (0,) * nd)   # constant block -> 1 DMA

    in_specs = [pl.BlockSpec((bb, 36, 128), lambda i: (i, 0, 0))]
    in_specs += [pinned(a) for a in inputs[1:]]

    out = pl.pallas_call(
        functools.partial(_lenet_kernel, n_task_l, bb),
        out_shape=jax.ShapeDtypeStruct((g, bb, n_tasks), jnp.float32),
        grid=(g,),
        in_specs=in_specs,
        out_specs=pl.BlockSpec((1, bb, n_tasks), lambda i: (i, 0, 0)),
        compiler_params=pltpu.CompilerParams(
            dimension_semantics=("parallel",),
            vmem_limit_bytes=32 * 1024 * 1024),
    )(*inputs)

    out = out.reshape(n_pad, n_tasks)[:n]                    # drop batch padding
    ypred = {}
    for t in range(n_tasks):
        # mirror torch: squeeze(swapaxes(col, 0, 1)) on the (N, 1) column
        ypred["task" + str(t)] = jnp.squeeze(jnp.swapaxes(out[:, t:t + 1], 0, 1))
    return ypred


# ----------------------- plain-XLA reference (for checking) ------------------

def _reference_forward(params, x_nchw, n_task_l):
    hi = lax.Precision.HIGHEST

    def conv(x, w, b, pad):
        y = lax.conv_general_dilated(
            x, w, window_strides=(1, 1), padding=((pad, pad), (pad, pad)),
            dimension_numbers=("NCHW", "OIHW", "NCHW"), precision=hi)
        return y + b[None, :, None, None]

    def pool(x):
        return lax.reduce_window(x, jnp.array(-jnp.inf, x.dtype), lax.max,
                                 (1, 1, 2, 2), (1, 1, 2, 2), "VALID")

    h = pool(jnp.maximum(conv(x_nchw, params["conv1_w"], params["conv1_b"], 2), 0.0))
    h = pool(jnp.maximum(conv(h, params["conv2_w"], params["conv2_b"], 0), 0.0))
    ypred = {}
    for i, tp in enumerate(params["tasks"]):
        t = jnp.maximum(conv(h, tp["convt_w"], tp["convt_b"], 0), 0.0)
        t = t.reshape(t.shape[0], -1)                               # NCHW flatten
        t = jnp.maximum(jnp.dot(t, tp["fc1_w"], precision=hi) + tp["fc1_b"], 0.0)
        for j in range(n_task_l):
            w, b = tp["head"][j]
            t = jnp.dot(t, w, precision=hi) + b
            t = 1.0 / (1.0 + jnp.exp(-t)) if j == n_task_l - 1 else jnp.maximum(t, 0.0)
        ypred["task" + str(i)] = jnp.squeeze(jnp.swapaxes(t, 0, 1))
    return ypred


# ----------------------------------- main ------------------------------------

if __name__ == "__main__":
    key = jax.random.PRNGKey(0)
    kx, kx2, kp = jax.random.split(key, 3)

    N_TASKS, N_TASK_L = 2, 2
    # 32x32 spatial is required by the module's hard-coded Linear(512, 84).
    x = jax.random.normal(kx, (2, 3, 32, 32), jnp.float32)

    params = init_lenet_params(kp, n_tasks=N_TASKS, n_task_l=N_TASK_L)
    prepared = prepare_params(params, N_TASKS, N_TASK_L)

    fwd = jax.jit(functools.partial(lenet_forward, n_tasks=N_TASKS, n_task_l=N_TASK_L))
    out = fwd(prepared, x)
    jax.block_until_ready(out)

    assert set(out.keys()) == {"task0", "task1"}
    assert all(v.shape == (2,) for v in out.values())

    # correctness check against a plain-XLA reference of the same module
    ref = _reference_forward(params, x, n_task_l=N_TASK_L)
    for k in sorted(out):
        err = float(jnp.max(jnp.abs(out[k] - ref[k])))
        assert err < 5e-3, f"{k}: max abs err {err}"

    # second check: multi-step grid + batch-padding path (B=2 per grid step)
    x2 = jax.random.normal(kx2, (5, 3, 32, 32), jnp.float32)
    fwd2 = jax.jit(functools.partial(lenet_forward, n_tasks=N_TASKS,
                                     n_task_l=N_TASK_L, block_batch=2))
    out2 = fwd2(prepared, x2)
    jax.block_until_ready(out2)
    ref2 = _reference_forward(params, x2, n_task_l=N_TASK_L)
    for k in sorted(out2):
        err = float(jnp.max(jnp.abs(out2[k] - ref2[k])))
        assert err < 5e-3, f"{k}: max abs err {err}"

    print("KERNEL_OK")
</pallas_src>

<mosaic_0001>
module attributes {stable_mosaic.version = 11 : i64} {
  func.func @_lenet_kernel(%arg0: i32, %arg1: memref<2x36x128xf32, #tpu.memory_space<vmem>>, %arg2: memref<3x128x256xf32, #tpu.memory_space<vmem>>, %arg3: memref<1x256xf32, #tpu.memory_space<vmem>>, %arg4: memref<5x128x256xf32, #tpu.memory_space<vmem>>, %arg5: memref<1x256xf32, #tpu.memory_space<vmem>>, %arg6: memref<2x17x34xf32, #tpu.memory_space<vmem>>, %arg7: memref<2x6x13xf32, #tpu.memory_space<vmem>>, %arg8: memref<768x1024xf32, #tpu.memory_space<vmem>>, %arg9: memref<1x1024xf32, #tpu.memory_space<vmem>>, %arg10: memref<1024x168xf32, #tpu.memory_space<vmem>>, %arg11: memref<1x168xf32, #tpu.memory_space<vmem>>, %arg12: memref<168x168xf32, #tpu.memory_space<vmem>>, %arg13: memref<1x168xf32, #tpu.memory_space<vmem>>, %arg14: memref<168x2xf32, #tpu.memory_space<vmem>>, %arg15: memref<1x2xf32, #tpu.memory_space<vmem>>, %arg16: memref<1x2x2xf32, #tpu.memory_space<vmem>>) attributes {dimension_semantics = [#tpu.dimension_semantics<parallel>], iteration_bounds = array<i64: 1>, scalar_prefetch = 0 : i64, scratch_operands = 0 : i64, tpu.core_type = #tpu.core_type<tc>, window_params = [{transform_indices = @transform_0, window_bounds = array<i64: 2, 36, 128>}, {pipeline_mode = #tpu.pipeline_mode<synchronous>, transform_indices = @transform_1, window_bounds = array<i64: 3, 128, 256>}, {pipeline_mode = #tpu.pipeline_mode<synchronous>, transform_indices = @transform_2, window_bounds = array<i64: 1, 256>}, {pipeline_mode = #tpu.pipeline_mode<synchronous>, transform_indices = @transform_3, window_bounds = array<i64: 5, 128, 256>}, {pipeline_mode = #tpu.pipeline_mode<synchronous>, transform_indices = @transform_4, window_bounds = array<i64: 1, 256>}, {pipeline_mode = #tpu.pipeline_mode<synchronous>, transform_indices = @transform_5, window_bounds = array<i64: 2, 17, 34>}, {pipeline_mode = #tpu.pipeline_mode<synchronous>, transform_indices = @transform_6, window_bounds = array<i64: 2, 6, 13>}, {pipeline_mode = #tpu.pipeline_mode<synchronous>, transform_indices = @transform_7, window_bounds = array<i64: 768, 1024>}, {pipeline_mode = #tpu.pipeline_mode<synchronous>, transform_indices = @transform_8, window_bounds = array<i64: 1, 1024>}, {pipeline_mode = #tpu.pipeline_mode<synchronous>, transform_indices = @transform_9, window_bounds = array<i64: 1024, 168>}, {pipeline_mode = #tpu.pipeline_mode<synchronous>, transform_indices = @transform_10, window_bounds = array<i64: 1, 168>}, {pipeline_mode = #tpu.pipeline_mode<synchronous>, transform_indices = @transform_11, window_bounds = array<i64: 168, 168>}, {pipeline_mode = #tpu.pipeline_mode<synchronous>, transform_indices = @transform_12, window_bounds = array<i64: 1, 168>}, {pipeline_mode = #tpu.pipeline_mode<synchronous>, transform_indices = @transform_13, window_bounds = array<i64: 168, 2>}, {pipeline_mode = #tpu.pipeline_mode<synchronous>, transform_indices = @transform_14, window_bounds = array<i64: 1, 2>}, {transform_indices = @transform_15, window_bounds = array<i64: 1, 2, 2>}]} {
    %c0 = arith.constant 0 : index
    %c0_0 = arith.constant 0 : index
    %c0_1 = arith.constant 0 : index
    %0 = vector.load %arg6[%c0, %c0_0, %c0_1] : memref<2x17x34xf32, #tpu.memory_space<vmem>>, vector<1x17x34xf32>
    %1 = vector.shape_cast %0 : vector<1x17x34xf32> to vector<17x34xf32>
    %c1 = arith.constant 1 : index
    %c0_2 = arith.constant 0 : index
    %c0_3 = arith.constant 0 : index
    %2 = vector.load %arg6[%c1, %c0_2, %c0_3] : memref<2x17x34xf32, #tpu.memory_space<vmem>>, vector<1x17x34xf32>
    %3 = vector.shape_cast %2 : vector<1x17x34xf32> to vector<17x34xf32>
    %c0_4 = arith.constant 0 : index
    %c0_5 = arith.constant 0 : index
    %c0_6 = arith.constant 0 : index
    %4 = vector.load %arg7[%c0_4, %c0_5, %c0_6] : memref<2x6x13xf32, #tpu.memory_space<vmem>>, vector<1x6x13xf32>
    %5 = vector.shape_cast %4 : vector<1x6x13xf32> to vector<6x13xf32>
    %c1_7 = arith.constant 1 : index
    %c0_8 = arith.constant 0 : index
    %c0_9 = arith.constant 0 : index
    %6 = vector.load %arg7[%c1_7, %c0_8, %c0_9] : memref<2x6x13xf32, #tpu.memory_space<vmem>>, vector<1x6x13xf32>
    %7 = vector.shape_cast %6 : vector<1x6x13xf32> to vector<6x13xf32>
    %c0_10 = arith.constant 0 : index
    %c0_11 = arith.constant 0 : index
    %8 = vector.load %arg3[%c0_10, %c0_11] : memref<1x256xf32, #tpu.memory_space<vmem>>, vector<1x256xf32>
    %c0_12 = arith.constant 0 : index
    %c0_13 = arith.constant 0 : index
    %9 = vector.load %arg5[%c0_12, %c0_13] : memref<1x256xf32, #tpu.memory_space<vmem>>, vector<1x256xf32>
    %c0_14 = arith.constant 0 : index
    %c0_15 = arith.constant 0 : index
    %c0_16 = arith.constant 0 : index
    %10 = vector.load %arg1[%c0_14, %c0_15, %c0_16] : memref<2x36x128xf32, #tpu.memory_space<vmem>>, vector<1x36x128xf32>
    %11 = vector.shape_cast %10 : vector<1x36x128xf32> to vector<36x128xf32>
    %12 = vector.extract_strided_slice %11 {offsets = [0, 0], sizes = [34, 128], strides = [1, 1]} : vector<36x128xf32> to vector<34x128xf32>
    %c0_17 = arith.constant 0 : index
    %c0_18 = arith.constant 0 : index
    %c0_19 = arith.constant 0 : index
    %13 = vector.load %arg2[%c0_17, %c0_18, %c0_19] : memref<3x128x256xf32, #tpu.memory_space<vmem>>, vector<1x128x256xf32>
    %14 = vector.shape_cast %13 : vector<1x128x256xf32> to vector<128x256xf32>
    %cst = arith.constant dense<0.000000e+00> : vector<34x256xf32>
    %15 = tpu.matmul %12, %14, %cst {dimension_numbers = #tpu.dot_dimension_numbers<[1], [0], [0], [1], [0, 0, 1, 1], [], []>} : vector<34x128xf32>, vector<128x256xf32>, vector<34x256xf32> -> vector<34x256xf32>
    %16 = vector.extract_strided_slice %11 {offsets = [1, 0], sizes = [34, 128], strides = [1, 1]} : vector<36x128xf32> to vector<34x128xf32>
    %c1_20 = arith.constant 1 : index
    %c0_21 = arith.constant 0 : index
    %c0_22 = arith.constant 0 : index
    %17 = vector.load %arg2[%c1_20, %c0_21, %c0_22] : memref<3x128x256xf32, #tpu.memory_space<vmem>>, vector<1x128x256xf32>
    %18 = vector.shape_cast %17 : vector<1x128x256xf32> to vector<128x256xf32>
    %cst_23 = arith.constant dense<0.000000e+00> : vector<34x256xf32>
    %19 = tpu.matmul %16, %18, %cst_23 {dimension_numbers = #tpu.dot_dimension_numbers<[1], [0], [0], [1], [0, 0, 1, 1], [], []>} : vector<34x128xf32>, vector<128x256xf32>, vector<34x256xf32> -> vector<34x256xf32>
    %20 = arith.addf %15, %19 : vector<34x256xf32>
    %21 = vector.extract_strided_slice %11 {offsets = [2, 0], sizes = [34, 128], strides = [1, 1]} : vector<36x128xf32> to vector<34x128xf32>
    %c2 = arith.constant 2 : index
    %c0_24 = arith.constant 0 : index
    %c0_25 = arith.constant 0 : index
    %22 = vector.load %arg2[%c2, %c0_24, %c0_25] : memref<3x128x256xf32, #tpu.memory_space<vmem>>, vector<1x128x256xf32>
    %23 = vector.shape_cast %22 : vector<1x128x256xf32> to vector<128x256xf32>
    %cst_26 = arith.constant dense<0.000000e+00> : vector<34x256xf32>
    %24 = tpu.matmul %21, %23, %cst_26 {dimension_numbers = #tpu.dot_dimension_numbers<[1], [0], [0], [1], [0, 0, 1, 1], [], []>} : vector<34x128xf32>, vector<128x256xf32>, vector<34x256xf32> -> vector<34x256xf32>
    %25 = arith.addf %20, %24 : vector<34x256xf32>
    %26 = vector.broadcast %8 : vector<1x256xf32> to vector<34x256xf32>
    %27 = arith.addf %25, %26 : vector<34x256xf32>
    %cst_27 = arith.constant 0.000000e+00 : f32
    %28 = vector.broadcast %cst_27 : f32 to vector<34x256xf32>
    %29 = arith.maximumf %27, %28 : vector<34x256xf32>
    %30 = vector.extract_strided_slice %29 {offsets = [0, 0], sizes = [34, 128], strides = [1, 1]} : vector<34x256xf32> to vector<34x128xf32>
    %31 = vector.extract_strided_slice %29 {offsets = [0, 128], sizes = [34, 128], strides = [1, 1]} : vector<34x256xf32> to vector<34x128xf32>
    %32 = arith.maximumf %30, %31 : vector<34x128xf32>
    %cst_28 = arith.constant dense<0.000000e+00> : vector<17x128xf32>
    %33 = tpu.matmul %1, %32, %cst_28 {dimension_numbers = #tpu.dot_dimension_numbers<[1], [0], [0], [1], [0, 0, 1, 1], [], []>} : vector<17x34xf32>, vector<34x128xf32>, vector<17x128xf32> -> vector<17x128xf32>
    %cst_29 = arith.constant dense<0.000000e+00> : vector<17x128xf32>
    %34 = tpu.matmul %3, %32, %cst_29 {dimension_numbers = #tpu.dot_dimension_numbers<[1], [0], [0], [1], [0, 0, 1, 1], [], []>} : vector<17x34xf32>, vector<34x128xf32>, vector<17x128xf32> -> vector<17x128xf32>
    %35 = arith.maximumf %33, %34 : vector<17x128xf32>
    %36 = vector.extract_strided_slice %35 {offsets = [0, 0], sizes = [13, 128], strides = [1, 1]} : vector<17x128xf32> to vector<13x128xf32>
    %c0_30 = arith.constant 0 : index
    %c0_31 = arith.constant 0 : index
    %c0_32 = arith.constant 0 : index
    %37 = vector.load %arg4[%c0_30, %c0_31, %c0_32] : memref<5x128x256xf32, #tpu.memory_space<vmem>>, vector<1x128x256xf32>
    %38 = vector.shape_cast %37 : vector<1x128x256xf32> to vector<128x256xf32>
    %cst_33 = arith.constant dense<0.000000e+00> : vector<13x256xf32>
    %39 = tpu.matmul %36, %38, %cst_33 {dimension_numbers = #tpu.dot_dimension_numbers<[1], [0], [0], [1], [0, 0, 1, 1], [], []>} : vector<13x128xf32>, vector<128x256xf32>, vector<13x256xf32> -> vector<13x256xf32>
    %40 = vector.extract_strided_slice %35 {offsets = [1, 0], sizes = [13, 128], strides = [1, 1]} : vector<17x128xf32> to vector<13x128xf32>
    %c1_34 = arith.constant 1 : index
    %c0_35 = arith.constant 0 : index
    %c0_36 = arith.constant 0 : index
    %41 = vector.load %arg4[%c1_34, %c0_35, %c0_36] : memref<5x128x256xf32, #tpu.memory_space<vmem>>, vector<1x128x256xf32>
    %42 = vector.shape_cast %41 : vector<1x128x256xf32> to vector<128x256xf32>
    %cst_37 = arith.constant dense<0.000000e+00> : vector<13x256xf32>
    %43 = tpu.matmul %40, %42, %cst_37 {dimension_numbers = #tpu.dot_dimension_numbers<[1], [0], [0], [1], [0, 0, 1, 1], [], []>} : vector<13x128xf32>, vector<128x256xf32>, vector<13x256xf32> -> vector<13x256xf32>
    %44 = arith.addf %39, %43 : vector<13x256xf32>
    %45 = vector.extract_strided_slice %35 {offsets = [2, 0], sizes = [13, 128], strides = [1, 1]} : vector<17x128xf32> to vector<13x128xf32>
    %c2_38 = arith.constant 2 : index
    %c0_39 = arith.constant 0 : index
    %c0_40 = arith.constant 0 : index
    %46 = vector.load %arg4[%c2_38, %c0_39, %c0_40] : memref<5x128x256xf32, #tpu.memory_space<vmem>>, vector<1x128x256xf32>
    %47 = vector.shape_cast %46 : vector<1x128x256xf32> to vector<128x256xf32>
    %cst_41 = arith.constant dense<0.000000e+00> : vector<13x256xf32>
    %48 = tpu.matmul %45, %47, %cst_41 {dimension_numbers = #tpu.dot_dimension_numbers<[1], [0], [0], [1], [0, 0, 1, 1], [], []>} : vector<13x128xf32>, vector<128x256xf32>, vector<13x256xf32> -> vector<13x256xf32>
    %49 = arith.addf %44, %48 : vector<13x256xf32>
    %50 = vector.extract_strided_slice %35 {offsets = [3, 0], sizes = [13, 128], strides = [1, 1]} : vector<17x128xf32> to vector<13x128xf32>
    %c3 = arith.constant 3 : index
    %c0_42 = arith.constant 0 : index
    %c0_43 = arith.constant 0 : index
    %51 = vector.load %arg4[%c3, %c0_42, %c0_43] : memref<5x128x256xf32, #tpu.memory_space<vmem>>, vector<1x128x256xf32>
    %52 = vector.shape_cast %51 : vector<1x128x256xf32> to vector<128x256xf32>
    %cst_44 = arith.constant dense<0.000000e+00> : vector<13x256xf32>
    %53 = tpu.matmul %50, %52, %cst_44 {dimension_numbers = #tpu.dot_dimension_numbers<[1], [0], [0], [1], [0, 0, 1, 1], [], []>} : vector<13x128xf32>, vector<128x256xf32>, vector<13x256xf32> -> vector<13x256xf32>
    %54 = arith.addf %49, %53 : vector<13x256xf32>
    %55 = vector.extract_strided_slice %35 {offsets = [4, 0], sizes = [13, 128], strides = [1, 1]} : vector<17x128xf32> to vector<13x128xf32>
    %c4 = arith.constant 4 : index
    %c0_45 = arith.constant 0 : index
    %c0_46 = arith.constant 0 : index
    %56 = vector.load %arg4[%c4, %c0_45, %c0_46] : memref<5x128x256xf32, #tpu.memory_space<vmem>>, vector<1x128x256xf32>
    %57 = vector.shape_cast %56 : vector<1x128x256xf32> to vector<128x256xf32>
    %cst_47 = arith.constant dense<0.000000e+00> : vector<13x256xf32>
    %58 = tpu.matmul %55, %57, %cst_47 {dimension_numbers = #tpu.dot_dimension_numbers<[1], [0], [0], [1], [0, 0, 1, 1], [], []>} : vector<13x128xf32>, vector<128x256xf32>, vector<13x256xf32> -> vector<13x256xf32>
    %59 = arith.addf %54, %58 : vector<13x256xf32>
    %60 = vector.broadcast %9 : vector<1x256xf32> to vector<13x256xf32>
    %61 = arith.addf %59, %60 : vector<13x256xf32>
    %cst_48 = arith.constant 0.000000e+00 : f32
    %62 = vector.broadcast %cst_48 : f32 to vector<13x256xf32>
    %63 = arith.maximumf %61, %62 : vector<13x256xf32>
    %64 = vector.extract_strided_slice %63 {offsets = [0, 0], sizes = [13, 128], strides = [1, 1]} : vector<13x256xf32> to vector<13x128xf32>
    %65 = vector.extract_strided_slice %63 {offsets = [0, 128], sizes = [13, 128], strides = [1, 1]} : vector<13x256xf32> to vector<13x128xf32>
    %66 = arith.maximumf %64, %65 : vector<13x128xf32>
    %cst_49 = arith.constant dense<0.000000e+00> : vector<6x128xf32>
    %67 = tpu.matmul %5, %66, %cst_49 {dimension_numbers = #tpu.dot_dimension_numbers<[1], [0], [0], [1], [0, 0, 1, 1], [], []>} : vector<6x13xf32>, vector<13x128xf32>, vector<6x128xf32> -> vector<6x128xf32>
    %cst_50 = arith.constant dense<0.000000e+00> : vector<6x128xf32>
    %68 = tpu.matmul %7, %66, %cst_50 {dimension_numbers = #tpu.dot_dimension_numbers<[1], [0], [0], [1], [0, 0, 1, 1], [], []>} : vector<6x13xf32>, vector<13x128xf32>, vector<6x128xf32> -> vector<6x128xf32>
    %69 = arith.maximumf %67, %68 : vector<6x128xf32>
    %70 = vector.extract_strided_slice %69 {offsets = [0, 0], sizes = [1, 128], strides = [1, 1]} : vector<6x128xf32> to vector<1x128xf32>
    %71 = vector.extract_strided_slice %69 {offsets = [1, 0], sizes = [1, 128], strides = [1, 1]} : vector<6x128xf32> to vector<1x128xf32>
    %72 = vector.extract_strided_slice %69 {offsets = [2, 0], sizes = [1, 128], strides = [1, 1]} : vector<6x128xf32> to vector<1x128xf32>
    %73 = vector.extract_strided_slice %69 {offsets = [3, 0], sizes = [1, 128], strides = [1, 1]} : vector<6x128xf32> to vector<1x128xf32>
    %74 = vector.extract_strided_slice %69 {offsets = [4, 0], sizes = [1, 128], strides = [1, 1]} : vector<6x128xf32> to vector<1x128xf32>
    %75 = vector.extract_strided_slice %69 {offsets = [5, 0], sizes = [1, 128], strides = [1, 1]} : vector<6x128xf32> to vector<1x128xf32>
    %76 = tpu.concatenate %70, %71, %72, %73, %74, %75 in 1 : vector<1x128xf32>, vector<1x128xf32>, vector<1x128xf32>, vector<1x128xf32>, vector<1x128xf32>, vector<1x128xf32> -> vector<1x768xf32>
    %c1_51 = arith.constant 1 : index
    %c0_52 = arith.constant 0 : index
    %c0_53 = arith.constant 0 : index
    %77 = vector.load %arg1[%c1_51, %c0_52, %c0_53] : memref<2x36x128xf32, #tpu.memory_space<vmem>>, vector<1x36x128xf32>
    %78 = vector.shape_cast %77 : vector<1x36x128xf32> to vector<36x128xf32>
    %79 = vector.extract_strided_slice %78 {offsets = [0, 0], sizes = [34, 128], strides = [1, 1]} : vector<36x128xf32> to vector<34x128xf32>
    %c0_54 = arith.constant 0 : index
    %c0_55 = arith.constant 0 : index
    %c0_56 = arith.constant 0 : index
    %80 = vector.load %arg2[%c0_54, %c0_55, %c0_56] : memref<3x128x256xf32, #tpu.memory_space<vmem>>, vector<1x128x256xf32>
    %81 = vector.shape_cast %80 : vector<1x128x256xf32> to vector<128x256xf32>
    %cst_57 = arith.constant dense<0.000000e+00> : vector<34x256xf32>
    %82 = tpu.matmul %79, %81, %cst_57 {dimension_numbers = #tpu.dot_dimension_numbers<[1], [0], [0], [1], [0, 0, 1, 1], [], []>} : vector<34x128xf32>, vector<128x256xf32>, vector<34x256xf32> -> vector<34x256xf32>
    %83 = vector.extract_strided_slice %78 {offsets = [1, 0], sizes = [34, 128], strides = [1, 1]} : vector<36x128xf32> to vector<34x128xf32>
    %c1_58 = arith.constant 1 : index
    %c0_59 = arith.constant 0 : index
    %c0_60 = arith.constant 0 : index
    %84 = vector.load %arg2[%c1_58, %c0_59, %c0_60] : memref<3x128x256xf32, #tpu.memory_space<vmem>>, vector<1x128x256xf32>
    %85 = vector.shape_cast %84 : vector<1x128x256xf32> to vector<128x256xf32>
    %cst_61 = arith.constant dense<0.000000e+00> : vector<34x256xf32>
    %86 = tpu.matmul %83, %85, %cst_61 {dimension_numbers = #tpu.dot_dimension_numbers<[1], [0], [0], [1], [0, 0, 1, 1], [], []>} : vector<34x128xf32>, vector<128x256xf32>, vector<34x256xf32> -> vector<34x256xf32>
    %87 = arith.addf %82, %86 : vector<34x256xf32>
    %88 = vector.extract_strided_slice %78 {offsets = [2, 0], sizes = [34, 128], strides = [1, 1]} : vector<36x128xf32> to vector<34x128xf32>
    %c2_62 = arith.constant 2 : index
    %c0_63 = arith.constant 0 : index
    %c0_64 = arith.constant 0 : index
    %89 = vector.load %arg2[%c2_62, %c0_63, %c0_64] : memref<3x128x256xf32, #tpu.memory_space<vmem>>, vector<1x128x256xf32>
    %90 = vector.shape_cast %89 : vector<1x128x256xf32> to vector<128x256xf32>
    %cst_65 = arith.constant dense<0.000000e+00> : vector<34x256xf32>
    %91 = tpu.matmul %88, %90, %cst_65 {dimension_numbers = #tpu.dot_dimension_numbers<[1], [0], [0], [1], [0, 0, 1, 1], [], []>} : vector<34x128xf32>, vector<128x256xf32>, vector<34x256xf32> -> vector<34x256xf32>
    %92 = arith.addf %87, %91 : vector<34x256xf32>
    %93 = vector.broadcast %8 : vector<1x256xf32> to vector<34x256xf32>
    %94 = arith.addf %92, %93 : vector<34x256xf32>
    %cst_66 = arith.constant 0.000000e+00 : f32
    %95 = vector.broadcast %cst_66 : f32 to vector<34x256xf32>
    %96 = arith.maximumf %94, %95 : vector<34x256xf32>
    %97 = vector.extract_strided_slice %96 {offsets = [0, 0], sizes = [34, 128], strides = [1, 1]} : vector<34x256xf32> to vector<34x128xf32>
    %98 = vector.extract_strided_slice %96 {offsets = [0, 128], sizes = [34, 128], strides = [1, 1]} : vector<34x256xf32> to vector<34x128xf32>
    %99 = arith.maximumf %97, %98 : vector<34x128xf32>
    %cst_67 = arith.constant dense<0.000000e+00> : vector<17x128xf32>
    %100 = tpu.matmul %1, %99, %cst_67 {dimension_numbers = #tpu.dot_dimension_numbers<[1], [0], [0], [1], [0, 0, 1, 1], [], []>} : vector<17x34xf32>, vector<34x128xf32>, vector<17x128xf32> -> vector<17x128xf32>
    %cst_68 = arith.constant dense<0.000000e+00> : vector<17x128xf32>
    %101 = tpu.matmul %3, %99, %cst_68 {dimension_numbers = #tpu.dot_dimension_numbers<[1], [0], [0], [1], [0, 0, 1, 1], [], []>} : vector<17x34xf32>, vector<34x128xf32>, vector<17x128xf32> -> vector<17x128xf32>
    %102 = arith.maximumf %100, %101 : vector<17x128xf32>
    %103 = vector.extract_strided_slice %102 {offsets = [0, 0], sizes = [13, 128], strides = [1, 1]} : vector<17x128xf32> to vector<13x128xf32>
    %c0_69 = arith.constant 0 : index
    %c0_70 = arith.constant 0 : index
    %c0_71 = arith.constant 0 : index
    %104 = vector.load %arg4[%c0_69, %c0_70, %c0_71] : memref<5x128x256xf32, #tpu.memory_space<vmem>>, vector<1x128x256xf32>
    %105 = vector.shape_cast %104 : vector<1x128x256xf32> to vector<128x256xf32>
    %cst_72 = arith.constant dense<0.000000e+00> : vector<13x256xf32>
    %106 = tpu.matmul %103, %105, %cst_72 {dimension_numbers = #tpu.dot_dimension_numbers<[1], [0], [0], [1], [0, 0, 1, 1], [], []>} : vector<13x128xf32>, vector<128x256xf32>, vector<13x256xf32> -> vector<13x256xf32>
    %107 = vector.extract_strided_slice %102 {offsets = [1, 0], sizes = [13, 128], strides = [1, 1]} : vector<17x128xf32> to vector<13x128xf32>
    %c1_73 = arith.constant 1 : index
    %c0_74 = arith.constant 0 : index
    %c0_75 = arith.constant 0 : index
    %108 = vector.load %arg4[%c1_73, %c0_74, %c0_75] : memref<5x128x256xf32, #tpu.memory_space<vmem>>, vector<1x128x256xf32>
    %109 = vector.shape_cast %108 : vector<1x128x256xf32> to vector<128x256xf32>
    %cst_76 = arith.constant dense<0.000000e+00> : vector<13x256xf32>
    %110 = tpu.matmul %107, %109, %cst_76 {dimension_numbers = #tpu.dot_dimension_numbers<[1], [0], [0], [1], [0, 0, 1, 1], [], []>} : vector<13x128xf32>, vector<128x256xf32>, vector<13x256xf32> -> vector<13x256xf32>
    %111 = arith.addf %106, %110 : vector<13x256xf32>
    %112 = vector.extract_strided_slice %102 {offsets = [2, 0], sizes = [13, 128], strides = [1, 1]} : vector<17x128xf32> to vector<13x128xf32>
    %c2_77 = arith.constant 2 : index
    %c0_78 = arith.constant 0 : index
    %c0_79 = arith.constant 0 : index
    %113 = vector.load %arg4[%c2_77, %c0_78, %c0_79] : memref<5x128x256xf32, #tpu.memory_space<vmem>>, vector<1x128x256xf32>
    %114 = vector.shape_cast %113 : vector<1x128x256xf32> to vector<128x256xf32>
    %cst_80 = arith.constant dense<0.000000e+00> : vector<13x256xf32>
    %115 = tpu.matmul %112, %114, %cst_80 {dimension_numbers = #tpu.dot_dimension_numbers<[1], [0], [0], [1], [0, 0, 1, 1], [], []>} : vector<13x128xf32>, vector<128x256xf32>, vector<13x256xf32> -> vector<13x256xf32>
    %116 = arith.addf %111, %115 : vector<13x256xf32>
    %117 = vector.extract_strided_slice %102 {offsets = [3, 0], sizes = [13, 128], strides = [1, 1]} : vector<17x128xf32> to vector<13x128xf32>
    %c3_81 = arith.constant 3 : index
    %c0_82 = arith.constant 0 : index
    %c0_83 = arith.constant 0 : index
    %118 = vector.load %arg4[%c3_81, %c0_82, %c0_83] : memref<5x128x256xf32, #tpu.memory_space<vmem>>, vector<1x128x256xf32>
    %119 = vector.shape_cast %118 : vector<1x128x256xf32> to vector<128x256xf32>
    %cst_84 = arith.constant dense<0.000000e+00> : vector<13x256xf32>
    %120 = tpu.matmul %117, %119, %cst_84 {dimension_numbers = #tpu.dot_dimension_numbers<[1], [0], [0], [1], [0, 0, 1, 1], [], []>} : vector<13x128xf32>, vector<128x256xf32>, vector<13x256xf32> -> vector<13x256xf32>
    %121 = arith.addf %116, %120 : vector<13x256xf32>
    %122 = vector.extract_strided_slice %102 {offsets = [4, 0], sizes = [13, 128], strides = [1, 1]} : vector<17x128xf32> to vector<13x128xf32>
    %c4_85 = arith.constant 4 : index
    %c0_86 = arith.constant 0 : index
    %c0_87 = arith.constant 0 : index
    %123 = vector.load %arg4[%c4_85, %c0_86, %c0_87] : memref<5x128x256xf32, #tpu.memory_space<vmem>>, vector<1x128x256xf32>
    %124 = vector.shape_cast %123 : vector<1x128x256xf32> to vector<128x256xf32>
    %cst_88 = arith.constant dense<0.000000e+00> : vector<13x256xf32>
    %125 = tpu.matmul %122, %124, %cst_88 {dimension_numbers = #tpu.dot_dimension_numbers<[1], [0], [0], [1], [0, 0, 1, 1], [], []>} : vector<13x128xf32>, vector<128x256xf32>, vector<13x256xf32> -> vector<13x256xf32>
    %126 = arith.addf %121, %125 : vector<13x256xf32>
    %127 = vector.broadcast %9 : vector<1x256xf32> to vector<13x256xf32>
    %128 = arith.addf %126, %127 : vector<13x256xf32>
    %cst_89 = arith.constant 0.000000e+00 : f32
    %129 = vector.broadcast %cst_89 : f32 to vector<13x256xf32>
    %130 = arith.maximumf %128, %129 : vector<13x256xf32>
    %131 = vector.extract_strided_slice %130 {offsets = [0, 0], sizes = [13, 128], strides = [1, 1]} : vector<13x256xf32> to vector<13x128xf32>
    %132 = vector.extract_strided_slice %130 {offsets = [0, 128], sizes = [13, 128], strides = [1, 1]} : vector<13x256xf32> to vector<13x128xf32>
    %133 = arith.maximumf %131, %132 : vector<13x128xf32>
    %cst_90 = arith.constant dense<0.000000e+00> : vector<6x128xf32>
    %134 = tpu.matmul %5, %133, %cst_90 {dimension_numbers = #tpu.dot_dimension_numbers<[1], [0], [0], [1], [0, 0, 1, 1], [], []>} : vector<6x13xf32>, vector<13x128xf32>, vector<6x128xf32> -> vector<6x128xf32>
    %cst_91 = arith.constant dense<0.000000e+00> : vector<6x128xf32>
    %135 = tpu.matmul %7, %133, %cst_91 {dimension_numbers = #tpu.dot_dimension_numbers<[1], [0], [0], [1], [0, 0, 1, 1], [], []>} : vector<6x13xf32>, vector<13x128xf32>, vector<6x128xf32> -> vector<6x128xf32>
    %136 = arith.maximumf %134, %135 : vector<6x128xf32>
    %137 = vector.extract_strided_slice %136 {offsets = [0, 0], sizes = [1, 128], strides = [1, 1]} : vector<6x128xf32> to vector<1x128xf32>
    %138 = vector.extract_strided_slice %136 {offsets = [1, 0], sizes = [1, 128], strides = [1, 1]} : vector<6x128xf32> to vector<1x128xf32>
    %139 = vector.extract_strided_slice %136 {offsets = [2, 0], sizes = [1, 128], strides = [1, 1]} : vector<6x128xf32> to vector<1x128xf32>
    %140 = vector.extract_strided_slice %136 {offsets = [3, 0], sizes = [1, 128], strides = [1, 1]} : vector<6x128xf32> to vector<1x128xf32>
    %141 = vector.extract_strided_slice %136 {offsets = [4, 0], sizes = [1, 128], strides = [1, 1]} : vector<6x128xf32> to vector<1x128xf32>
    %142 = vector.extract_strided_slice %136 {offsets = [5, 0], sizes = [1, 128], strides = [1, 1]} : vector<6x128xf32> to vector<1x128xf32>
    %143 = tpu.concatenate %137, %138, %139, %140, %141, %142 in 1 : vector<1x128xf32>, vector<1x128xf32>, vector<1x128xf32>, vector<1x128xf32>, vector<1x128xf32>, vector<1x128xf32> -> vector<1x768xf32>
    %144 = tpu.concatenate %76, %143 in 0 : vector<1x768xf32>, vector<1x768xf32> -> vector<2x768xf32>
    %c0_92 = arith.constant 0 : index
    %c0_93 = arith.constant 0 : index
    %145 = vector.load %arg8[%c0_92, %c0_93] : memref<768x1024xf32, #tpu.memory_space<vmem>>, vector<768x1024xf32>
    %cst_94 = arith.constant dense<0.000000e+00> : vector<2x1024xf32>
    %146 = tpu.matmul %144, %145, %cst_94 {dimension_numbers = #tpu.dot_dimension_numbers<[1], [0], [0], [1], [0, 0, 1, 1], [], []>} : vector<2x768xf32>, vector<768x1024xf32>, vector<2x1024xf32> -> vector<2x1024xf32>
    %c0_95 = arith.constant 0 : index
    %c0_96 = arith.constant 0 : index
    %147 = vector.load %arg9[%c0_95, %c0_96] : memref<1x1024xf32, #tpu.memory_space<vmem>>, vector<1x1024xf32>
    %148 = vector.broadcast %147 : vector<1x1024xf32> to vector<2x1024xf32>
    %149 = arith.addf %146, %148 : vector<2x1024xf32>
    %cst_97 = arith.constant 0.000000e+00 : f32
    %150 = vector.broadcast %cst_97 : f32 to vector<2x1024xf32>
    %151 = arith.maximumf %149, %150 : vector<2x1024xf32>
    %c0_98 = arith.constant 0 : index
    %c0_99 = arith.constant 0 : index
    %152 = vector.load %arg10[%c0_98, %c0_99] : memref<1024x168xf32, #tpu.memory_space<vmem>>, vector<1024x168xf32>
    %cst_100 = arith.constant dense<0.000000e+00> : vector<2x168xf32>
    %153 = tpu.matmul %151, %152, %cst_100 {dimension_numbers = #tpu.dot_dimension_numbers<[1], [0], [0], [1], [0, 0, 1, 1], [], []>} : vector<2x1024xf32>, vector<1024x168xf32>, vector<2x168xf32> -> vector<2x168xf32>
    %c0_101 = arith.constant 0 : index
    %c0_102 = arith.constant 0 : index
    %154 = vector.load %arg11[%c0_101, %c0_102] : memref<1x168xf32, #tpu.memory_space<vmem>>, vector<1x168xf32>
    %155 = vector.broadcast %154 : vector<1x168xf32> to vector<2x168xf32>
    %156 = arith.addf %153, %155 : vector<2x168xf32>
    %cst_103 = arith.constant 0.000000e+00 : f32
    %157 = vector.broadcast %cst_103 : f32 to vector<2x168xf32>
    %158 = arith.maximumf %156, %157 : vector<2x168xf32>
    %c0_104 = arith.constant 0 : index
    %c0_105 = arith.constant 0 : index
    %159 = vector.load %arg12[%c0_104, %c0_105] : memref<168x168xf32, #tpu.memory_space<vmem>>, vector<168x168xf32>
    %cst_106 = arith.constant dense<0.000000e+00> : vector<2x168xf32>
    %160 = tpu.matmul %158, %159, %cst_106 {dimension_numbers = #tpu.dot_dimension_numbers<[1], [0], [0], [1], [0, 0, 1, 1], [], []>} : vector<2x168xf32>, vector<168x168xf32>, vector<2x168xf32> -> vector<2x168xf32>
    %c0_107 = arith.constant 0 : index
    %c0_108 = arith.constant 0 : index
    %161 = vector.load %arg13[%c0_107, %c0_108] : memref<1x168xf32, #tpu.memory_space<vmem>>, vector<1x168xf32>
    %162 = vector.broadcast %161 : vector<1x168xf32> to vector<2x168xf32>
    %163 = arith.addf %160, %162 : vector<2x168xf32>
    %cst_109 = arith.constant 0.000000e+00 : f32
    %164 = vector.broadcast %cst_109 : f32 to vector<2x168xf32>
    %165 = arith.maximumf %163, %164 : vector<2x168xf32>
    %c0_110 = arith.constant 0 : index
    %c0_111 = arith.constant 0 : index
    %166 = vector.load %arg14[%c0_110, %c0_111] : memref<168x2xf32, #tpu.memory_space<vmem>>, vector<168x2xf32>
    %cst_112 = arith.constant dense<0.000000e+00> : vector<2x2xf32>
    %167 = tpu.matmul %165, %166, %cst_112 {dimension_numbers = #tpu.dot_dimension_numbers<[1], [0], [0], [1], [0, 0, 1, 1], [], []>} : vector<2x168xf32>, vector<168x2xf32>, vector<2x2xf32> -> vector<2x2xf32>
    %c0_113 = arith.constant 0 : index
    %c0_114 = arith.constant 0 : index
    %168 = vector.load %arg15[%c0_113, %c0_114] : memref<1x2xf32, #tpu.memory_space<vmem>>, vector<1x2xf32>
    %169 = vector.broadcast %168 : vector<1x2xf32> to vector<2x2xf32>
    %170 = arith.addf %167, %169 : vector<2x2xf32>
    %cst_115 = arith.constant 0.000000e+00 : f32
    %171 = vector.broadcast %cst_115 : f32 to vector<2x2xf32>
    %172 = arith.subf %171, %170 : vector<2x2xf32>
    %173 = math.exp %172 : vector<2x2xf32>
    %cst_116 = arith.constant 1.000000e+00 : f32
    %174 = vector.broadcast %cst_116 : f32 to vector<2x2xf32>
    %175 = arith.addf %174, %173 : vector<2x2xf32>
    %cst_117 = arith.constant 1.000000e+00 : f32
    %176 = vector.broadcast %cst_117 : f32 to vector<2x2xf32>
    %177 = arith.divf %176, %175 : vector<2x2xf32>
    %c0_118 = arith.constant 0 : index
    %c0_119 = arith.constant 0 : index
    %c0_120 = arith.constant 0 : index
    %178 = vector.load %arg16[%c0_118, %c0_119, %c0_120] : memref<1x2x2xf32, #tpu.memory_space<vmem>>, vector<1x2x2xf32>
    %179 = vector.shape_cast %178 : vector<1x2x2xf32> to vector<2x2xf32>
    %180 = vector.shape_cast %177 : vector<2x2xf32> to vector<1x2x2xf32>
    tpu.vector_store %arg16[%c0_118, %c0_119, %c0_120], %180 {strides = array<i32>} : memref<1x2x2xf32, #tpu.memory_space<vmem>>, vector<1x2x2xf32>,
    return
  }
  func.func @transform_0(%arg0: i32) -> (i32, i32, i32) {
    %c0_i32 = arith.constant 0 : i32
    %c0_i32_0 = arith.constant 0 : i32
    %c0_i32_1 = arith.constant 0 : i32
    return %arg0, %c0_i32, %c0_i32_0 : i32, i32, i32
  }
  func.func @transform_1(%arg0: i32) -> (i32, i32, i32) {
    %c0_i32 = arith.constant 0 : i32
    %c0_i32_0 = arith.constant 0 : i32
    %c0_i32_1 = arith.constant 0 : i32
    %c0_i32_2 = arith.constant 0 : i32
    return %c0_i32, %c0_i32_0, %c0_i32_1 : i32, i32, i32
  }
  func.func @transform_2(%arg0: i32) -> (i32, i32) {
    %c0_i32 = arith.constant 0 : i32
    %c0_i32_0 = arith.constant 0 : i32
    %c0_i32_1 = arith.constant 0 : i32
    return %c0_i32, %c0_i32_0 : i32, i32
  }
  func.func @transform_3(%arg0: i32) -> (i32, i32, i32) {
    %c0_i32 = arith.constant 0 : i32
    %c0_i32_0 = arith.constant 0 : i32
    %c0_i32_1 = arith.constant 0 : i32
    %c0_i32_2 = arith.constant 0 : i32
    return %c0_i32, %c0_i32_0, %c0_i32_1 : i32, i32, i32
  }
  func.func @transform_4(%arg0: i32) -> (i32, i32) {
    %c0_i32 = arith.constant 0 : i32
    %c0_i32_0 = arith.constant 0 : i32
    %c0_i32_1 = arith.constant 0 : i32
    return %c0_i32, %c0_i32_0 : i32, i32
  }
  func.func @transform_5(%arg0: i32) -> (i32, i32, i32) {
    %c0_i32 = arith.constant 0 : i32
    %c0_i32_0 = arith.constant 0 : i32
    %c0_i32_1 = arith.constant 0 : i32
    %c0_i32_2 = arith.constant 0 : i32
    return %c0_i32, %c0_i32_0, %c0_i32_1 : i32, i32, i32
  }
  func.func @transform_6(%arg0: i32) -> (i32, i32, i32) {
    %c0_i32 = arith.constant 0 : i32
    %c0_i32_0 = arith.constant 0 : i32
    %c0_i32_1 = arith.constant 0 : i32
    %c0_i32_2 = arith.constant 0 : i32
    return %c0_i32, %c0_i32_0, %c0_i32_1 : i32, i32, i32
  }
  func.func @transform_7(%arg0: i32) -> (i32, i32) {
    %c0_i32 = arith.constant 0 : i32
    %c0_i32_0 = arith.constant 0 : i32
    %c0_i32_1 = arith.constant 0 : i32
    return %c0_i32, %c0_i32_0 : i32, i32
  }
  func.func @transform_8(%arg0: i32) -> (i32, i32) {
    %c0_i32 = arith.constant 0 : i32
    %c0_i32_0 = arith.constant 0 : i32
    %c0_i32_1 = arith.constant 0 : i32
    return %c0_i32, %c0_i32_0 : i32, i32
  }
  func.func @transform_9(%arg0: i32) -> (i32, i32) {
    %c0_i32 = arith.constant 0 : i32
    %c0_i32_0 = arith.constant 0 : i32
    %c0_i32_1 = arith.constant 0 : i32
    return %c0_i32, %c0_i32_0 : i32, i32
  }
  func.func @transform_10(%arg0: i32) -> (i32, i32) {
    %c0_i32 = arith.constant 0 : i32
    %c0_i32_0 = arith.constant 0 : i32
    %c0_i32_1 = arith.constant 0 : i32
    return %c0_i32, %c0_i32_0 : i32, i32
  }
  func.func @transform_11(%arg0: i32) -> (i32, i32) {
    %c0_i32 = arith.constant 0 : i32
    %c0_i32_0 = arith.constant 0 : i32
    %c0_i32_1 = arith.constant 0 : i32
    return %c0_i32, %c0_i32_0 : i32, i32
  }
  func.func @transform_12(%arg0: i32) -> (i32, i32) {
    %c0_i32 = arith.constant 0 : i32
    %c0_i32_0 = arith.constant 0 : i32
    %c0_i32_1 = arith.constant 0 : i32
    return %c0_i32, %c0_i32_0 : i32, i32
  }
  func.func @transform_13(%arg0: i32) -> (i32, i32) {
    %c0_i32 = arith.constant 0 : i32
    %c0_i32_0 = arith.constant 0 : i32
    %c0_i32_1 = arith.constant 0 : i32
    return %c0_i32, %c0_i32_0 : i32, i32
  }
  func.func @transform_14(%arg0: i32) -> (i32, i32) {
    %c0_i32 = arith.constant 0 : i32
    %c0_i32_0 = arith.constant 0 : i32
    %c0_i32_1 = arith.constant 0 : i32
    return %c0_i32, %c0_i32_0 : i32, i32
  }
  func.func @transform_15(%arg0: i32) -> (i32, i32, i32) {
    %c0_i32 = arith.constant 0 : i32
    %c0_i32_0 = arith.constant 0 : i32
    %c0_i32_1 = arith.constant 0 : i32
    return %arg0, %c0_i32, %c0_i32_0 : i32, i32, i32
  }
}

</mosaic_0001>

<bundles_post_ra>
// kernel: lenet_forward.1
= control target key start
LH: loop header
LB: loop body
LE: loop exit
PB: predicated region body
PF: predicated region fallthrough
CT: control target
= control target key end

     0   :  { %20 = vsyncpa [#allocation3], 0  ;;  %s7400_s0 = inlined_call_operand.vmem [shape: f32[2,36,128], index: 0, kind: input, shape index: {}]   ;;  %s7401_s1 = inlined_call_operand.hbm [shape: f32[3,128,256], index: 1, kind: input, shape index: {}]   ;;  %s7402_s2 = inlined_call_operand.hbm [shape: f32[1,256], index: 2, kind: input, shape index: {}]   ;;  %s7403_s3 = inlined_call_operand.hbm [shape: f32[5,128,256], index: 3, kind: input, shape index: {}]   ;;  %s7404_s4 = inlined_call_operand.hbm [shape: f32[1,256], index: 4, kind: input, shape index: {}]   ;;  %s7405_s5 = inlined_call_operand.vmem [shape: f32[2,17,34], index: 5, kind: input, shape index: {}]   ;;  %s7406_s6 = inlined_call_operand.vmem [shape: f32[2,6,13], index: 6, kind: input, shape index: {}]   ;;  %s7407_s7 = inlined_call_operand.hbm [shape: f32[768,1024], index: 7, kind: input, shape index: {}]   ;;  %s7408_s8 = inlined_call_operand.hbm [shape: f32[1,1024], index: 8, kind: input, shape index: {}]   ;;  %s7409_s9 = inlined_call_operand.vmem [shape: f32[1024,168], index: 9, kind: input, shape index: {}]   ;;  %s7410_s10 = inlined_call_operand.hbm [shape: f32[1,168], index: 10, kind: input, shape index: {}]   ;;  %s7411_s11 = inlined_call_operand.hbm [shape: f32[168,168], index: 11, kind: input, shape index: {}]   ;;  %s7412_s12 = inlined_call_operand.hbm [shape: f32[1,168], index: 12, kind: input, shape index: {}]   ;;  %s7413_s13 = inlined_call_operand.vmem [shape: f32[168,2], index: 13, kind: input, shape index: {}]   ;;  %s7414_s14 = inlined_call_operand.hbm [shape: f32[1,2], index: 14, kind: input, shape index: {}]   ;;  %s7415_s15 = inlined_call_operand.vmem [shape: f32[1,2,2], index: 15, kind: output, shape index: {}]  }
   0x1   :  { %21 = vsyncpa [#allocation5], 0 }
   0x2   :  { %22 = vsyncpa [#allocation8], 0 }
   0x3   :  { %23 = vsyncpa [#allocation11], 0 }
   0x4   :  { %24 = vsyncpa [#allocation14], 0 }
   0x5   :  { %25 = vsyncpa [#allocation17], 0  ;;  %s5886_s18 = smov [#allocation4]   ;;  %s5887_s20 = smov [#allocation7]  }
   0x6   :  { %s46_s19 = sshll.u32 %s5886_s18, 4  ;;  %s68_s21 = sshll.u32 %s5887_s20, 4  ;;  %s47_s19 = int_to_ptr.vmem [resolvable:$true] %s46_s19  ;;  %s69_s21 = int_to_ptr.vmem [resolvable:$true] %s68_s21 }
   0x7   :  { %s5682_s22 = scalar_lea.vmem %s47_s19, 32  ;;  %p5687_p1 = scmp.lt.s32.totalorder %s47_s19, %s47_s19 }
   0x8   :  { %p5683_p0 = scmp.ne.s32.totalorder %s47_s19, %s5682_s22  ;;  %p5688_p2 = scmp.lt.s32.totalorder %s5682_s22, %s5682_s22 }
   0xa   :  { %p5689_p3 = por %p5688_p2, %p5687_p1 }
   0xc   :  { %p5690_p4 = pnand %p5689_p3, %p5683_p0 }
   0xe   :  { %5693 = shalt.err (!%p5690_p4)
}
   0xf   :  { %49 = dma.hbm_to_vmem [thread:$0]  %s7402_s2, 32, %s47_s19, [#allocation5]  }
  0x10   :  { %s5702_s25 = scalar_lea.vmem %s69_s21, 32  ;;  %p5707_p6 = scmp.lt.s32.totalorder %s69_s21, %s69_s21 }
  0x11   :  { %p5703_p5 = scmp.ne.s32.totalorder %s69_s21, %s5702_s25  ;;  %p5708_p7 = scmp.lt.s32.totalorder %s5702_s25, %s5702_s25 }
  0x13   :  { %p5709_p8 = por %p5708_p7, %p5707_p6 }
  0x15   :  { %p5710_p9 = pnand %p5709_p8, %p5703_p5 }
  0x17   :  { %5713 = shalt.err (!%p5710_p9)
}
  0x18   :  { %71 = dma.hbm_to_vmem [thread:$0]  %s7404_s4, 32, %s69_s21, [#allocation8]  }
  0x19   :  { %s5888_s28 = smov [#allocation10]  }
  0x1a   :  { %s94_s29 = sshll.u32 %s5888_s28, 4  ;;  %s95_s29 = int_to_ptr.vmem [resolvable:$true] %s94_s29 }
  0x1b   :  { %s5722_s30 = scalar_lea.vmem %s95_s29, 128  ;;  %p5727_p11 = scmp.lt.s32.totalorder %s95_s29, %s95_s29 }
  0x1c   :  { %p5723_p10 = scmp.ne.s32.totalorder %s95_s29, %s5722_s30  ;;  %p5728_p12 = scmp.lt.s32.totalorder %s5722_s30, %s5722_s30 }
  0x1e   :  { %p5729_p13 = por %p5728_p12, %p5727_p11 }
  0x20   :  { %p5730_p0 = pnand %p5729_p13, %p5723_p10 }
  0x22   :  { %5733 = shalt.err (!%p5730_p0)
}
  0x23   :  { %97 = dma.hbm_to_vmem [thread:$0]  %s7408_s8, 128, %s95_s29, [#allocation11]  }
  0x24   :  { %s5889_s17 = smov [#allocation13]   ;;  %s5890_s19 = smov [#allocation2]  }
  0x25   :  { %s115_s18 = sshll.u32 %s5889_s17, 4  ;;  %s33_s20 = sshll.u32 %s5890_s19, 4  ;;  %s116_s18 = int_to_ptr.vmem [resolvable:$true] %s115_s18  ;;  %s34_s20 = int_to_ptr.vmem [resolvable:$true] %s33_s20 }
  0x26   :  { %s5742_s4 = scalar_lea.vmem %s116_s18, 5376  ;;  %p5747_p2 = scmp.lt.s32.totalorder %s116_s18, %s116_s18 }
  0x27   :  { %p5743_p1 = scmp.ne.s32.totalorder %s116_s18, %s5742_s4  ;;  %p5748_p3 = scmp.lt.s32.totalorder %s5742_s4, %s5742_s4 }
  0x29   :  { %p5749_p4 = por %p5748_p3, %p5747_p2 }
  0x2b   :  { %p5750_p5 = pnand %p5749_p4, %p5743_p1 }
  0x2d   :  { %5753 = shalt.err (!%p5750_p5)
}
  0x2e   :  { %s5891_s21 = smov 256   ;;  %s5892_s22 = smov 16  }
  0x2f   :  { %121 = dma.hbm_to_vmem [thread:$0]  %s7411_s11, 5376, %s116_s18, [#allocation14], %s5891_s21, %s5891_s21, %s5892_s22  }
  0x30   :  { %s5762_s8 = scalar_lea.vmem %s34_s20, 12288  ;;  %p5767_p7 = scmp.lt.s32.totalorder %s34_s20, %s34_s20 }
  0x31   :  { %p5763_p6 = scmp.ne.s32.totalorder %s34_s20, %s5762_s8  ;;  %p5768_p8 = scmp.lt.s32.totalorder %s5762_s8, %s5762_s8 }
  0x33   :  { %p5769_p9 = por %p5768_p8, %p5767_p7 }
  0x35   :  { %p5770_p10 = pnand %p5769_p9, %p5763_p6 }
  0x37   :  { %5773 = shalt.err (!%p5770_p10)
}
  0x38   :  { %39 = dma.hbm_to_vmem [thread:$0]  %s7401_s1, 12288, %s34_s20, [#allocation3], %s5891_s21, %s5891_s21, %s5892_s22  }
  0x39   :  { %s5893_s27 = smov [#allocation6]   ;;  %s5894_s29 = smov [#allocation9]  }
  0x3a   :  { %s55_s28 = sshll.u32 %s5893_s27, 4  ;;  %s81_s30 = sshll.u32 %s5894_s29, 4  ;;  %s56_s28 = int_to_ptr.vmem [resolvable:$true] %s55_s28  ;;  %s82_s30 = int_to_ptr.vmem [resolvable:$true] %s81_s30 }
  0x3b   :  { %s5782_s2 = scalar_lea.vmem %s56_s28, 20480  ;;  %p5787_p12 = scmp.lt.s32.totalorder %s56_s28, %s56_s28 }
  0x3c   :  { %p5783_p11 = scmp.ne.s32.totalorder %s56_s28, %s5782_s2  ;;  %p5788_p13 = scmp.lt.s32.totalorder %s5782_s2, %s5782_s2 }
  0x3e   :  { %p5789_p0 = por %p5788_p13, %p5787_p12 }
  0x40   :  { %p5790_p1 = pnand %p5789_p0, %p5783_p11 }
  0x42   :  { %5793 = shalt.err (!%p5790_p1)
}
  0x43   :  { %61 = dma.hbm_to_vmem [thread:$0]  %s7403_s3, 20480, %s56_s28, [#allocation5], %s5891_s21, %s5891_s21, %s5892_s22  }
  0x44   :  { %s5802_s17 = scalar_lea.vmem %s82_s30, 98304  ;;  %p5807_p3 = scmp.lt.s32.totalorder %s82_s30, %s82_s30 }
  0x45   :  { %p5803_p2 = scmp.ne.s32.totalorder %s82_s30, %s5802_s17  ;;  %p5808_p4 = scmp.lt.s32.totalorder %s5802_s17, %s5802_s17 }
  0x47   :  { %p5809_p5 = por %p5808_p4, %p5807_p3 }
  0x49   :  { %p5810_p6 = pnand %p5809_p5, %p5803_p2 }
  0x4b   :  { %5813 = shalt.err (!%p5810_p6)
}
  0x4c   :  { %s5895_s1 = smov 1024   ;;  %s5896_s18 = smov 64  }
  0x4d   :  { %87 = dma.hbm_to_vmem [thread:$0]  %s7407_s7, 98304, %s82_s30, [#allocation8], %s5895_s1, %s5895_s1, %s5896_s18  }
  0x4e   :  { %s5897_s4 = smov [#allocation12]   ;;  %s5898_s24 = smov [#allocation15]  }
  0x4f   :  { %s106_s23 = sshll.u32 %s5897_s4, 4  ;;  %s128_s8 = sshll.u32 %s5898_s24, 4  ;;  %s107_s23 = int_to_ptr.vmem [resolvable:$true] %s106_s23  ;;  %s129_s8 = int_to_ptr.vmem [resolvable:$true] %s128_s8 }
  0x50   :  { %s5822_s3 = scalar_lea.vmem %s107_s23, 32  ;;  %p5827_p8 = scmp.lt.s32.totalorder %s107_s23, %s107_s23 }
  0x51   :  { %p5823_p7 = scmp.ne.s32.totalorder %s107_s23, %s5822_s3  ;;  %p5828_p9 = scmp.lt.s32.totalorder %s5822_s3, %s5822_s3 }
  0x53   :  { %p5829_p10 = por %p5828_p9, %p5827_p8 }
  0x55   :  { %p5830_p11 = pnand %p5829_p10, %p5823_p7 }
  0x57   :  { %5833 = shalt.err (!%p5830_p11)
}
  0x58   :  { %109 = dma.hbm_to_vmem [thread:$0]  %s7410_s10, 32, %s107_s23, [#allocation11]  }
  0x59   :  { %s5842_s25 = scalar_lea.vmem %s129_s8, 32  ;;  %p5847_p13 = scmp.lt.s32.totalorder %s129_s8, %s129_s8 }
  0x5a   :  { %p5843_p12 = scmp.ne.s32.totalorder %s129_s8, %s5842_s25  ;;  %p5848_p0 = scmp.lt.s32.totalorder %s5842_s25, %s5842_s25 }
  0x5c   :  { %p5849_p1 = por %p5848_p0, %p5847_p13 }
  0x5e   :  { %p5850_p2 = pnand %p5849_p1, %p5843_p12 }
  0x60   :  { %5853 = shalt.err (!%p5850_p2)
}
  0x61   :  { %131 = dma.hbm_to_vmem [thread:$0]  %s7412_s12, 32, %s129_s8, [#allocation14]  }
  0x62   :  { %s5899_s27 = smov [#allocation16]  }
  0x63   :  { %s140_s28 = sshll.u32 %s5899_s27, 4  ;;  %s141_s28 = int_to_ptr.vmem [resolvable:$true] %s140_s28 }
  0x64   :  { %s5862_s29 = scalar_lea.vmem %s141_s28, 16  ;;  %s5866_s30 = scalar_lea.vmem %s141_s28, 32 }
  0x65   :  { %p5863_p3 = scmp.ne.s32.totalorder %s141_s28, %s5862_s29  ;;  %p5867_p4 = scmp.lt.s32.totalorder %s141_s28, %s141_s28 }
  0x66   :  { %p5868_p5 = scmp.lt.s32.totalorder %s5866_s30, %s5862_s29 }
  0x68   :  { %p5869_p6 = por %p5868_p5, %p5867_p4 }
  0x6a   :  { %p5870_p7 = pnand %p5869_p6, %p5863_p3 }
  0x6c   :  { %5873 = shalt.err (!%p5870_p7)
}
  0x6d   :  { %143 = dma.hbm_to_vmem [thread:$0]  %s7414_s14, 16, %s141_s28, [#allocation17]  }
  0x6e   :  { %5874 = dma.done.wait [#allocation3], 12288  }
  0x6f   :  { %5875 = vsyncadd [#allocation3], 4294955008 }
  0x70   :  { %5876 = dma.done.wait [#allocation5], 20512  }
  0x71   :  { %5877 = vsyncadd [#allocation5], 4294946784 }
  0x72   :  { %5878 = dma.done.wait [#allocation8], 98336  }
  0x73   :  { %5879 = vsyncadd [#allocation8], 4294868960 }
  0x74   :  { %5880 = dma.done.wait [#allocation11], 160  }
  0x75   :  { %5881 = vsyncadd [#allocation11], 4294967136 }
  0x76   :  { %5882 = dma.done.wait [#allocation14], 5408  }
  0x77   :  { %5883 = vsyncadd [#allocation14], 4294961888 }
  0x78   :  { %5884 = dma.done.wait [#allocation17], 16  }
  0x79   :  { %5885 = vsyncadd [#allocation17], 4294967280  ;;  %v5900_v0 = vmov 0.0   ;;  %v255_v1 = vld [vmem:[#allocation2 + $0x1f8] sm:$0xff]  ;;  %v254_v3 = vld [vmem:[#allocation2 + $0x1f0] sm:$0xff]  ;;  %vm261_vm0 = vcmask 1046528  }
  0x7a   :  { %340 = vmatprep.mubr.f32.mxu0 %v5900_v0  ;;  %435 = vmatprep.mubr.f32.mxu1 %v5900_v0  ;;  %v222_v2 = vld [vmem:[#allocation2 + $0xf8] sm:$0xff]  ;;  %v221_v4 = vld [vmem:[#allocation2 + $0xf0] sm:$0xff]  ;;  %v253_v5 = vld [vmem:[#allocation2 + $0x1e8] sm:$0xff]  ;;  %vm499_vm1 = vcmask 1045504   ;;  %vm5901_vm2 = vmmov 0   ;;  %vm665_vm3 = vcmask 1041408  }
  0x7b   :  { %276 = vmatprep.subr.mxu0 %v255_v1  ;;  %371 = vmatprep.subr.mxu1 %v222_v2  ;;  %v220_v6 = vld [vmem:[#allocation2 + $0xe8] sm:$0xff]  ;;  %v252_v7 = vld [vmem:[#allocation2 + $0x1e0] sm:$0xff]  ;;  %v251_v9 = vld [vmem:[#allocation2 + $0x1d8] sm:$0xff]  ;;  %vm655_vm4 = vcmask 277504   ;;  %vm1340_vm5 = vcmask 1043456   ;;  %vm1219_vm6 = vcmask 1044480  }
  0x7c   :  { %277 = vmatpush1.msra.mxu0 %v254_v3  ;;  %372 = vmatpush1.msra.mxu1 %v221_v4  ;;  %v219_v8 = vld [vmem:[#allocation2 + $0xe0] sm:$0xff]  ;;  %v218_v10 = vld [vmem:[#allocation2 + $0xd8] sm:$0xff]  ;;  %v250_v11 = vld [vmem:[#allocation2 + $0x1d0] sm:$0xff]  ;;  %vm1450_vm7 = vcmask 105472   ;;  %vm2731_vm8 = vcmask 1040384   ;;  %vm5016_vm9 = vcmask 326656  }
  0x7d   :  { %278 = vmatprep.subr.mxu0 %v253_v5  ;;  %373 = vmatprep.subr.mxu1 %v220_v6  ;;  %v217_v12 = vld [vmem:[#allocation2 + $0xd0] sm:$0xff]  ;;  %v249_v13 = vld [vmem:[#allocation2 + $0x1c8] sm:$0xff]  ;;  %v248_v15 = vld [vmem:[#allocation2 + $0x1c0] sm:$0xff]  ;;  %vm5200_vm10 = vcmask 9216  }
  0x7e   :  { %279 = vmatpush1.msra.mxu0 %v252_v7  ;;  %374 = vmatpush1.msra.mxu1 %v219_v8  ;;  %v216_v14 = vld [vmem:[#allocation2 + $0xc8] sm:$0xff]  ;;  %v215_v16 = vld [vmem:[#allocation2 + $0xc0] sm:$0xff]  ;;  %v247_v17 = vld [vmem:[#allocation2 + $0x1b8] sm:$0xff] }
  0x7f   :  { %280 = vmatprep.subr.mxu0 %v251_v9  ;;  %375 = vmatprep.subr.mxu1 %v218_v10  ;;  %v214_v18 = vld [vmem:[#allocation2 + $0xb8] sm:$0xff]  ;;  %v246_v19 = vld [vmem:[#allocation2 + $0x1b0] sm:$0xff]  ;;  %v245_v21 = vld [vmem:[#allocation2 + $0x1a8] sm:$0xff] }
  0x80   :  { %281 = vmatpush1.msra.mxu0 %v250_v11  ;;  %376 = vmatpush1.msra.mxu1 %v217_v12  ;;  %v213_v20 = vld [vmem:[#allocation2 + $0xb0] sm:$0xff]  ;;  %v212_v22 = vld [vmem:[#allocation2 + $0xa8] sm:$0xff]  ;;  %v244_v23 = vld [vmem:[#allocation2 + $0x1a0] sm:$0xff] }
  0x81   :  { %282 = vmatprep.subr.mxu0 %v249_v13  ;;  %377 = vmatprep.subr.mxu1 %v216_v14  ;;  %v211_v24 = vld [vmem:[#allocation2 + $0xa0] sm:$0xff]  ;;  %v243_v25 = vld [vmem:[#allocation2 + $0x198] sm:$0xff]  ;;  %v242_v27 = vld [vmem:[#allocation2 + $0x190] sm:$0xff] }
  0x82   :  { %283 = vmatpush1.msra.mxu0 %v248_v15  ;;  %378 = vmatpush1.msra.mxu1 %v215_v16  ;;  %v210_v26 = vld [vmem:[#allocation2 + $0x98] sm:$0xff]  ;;  %v209_v28 = vld [vmem:[#allocation2 + $0x90] sm:$0xff]  ;;  %v241_v29 = vld [vmem:[#allocation2 + $0x188] sm:$0xff] }
  0x83   :  { %284 = vmatprep.subr.mxu0 %v247_v17  ;;  %379 = vmatprep.subr.mxu1 %v214_v18  ;;  %v208_v30 = vld [vmem:[#allocation2 + $0x88] sm:$0xff]  ;;  %v240_v31 = vld [vmem:[#allocation2 + $0x180] sm:$0xff]  ;;  %v239_v33 = vld [vmem:[#allocation2 + $0x178] sm:$0xff] }
  0x84   :  { %285 = vmatpush1.msra.mxu0 %v246_v19  ;;  %380 = vmatpush1.msra.mxu1 %v213_v20  ;;  %v207_v32 = vld [vmem:[#allocation2 + $0x80] sm:$0xff]  ;;  %v206_v34 = vld [vmem:[#allocation2 + $0x78] sm:$0xff]  ;;  %v238_v35 = vld [vmem:[#allocation2 + $0x170] sm:$0xff] }
  0x85   :  { %286 = vmatprep.subr.mxu0 %v245_v21  ;;  %381 = vmatprep.subr.mxu1 %v212_v22  ;;  %v205_v36 = vld [vmem:[#allocation2 + $0x70] sm:$0xff]  ;;  %v237_v37 = vld [vmem:[#allocation2 + $0x168] sm:$0xff]  ;;  %v236_v39 = vld [vmem:[#allocation2 + $0x160] sm:$0xff] }
  0x86   :  { %287 = vmatpush1.msra.mxu0 %v244_v23  ;;  %382 = vmatpush1.msra.mxu1 %v211_v24  ;;  %v204_v38 = vld [vmem:[#allocation2 + $0x68] sm:$0xff]  ;;  %v203_v40 = vld [vmem:[#allocation2 + $0x60] sm:$0xff]  ;;  %v235_v41 = vld [vmem:[#allocation2 + $0x158] sm:$0xff] }
  0x87   :  { %288 = vmatprep.subr.mxu0 %v243_v25  ;;  %383 = vmatprep.subr.mxu1 %v210_v26  ;;  %v202_v42 = vld [vmem:[#allocation2 + $0x58] sm:$0xff]  ;;  %v234_v43 = vld [vmem:[#allocation2 + $0x150] sm:$0xff]  ;;  %v233_v45 = vld [vmem:[#allocation2 + $0x148] sm:$0xff] }
  0x88   :  { %289 = vmatpush1.msra.mxu0 %v242_v27  ;;  %384 = vmatpush1.msra.mxu1 %v209_v28  ;;  %v201_v44 = vld [vmem:[#allocation2 + $0x50] sm:$0xff]  ;;  %v200_v46 = vld [vmem:[#allocation2 + $0x48] sm:$0xff]  ;;  %v232_v47 = vld [vmem:[#allocation2 + $0x140] sm:$0xff] }
  0x89   :  { %290 = vmatprep.subr.mxu0 %v241_v29  ;;  %385 = vmatprep.subr.mxu1 %v208_v30  ;;  %v199_v48 = vld [vmem:[#allocation2 + $0x40] sm:$0xff]  ;;  %v231_v49 = vld [vmem:[#allocation2 + $0x138] sm:$0xff]  ;;  %v230_v51 = vld [vmem:[#allocation2 + $0x130] sm:$0xff] }
  0x8a   :  { %291 = vmatpush1.msra.mxu0 %v240_v31  ;;  %386 = vmatpush1.msra.mxu1 %v207_v32  ;;  %v198_v50 = vld [vmem:[#allocation2 + $0x38] sm:$0xff]  ;;  %v197_v52 = vld [vmem:[#allocation2 + $0x30] sm:$0xff]  ;;  %v6017_v53 = vld [vmem:[%s7400_s0] sm:$0xff] }
  0x8b   :  { %292 = vmatprep.subr.mxu0 %v239_v33  ;;  %387 = vmatprep.subr.mxu1 %v206_v34  ;;  %v6022_v54 = vld [vmem:[%s7400_s0 + $0x8] sm:$0xff]  ;;  %v228_v57 = vld [vmem:[#allocation2 + $0x120] sm:$0xff]  ;;  %v227_v59 = vld [vmem:[#allocation2 + $0x118] sm:$0xff]  ;;  %v262_v61 = vrot.slane %v6017_v53, 1 }
  0x8c   :  { %293 = vmatpush1.msra.mxu0 %v238_v35  ;;  %388 = vmatpush1.msra.mxu1 %v205_v36  ;;  %v229_v55 = vld [vmem:[#allocation2 + $0x128] sm:$0xff]  ;;  %v195_v58 = vld [vmem:[#allocation2 + $0x20] sm:$0xff]  ;;  %v194_v60 = vld [vmem:[#allocation2 + $0x18] sm:$0xff]  ;;  %v263_v62 = vrot.slane %v6022_v54, 1 }
  0x8d   :  { %294 = vmatprep.subr.mxu0 %v237_v37  ;;  %389 = vmatprep.subr.mxu1 %v204_v38  ;;  %v196_v56 = vld [vmem:[#allocation2 + $0x28] sm:$0xff]  ;;  %v226_v63 = vld [vmem:[#allocation2 + $0x110] sm:$0xff]  ;;  %v224_v5 = vld [vmem:[#allocation2 + $0x100] sm:$0xff] }
  0x8e   :  { %295 = vmatpush1.msra.mxu0 %v236_v39  ;;  %390 = vmatpush1.msra.mxu1 %v203_v40  ;;  %v193_v1 = vld [vmem:[#allocation2 + $0x10] sm:$0xff]  ;;  %v225_v2 = vld [vmem:[#allocation2 + $0x108] sm:$0xff]  ;;  %v191_v6 = vld [vmem:[#allocation2] sm:$0xff]  ;;  %v264_v7 = vsel %vm261_vm0, %v262_v61, %v263_v62 }
  0x8f   :  { %296 = vmatprep.subr.mxu0 %v235_v41  ;;  %391 = vmatprep.subr.mxu1 %v202_v42  ;;  %v192_v3 = vld [vmem:[#allocation2 + $0x8] sm:$0xff]  ;;  %v6029_v4 = vld [vmem:[%s7400_s0 + $0x10] sm:$0xff]  ;;  %v498_v8 = vld [vmem:[#allocation2 + $0x2f8] sm:$0xff] }
  0x90   :  { %297 = vmatpush1.msra.mxu0 %v234_v43  ;;  %392 = vmatpush1.msra.mxu1 %v201_v44  ;;  %v265_v9 = vrot.slane %v6029_v4, 1  ;;  %v497_v10 = vld [vmem:[#allocation2 + $0x2f0] sm:$0xff]  ;;  %v6036_v11 = vld [vmem:[%s7400_s0 + $0x18] sm:$0xff]  ;;  %v496_v12 = vld [vmem:[#allocation2 + $0x2e8] sm:$0xff] }
  0x91   :  { %298 = vmatprep.subr.mxu0 %v233_v45  ;;  %393 = vmatprep.subr.mxu1 %v200_v46  ;;  %v495_v13 = vld [vmem:[#allocation2 + $0x2e0] sm:$0xff]  ;;  %v494_v14 = vld [vmem:[#allocation2 + $0x2d8] sm:$0xff]  ;;  %v267_v16 = vrot.slane %v6036_v11, 1  ;;  %v493_v17 = vld [vmem:[#allocation2 + $0x2d0] sm:$0xff]  ;;  %v500_v45 = vrot.slane %v6017_v53, 2  ;;  %v501_v46 = vrot.slane %v6022_v54, 2 }
  0x92   :  { %299 = vmatpush1.msra.mxu0 %v232_v47  ;;  %394 = vmatpush1.msra.mxu1 %v199_v48  ;;  %v266_v15 = vsel %vm261_vm0, %v263_v62, %v265_v9  ;;  %v6046_v18 = vld [vmem:[%s7400_s0 + $0x20] sm:$0xf]  ;;  %v492_v19 = vld [vmem:[#allocation2 + $0x2c8] sm:$0xff]  ;;  %v490_v21 = vld [vmem:[#allocation2 + $0x2b8] sm:$0xff] }
  0x93   :  { %300 = vmatprep.subr.mxu0 %v231_v49  ;;  %395 = vmatprep.subr.mxu1 %v198_v50  ;;  %v491_v20 = vld [vmem:[#allocation2 + $0x2c0] sm:$0xff]  ;;  %v268_v22 = vsel %vm261_vm0, %v265_v9, %v267_v16  ;;  %v269_v23 = vrot.slane %v6046_v18, 1  ;;  %v489_v24 = vld [vmem:[#allocation2 + $0x2b0] sm:$0xff]  ;;  %v488_v25 = vld [vmem:[#allocation2 + $0x2a8] sm:$0xff]  ;;  %v502_v50 = vsel %vm499_vm1, %v500_v45, %v501_v46 }
  0x94   :  { %301 = vmatpush1.msra.mxu0 %v230_v51  ;;  %396 = vmatpush1.msra.mxu1 %v197_v52  ;;  %v487_v26 = vld [vmem:[#allocation2 + $0x2a0] sm:$0xff]  ;;  %v486_v27 = vld [vmem:[#allocation2 + $0x298] sm:$0xff]  ;;  %v485_v29 = vld [vmem:[#allocation2 + $0x290] sm:$0xff]  ;;  %v503_v51 = vrot.slane %v6029_v4, 2 }
  0x95   :  { %302 = vmatprep.subr.mxu0 %v229_v55  ;;  %397 = vmatprep.subr.mxu1 %v196_v56  ;;  %v270_v28 = vsel %vm261_vm0, %v267_v16, %v269_v23  ;;  %v484_v30 = vld [vmem:[#allocation2 + $0x288] sm:$0xff]  ;;  %v483_v31 = vld [vmem:[#allocation2 + $0x280] sm:$0xff]  ;;  %v482_v32 = vld [vmem:[#allocation2 + $0x278] sm:$0xff]  ;;  %v507_v55 = vrot.slane %v6046_v18, 2 }
  0x96   :  { %303 = vmatpush1.msra.mxu0 %v228_v57  ;;  %398 = vmatpush1.msra.mxu1 %v195_v58  ;;  %v481_v33 = vld [vmem:[#allocation2 + $0x270] sm:$0xff]  ;;  %v480_v34 = vld [vmem:[#allocation2 + $0x268] sm:$0xff]  ;;  %v479_v35 = vld [vmem:[#allocation2 + $0x260] sm:$0xff]  ;;  %v504_v52 = vsel %vm499_vm1, %v501_v46, %v503_v51 }
  0x97   :  { %304 = vmatprep.subr.mxu0 %v227_v59  ;;  %399 = vmatprep.subr.mxu1 %v194_v60  ;;  %v478_v36 = vld [vmem:[#allocation2 + $0x258] sm:$0xff]  ;;  %v477_v37 = vld [vmem:[#allocation2 + $0x250] sm:$0xff]  ;;  %v476_v38 = vld [vmem:[#allocation2 + $0x248] sm:$0xff] }
  0x98   :  { %305 = vmatpush1.msra.mxu0 %v226_v63  ;;  %400 = vmatpush1.msra.mxu1 %v193_v1  ;;  %v475_v39 = vld [vmem:[#allocation2 + $0x240] sm:$0xff]  ;;  %v474_v40 = vld [vmem:[#allocation2 + $0x238] sm:$0xff]  ;;  %v473_v41 = vld [vmem:[#allocation2 + $0x230] sm:$0xff] }
  0x99   :  { %306 = vmatprep.subr.mxu0 %v225_v2  ;;  %401 = vmatprep.subr.mxu1 %v192_v3  ;;  %v472_v42 = vld [vmem:[#allocation2 + $0x228] sm:$0xff]  ;;  %v471_v43 = vld [vmem:[#allocation2 + $0x220] sm:$0xff]  ;;  %v470_v44 = vld [vmem:[#allocation2 + $0x218] sm:$0xff] }
  0x9a   :  { %307 = vmatpush1.msra.mxu0 %v224_v5  ;;  %402 = vmatpush1.msra.mxu1 %v191_v6  ;;  %v469_v47 = vld [vmem:[#allocation2 + $0x210] sm:$0xff]  ;;  %v468_v48 = vld [vmem:[#allocation2 + $0x208] sm:$0xff]  ;;  %v467_v49 = vld [vmem:[#allocation2 + $0x200] sm:$0xff] }
  0x9b   :  { %341 = vmatmul.mubr.f32.vlgmr.msra.gmra.mxu0 %v264_v7  ;;  %436 = vmatmul.mubr.f32.vlgmr.msra.gmra.mxu1 %v6017_v53  ;;  %v505_v53 = vrot.slane %v6036_v11, 2  ;;  %v905_v57 = vld [vmem:[#allocation6 + $0x1f8] sm:$0xff]  ;;  %v904_v58 = vld [vmem:[#allocation6 + $0x1f0] sm:$0xff]  ;;  %v903_v59 = vld [vmem:[#allocation6 + $0x1e8] sm:$0xff] }
  0x9c   :  { %514 = vmatprep.subr.mxu0 %v498_v8  ;;  %346 = vmatprep.mubr.f32.mxu0 %v5900_v0  ;;  %v902_v60 = vld [vmem:[#allocation6 + $0x1e0] sm:$0xff]  ;;  %v901_v61 = vld [vmem:[#allocation6 + $0x1d8] sm:$0xff]  ;;  %v900_v62 = vld [vmem:[#allocation6 + $0x1d0] sm:$0xff] }
  0x9d   :  { %515 = vmatpush1.msra.mxu0 %v497_v10  ;;  %441 = vmatprep.mubr.f32.mxu1 %v5900_v0  ;;  %v508_v56 = vsel %vm499_vm1, %v505_v53, %v507_v55  ;;  %v899_v63 = vld [vmem:[#allocation6 + $0x1c8] sm:$0xff]  ;;  %v898_v1 = vld [vmem:[#allocation6 + $0x1c0] sm:$0xff]  ;;  %v897_v2 = vld [vmem:[#allocation6 + $0x1b8] sm:$0xff] }
  0x9e   :  { %516 = vmatprep.subr.mxu0 %v496_v12  ;;  %5297 = vmatprep.subr.mxu1 %v5900_v0  ;;  %v896_v3 = vld [vmem:[#allocation6 + $0x1b0] sm:$0xff] }
  0x9f   :  { %517 = vmatpush1.msra.mxu0 %v495_v13  ;;  %442 = vmatmul.mubr.f32.gmra.mxu1 %v6022_v54  ;;  %v506_v54 = vsel %vm499_vm1, %v503_v51, %v505_v53 }
  0xa0   :  { %518 = vmatprep.subr.mxu0 %v494_v14  ;;  %347 = vmatmul.mubr.f32.gmra.mxu0 %v266_v15 }
  0xa1   :  { %519 = vmatpush1.msra.mxu0 %v493_v17  ;;  %352 = vmatprep.mubr.f32.mxu0 %v5900_v0 }
  0xa2   :  { %520 = vmatprep.subr.mxu0 %v492_v19  ;;  %447 = vmatprep.mubr.f32.mxu1 %v5900_v0 }
  0xa3   :  { %521 = vmatpush1.msra.mxu0 %v491_v20  ;;  %448 = vmatmul.mubr.f32.gmra.mxu1 %v6029_v4  ;;  %v895_v4 = vld [vmem:[#allocation6 + $0x1a8] sm:$0xff] }
  0xa4   :  { %522 = vmatprep.subr.mxu0 %v490_v21  ;;  %353 = vmatmul.mubr.f32.gmra.mxu0 %v268_v22 }
  0xa5   :  { %523 = vmatpush1.msra.mxu0 %v489_v24  ;;  %358 = vmatprep.mubr.f32.mxu0 %v5900_v0  ;;  %v620_v24 = vlaneseq }
  0xa6   :  { %524 = vmatprep.subr.mxu0 %v488_v25  ;;  %453 = vmatprep.mubr.f32.mxu1 %v5900_v0 }
  0xa7   :  { %525 = vmatpush1.msra.mxu0 %v487_v26  ;;  %454 = vmatmul.mubr.f32.gmra.mxu1 %v6036_v11 }
  0xa8   :  { %526 = vmatprep.subr.mxu0 %v486_v27  ;;  %359 = vmatmul.mubr.f32.gmra.mxu0 %v270_v28  ;;  %v6079_v28 = vshrl.u32 %v620_v24, 7  ;;  %v174_v24 = vld [vmem:[%s7405_s5] sm:$0xff] }
  0xa9   :  { %527 = vmatpush1.msra.mxu0 %v485_v29  ;;  %364 = vmatprep.mubr.f32.mxu0 %v5900_v0 }
  0xaa   :  { %528 = vmatprep.subr.mxu0 %v484_v30  ;;  %459 = vmatprep.mubr.f32.mxu1 %v5900_v0 }
  0xab   :  { %529 = vmatpush1.msra.mxu0 %v483_v31  ;;  %460 = vmatmul.mubr.f32.gmra.mxu1 %v6046_v18 }
  0xac   :  { %530 = vmatprep.subr.mxu0 %v482_v32  ;;  %365 = vmatmul.mubr.f32.gmra.mxu0 %v269_v23  ;;  %v6082_v32 = vsub.s32 0, %v6079_v28 }
  0xad   :  { %531 = vmatpush1.msra.mxu0 %v481_v33  ;;  %578 = vmatprep.mubr.f32.mxu0 %v5900_v0  ;;  %v6085_v33 = vsub.s32 1, %v6079_v28 }
  0xae   :  { %532 = vmatprep.subr.mxu0 %v480_v34  ;;  %5307 = vmatprep.mubr.msk.f32.mxu1 %vm5901_vm2, %v5900_v0 }
  0xaf   :  { %533 = vmatpush1.msra.mxu0 %v479_v35 }
  0xb0   :  { %534 = vmatprep.subr.mxu0 %v478_v36  ;;  %v184_v36 = vld [vmem:[#allocation4] sm:$0x3] }
  0xb1   :  { %535 = vmatpush1.msra.mxu0 %v477_v37  ;;  %v6088_v45 = vrot.slane %v184_v36, %v6082_v32  ;;  %v6091_v46 = vrot.slane %v184_v36, %v6085_v33  ;;  %v868_v36 = vld [vmem:[#allocation6 + $0xd8] sm:$0xff] }
  0xb2   :  { %536 = vmatprep.subr.mxu0 %v476_v38 }
  0xb3   :  { %537 = vmatpush1.msra.mxu0 %v475_v39 }
  0xb4   :  { %538 = vmatprep.subr.mxu0 %v474_v40 }
  0xb5   :  { %539 = vmatpush1.msra.mxu0 %v473_v41 }
  0xb6   :  { %540 = vmatprep.subr.mxu0 %v472_v42 }
  0xb7   :  { %541 = vmatpush1.msra.mxu0 %v471_v43 }
  0xb8   :  { %542 = vmatprep.subr.mxu0 %v470_v44 }
  0xb9   :  { %543 = vmatpush1.msra.mxu0 %v469_v47 }
  0xba   :  { %544 = vmatprep.subr.mxu0 %v468_v48 }
  0xbb   :  { %545 = vmatpush1.msra.mxu0 %v467_v49 }
  0xbc   :  { %579 = vmatmul.mubr.f32.vlgmr.msra.gmra.mxu0 %v502_v50  ;;  %913 = vmatprep.subr.mxu0 %v905_v57 }
  0xbd   :  { %584 = vmatprep.mubr.f32.mxu0 %v5900_v0  ;;  %914 = vmatpush1.msra.mxu0 %v904_v58 }
  0xbe   :  { %915 = vmatprep.subr.mxu0 %v903_v59 }
  0xbf   :  { %916 = vmatpush1.msra.mxu0 %v902_v60 }
  0xc0   :  { %585 = vmatmul.mubr.f32.gmra.mxu0 %v504_v52  ;;  %917 = vmatprep.subr.mxu0 %v901_v61 }
  0xc1   :  { %590 = vmatprep.mubr.f32.mxu0 %v5900_v0  ;;  %918 = vmatpush1.msra.mxu0 %v900_v62 }
  0xc2   :  { %919 = vmatprep.subr.mxu0 %v899_v63 }
  0xc3   :  { %920 = vmatpush1.msra.mxu0 %v898_v1 }
  0xc4   :  { %591 = vmatmul.mubr.f32.gmra.mxu0 %v506_v54  ;;  %921 = vmatprep.subr.mxu0 %v897_v2 }
  0xc5   :  { %596 = vmatprep.mubr.f32.mxu0 %v5900_v0  ;;  %922 = vmatpush1.msra.mxu0 %v896_v3 }
  0xc6   :  { %923 = vmatprep.subr.mxu0 %v895_v4 }
  0xc8   :  { %597 = vmatmul.mubr.f32.gmra.mxu0 %v508_v56 }
  0xc9   :  { %602 = vmatprep.mubr.f32.mxu0 %v5900_v0 }
  0xcc   :  { %603 = vmatmul.mubr.f32.gmra.mxu0 %v507_v55 }
  0xcd   :  { %977 = vmatprep.mubr.f32.mxu0 %v5900_v0 }
 0x15b   :  { %v342_v5 = vpop.f32.mrf.mxu0  ;;  %v437_v10 = vpop.f32.mrf.mxu1 }
 0x15c   :  { %v438_v60 = vadd.f32 %v437_v10, %v342_v5 }
 0x15d   :  { %v344_v6 = vpop.f32.mrf.mxu0  ;;  %v439_v12 = vpop.f32.mrf.mxu1 }
 0x15e   :  { %v440_v52 = vadd.f32 %v439_v12, %v344_v6 }
 0x15f   :  { %v443_v13 = vpop.f32.mrf.mxu1 }
 0x160   :  { %v348_v7 = vpop.f32.mrf.mxu0 }
 0x161   :  { %v445_v15 = vpop.f32.mrf.mxu1  ;;  %v444_v53 = vadd.f32 %v443_v13, %v348_v7 }
 0x162   :  { %v350_v8 = vpop.f32.mrf.mxu0 }
 0x163   :  { %v449_v17 = vpop.f32.mrf.mxu1  ;;  %v446_v43 = vadd.f32 %v445_v15, %v350_v8 }
 0x164   :  { %v354_v9 = vpop.f32.mrf.mxu0 }
 0x165   :  { %v451_v19 = vpop.f32.mrf.mxu1  ;;  %v450_v44 = vadd.f32 %v449_v17, %v354_v9 }
 0x166   :  { %v356_v11 = vpop.f32.mrf.mxu0 }
 0x167   :  { %v455_v22 = vpop.f32.mrf.mxu1  ;;  %v452_v39 = vadd.f32 %v451_v19, %v356_v11 }
 0x168   :  { %v360_v14 = vpop.f32.mrf.mxu0 }
 0x169   :  { %v457_v26 = vpop.f32.mrf.mxu1  ;;  %v456_v40 = vadd.f32 %v455_v22, %v360_v14 }
 0x16a   :  { %v362_v16 = vpop.f32.mrf.mxu0 }
 0x16b   :  { %v461_v30 = vpop.f32.mrf.mxu1  ;;  %v458_v35 = vadd.f32 %v457_v26, %v362_v16  ;;  %v176_v26 = vld [vmem:[%s7405_s5 + $0x10] sm:$0x1] }
 0x16c   :  { %v366_v18 = vpop.f32.mrf.mxu0 }
 0x16d   :  { %v463_v37 = vpop.f32.mrf.mxu1  ;;  %v462_v41 = vadd.f32 %v461_v30, %v366_v18  ;;  %v871_v30 = vld [vmem:[#allocation6 + $0xf0] sm:$0xff] }
 0x16e   :  { %v368_v20 = vpop.f32.mrf.mxu0 }
 0x16f   :  { %v464_v48 = vadd.f32 %v463_v37, %v368_v20  ;;  %v867_v37 = vld [vmem:[#allocation6 + $0xd0] sm:$0xff] }
 0x17c   :  { %v580_v21 = vpop.f32.mrf.mxu0 }
 0x17d   :  { %v609_v3 = vadd.f32 %v580_v21, %v438_v60  ;;  %v851_v60 = vld [vmem:[#allocation6 + $0x50] sm:$0xff] }
 0x17e   :  { %v582_v23 = vpop.f32.mrf.mxu0 }
 0x17f   :  { %v610_v61 = vadd.f32 %v582_v23, %v440_v52  ;;  %v630_v14 = vadd.f32 %v6088_v45, %v609_v3  ;;  %v855_v52 = vld [vmem:[#allocation6 + $0x70] sm:$0xff]  ;;  %v848_v3 = vld [vmem:[#allocation6 + $0x38] sm:$0xff] }
 0x180   :  { %v586_v25 = vpop.f32.mrf.mxu0 }
 0x181   :  { %v611_v62 = vadd.f32 %v586_v25, %v444_v53  ;;  %v631_v11 = vadd.f32 %v6091_v46, %v610_v61  ;;  %v640_v21 = vmax.f32 %v630_v14, 0.0  ;;  %v175_v25 = vld [vmem:[%s7405_s5 + $0x8] sm:$0xff] }
 0x182   :  { %v588_v27 = vpop.f32.mrf.mxu0  ;;  %v894_v53 = vld [vmem:[#allocation6 + $0x1a0] sm:$0xff] }
 0x183   :  { %v612_v54 = vadd.f32 %v588_v27, %v446_v43  ;;  %v632_v5 = vadd.f32 %v6088_v45, %v611_v62  ;;  %v641_v18 = vmax.f32 %v631_v11, 0.0  ;;  %v872_v27 = vld [vmem:[#allocation6 + $0xf8] sm:$0xff]  ;;  %v862_v43 = vld [vmem:[#allocation6 + $0xa8] sm:$0xff]  ;;  %924 = vmatpush1.msra.mxu0 %v894_v53  ;;  %v890_v61 = vld [vmem:[#allocation6 + $0x180] sm:$0xff] }
 0x184   :  { %v592_v29 = vpop.f32.mrf.mxu0  ;;  %v850_v62 = vld [vmem:[#allocation6 + $0x48] sm:$0xff]  ;;  %v845_v11 = vld [vmem:[#allocation6 + $0x20] sm:$0xff] }
 0x185   :  { %v613_v56 = vadd.f32 %v592_v29, %v450_v44  ;;  %v633_v4 = vadd.f32 %v6091_v46, %v612_v54  ;;  %v642_v19 = vmax.f32 %v632_v5, 0.0  ;;  %v650_v23 = vmax.f32 %v640_v21, %v641_v18  ;;  %v5212_v29 = vld [vmem:[%s7405_s5 + $0x18] sm:$0xff]  ;;  %v861_v44 = vld [vmem:[#allocation6 + $0xa0] sm:$0xff]  ;;  %v854_v54 = vld [vmem:[#allocation6 + $0x68] sm:$0xff] }
 0x186   :  { %v594_v31 = vpop.f32.mrf.mxu0  ;;  %v6152_v5 = vld [vmem:[#allocation6 + $0x150] sm:$0xff]  ;;  %v6158_v14 = vld [vmem:[#allocation6 + $0x140] sm:$0xff] }
 0x187   :  { %v614_v49 = vadd.f32 %v594_v31, %v452_v39  ;;  %v634_v6 = vadd.f32 %v6088_v45, %v613_v56  ;;  %v643_v15 = vmax.f32 %v633_v4, 0.0  ;;  %v870_v31 = vld [vmem:[#allocation6 + $0xe8] sm:$0xff]  ;;  %v865_v39 = vld [vmem:[#allocation6 + $0xc0] sm:$0xff]  ;;  %v6164_v18 = vld [vmem:[#allocation6 + $0x130] sm:$0xff] }
 0x188   :  { %v598_v34 = vpop.f32.mrf.mxu0  ;;  %v853_v56 = vld [vmem:[#allocation6 + $0x60] sm:$0xff]  ;;  %v887_v4 = vld [vmem:[#allocation6 + $0x168] sm:$0xff] }
 0x189   :  { %v615_v50 = vadd.f32 %v598_v34, %v456_v40  ;;  %v635_v63 = vadd.f32 %v6091_v46, %v614_v49  ;;  %v644_v16 = vmax.f32 %v634_v6, 0.0  ;;  %v651_v22 = vmax.f32 %v642_v19, %v643_v15  ;;  %v869_v34 = vld [vmem:[#allocation6 + $0xe0] sm:$0xff]  ;;  %v858_v49 = vld [vmem:[#allocation6 + $0x88] sm:$0xff]  ;;  %v847_v6 = vld [vmem:[#allocation6 + $0x30] sm:$0xff] }
 0x18a   :  { %v600_v38 = vpop.f32.mrf.mxu0  ;;  %v5214_v40 = vld [vmem:[%s7405_s5 + $0x28] sm:$0x1]  ;;  %v842_v15 = vld [vmem:[#allocation6 + $0x8] sm:$0xff]  ;;  %v1218_v19 = vld [vmem:[#allocation6 + $0x3f8] sm:$0xff] }
 0x18b   :  { %v616_v42 = vadd.f32 %v600_v38, %v458_v35  ;;  %v636_v1 = vadd.f32 %v6088_v45, %v615_v50  ;;  %v645_v10 = vmax.f32 %v635_v63, 0.0  ;;  %v5213_v35 = vld [vmem:[%s7405_s5 + $0x20] sm:$0xff]  ;;  %v866_v38 = vld [vmem:[#allocation6 + $0xc8] sm:$0xff] }
 0x18c   :  { %v604_v47 = vpop.f32.mrf.mxu0  ;;  %v857_v50 = vld [vmem:[#allocation6 + $0x80] sm:$0xff]  ;;  %v889_v63 = vld [vmem:[#allocation6 + $0x178] sm:$0xff] }
 0x18d   :  { %v617_v51 = vadd.f32 %v604_v47, %v462_v41  ;;  %v637_v57 = vadd.f32 %v6091_v46, %v616_v42  ;;  %v646_v12 = vmax.f32 %v636_v1, 0.0  ;;  %v652_v20 = vmax.f32 %v644_v16, %v645_v10  ;;  %v864_v41 = vld [vmem:[#allocation6 + $0xb8] sm:$0xff]  ;;  %v863_v42 = vld [vmem:[#allocation6 + $0xb0] sm:$0xff]  ;;  %v849_v1 = vld [vmem:[#allocation6 + $0x40] sm:$0xff] }
 0x18e   :  { %v606_v55 = vpop.f32.mrf.mxu0  ;;  %v860_v47 = vld [vmem:[#allocation6 + $0x98] sm:$0xff]  ;;  %v6170_v21 = vld [vmem:[#allocation6 + $0x120] sm:$0xff] }
 0x18f   :  { %v638_v58 = vadd.f32 %v6088_v45, %v617_v51  ;;  %v618_v59 = vadd.f32 %v606_v55, %v464_v48  ;;  %v647_v7 = vmax.f32 %v637_v57, 0.0  ;;  %v859_v48 = vld [vmem:[#allocation6 + $0x90] sm:$0xff]  ;;  %v856_v51 = vld [vmem:[#allocation6 + $0x78] sm:$0xff] }
 0x190   :  { %v893_v55 = vld [vmem:[#allocation6 + $0x198] sm:$0xff]  ;;  %v892_v57 = vld [vmem:[#allocation6 + $0x190] sm:$0xff] }
 0x191   :  { %v639_v2 = vadd.f32 %v6091_v46, %v618_v59  ;;  %v648_v8 = vmax.f32 %v638_v58, 0.0  ;;  %v653_v17 = vmax.f32 %v646_v12, %v647_v7  ;;  %925 = vmatprep.subr.mxu0 %v893_v55  ;;  %v852_v58 = vld [vmem:[#allocation6 + $0x58] sm:$0xff]  ;;  %v891_v59 = vld [vmem:[#allocation6 + $0x188] sm:$0xff]  ;;  %v886_v7 = vld [vmem:[#allocation6 + $0x160] sm:$0xff] }
 0x192   :  { %926 = vmatpush1.msra.mxu0 %v892_v57  ;;  %v844_v10 = vld [vmem:[#allocation6 + $0x18] sm:$0xff]  ;;  %v6155_v12 = vld [vmem:[#allocation6 + $0x148] sm:$0xff]  ;;  %v1098_v55 = vld [vmem:[#allocation6 + $0x2f0] sm:$0xff] }
 0x193   :  { %v649_v9 = vmax.f32 %v639_v2, 0.0  ;;  %927 = vmatprep.subr.mxu0 %v891_v59  ;;  %v888_v2 = vld [vmem:[#allocation6 + $0x170] sm:$0xff]  ;;  %v6161_v16 = vld [vmem:[#allocation6 + $0x138] sm:$0xff] }
 0x194   :  { %928 = vmatpush1.msra.mxu0 %v890_v61  ;;  %v1209_v61 = vld [vmem:[#allocation6 + $0x3b0] sm:$0xff] }
 0x195   :  { %v654_v13 = vmax.f32 %v648_v8, %v649_v9  ;;  %929 = vmatprep.subr.mxu0 %v889_v63  ;;  %v846_v8 = vld [vmem:[#allocation6 + $0x28] sm:$0xff]  ;;  %v6149_v9 = vld [vmem:[#allocation6 + $0x158] sm:$0xff] }
 0x196   :  { %930 = vmatpush1.msra.mxu0 %v888_v2  ;;  %v1208_v63 = vld [vmem:[#allocation6 + $0x3a8] sm:$0xff] }
 0x197   :  { %5298 = vmatpush3.msk.msra.mxu1 %vm665_vm3, %v654_v13  ;;  %931 = vmatprep.subr.mxu0 %v887_v4  ;;  %v1095_v4 = vld [vmem:[#allocation6 + $0x2d8] sm:$0xff] }
 0x198   :  { %5299 = vmatprep.subr.mxu1 %v5900_v0  ;;  %932 = vmatpush1.msra.mxu0 %v886_v7  ;;  %v1094_v7 = vld [vmem:[#allocation6 + $0x2d0] sm:$0xff] }
 0x199   :  { %5300 = vmatpush3.msra.mxu1 %v653_v17  ;;  %933 = vmatprep.subr.mxu0 %v6149_v9 }
 0x19a   :  { %5301 = vmatprep.subr.mxu1 %v5900_v0  ;;  %934 = vmatpush1.msra.mxu0 %v6152_v5 }
 0x19b   :  { %5302 = vmatpush3.msra.mxu1 %v652_v20  ;;  %935 = vmatprep.subr.mxu0 %v6155_v12 }
 0x19c   :  { %5303 = vmatprep.subr.mxu1 %v5900_v0  ;;  %936 = vmatpush1.msra.mxu0 %v6158_v14 }
 0x19d   :  { %5304 = vmatpush3.msra.mxu1 %v651_v22  ;;  %937 = vmatprep.subr.mxu0 %v6161_v16 }
 0x19e   :  { %5305 = vmatprep.subr.mxu1 %v5900_v0  ;;  %938 = vmatpush1.msra.mxu0 %v6164_v18 }
 0x19f   :  { %5306 = vmatpush3.msra.mxu1 %v650_v23 }
 0x1a0   :  { %5308 = vmatmul.mubr.msk.f32.vlgmr.msra.gmra.mxu1 %vm655_vm4, %v174_v24  ;;  %5316 = vmatprep.subr.mxu1 %v5900_v0  ;;  %v6179_v24 = vld [vmem:[#allocation6 + $0x108] sm:$0xff] }
 0x1a1   :  { %5317 = vmatpush3.msk.msra.mxu1 %vm665_vm3, %v654_v13  ;;  %5310 = vmatprep.mubr.msk.f32.mxu1 %vm5901_vm2, %v5900_v0  ;;  %v843_v13 = vld [vmem:[#allocation6 + $0x10] sm:$0xff] }
 0x1a2   :  { %5318 = vmatprep.subr.mxu1 %v5900_v0 }
 0x1a3   :  { %5319 = vmatpush3.msra.mxu1 %v653_v17  ;;  %v841_v17 = vld [vmem:[#allocation6] sm:$0xff] }
 0x1a4   :  { %5311 = vmatmul.mubr.msk.f32.gmra.mxu1 %vm655_vm4, %v175_v25  ;;  %5320 = vmatprep.subr.mxu1 %v5900_v0  ;;  %v6182_v25 = vld [vmem:[#allocation6 + $0x100] sm:$0xff] }
 0x1a5   :  { %5321 = vmatpush3.msra.mxu1 %v652_v20  ;;  %5313 = vmatprep.mubr.msk.f32.mxu1 %vm5901_vm2, %v5900_v0  ;;  %v6167_v20 = vld [vmem:[#allocation6 + $0x128] sm:$0xff] }
 0x1a6   :  { %5322 = vmatprep.subr.mxu1 %v5900_v0  ;;  %939 = vmatprep.subr.mxu0 %v6167_v20 }
 0x1a7   :  { %5323 = vmatpush3.msra.mxu1 %v651_v22  ;;  %940 = vmatpush1.msra.mxu0 %v6170_v21  ;;  %v6173_v22 = vld [vmem:[#allocation6 + $0x118] sm:$0xff] }
 0x1a8   :  { %5314 = vmatmul.mubr.msk.f32.gmra.mxu1 %vm655_vm4, %v176_v26  ;;  %5324 = vmatprep.subr.mxu1 %v5900_v0  ;;  %v6185_v26 = vld [vmem:[#allocation6 + $0x2f8] sm:$0xff] }
 0x1a9   :  { %5325 = vmatpush3.msra.mxu1 %v650_v23  ;;  %5326 = vmatprep.mubr.msk.f32.mxu1 %vm5901_vm2, %v5900_v0  ;;  %v6176_v23 = vld [vmem:[#allocation6 + $0x110] sm:$0xff] }
 0x1aa   :  { %990 = vmatprep.subr.mxu1 %v872_v27  ;;  %941 = vmatprep.subr.mxu0 %v6173_v22 }
 0x1ab   :  { %942 = vmatpush1.msra.mxu0 %v6176_v23 }
 0x1ac   :  { %5327 = vmatmul.mubr.msk.f32.vlgmr.msra.gmra.mxu1 %vm655_vm4, %v5212_v29  ;;  %943 = vmatprep.subr.mxu0 %v6179_v24 }
 0x1ad   :  { %5329 = vmatprep.mubr.msk.f32.mxu1 %vm5901_vm2, %v5900_v0  ;;  %991 = vmatpush1.msra.mxu1 %v871_v30 }
 0x1ae   :  { %992 = vmatprep.subr.mxu1 %v870_v31  ;;  %944 = vmatpush1.msra.mxu0 %v6182_v25 }
 0x1af   :  { %993 = vmatpush1.msra.mxu1 %v869_v34  ;;  %1105 = vmatprep.subr.mxu0 %v6185_v26 }
 0x1b0   :  { %5330 = vmatmul.mubr.msk.f32.gmra.mxu1 %vm655_vm4, %v5213_v35  ;;  %994 = vmatprep.subr.mxu1 %v868_v36 }
 0x1b1   :  { %5332 = vmatprep.mubr.msk.f32.mxu1 %vm5901_vm2, %v5900_v0  ;;  %995 = vmatpush1.msra.mxu1 %v867_v37 }
 0x1b2   :  { %996 = vmatprep.subr.mxu1 %v866_v38  ;;  %v1217_v38 = vld [vmem:[#allocation6 + $0x3f0] sm:$0xff] }
 0x1b3   :  { %997 = vmatpush1.msra.mxu1 %v865_v39 }
 0x1b4   :  { %5333 = vmatmul.mubr.msk.f32.gmra.mxu1 %vm655_vm4, %v5214_v40  ;;  %998 = vmatprep.subr.mxu1 %v864_v41  ;;  %v1216_v40 = vld [vmem:[#allocation6 + $0x3e8] sm:$0xff]  ;;  %v1215_v41 = vld [vmem:[#allocation6 + $0x3e0] sm:$0xff] }
 0x1b5   :  { %999 = vmatpush1.msra.mxu1 %v863_v42  ;;  %1054 = vmatprep.mubr.f32.mxu1 %v5900_v0 }
 0x1b6   :  { %1000 = vmatprep.subr.mxu1 %v862_v43  ;;  %v1214_v43 = vld [vmem:[#allocation6 + $0x3d8] sm:$0xff] }
 0x1b7   :  { %1001 = vmatpush1.msra.mxu1 %v861_v44 }
 0x1b8   :  { %1002 = vmatprep.subr.mxu1 %v860_v47  ;;  %v1213_v47 = vld [vmem:[#allocation6 + $0x3d0] sm:$0xff] }
 0x1b9   :  { %1003 = vmatpush1.msra.mxu1 %v859_v48 }
 0x1ba   :  { %1004 = vmatprep.subr.mxu1 %v858_v49  ;;  %v1212_v49 = vld [vmem:[#allocation6 + $0x3c8] sm:$0xff] }
 0x1bb   :  { %1005 = vmatpush1.msra.mxu1 %v857_v50  ;;  %v1211_v50 = vld [vmem:[#allocation6 + $0x3c0] sm:$0xff] }
 0x1bc   :  { %1006 = vmatprep.subr.mxu1 %v856_v51 }
 0x1bd   :  { %1007 = vmatpush1.msra.mxu1 %v855_v52 }
 0x1be   :  { %1008 = vmatprep.subr.mxu1 %v854_v54 }
 0x1bf   :  { %1009 = vmatpush1.msra.mxu1 %v853_v56  ;;  %v1210_v56 = vld [vmem:[#allocation6 + $0x3b8] sm:$0xff] }
 0x1c0   :  { %1010 = vmatprep.subr.mxu1 %v852_v58 }
 0x1c1   :  { %1011 = vmatpush1.msra.mxu1 %v851_v60  ;;  %v1097_v60 = vld [vmem:[#allocation6 + $0x2e8] sm:$0xff] }
 0x1c2   :  { %1012 = vmatprep.subr.mxu1 %v850_v62  ;;  %v1096_v62 = vld [vmem:[#allocation6 + $0x2e0] sm:$0xff] }
 0x1c3   :  { %1013 = vmatpush1.msra.mxu1 %v849_v1 }
 0x1c4   :  { %1014 = vmatprep.subr.mxu1 %v848_v3 }
 0x1c5   :  { %1015 = vmatpush1.msra.mxu1 %v847_v6  ;;  %v1207_v6 = vld [vmem:[#allocation6 + $0x3a0] sm:$0xff] }
 0x1c6   :  { %1016 = vmatprep.subr.mxu1 %v846_v8  ;;  %v1206_v8 = vld [vmem:[#allocation6 + $0x398] sm:$0xff] }
 0x1c7   :  { %1017 = vmatpush1.msra.mxu1 %v845_v11 }
 0x1c8   :  { %1018 = vmatprep.subr.mxu1 %v844_v10  ;;  %v1093_v10 = vld [vmem:[#allocation6 + $0x2c8] sm:$0xff] }
 0x1c9   :  { %1019 = vmatpush1.msra.mxu1 %v843_v13  ;;  %v1205_v13 = vld [vmem:[#allocation6 + $0x390] sm:$0xff] }
 0x1ca   :  { %1020 = vmatprep.subr.mxu1 %v842_v15  ;;  %v1092_v15 = vld [vmem:[#allocation6 + $0x2c0] sm:$0xff] }
 0x1cb   :  { %1021 = vmatpush1.msra.mxu1 %v841_v17  ;;  %v1204_v17 = vld [vmem:[#allocation6 + $0x388] sm:$0xff] }
 0x1cc   :  { %1225 = vmatprep.subr.mxu1 %v1218_v19  ;;  %v1091_v19 = vld [vmem:[#allocation6 + $0x2b8] sm:$0xff] }
 0x260   :  { %v735_v27 = vpop.f32.mrf.mxu1 }
 0x262   :  { %v5309_v29 = vpop.f32.mrf.mxu1 }
 0x263   :  { %v1090_v29 = vld [vmem:[#allocation6 + $0x2b0] sm:$0xff] }
 0x264   :  { %v740_v30 = vpop.f32.mrf.mxu1 }
 0x266   :  { %v5312_v31 = vpop.f32.mrf.mxu1 }
 0x267   :  { %v1089_v31 = vld [vmem:[#allocation6 + $0x2a8] sm:$0xff] }
 0x268   :  { %v745_v34 = vpop.f32.mrf.mxu1 }
 0x26a   :  { %v5315_v35 = vpop.f32.mrf.mxu1 }
 0x26b   :  { %v1088_v35 = vld [vmem:[#allocation6 + $0x2a0] sm:$0xff] }
 0x26c   :  { %v824_v36 = vpop.f32.mrf.mxu1 }
 0x26d   :  { %v6188_v37 = vmax.f32 %v735_v27, %v824_v36  ;;  %v1203_v27 = vld [vmem:[#allocation6 + $0x380] sm:$0xff]  ;;  %v1200_v36 = vld [vmem:[#allocation6 + $0x368] sm:$0xff] }
 0x26e   :  { %v5328_v39 = vpop.f32.mrf.mxu1 }
 0x26f   :  { %1055 = vmatmul.mubr.f32.vlgmr.msra.gmra.mxu1 %v6188_v37  ;;  %v908_v51 = vrot.slane %v6188_v37, 1  ;;  %v1341_v57 = vrot.slane %v6188_v37, 4  ;;  %v1199_v39 = vld [vmem:[#allocation6 + $0x360] sm:$0xff] }
 0x270   :  { %1226 = vmatpush1.msra.mxu1 %v1217_v38  ;;  %v829_v42 = vpop.f32.mrf.mxu1  ;;  %1060 = vmatprep.mubr.f32.mxu1 %v5900_v0  ;;  %v1087_v38 = vld [vmem:[#allocation6 + $0x298] sm:$0xff] }
 0x271   :  { %v6192_v44 = vmax.f32 %v740_v30, %v829_v42  ;;  %1227 = vmatprep.subr.mxu1 %v1216_v40  ;;  %v1202_v30 = vld [vmem:[#allocation6 + $0x378] sm:$0xff]  ;;  %v1086_v40 = vld [vmem:[#allocation6 + $0x290] sm:$0xff]  ;;  %v1085_v42 = vld [vmem:[#allocation6 + $0x288] sm:$0xff] }
 0x272   :  { %1228 = vmatpush1.msra.mxu1 %v1215_v41  ;;  %v5331_v48 = vpop.f32.mrf.mxu1  ;;  %v1198_v41 = vld [vmem:[#allocation6 + $0x358] sm:$0xff] }
 0x273   :  { %1229 = vmatprep.subr.mxu1 %v1214_v43  ;;  %1061 = vmatmul.mubr.f32.gmra.mxu1 %v6192_v44  ;;  %v909_v52 = vrot.slane %v6192_v44, 1  ;;  %v1342_v53 = vrot.slane %v6192_v44, 4  ;;  %v1197_v43 = vld [vmem:[#allocation6 + $0x350] sm:$0xff]  ;;  %v1196_v48 = vld [vmem:[#allocation6 + $0x348] sm:$0xff] }
 0x274   :  { %1230 = vmatpush1.msra.mxu1 %v1213_v47  ;;  %v834_v54 = vpop.f32.mrf.mxu1  ;;  %1289 = vmatprep.mubr.f32.mxu1 %v5900_v0  ;;  %v1084_v47 = vld [vmem:[#allocation6 + $0x280] sm:$0xff] }
 0x275   :  { %v840_v58 = vmax.f32 %v745_v34, %v834_v54  ;;  %1231 = vmatprep.subr.mxu1 %v1212_v49  ;;  %v910_v59 = vsel %vm261_vm0, %v908_v51, %v909_v52  ;;  %v6202_v2 = vsel %vm1340_vm5, %v1341_v57, %v1342_v53  ;;  %v1201_v34 = vld [vmem:[#allocation6 + $0x370] sm:$0xff]  ;;  %v1083_v49 = vld [vmem:[#allocation6 + $0x278] sm:$0xff] }
 0x276   :  { %1232 = vmatpush1.msra.mxu1 %v1211_v50  ;;  %978 = vmatmul.mubr.f32.vlgmr.msra.gmra.mxu0 %v910_v59  ;;  %v5334_v1 = vpop.f32.mrf.mxu1  ;;  %v1195_v50 = vld [vmem:[#allocation6 + $0x340] sm:$0xff]  ;;  %v1082_v51 = vld [vmem:[#allocation6 + $0x270] sm:$0xff]  ;;  %v1079_v57 = vld [vmem:[#allocation6 + $0x258] sm:$0xff] }
 0x277   :  { %v1344_v3 = vrot.slane %v840_v58, 4  ;;  %1106 = vmatpush1.msra.mxu0 %v1098_v55  ;;  %1233 = vmatprep.subr.mxu1 %v1210_v56  ;;  %v1193_v54 = vld [vmem:[#allocation6 + $0x330] sm:$0xff]  ;;  %v1080_v55 = vld [vmem:[#allocation6 + $0x260] sm:$0xff]  ;;  %v1192_v56 = vld [vmem:[#allocation6 + $0x328] sm:$0xff] }
 0x278   :  { %1107 = vmatprep.subr.mxu0 %v1097_v60  ;;  %1234 = vmatpush1.msra.mxu1 %v1209_v61  ;;  %v1191_v58 = vld [vmem:[#allocation6 + $0x320] sm:$0xff]  ;;  %v1078_v59 = vld [vmem:[#allocation6 + $0x250] sm:$0xff]  ;;  %v1190_v60 = vld [vmem:[#allocation6 + $0x318] sm:$0xff] }
 0x279   :  { %1108 = vmatpush1.msra.mxu0 %v1096_v62  ;;  %1235 = vmatprep.subr.mxu1 %v1208_v63  ;;  %v6205_v11 = vsel %vm1340_vm5, %v1342_v53, %v1344_v3  ;;  %v1081_v53 = vld [vmem:[#allocation6 + $0x268] sm:$0xff]  ;;  %v1189_v62 = vld [vmem:[#allocation6 + $0x310] sm:$0xff]  ;;  %v1076_v63 = vld [vmem:[#allocation6 + $0x240] sm:$0xff]  ;;  %v1221_v3 = vrot.slane %v6192_v44, 3 }
 0x27a   :  { %983 = vmatprep.mubr.f32.mxu0 %v5900_v0  ;;  %1109 = vmatprep.subr.mxu0 %v1095_v4  ;;  %v1077_v61 = vld [vmem:[#allocation6 + $0x248] sm:$0xff]  ;;  %v1075_v4 = vld [vmem:[#allocation6 + $0x238] sm:$0xff] }
 0x27b   :  { %1236 = vmatpush1.msra.mxu1 %v1207_v6  ;;  %984 = vmatmul.mubr.f32.gmra.mxu0 %v909_v52  ;;  %v1194_v52 = vld [vmem:[#allocation6 + $0x338] sm:$0xff]  ;;  %v1188_v1 = vld [vmem:[#allocation6 + $0x308] sm:$0xff]  ;;  %v1187_v6 = vld [vmem:[#allocation6 + $0x300] sm:$0xff] }
 0x27c   :  { %1110 = vmatpush1.msra.mxu0 %v1094_v7  ;;  %1237 = vmatprep.subr.mxu1 %v1206_v8  ;;  %v1074_v7 = vld [vmem:[#allocation6 + $0x230] sm:$0xff]  ;;  %v1220_v8 = vrot.slane %v6188_v37, 3 }
 0x27d   :  { %1111 = vmatprep.subr.mxu0 %v1093_v10  ;;  %1238 = vmatpush1.msra.mxu1 %v1205_v13  ;;  %v1073_v10 = vld [vmem:[#allocation6 + $0x228] sm:$0xff] }
 0x27e   :  { %1112 = vmatpush1.msra.mxu0 %v1092_v15  ;;  %1239 = vmatprep.subr.mxu1 %v1204_v17  ;;  %v1222_v13 = vsel %vm1219_vm6, %v1220_v8, %v1221_v3  ;;  %v1072_v15 = vld [vmem:[#allocation6 + $0x220] sm:$0xff]  ;;  %v1071_v17 = vld [vmem:[#allocation6 + $0x218] sm:$0xff] }
 0x27f   :  { %1113 = vmatprep.subr.mxu0 %v1091_v19  ;;  %1240 = vmatpush1.msra.mxu1 %v1203_v27  ;;  %v1070_v19 = vld [vmem:[#allocation6 + $0x210] sm:$0xff]  ;;  %v1069_v27 = vld [vmem:[#allocation6 + $0x208] sm:$0xff] }
 0x280   :  { %1114 = vmatpush1.msra.mxu0 %v1090_v29  ;;  %1241 = vmatprep.subr.mxu1 %v1202_v30  ;;  %v1101_v29 = vrot.slane %v6192_v44, 2  ;;  %v1068_v30 = vld [vmem:[#allocation6 + $0x200] sm:$0xff]  ;;  %v5421_v8 = vld [vmem:[#allocation2 + $0xf8] sm:$0xff] }
 0x281   :  { %1115 = vmatprep.subr.mxu0 %v1089_v31  ;;  %1242 = vmatpush1.msra.mxu1 %v1201_v34  ;;  %v1100_v31 = vrot.slane %v6188_v37, 2  ;;  %v1338_v34 = vld [vmem:[#allocation6 + $0x4f8] sm:$0xff]  ;;  %v1335_v44 = vld [vmem:[#allocation6 + $0x4e0] sm:$0xff]  ;;  %v1332_v37 = vld [vmem:[#allocation6 + $0x4c8] sm:$0xff] }
 0x282   :  { %1116 = vmatpush1.msra.mxu0 %v1088_v35  ;;  %1243 = vmatprep.subr.mxu1 %v1200_v36  ;;  %v1337_v35 = vld [vmem:[#allocation6 + $0x4f0] sm:$0xff] }
 0x283   :  { %1117 = vmatprep.subr.mxu0 %v1087_v38  ;;  %1244 = vmatpush1.msra.mxu1 %v1199_v39  ;;  %v1102_v36 = vsel %vm499_vm1, %v1100_v31, %v1101_v29  ;;  %v1336_v38 = vld [vmem:[#allocation6 + $0x4e8] sm:$0xff]  ;;  %v1334_v39 = vld [vmem:[#allocation6 + $0x4d8] sm:$0xff] }
 0x284   :  { %1118 = vmatpush1.msra.mxu0 %v1086_v40  ;;  %1245 = vmatprep.subr.mxu1 %v1198_v41  ;;  %v1333_v40 = vld [vmem:[#allocation6 + $0x4d0] sm:$0xff]  ;;  %v1331_v41 = vld [vmem:[#allocation6 + $0x4c0] sm:$0xff] }
 0x285   :  { %1119 = vmatprep.subr.mxu0 %v1085_v42  ;;  %1246 = vmatpush1.msra.mxu1 %v1197_v43  ;;  %v1330_v42 = vld [vmem:[#allocation6 + $0x4b8] sm:$0xff]  ;;  %v1329_v43 = vld [vmem:[#allocation6 + $0x4b0] sm:$0xff]  ;;  %v5431_v31 = vld [vmem:[#allocation2 + $0xa8] sm:$0xff] }
 0x286   :  { %1120 = vmatpush1.msra.mxu0 %v1084_v47  ;;  %1247 = vmatprep.subr.mxu1 %v1196_v48  ;;  %v1328_v47 = vld [vmem:[#allocation6 + $0x4a8] sm:$0xff]  ;;  %v1327_v48 = vld [vmem:[#allocation6 + $0x4a0] sm:$0xff] }
 0x287   :  { %1121 = vmatprep.subr.mxu0 %v1083_v49  ;;  %1248 = vmatpush1.msra.mxu1 %v1195_v50  ;;  %v1326_v49 = vld [vmem:[#allocation6 + $0x498] sm:$0xff]  ;;  %v1325_v50 = vld [vmem:[#allocation6 + $0x490] sm:$0xff] }
 0x288   :  { %1122 = vmatpush1.msra.mxu0 %v1082_v51  ;;  %1249 = vmatprep.subr.mxu1 %v1194_v52  ;;  %v1324_v51 = vld [vmem:[#allocation6 + $0x488] sm:$0xff]  ;;  %v1323_v52 = vld [vmem:[#allocation6 + $0x480] sm:$0xff] }
 0x289   :  { %1123 = vmatprep.subr.mxu0 %v1081_v53  ;;  %1250 = vmatpush1.msra.mxu1 %v1193_v54  ;;  %v1322_v53 = vld [vmem:[#allocation6 + $0x478] sm:$0xff]  ;;  %v1321_v54 = vld [vmem:[#allocation6 + $0x470] sm:$0xff] }
 0x28a   :  { %1124 = vmatpush1.msra.mxu0 %v1080_v55  ;;  %1251 = vmatprep.subr.mxu1 %v1192_v56  ;;  %v1320_v55 = vld [vmem:[#allocation6 + $0x468] sm:$0xff]  ;;  %v1319_v56 = vld [vmem:[#allocation6 + $0x460] sm:$0xff] }
 0x28b   :  { %1125 = vmatprep.subr.mxu0 %v1079_v57  ;;  %1252 = vmatpush1.msra.mxu1 %v1191_v58  ;;  %v1318_v57 = vld [vmem:[#allocation6 + $0x458] sm:$0xff]  ;;  %v1317_v58 = vld [vmem:[#allocation6 + $0x450] sm:$0xff] }
 0x28c   :  { %1126 = vmatpush1.msra.mxu0 %v1078_v59  ;;  %1253 = vmatprep.subr.mxu1 %v1190_v60  ;;  %v1316_v59 = vld [vmem:[#allocation6 + $0x448] sm:$0xff]  ;;  %v1315_v60 = vld [vmem:[#allocation6 + $0x440] sm:$0xff] }
 0x28d   :  { %1127 = vmatprep.subr.mxu0 %v1077_v61  ;;  %1254 = vmatpush1.msra.mxu1 %v1189_v62  ;;  %v1314_v61 = vld [vmem:[#allocation6 + $0x438] sm:$0xff]  ;;  %v1313_v62 = vld [vmem:[#allocation6 + $0x430] sm:$0xff] }
 0x28e   :  { %1128 = vmatpush1.msra.mxu0 %v1076_v63  ;;  %1255 = vmatprep.subr.mxu1 %v1188_v1  ;;  %v1312_v63 = vld [vmem:[#allocation6 + $0x428] sm:$0xff]  ;;  %v1311_v1 = vld [vmem:[#allocation6 + $0x420] sm:$0xff] }
 0x28f   :  { %1129 = vmatprep.subr.mxu0 %v1075_v4  ;;  %1256 = vmatpush1.msra.mxu1 %v1187_v6  ;;  %v1309_v4 = vld [vmem:[#allocation6 + $0x410] sm:$0xff]  ;;  %v1308_v6 = vld [vmem:[#allocation6 + $0x408] sm:$0xff] }
 0x290   :  { %1130 = vmatpush1.msra.mxu0 %v1074_v7  ;;  %1290 = vmatmul.mubr.f32.vlgmr.msra.gmra.mxu1 %v1222_v13  ;;  %v1307_v7 = vld [vmem:[#allocation6 + $0x400] sm:$0xff] }
 0x291   :  { %1131 = vmatprep.subr.mxu0 %v1073_v10  ;;  %1295 = vmatprep.mubr.f32.mxu1 %v5900_v0  ;;  %v5422_v10 = vld [vmem:[#allocation2 + $0xf0] sm:$0xff]  ;;  %v5423_v13 = vld [vmem:[#allocation2 + $0xe8] sm:$0xff] }
 0x292   :  { %1132 = vmatpush1.msra.mxu0 %v1072_v15  ;;  %1169 = vmatprep.mubr.f32.mxu0 %v5900_v0  ;;  %v5424_v15 = vld [vmem:[#allocation2 + $0xe0] sm:$0xff] }
 0x293   :  { %1133 = vmatprep.subr.mxu0 %v1071_v17  ;;  %5335 = vmatprep.subr.mxu1 %v5900_v0  ;;  %v5425_v17 = vld [vmem:[#allocation2 + $0xd8] sm:$0xff] }
 0x294   :  { %1134 = vmatpush1.msra.mxu0 %v1070_v19  ;;  %1296 = vmatmul.mubr.f32.gmra.mxu1 %v1221_v3  ;;  %v1310_v3 = vld [vmem:[#allocation6 + $0x418] sm:$0xff]  ;;  %v5426_v19 = vld [vmem:[#allocation2 + $0xd0] sm:$0xff] }
 0x295   :  { %1135 = vmatprep.subr.mxu0 %v1069_v27  ;;  %5339 = vmatprep.mubr.msk.f32.mxu1 %vm5901_vm2, %v5900_v0  ;;  %v5427_v27 = vld [vmem:[#allocation2 + $0xc8] sm:$0xff] }
 0x296   :  { %1136 = vmatpush1.msra.mxu0 %v1068_v30  ;;  %v5430_v30 = vld [vmem:[#allocation2 + $0xb0] sm:$0xff] }
 0x297   :  { %1170 = vmatmul.mubr.f32.vlgmr.msra.gmra.mxu0 %v1102_v36  ;;  %1348 = vmatprep.subr.mxu0 %v1338_v34  ;;  %v5432_v34 = vld [vmem:[#allocation2 + $0xa0] sm:$0xff]  ;;  %v5435_v36 = vld [vmem:[#allocation2 + $0x88] sm:$0xff] }
 0x298   :  { %1349 = vmatpush1.msra.mxu0 %v1337_v35  ;;  %1175 = vmatprep.mubr.f32.mxu0 %v5900_v0  ;;  %v5433_v35 = vld [vmem:[#allocation2 + $0x98] sm:$0xff] }
 0x299   :  { %1350 = vmatprep.subr.mxu0 %v1336_v38  ;;  %v5436_v38 = vld [vmem:[#allocation2 + $0x80] sm:$0xff] }
 0x29a   :  { %1351 = vmatpush1.msra.mxu0 %v1335_v44  ;;  %v5437_v44 = vld [vmem:[#allocation2 + $0x78] sm:$0xff] }
 0x29b   :  { %1176 = vmatmul.mubr.f32.gmra.mxu0 %v1101_v29  ;;  %1352 = vmatprep.subr.mxu0 %v1334_v39  ;;  %v5429_v29 = vld [vmem:[#allocation2 + $0xb8] sm:$0xff]  ;;  %v5438_v39 = vld [vmem:[#allocation2 + $0x70] sm:$0xff] }
 0x29c   :  { %1353 = vmatpush1.msra.mxu0 %v1333_v40  ;;  %1412 = vmatprep.mubr.f32.mxu0 %v5900_v0  ;;  %v5439_v40 = vld [vmem:[#allocation2 + $0x68] sm:$0xff] }
 0x29d   :  { %1354 = vmatprep.subr.mxu0 %v1332_v37  ;;  %v5440_v37 = vld [vmem:[#allocation2 + $0x60] sm:$0xff] }
 0x29e   :  { %1355 = vmatpush1.msra.mxu0 %v1331_v41  ;;  %v5441_v41 = vld [vmem:[#allocation2 + $0x58] sm:$0xff] }
 0x29f   :  { %1356 = vmatprep.subr.mxu0 %v1330_v42  ;;  %v5442_v42 = vld [vmem:[#allocation2 + $0x50] sm:$0xff] }
 0x2a0   :  { %1357 = vmatpush1.msra.mxu0 %v1329_v43  ;;  %v5443_v43 = vld [vmem:[#allocation2 + $0x48] sm:$0xff] }
 0x2a1   :  { %1358 = vmatprep.subr.mxu0 %v1328_v47  ;;  %v5444_v47 = vld [vmem:[#allocation2 + $0x40] sm:$0xff] }
 0x2a2   :  { %1359 = vmatpush1.msra.mxu0 %v1327_v48  ;;  %v5445_v48 = vld [vmem:[#allocation2 + $0x38] sm:$0xff] }
 0x2a3   :  { %1360 = vmatprep.subr.mxu0 %v1326_v49  ;;  %v5446_v49 = vld [vmem:[#allocation2 + $0x30] sm:$0xff] }
 0x2a4   :  { %1361 = vmatpush1.msra.mxu0 %v1325_v50  ;;  %v5447_v50 = vld [vmem:[#allocation2 + $0x28] sm:$0xff] }
 0x2a5   :  { %1362 = vmatprep.subr.mxu0 %v1324_v51  ;;  %v5448_v51 = vld [vmem:[#allocation2 + $0x20] sm:$0xff] }
 0x2a6   :  { %1363 = vmatpush1.msra.mxu0 %v1323_v52  ;;  %v5449_v52 = vld [vmem:[#allocation2 + $0x18] sm:$0xff] }
 0x2a7   :  { %1364 = vmatprep.subr.mxu0 %v1322_v53  ;;  %v5450_v53 = vld [vmem:[#allocation2 + $0x10] sm:$0xff] }
 0x2a8   :  { %1365 = vmatpush1.msra.mxu0 %v1321_v54  ;;  %v5451_v54 = vld [vmem:[#allocation2 + $0x8] sm:$0xff] }
 0x2a9   :  { %1366 = vmatprep.subr.mxu0 %v1320_v55  ;;  %v5452_v55 = vld [vmem:[#allocation2] sm:$0xff] }
 0x2aa   :  { %1367 = vmatpush1.msra.mxu0 %v1319_v56  ;;  %v5228_v56 = vld [vmem:[%s7400_s0 + $0x28] sm:$0xff] }
 0x2ab   :  { %1368 = vmatprep.subr.mxu0 %v1318_v57  ;;  %v5229_v57 = vld [vmem:[%s7400_s0 + $0x30] sm:$0xff] }
 0x2ac   :  { %1369 = vmatpush1.msra.mxu0 %v1317_v58  ;;  %v1623_v58 = vrot.slane %v5228_v56, 1 }
 0x2ad   :  { %1370 = vmatprep.subr.mxu0 %v1316_v59  ;;  %v1624_v59 = vrot.slane %v5229_v57, 1 }
 0x2ae   :  { %1371 = vmatpush1.msra.mxu0 %v1315_v60 }
 0x2af   :  { %1372 = vmatprep.subr.mxu0 %v1314_v61  ;;  %v6234_v60 = vsel %vm261_vm0, %v1623_v58, %v1624_v59  ;;  %v5230_v61 = vld [vmem:[%s7400_s0 + $0x38] sm:$0xff] }
 0x2b0   :  { %1373 = vmatpush1.msra.mxu0 %v1313_v62  ;;  %v1626_v62 = vrot.slane %v5230_v61, 1 }
 0x2b1   :  { %1374 = vmatprep.subr.mxu0 %v1312_v63 }
 0x2b2   :  { %1375 = vmatpush1.msra.mxu0 %v1311_v1  ;;  %v6242_v63 = vsel %vm261_vm0, %v1624_v59, %v1626_v62  ;;  %v5231_v1 = vld [vmem:[%s7400_s0 + $0x40] sm:$0xff] }
 0x2b3   :  { %1376 = vmatprep.subr.mxu0 %v1310_v3  ;;  %v1628_v3 = vrot.slane %v5231_v1, 1  ;;  %v185_v59 = vld [vmem:[#allocation7] sm:$0x3] }
 0x2b4   :  { %1377 = vmatpush1.msra.mxu0 %v1309_v4 }
 0x2b5   :  { %1378 = vmatprep.subr.mxu0 %v1308_v6  ;;  %v6249_v4 = vsel %vm261_vm0, %v1626_v62, %v1628_v3  ;;  %v6254_v6 = vld [vmem:[%s7400_s0 + $0x48] sm:$0xf] }
 0x2b6   :  { %1379 = vmatpush1.msra.mxu0 %v1307_v7  ;;  %v1630_v7 = vrot.slane %v6254_v6, 1 }
 0x2b7   :  { %1413 = vmatmul.mubr.f32.vlgmr.msra.gmra.mxu0 %v6202_v2  ;;  %1732 = vmatprep.subr.mxu0 %v5421_v8  ;;  %v5428_v2 = vld [vmem:[#allocation2 + $0xc0] sm:$0xff] }
 0x2b8   :  { %1418 = vmatprep.mubr.f32.mxu0 %v5900_v0  ;;  %1733 = vmatpush1.msra.mxu0 %v5422_v10  ;;  %v6263_v8 = vsel %vm261_vm0, %v1628_v3, %v1630_v7  ;;  %v1827_v10 = vrot.slane %v5228_v56, 2  ;;  %v6281_v3 = vrot.slane %v185_v59, %v6085_v33 }
 0x2b9   :  { %1734 = vmatprep.subr.mxu0 %v5423_v13  ;;  %v1828_v13 = vrot.slane %v5229_v57, 2 }
 0x2ba   :  { %1735 = vmatpush1.msra.mxu0 %v5424_v15 }
 0x2bb   :  { %1419 = vmatmul.mubr.f32.gmra.mxu0 %v6205_v11  ;;  %1736 = vmatprep.subr.mxu0 %v5425_v17  ;;  %v5434_v11 = vld [vmem:[#allocation2 + $0x90] sm:$0xff]  ;;  %v6266_v15 = vsel %vm499_vm1, %v1827_v10, %v1828_v13  ;;  %v1830_v17 = vrot.slane %v5230_v61, 2 }
 0x2bc   :  { %1737 = vmatpush1.msra.mxu0 %v5426_v19  ;;  %1796 = vmatprep.mubr.f32.mxu0 %v5900_v0 }
 0x2bd   :  { %1738 = vmatprep.subr.mxu0 %v5427_v27  ;;  %v6269_v19 = vsel %vm499_vm1, %v1828_v13, %v1830_v17  ;;  %v1832_v27 = vrot.slane %v5231_v1, 2 }
 0x2be   :  { %1739 = vmatpush1.msra.mxu0 %v5428_v2 }
 0x2bf   :  { %1740 = vmatprep.subr.mxu0 %v5429_v29  ;;  %v6272_v2 = vsel %vm499_vm1, %v1830_v17, %v1832_v27  ;;  %v1834_v29 = vrot.slane %v6254_v6, 2 }
 0x2c0   :  { %1741 = vmatpush1.msra.mxu0 %v5430_v30 }
 0x2c1   :  { %1742 = vmatprep.subr.mxu0 %v5431_v31  ;;  %v6278_v30 = vsel %vm499_vm1, %v1832_v27, %v1834_v29 }
 0x2c2   :  { %1743 = vmatpush1.msra.mxu0 %v5432_v34 }
 0x2c3   :  { %1744 = vmatprep.subr.mxu0 %v5433_v35 }
 0x2c4   :  { %1745 = vmatpush1.msra.mxu0 %v5434_v11 }
 0x2c5   :  { %1746 = vmatprep.subr.mxu0 %v5435_v36 }
 0x2c6   :  { %1747 = vmatpush1.msra.mxu0 %v5436_v38 }
 0x2c7   :  { %1748 = vmatprep.subr.mxu0 %v5437_v44 }
 0x2c8   :  { %1749 = vmatpush1.msra.mxu0 %v5438_v39 }
 0x2c9   :  { %1750 = vmatprep.subr.mxu0 %v5439_v40 }
 0x2ca   :  { %1751 = vmatpush1.msra.mxu0 %v5440_v37 }
 0x2cb   :  { %1752 = vmatprep.subr.mxu0 %v5441_v41 }
 0x2cc   :  { %1753 = vmatpush1.msra.mxu0 %v5442_v42 }
 0x2cd   :  { %1754 = vmatprep.subr.mxu0 %v5443_v43 }
 0x2ce   :  { %1755 = vmatpush1.msra.mxu0 %v5444_v47 }
 0x2cf   :  { %1756 = vmatprep.subr.mxu0 %v5445_v48 }
 0x2d0   :  { %1757 = vmatpush1.msra.mxu0 %v5446_v49 }
 0x2d1   :  { %1758 = vmatprep.subr.mxu0 %v5447_v50 }
 0x2d2   :  { %1759 = vmatpush1.msra.mxu0 %v5448_v51 }
 0x2d3   :  { %1760 = vmatprep.subr.mxu0 %v5449_v52 }
 0x2d4   :  { %1761 = vmatpush1.msra.mxu0 %v5450_v53 }
 0x2d5   :  { %1762 = vmatprep.subr.mxu0 %v5451_v54 }
 0x2d6   :  { %1763 = vmatpush1.msra.mxu0 %v5452_v55 }
 0x2d7   :  { %5349 = vmatprep.subr.mxu0 %v5900_v0  ;;  %1797 = vmatmul.mubr.f32.vlgmr.msra.gmra.mxu0 %v5228_v56 }
 0x2d8   :  { %1802 = vmatprep.mubr.f32.mxu0 %v5900_v0 }
 0x2db   :  { %1803 = vmatmul.mubr.f32.gmra.mxu0 %v5229_v57 }
 0x2dc   :  { %1808 = vmatprep.mubr.f32.mxu0 %v5900_v0 }
 0x2df   :  { %1809 = vmatmul.mubr.f32.gmra.mxu0 %v5230_v61 }
 0x2e0   :  { %1814 = vmatprep.mubr.f32.mxu0 %v5900_v0 }
 0x2e3   :  { %1815 = vmatmul.mubr.f32.gmra.mxu0 %v5231_v1 }
 0x2e4   :  { %1820 = vmatprep.mubr.f32.mxu0 %v5900_v0 }
 0x2e7   :  { %1821 = vmatmul.mubr.f32.gmra.mxu0 %v6254_v6 }
 0x2e8   :  { %5359 = vmatprep.mubr.msk.f32.mxu0 %vm5901_vm2, %v5900_v0 }
 0x32f   :  { %v1056_v35 = vpop.f32.mrf.mxu1 }
 0x331   :  { %v1058_v36 = vpop.f32.mrf.mxu1 }
 0x333   :  { %v1062_v44 = vpop.f32.mrf.mxu1 }
 0x335   :  { %v1064_v40 = vpop.f32.mrf.mxu1 }
 0x336   :  { %v979_v31 = vpop.f32.mrf.mxu0 }
 0x337   :  { %v1057_v48 = vadd.f32 %v1056_v35, %v979_v31  ;;  %v6284_v31 = vrot.slane %v185_v59, %v6082_v32  ;;  %v5461_v59 = vld [vmem:[#allocation2 + $0x1b8] sm:$0xff] }
 0x338   :  { %v981_v34 = vpop.f32.mrf.mxu0 }
 0x339   :  { %v1059_v43 = vadd.f32 %v1058_v36, %v981_v34 }
 0x33b   :  { %v985_v11 = vpop.f32.mrf.mxu0 }
 0x33c   :  { %v1063_v49 = vadd.f32 %v1062_v44, %v985_v11 }
 0x33d   :  { %v987_v38 = vpop.f32.mrf.mxu0 }
 0x33e   :  { %v1065_v52 = vadd.f32 %v1064_v40, %v987_v38 }
 0x350   :  { %v1291_v41 = vpop.f32.mrf.mxu1 }
 0x352   :  { %v1293_v47 = vpop.f32.mrf.mxu1 }
 0x354   :  { %v1297_v55 = vpop.f32.mrf.mxu1 }
 0x356   :  { %v1299_v13 = vpop.f32.mrf.mxu1 }
 0x357   :  { %v1171_v39 = vpop.f32.mrf.mxu0 }
 0x358   :  { %v1182_v53 = vadd.f32 %v1171_v39, %v1057_v48 }
 0x359   :  { %v1173_v37 = vpop.f32.mrf.mxu0 }
 0x35a   :  { %v1183_v50 = vadd.f32 %v1173_v37, %v1059_v43  ;;  %v1302_v62 = vadd.f32 %v1291_v41, %v1182_v53  ;;  %v5455_v53 = vld [vmem:[#allocation2 + $0x1e8] sm:$0xff] }
 0x35b   :  { %v1177_v42 = vpop.f32.mrf.mxu0 }
 0x35c   :  { %v1184_v54 = vadd.f32 %v1177_v42, %v1063_v49  ;;  %v1303_v58 = vadd.f32 %v1293_v47, %v1183_v50  ;;  %v181_v49 = vld [vmem:[%s7406_s6] sm:$0x3f]  ;;  %v5215_v50 = vld [vmem:[%s7406_s6 + $0x8] sm:$0x3f] }
 0x35d   :  { %v1179_v51 = vpop.f32.mrf.mxu0 }
 0x35e   :  { %v1185_v57 = vadd.f32 %v1179_v51, %v1065_v52  ;;  %v1304_v10 = vadd.f32 %v1297_v55, %v1184_v54  ;;  %v5453_v51 = vld [vmem:[#allocation2 + $0x1f8] sm:$0xff]  ;;  %v5454_v52 = vld [vmem:[#allocation2 + $0x1f0] sm:$0xff]  ;;  %v5456_v54 = vld [vmem:[#allocation2 + $0x1e0] sm:$0xff] }
 0x35f   :  { %v5457_v55 = vld [vmem:[#allocation2 + $0x1d8] sm:$0xff] }
 0x360   :  { %v1305_v35 = vadd.f32 %v1299_v13, %v1185_v57  ;;  %v5459_v57 = vld [vmem:[#allocation2 + $0x1c8] sm:$0xff]  ;;  %v5466_v13 = vld [vmem:[#allocation2 + $0x190] sm:$0xff] }
 0x377   :  { %v1414_v56 = vpop.f32.mrf.mxu0 }
 0x378   :  { %v1425_v27 = vadd.f32 %v1414_v56, %v1302_v62  ;;  %v5458_v56 = vld [vmem:[#allocation2 + $0x1d0] sm:$0xff]  ;;  %v5463_v62 = vld [vmem:[#allocation2 + $0x1a8] sm:$0xff] }
 0x379   :  { %v1416_v61 = vpop.f32.mrf.mxu0 }
 0x37a   :  { %v1426_v1 = vadd.f32 %v1416_v61, %v1303_v58  ;;  %v1440_v39 = vadd.f32 %v6284_v31, %v1425_v27  ;;  %v5460_v58 = vld [vmem:[#allocation2 + $0x1c0] sm:$0xff]  ;;  %v5462_v61 = vld [vmem:[#allocation2 + $0x1b0] sm:$0xff] }
 0x37b   :  { %v1420_v17 = vpop.f32.mrf.mxu0  ;;  %v5468_v27 = vld [vmem:[#allocation2 + $0x180] sm:$0xff] }
 0x37c   :  { %v1427_v34 = vadd.f32 %v1420_v17, %v1304_v10  ;;  %v1441_v36 = vadd.f32 %v6281_v3, %v1426_v1  ;;  %v1444_v43 = vmax.f32 %v1440_v39, 0.0  ;;  %v5464_v1 = vld [vmem:[#allocation2 + $0x1a0] sm:$0xff]  ;;  %v5465_v10 = vld [vmem:[#allocation2 + $0x198] sm:$0xff]  ;;  %v5467_v17 = vld [vmem:[#allocation2 + $0x188] sm:$0xff] }
 0x37d   :  { %v1422_v11 = vpop.f32.mrf.mxu0  ;;  %v5475_v39 = vld [vmem:[#allocation2 + $0x148] sm:$0xff] }
 0x37e   :  { %v1442_v38 = vadd.f32 %v6284_v31, %v1427_v34  ;;  %v1428_v44 = vadd.f32 %v1422_v11, %v1305_v35  ;;  %v1445_v37 = vmax.f32 %v1441_v36, 0.0  ;;  %v5469_v34 = vld [vmem:[#allocation2 + $0x178] sm:$0xff]  ;;  %v5470_v35 = vld [vmem:[#allocation2 + $0x170] sm:$0xff]  ;;  %v5471_v11 = vld [vmem:[#allocation2 + $0x168] sm:$0xff] }
 0x37f   :  { %v5472_v36 = vld [vmem:[#allocation2 + $0x160] sm:$0xff] }
 0x380   :  { %v1443_v40 = vadd.f32 %v6281_v3, %v1428_v44  ;;  %v1446_v41 = vmax.f32 %v1442_v38, 0.0  ;;  %v1448_v48 = vmax.f32 %v1444_v43, %v1445_v37  ;;  %v5473_v38 = vld [vmem:[#allocation2 + $0x158] sm:$0xff]  ;;  %v5474_v44 = vld [vmem:[#allocation2 + $0x150] sm:$0xff]  ;;  %v5480_v43 = vld [vmem:[#allocation2 + $0x120] sm:$0xff] }
 0x381   :  { %v5477_v37 = vld [vmem:[#allocation2 + $0x138] sm:$0xff] }
 0x382   :  { %v1447_v42 = vmax.f32 %v1443_v40, 0.0  ;;  %v5476_v40 = vld [vmem:[#allocation2 + $0x140] sm:$0xff] }
 0x384   :  { %v1449_v47 = vmax.f32 %v1446_v41, %v1447_v42  ;;  %v5478_v41 = vld [vmem:[#allocation2 + $0x130] sm:$0xff]  ;;  %v5479_v42 = vld [vmem:[#allocation2 + $0x128] sm:$0xff] }
 0x386   :  { %5336 = vmatpush3.msk.msra.mxu1 %vm1219_vm6, %v1449_v47 }
 0x387   :  { %5337 = vmatprep.subr.mxu1 %v5900_v0 }
 0x388   :  { %5338 = vmatpush3.msra.mxu1 %v1448_v48 }
 0x389   :  { %5340 = vmatmul.mubr.msk.f32.vlgmr.msra.gmra.mxu1 %vm1450_vm7, %v181_v49  ;;  %5342 = vmatprep.subr.mxu1 %v5900_v0  ;;  %v5483_v49 = vld [vmem:[#allocation2 + $0x108] sm:$0xff] }
 0x38a   :  { %5343 = vmatpush3.msk.msra.mxu1 %vm1219_vm6, %v1449_v47  ;;  %5346 = vmatprep.mubr.msk.f32.mxu1 %vm5901_vm2, %v5900_v0  ;;  %v5481_v47 = vld [vmem:[#allocation2 + $0x118] sm:$0xff] }
 0x38b   :  { %5344 = vmatprep.subr.mxu1 %v5900_v0 }
 0x38c   :  { %5345 = vmatpush3.msra.mxu1 %v1448_v48  ;;  %v5482_v48 = vld [vmem:[#allocation2 + $0x110] sm:$0xff] }
 0x38d   :  { %5347 = vmatmul.mubr.msk.f32.vlgmr.msra.gmra.mxu1 %vm1450_vm7, %v5215_v50  ;;  %1637 = vmatprep.subr.mxu1 %v5453_v51  ;;  %v5484_v50 = vld [vmem:[#allocation2 + $0x100] sm:$0xff]  ;;  %v5485_v51 = vld [vmem:[#allocation2 + $0x2f8] sm:$0xff] }
 0x38e   :  { %1638 = vmatpush1.msra.mxu1 %v5454_v52  ;;  %1701 = vmatprep.mubr.f32.mxu1 %v5900_v0  ;;  %v5486_v52 = vld [vmem:[#allocation2 + $0x2f0] sm:$0xff] }
 0x38f   :  { %1639 = vmatprep.subr.mxu1 %v5455_v53  ;;  %v5487_v53 = vld [vmem:[#allocation2 + $0x2e8] sm:$0xff] }
 0x390   :  { %1640 = vmatpush1.msra.mxu1 %v5456_v54  ;;  %v5488_v54 = vld [vmem:[#allocation2 + $0x2e0] sm:$0xff] }
 0x391   :  { %1641 = vmatprep.subr.mxu1 %v5457_v55  ;;  %v5489_v55 = vld [vmem:[#allocation2 + $0x2d8] sm:$0xff] }
 0x392   :  { %1642 = vmatpush1.msra.mxu1 %v5458_v56  ;;  %v5490_v56 = vld [vmem:[#allocation2 + $0x2d0] sm:$0xff] }
 0x393   :  { %1643 = vmatprep.subr.mxu1 %v5459_v57  ;;  %v5491_v57 = vld [vmem:[#allocation2 + $0x2c8] sm:$0xff] }
 0x394   :  { %1644 = vmatpush1.msra.mxu1 %v5460_v58  ;;  %v5493_v58 = vld [vmem:[#allocation2 + $0x2b8] sm:$0xff] }
 0x395   :  { %1645 = vmatprep.subr.mxu1 %v5461_v59  ;;  %v5494_v59 = vld [vmem:[#allocation2 + $0x2b0] sm:$0xff] }
 0x396   :  { %1646 = vmatpush1.msra.mxu1 %v5462_v61  ;;  %v5495_v61 = vld [vmem:[#allocation2 + $0x2a8] sm:$0xff] }
 0x397   :  { %1647 = vmatprep.subr.mxu1 %v5463_v62  ;;  %v5496_v62 = vld [vmem:[#allocation2 + $0x2a0] sm:$0xff] }
 0x398   :  { %1648 = vmatpush1.msra.mxu1 %v5464_v1  ;;  %v5498_v1 = vld [vmem:[#allocation2 + $0x290] sm:$0xff] }
 0x399   :  { %1649 = vmatprep.subr.mxu1 %v5465_v10  ;;  %v5499_v10 = vld [vmem:[#allocation2 + $0x288] sm:$0xff] }
 0x39a   :  { %1650 = vmatpush1.msra.mxu1 %v5466_v13  ;;  %v5500_v13 = vld [vmem:[#allocation2 + $0x280] sm:$0xff] }
 0x39b   :  { %1651 = vmatprep.subr.mxu1 %v5467_v17  ;;  %v5502_v17 = vld [vmem:[#allocation2 + $0x270] sm:$0xff] }
 0x39c   :  { %1652 = vmatpush1.msra.mxu1 %v5468_v27  ;;  %v5503_v27 = vld [vmem:[#allocation2 + $0x268] sm:$0xff] }
 0x39d   :  { %1653 = vmatprep.subr.mxu1 %v5469_v34  ;;  %v5505_v34 = vld [vmem:[#allocation2 + $0x258] sm:$0xff] }
 0x39e   :  { %1654 = vmatpush1.msra.mxu1 %v5470_v35  ;;  %v5506_v35 = vld [vmem:[#allocation2 + $0x250] sm:$0xff] }
 0x39f   :  { %1655 = vmatprep.subr.mxu1 %v5471_v11  ;;  %v5507_v11 = vld [vmem:[#allocation2 + $0x248] sm:$0xff] }
 0x3a0   :  { %1656 = vmatpush1.msra.mxu1 %v5472_v36  ;;  %v5508_v36 = vld [vmem:[#allocation2 + $0x240] sm:$0xff] }
 0x3a1   :  { %1657 = vmatprep.subr.mxu1 %v5473_v38  ;;  %v5509_v38 = vld [vmem:[#allocation2 + $0x238] sm:$0xff] }
 0x3a2   :  { %1658 = vmatpush1.msra.mxu1 %v5474_v44  ;;  %v5510_v44 = vld [vmem:[#allocation2 + $0x230] sm:$0xff] }
 0x3a3   :  { %1659 = vmatprep.subr.mxu1 %v5475_v39  ;;  %v5512_v39 = vld [vmem:[#allocation2 + $0x220] sm:$0xff] }
 0x3a4   :  { %1660 = vmatpush1.msra.mxu1 %v5476_v40  ;;  %v5513_v40 = vld [vmem:[#allocation2 + $0x218] sm:$0xff] }
 0x3a5   :  { %1661 = vmatprep.subr.mxu1 %v5477_v37  ;;  %v5514_v37 = vld [vmem:[#allocation2 + $0x210] sm:$0xff] }
 0x3a6   :  { %1662 = vmatpush1.msra.mxu1 %v5478_v41  ;;  %v5515_v41 = vld [vmem:[#allocation2 + $0x208] sm:$0xff] }
 0x3a7   :  { %1663 = vmatprep.subr.mxu1 %v5479_v42  ;;  %v5516_v42 = vld [vmem:[#allocation2 + $0x200] sm:$0xff] }
 0x3a8   :  { %1664 = vmatpush1.msra.mxu1 %v5480_v43  ;;  %v5517_v43 = vld [vmem:[#allocation6 + $0x1f8] sm:$0xff] }
 0x3a9   :  { %1665 = vmatprep.subr.mxu1 %v5481_v47  ;;  %v5518_v47 = vld [vmem:[#allocation6 + $0x1f0] sm:$0xff] }
 0x3aa   :  { %1666 = vmatpush1.msra.mxu1 %v5482_v48  ;;  %v5519_v48 = vld [vmem:[#allocation6 + $0x1e8] sm:$0xff] }
 0x3ab   :  { %1667 = vmatprep.subr.mxu1 %v5483_v49  ;;  %v5520_v49 = vld [vmem:[#allocation6 + $0x1e0] sm:$0xff] }
 0x3ac   :  { %1668 = vmatpush1.msra.mxu1 %v5484_v50  ;;  %v5521_v50 = vld [vmem:[#allocation6 + $0x1d8] sm:$0xff] }
 0x3ad   :  { %1702 = vmatmul.mubr.f32.vlgmr.msra.gmra.mxu1 %v6234_v60  ;;  %1841 = vmatprep.subr.mxu1 %v5485_v51  ;;  %v5492_v60 = vld [vmem:[#allocation2 + $0x2c0] sm:$0xff]  ;;  %v5522_v51 = vld [vmem:[#allocation6 + $0x1d0] sm:$0xff] }
 0x3ae   :  { %1842 = vmatpush1.msra.mxu1 %v5486_v52  ;;  %1707 = vmatprep.mubr.f32.mxu1 %v5900_v0  ;;  %v5523_v52 = vld [vmem:[#allocation6 + $0x1c8] sm:$0xff] }
 0x3af   :  { %1843 = vmatprep.subr.mxu1 %v5487_v53  ;;  %v5525_v53 = vld [vmem:[#allocation6 + $0x1b8] sm:$0xff] }
 0x3b0   :  { %1844 = vmatpush1.msra.mxu1 %v5488_v54  ;;  %v5526_v54 = vld [vmem:[#allocation6 + $0x1b0] sm:$0xff] }
 0x3b1   :  { %1845 = vmatprep.subr.mxu1 %v5489_v55  ;;  %1708 = vmatmul.mubr.f32.gmra.mxu1 %v6242_v63  ;;  %v5497_v63 = vld [vmem:[#allocation2 + $0x298] sm:$0xff]  ;;  %v5527_v55 = vld [vmem:[#allocation6 + $0x1a8] sm:$0xff] }
 0x3b2   :  { %1846 = vmatpush1.msra.mxu1 %v5490_v56  ;;  %1713 = vmatprep.mubr.f32.mxu1 %v5900_v0  ;;  %v5529_v56 = vld [vmem:[#allocation6 + $0x198] sm:$0xff] }
 0x3b3   :  { %1847 = vmatprep.subr.mxu1 %v5491_v57  ;;  %v5530_v57 = vld [vmem:[#allocation6 + $0x190] sm:$0xff] }
 0x3b4   :  { %1848 = vmatpush1.msra.mxu1 %v5492_v60  ;;  %v5531_v60 = vld [vmem:[#allocation6 + $0x188] sm:$0xff] }
 0x3b5   :  { %1849 = vmatprep.subr.mxu1 %v5493_v58  ;;  %1714 = vmatmul.mubr.f32.gmra.mxu1 %v6249_v4  ;;  %v5501_v4 = vld [vmem:[#allocation2 + $0x278] sm:$0xff] }
 0x3b6   :  { %1850 = vmatpush1.msra.mxu1 %v5494_v59  ;;  %1719 = vmatprep.mubr.f32.mxu1 %v5900_v0  ;;  %v5533_v58 = vld [vmem:[#allocation6 + $0x178] sm:$0xff]  ;;  %v5534_v59 = vld [vmem:[#allocation6 + $0x170] sm:$0xff] }
 0x3b7   :  { %1851 = vmatprep.subr.mxu1 %v5495_v61  ;;  %v5536_v61 = vld [vmem:[#allocation6 + $0x160] sm:$0xff] }
 0x3b8   :  { %1852 = vmatpush1.msra.mxu1 %v5496_v62 }
 0x3b9   :  { %1853 = vmatprep.subr.mxu1 %v5497_v63  ;;  %1720 = vmatmul.mubr.f32.gmra.mxu1 %v6263_v8  ;;  %v5504_v8 = vld [vmem:[#allocation2 + $0x260] sm:$0xff] }
 0x3ba   :  { %1854 = vmatpush1.msra.mxu1 %v5498_v1  ;;  %1725 = vmatprep.mubr.f32.mxu1 %v5900_v0 }
 0x3bb   :  { %1855 = vmatprep.subr.mxu1 %v5499_v10 }
 0x3bc   :  { %1856 = vmatpush1.msra.mxu1 %v5500_v13 }
 0x3bd   :  { %1857 = vmatprep.subr.mxu1 %v5501_v4  ;;  %1726 = vmatmul.mubr.f32.gmra.mxu1 %v1630_v7  ;;  %v5511_v7 = vld [vmem:[#allocation2 + $0x228] sm:$0xff] }
 0x3be   :  { %1858 = vmatpush1.msra.mxu1 %v5502_v17  ;;  %1905 = vmatprep.mubr.f32.mxu1 %v5900_v0 }
 0x3bf   :  { %1859 = vmatprep.subr.mxu1 %v5503_v27 }
 0x3c0   :  { %1860 = vmatpush1.msra.mxu1 %v5504_v8 }
 0x3c1   :  { %1861 = vmatprep.subr.mxu1 %v5505_v34 }
 0x3c2   :  { %1862 = vmatpush1.msra.mxu1 %v5506_v35 }
 0x3c3   :  { %1863 = vmatprep.subr.mxu1 %v5507_v11 }
 0x3c4   :  { %1864 = vmatpush1.msra.mxu1 %v5508_v36 }
 0x3c5   :  { %1865 = vmatprep.subr.mxu1 %v5509_v38 }
 0x3c6   :  { %1866 = vmatpush1.msra.mxu1 %v5510_v44 }
 0x3c7   :  { %1867 = vmatprep.subr.mxu1 %v5511_v7 }
 0x3c8   :  { %1868 = vmatpush1.msra.mxu1 %v5512_v39 }
 0x3c9   :  { %1869 = vmatprep.subr.mxu1 %v5513_v40 }
 0x3ca   :  { %1870 = vmatpush1.msra.mxu1 %v5514_v37 }
 0x3cb   :  { %1871 = vmatprep.subr.mxu1 %v5515_v41 }
 0x3cc   :  { %1872 = vmatpush1.msra.mxu1 %v5516_v42 }
 0x3cd   :  { %1906 = vmatmul.mubr.f32.vlgmr.msra.gmra.mxu1 %v6266_v15  ;;  %2144 = vmatprep.subr.mxu1 %v5517_v43  ;;  %v5524_v15 = vld [vmem:[#allocation6 + $0x1c0] sm:$0xff] }
 0x3ce   :  { %1911 = vmatprep.mubr.f32.mxu1 %v5900_v0  ;;  %2145 = vmatpush1.msra.mxu1 %v5518_v47 }
 0x3cf   :  { %2146 = vmatprep.subr.mxu1 %v5519_v48 }
 0x3d0   :  { %2147 = vmatpush1.msra.mxu1 %v5520_v49 }
 0x3d1   :  { %1912 = vmatmul.mubr.f32.gmra.mxu1 %v6269_v19  ;;  %2148 = vmatprep.subr.mxu1 %v5521_v50  ;;  %v5528_v19 = vld [vmem:[#allocation6 + $0x1a0] sm:$0xff] }
 0x3d2   :  { %1917 = vmatprep.mubr.f32.mxu1 %v5900_v0  ;;  %2149 = vmatpush1.msra.mxu1 %v5522_v51 }
 0x3d3   :  { %2150 = vmatprep.subr.mxu1 %v5523_v52 }
 0x3d4   :  { %2151 = vmatpush1.msra.mxu1 %v5524_v15 }
 0x3d5   :  { %1918 = vmatmul.mubr.f32.gmra.mxu1 %v6272_v2  ;;  %2152 = vmatprep.subr.mxu1 %v5525_v53  ;;  %v5532_v2 = vld [vmem:[#allocation6 + $0x180] sm:$0xff] }
 0x3d6   :  { %1923 = vmatprep.mubr.f32.mxu1 %v5900_v0  ;;  %2153 = vmatpush1.msra.mxu1 %v5526_v54 }
 0x3d7   :  { %2154 = vmatprep.subr.mxu1 %v5527_v55 }
 0x3d8   :  { %2155 = vmatpush1.msra.mxu1 %v5528_v19 }
 0x3d9   :  { %1924 = vmatmul.mubr.f32.gmra.mxu1 %v6278_v30  ;;  %2156 = vmatprep.subr.mxu1 %v5529_v56  ;;  %v5535_v30 = vld [vmem:[#allocation6 + $0x168] sm:$0xff] }
 0x3da   :  { %1929 = vmatprep.mubr.f32.mxu1 %v5900_v0  ;;  %2157 = vmatpush1.msra.mxu1 %v5530_v57 }
 0x3db   :  { %2158 = vmatprep.subr.mxu1 %v5531_v60 }
 0x3dc   :  { %2159 = vmatpush1.msra.mxu1 %v5532_v2 }
 0x3dd   :  { %1930 = vmatmul.mubr.f32.gmra.mxu1 %v1834_v29  ;;  %2160 = vmatprep.subr.mxu1 %v5533_v58 }
 0x3de   :  { %2161 = vmatpush1.msra.mxu1 %v5534_v59  ;;  %2208 = vmatprep.mubr.f32.mxu1 %v5900_v0 }
 0x3df   :  { %2162 = vmatprep.subr.mxu1 %v5535_v30 }
 0x3e0   :  { %2163 = vmatpush1.msra.mxu1 %v5536_v61 }
 0x3e1   :  { %2164 = vmatprep.subr.mxu1 %v6149_v9 }
 0x3e2   :  { %2165 = vmatpush1.msra.mxu1 %v6152_v5 }
 0x3e3   :  { %2166 = vmatprep.subr.mxu1 %v6155_v12 }
 0x3e4   :  { %2167 = vmatpush1.msra.mxu1 %v6158_v14 }
 0x3e5   :  { %2168 = vmatprep.subr.mxu1 %v6161_v16 }
 0x3e6   :  { %2169 = vmatpush1.msra.mxu1 %v6164_v18 }
 0x3e7   :  { %2170 = vmatprep.subr.mxu1 %v6167_v20 }
 0x3e8   :  { %2171 = vmatpush1.msra.mxu1 %v6170_v21 }
 0x3e9   :  { %2172 = vmatprep.subr.mxu1 %v6173_v22  ;;  %v1798_v22 = vpop.f32.mrf.mxu0 }
 0x3ea   :  { %2173 = vmatpush1.msra.mxu1 %v6176_v23 }
 0x3eb   :  { %2174 = vmatprep.subr.mxu1 %v6179_v24  ;;  %v1800_v23 = vpop.f32.mrf.mxu0 }
 0x3ec   :  { %2175 = vmatpush1.msra.mxu1 %v6182_v25 }
 0x3ed   :  { %2303 = vmatprep.subr.mxu1 %v6185_v26  ;;  %v1804_v63 = vpop.f32.mrf.mxu0 }
 0x3ef   :  { %v1806_v1 = vpop.f32.mrf.mxu0 }
 0x3f1   :  { %v1810_v10 = vpop.f32.mrf.mxu0 }
 0x3f3   :  { %v1812_v13 = vpop.f32.mrf.mxu0 }
 0x3f5   :  { %v1816_v27 = vpop.f32.mrf.mxu0 }
 0x3f7   :  { %v1818_v35 = vpop.f32.mrf.mxu0 }
 0x3f9   :  { %v1822_v38 = vpop.f32.mrf.mxu0 }
 0x3fb   :  { %v1824_v40 = vpop.f32.mrf.mxu0 }
 0x449   :  { %v1523_v9 = vpop.f32.mrf.mxu1 }
 0x44b   :  { %v5341_v5 = vpop.f32.mrf.mxu1 }
 0x44d   :  { %v1596_v12 = vpop.f32.mrf.mxu1 }
 0x44e   :  { %v6341_v14 = vmax.f32 %v1523_v9, %v1596_v12 }
 0x44f   :  { %v5348_v16 = vpop.f32.mrf.mxu1 }
 0x46d   :  { %v1703_v18 = vpop.f32.mrf.mxu1 }
 0x46e   :  { %v1799_v59 = vadd.f32 %v1798_v22, %v1703_v18 }
 0x46f   :  { %v1705_v20 = vpop.f32.mrf.mxu1 }
 0x470   :  { %v1801_v54 = vadd.f32 %v1800_v23, %v1705_v20 }
 0x471   :  { %v1709_v6 = vpop.f32.mrf.mxu1 }
 0x472   :  { %v1805_v55 = vadd.f32 %v1804_v63, %v1709_v6 }
 0x473   :  { %v1711_v21 = vpop.f32.mrf.mxu1 }
 0x474   :  { %v1807_v48 = vadd.f32 %v1806_v1, %v1711_v21 }
 0x475   :  { %v1715_v29 = vpop.f32.mrf.mxu1 }
 0x476   :  { %v1811_v49 = vadd.f32 %v1810_v10, %v1715_v29 }
 0x477   :  { %v1717_v62 = vpop.f32.mrf.mxu1 }
 0x478   :  { %v1813_v41 = vadd.f32 %v1812_v13, %v1717_v62 }
 0x479   :  { %v1721_v24 = vpop.f32.mrf.mxu1 }
 0x47a   :  { %v1817_v42 = vadd.f32 %v1816_v27, %v1721_v24 }
 0x47b   :  { %v1723_v25 = vpop.f32.mrf.mxu1 }
 0x47c   :  { %v1819_v39 = vadd.f32 %v1818_v35, %v1723_v25  ;;  %v5539_v35 = vld [vmem:[%s7405_s5 + $0x10] sm:$0x1] }
 0x47d   :  { %v1727_v26 = vpop.f32.mrf.mxu1 }
 0x47e   :  { %v1823_v43 = vadd.f32 %v1822_v38, %v1727_v26  ;;  %v5542_v38 = vld [vmem:[#allocation6 + $0xf0] sm:$0xff] }
 0x47f   :  { %v1729_v4 = vpop.f32.mrf.mxu1 }
 0x480   :  { %v1825_v51 = vadd.f32 %v1824_v40, %v1729_v4  ;;  %v5546_v40 = vld [vmem:[#allocation6 + $0xd8] sm:$0xff] }
 0x48d   :  { %v1907_v17 = vpop.f32.mrf.mxu1 }
 0x48e   :  { %v1936_v16 = vadd.f32 %v1907_v17, %v1799_v59  ;;  %v5567_v59 = vld [vmem:[#allocation6 + $0x38] sm:$0xff] }
 0x48f   :  { %v1909_v8 = vpop.f32.mrf.mxu1 }
 0x490   :  { %v1937_v30 = vadd.f32 %v1909_v8, %v1801_v54  ;;  %v1946_v1 = vadd.f32 %v1936_v16, %v6088_v45  ;;  %v5559_v54 = vld [vmem:[#allocation6 + $0x78] sm:$0xff]  ;;  %v5573_v16 = vld [vmem:[#allocation6 + $0x8] sm:$0xff] }
 0x491   :  { %v1913_v34 = vpop.f32.mrf.mxu1 }
 0x492   :  { %v1938_v61 = vadd.f32 %v1913_v34, %v1805_v55  ;;  %v1947_v23 = vadd.f32 %v1937_v30, %v6091_v46  ;;  %v5538_v34 = vld [vmem:[%s7405_s5 + $0x8] sm:$0xff]  ;;  %v5560_v55 = vld [vmem:[#allocation6 + $0x70] sm:$0xff] }
 0x493   :  { %v1915_v11 = vpop.f32.mrf.mxu1  ;;  %v5568_v30 = vld [vmem:[#allocation6 + $0x30] sm:$0xff] }
 0x494   :  { %v1939_v19 = vadd.f32 %v1915_v11, %v1807_v48  ;;  %v1948_v18 = vadd.f32 %v1938_v61, %v6088_v45  ;;  %v1957_v13 = vmax.f32 %v1947_v23, 0.0  ;;  %v5540_v11 = vld [vmem:[#allocation6 + $0xf8] sm:$0xff]  ;;  %v5552_v48 = vld [vmem:[#allocation6 + $0xb0] sm:$0xff]  ;;  %v5569_v61 = vld [vmem:[#allocation6 + $0x28] sm:$0xff] }
 0x495   :  { %v1919_v36 = vpop.f32.mrf.mxu1 }
 0x496   :  { %v1940_v57 = vadd.f32 %v1919_v36, %v1811_v49  ;;  %v1949_v20 = vadd.f32 %v1939_v19, %v6091_v46  ;;  %v1958_v4 = vmax.f32 %v1948_v18, 0.0  ;;  %v5541_v36 = vld [vmem:[%s7405_s5 + $0x18] sm:$0xff]  ;;  %v5553_v49 = vld [vmem:[#allocation6 + $0xa8] sm:$0xff] }
 0x497   :  { %v1921_v44 = vpop.f32.mrf.mxu1  ;;  %v5561_v19 = vld [vmem:[#allocation6 + $0x68] sm:$0xff] }
 0x498   :  { %v1941_v52 = vadd.f32 %v1921_v44, %v1813_v41  ;;  %v1950_v6 = vadd.f32 %v1940_v57, %v6088_v45  ;;  %v1959_v25 = vmax.f32 %v1949_v20, 0.0  ;;  %v5543_v44 = vld [vmem:[#allocation6 + $0xe8] sm:$0xff]  ;;  %v5563_v57 = vld [vmem:[#allocation6 + $0x58] sm:$0xff]  ;;  %v5574_v20 = vld [vmem:[#allocation6] sm:$0xff] }
 0x499   :  { %v1925_v7 = vpop.f32.mrf.mxu1  ;;  %v5548_v41 = vld [vmem:[#allocation6 + $0xc8] sm:$0xff] }
 0x49a   :  { %v1942_v15 = vadd.f32 %v1925_v7, %v1817_v42  ;;  %v1951_v9 = vadd.f32 %v1941_v52, %v6091_v46  ;;  %v1960_v10 = vmax.f32 %v1950_v6, 0.0  ;;  %v1967_v27 = vmax.f32 %v1958_v4, %v1959_v25  ;;  %v5544_v7 = vld [vmem:[#allocation6 + $0xe0] sm:$0xff]  ;;  %v5556_v52 = vld [vmem:[#allocation6 + $0x90] sm:$0xff]  ;;  %v5575_v6 = vld [vmem:[#allocation6 + $0x3f8] sm:$0xff] }
 0x49b   :  { %v1927_v37 = vpop.f32.mrf.mxu1  ;;  %v5549_v42 = vld [vmem:[#allocation6 + $0xc0] sm:$0xff]  ;;  %v5576_v25 = vld [vmem:[#allocation6 + $0x3f0] sm:$0xff] }
 0x49c   :  { %v1943_v47 = vadd.f32 %v1927_v37, %v1819_v39  ;;  %v1952_v5 = vadd.f32 %v1942_v15, %v6088_v45  ;;  %v1961_v22 = vmax.f32 %v1951_v9, 0.0  ;;  %v5545_v39 = vld [vmem:[%s7405_s5 + $0x20] sm:$0xff]  ;;  %v5547_v37 = vld [vmem:[#allocation6 + $0xd0] sm:$0xff]  ;;  %v5557_v15 = vld [vmem:[#allocation6 + $0x88] sm:$0xff] }
 0x49d   :  { %v1931_v50 = vpop.f32.mrf.mxu1  ;;  %v5570_v9 = vld [vmem:[#allocation6 + $0x20] sm:$0xff] }
 0x49e   :  { %v1944_v53 = vadd.f32 %v1931_v50, %v1823_v43  ;;  %v1953_v60 = vadd.f32 %v1943_v47, %v6091_v46  ;;  %v1962_v63 = vmax.f32 %v1952_v5, 0.0  ;;  %v1968_v17 = vmax.f32 %v1960_v10, %v1961_v22  ;;  %v5550_v43 = vld [vmem:[%s7405_s5 + $0x28] sm:$0x1]  ;;  %v5551_v47 = vld [vmem:[#allocation6 + $0xb8] sm:$0xff] }
 0x49f   :  { %v1933_v56 = vpop.f32.mrf.mxu1  ;;  %v5554_v50 = vld [vmem:[#allocation6 + $0xa0] sm:$0xff]  ;;  %v5571_v5 = vld [vmem:[#allocation6 + $0x18] sm:$0xff] }
 0x4a0   :  { %v1954_v2 = vadd.f32 %v1944_v53, %v6088_v45  ;;  %v1945_v58 = vadd.f32 %v1933_v56, %v1825_v51  ;;  %v1963_v21 = vmax.f32 %v1953_v60, 0.0  ;;  %v5537_v45 = vld [vmem:[%s7405_s5] sm:$0xff]  ;;  %v5564_v60 = vld [vmem:[#allocation6 + $0x50] sm:$0xff] }
 0x4a1   :  { %v5555_v51 = vld [vmem:[#allocation6 + $0x98] sm:$0xff]  ;;  %v5558_v53 = vld [vmem:[#allocation6 + $0x80] sm:$0xff] }
 0x4a2   :  { %v1955_v12 = vadd.f32 %v1945_v58, %v6091_v46  ;;  %v1964_v29 = vmax.f32 %v1954_v2, 0.0  ;;  %v1969_v26 = vmax.f32 %v1962_v63, %v1963_v21  ;;  %v1956_v46 = vmax.f32 %v1946_v1, 0.0  ;;  %v5562_v56 = vld [vmem:[#allocation6 + $0x60] sm:$0xff]  ;;  %v5565_v2 = vld [vmem:[#allocation6 + $0x48] sm:$0xff] }
 0x4a3   :  { %v5566_v58 = vld [vmem:[#allocation6 + $0x40] sm:$0xff] }
 0x4a4   :  { %v1965_v62 = vmax.f32 %v1955_v12, 0.0  ;;  %v1966_v8 = vmax.f32 %v1956_v46, %v1957_v13  ;;  %v5572_v12 = vld [vmem:[#allocation6 + $0x10] sm:$0xff]  ;;  %v5577_v13 = vld [vmem:[#allocation6 + $0x3e8] sm:$0xff]  ;;  %v5578_v4 = vld [vmem:[#allocation6 + $0x3e0] sm:$0xff] }
 0x4a5   :  { %v5579_v46 = vld [vmem:[#allocation6 + $0x3d8] sm:$0xff] }
 0x4a6   :  { %v1970_v24 = vmax.f32 %v1964_v29, %v1965_v62 }
 0x4a8   :  { %5350 = vmatpush3.msk.msra.mxu0 %vm665_vm3, %v1970_v24 }
 0x4a9   :  { %5351 = vmatprep.subr.mxu0 %v5900_v0 }
 0x4aa   :  { %5352 = vmatpush3.msra.mxu0 %v1969_v26 }
 0x4ab   :  { %5353 = vmatprep.subr.mxu0 %v5900_v0 }
 0x4ac   :  { %5354 = vmatpush3.msra.mxu0 %v1968_v17 }
 0x4ad   :  { %5355 = vmatprep.subr.mxu0 %v5900_v0 }
 0x4ae   :  { %5356 = vmatpush3.msra.mxu0 %v1967_v27 }
 0x4af   :  { %5357 = vmatprep.subr.mxu0 %v5900_v0 }
 0x4b0   :  { %5358 = vmatpush3.msra.mxu0 %v1966_v8 }
 0x4b1   :  { %5360 = vmatmul.mubr.msk.f32.vlgmr.msra.gmra.mxu0 %vm655_vm4, %v5537_v45  ;;  %5368 = vmatprep.subr.mxu0 %v5900_v0 }
 0x4b2   :  { %5369 = vmatpush3.msk.msra.mxu0 %vm665_vm3, %v1970_v24  ;;  %5362 = vmatprep.mubr.msk.f32.mxu0 %vm5901_vm2, %v5900_v0 }
 0x4b3   :  { %5370 = vmatprep.subr.mxu0 %v5900_v0 }
 0x4b4   :  { %5371 = vmatpush3.msra.mxu0 %v1969_v26 }
 0x4b5   :  { %5363 = vmatmul.mubr.msk.f32.gmra.mxu0 %vm655_vm4, %v5538_v34  ;;  %5372 = vmatprep.subr.mxu0 %v5900_v0  ;;  %v5580_v34 = vld [vmem:[#allocation6 + $0x3d0] sm:$0xff] }
 0x4b6   :  { %5373 = vmatpush3.msra.mxu0 %v1968_v17  ;;  %5365 = vmatprep.mubr.msk.f32.mxu0 %vm5901_vm2, %v5900_v0 }
 0x4b7   :  { %5374 = vmatprep.subr.mxu0 %v5900_v0 }
 0x4b8   :  { %5375 = vmatpush3.msra.mxu0 %v1967_v27 }
 0x4b9   :  { %5366 = vmatmul.mubr.msk.f32.gmra.mxu0 %vm655_vm4, %v5539_v35  ;;  %5376 = vmatprep.subr.mxu0 %v5900_v0 }
 0x4ba   :  { %5377 = vmatpush3.msra.mxu0 %v1966_v8  ;;  %5378 = vmatprep.mubr.msk.f32.mxu0 %vm5901_vm2, %v5900_v0 }
 0x4bb   :  { %2221 = vmatprep.subr.mxu0 %v5540_v11 }
 0x4bd   :  { %5379 = vmatmul.mubr.msk.f32.vlgmr.msra.gmra.mxu0 %vm655_vm4, %v5541_v36 }
 0x4be   :  { %5381 = vmatprep.mubr.msk.f32.mxu0 %vm5901_vm2, %v5900_v0  ;;  %2222 = vmatpush1.msra.mxu0 %v5542_v38  ;;  %v5581_v38 = vld [vmem:[#allocation6 + $0x3c8] sm:$0xff] }
 0x4bf   :  { %2223 = vmatprep.subr.mxu0 %v5543_v44 }
 0x4c0   :  { %2224 = vmatpush1.msra.mxu0 %v5544_v7  ;;  %v5582_v7 = vld [vmem:[#allocation6 + $0x3c0] sm:$0xff] }
 0x4c1   :  { %5382 = vmatmul.mubr.msk.f32.gmra.mxu0 %vm655_vm4, %v5545_v39  ;;  %2225 = vmatprep.subr.mxu0 %v5546_v40 }
 0x4c2   :  { %5384 = vmatprep.mubr.msk.f32.mxu0 %vm5901_vm2, %v5900_v0  ;;  %2226 = vmatpush1.msra.mxu0 %v5547_v37 }
 0x4c3   :  { %2227 = vmatprep.subr.mxu0 %v5548_v41  ;;  %v5583_v41 = vld [vmem:[#allocation6 + $0x2f0] sm:$0xff] }
 0x4c4   :  { %2228 = vmatpush1.msra.mxu0 %v5549_v42  ;;  %v5584_v42 = vld [vmem:[#allocation6 + $0x3b8] sm:$0xff] }
 0x4c5   :  { %5385 = vmatmul.mubr.msk.f32.gmra.mxu0 %vm655_vm4, %v5550_v43  ;;  %2229 = vmatprep.subr.mxu0 %v5551_v47  ;;  %v5585_v43 = vld [vmem:[#allocation6 + $0x2e8] sm:$0xff]  ;;  %v5586_v47 = vld [vmem:[#allocation6 + $0x3b0] sm:$0xff] }
 0x4c6   :  { %2230 = vmatpush1.msra.mxu0 %v5552_v48  ;;  %2285 = vmatprep.mubr.f32.mxu0 %v5900_v0  ;;  %v5587_v48 = vld [vmem:[#allocation6 + $0x2e0] sm:$0xff] }
 0x4c7   :  { %2231 = vmatprep.subr.mxu0 %v5553_v49  ;;  %v5588_v49 = vld [vmem:[#allocation6 + $0x3a8] sm:$0xff] }
 0x4c8   :  { %2232 = vmatpush1.msra.mxu0 %v5554_v50 }
 0x4c9   :  { %2233 = vmatprep.subr.mxu0 %v5555_v51  ;;  %v5589_v51 = vld [vmem:[#allocation6 + $0x2d8] sm:$0xff] }
 0x4ca   :  { %2234 = vmatpush1.msra.mxu0 %v5556_v52  ;;  %v5590_v52 = vld [vmem:[#allocation6 + $0x3a0] sm:$0xff] }
 0x4cb   :  { %2235 = vmatprep.subr.mxu0 %v5557_v15  ;;  %v5591_v15 = vld [vmem:[#allocation6 + $0x2d0] sm:$0xff] }
 0x4cc   :  { %2236 = vmatpush1.msra.mxu0 %v5558_v53  ;;  %v5592_v53 = vld [vmem:[#allocation6 + $0x398] sm:$0xff] }
 0x4cd   :  { %2237 = vmatprep.subr.mxu0 %v5559_v54  ;;  %v5593_v54 = vld [vmem:[#allocation6 + $0x2c8] sm:$0xff] }
 0x4ce   :  { %2238 = vmatpush1.msra.mxu0 %v5560_v55  ;;  %v5594_v55 = vld [vmem:[#allocation6 + $0x390] sm:$0xff] }
 0x4cf   :  { %2239 = vmatprep.subr.mxu0 %v5561_v19  ;;  %v5595_v19 = vld [vmem:[#allocation6 + $0x2c0] sm:$0xff] }
 0x4d0   :  { %2240 = vmatpush1.msra.mxu0 %v5562_v56  ;;  %v5596_v56 = vld [vmem:[#allocation6 + $0x388] sm:$0xff] }
 0x4d1   :  { %2241 = vmatprep.subr.mxu0 %v5563_v57  ;;  %v5597_v57 = vld [vmem:[#allocation6 + $0x2b8] sm:$0xff] }
 0x4d2   :  { %2242 = vmatpush1.msra.mxu0 %v5564_v60  ;;  %v5598_v60 = vld [vmem:[#allocation6 + $0x380] sm:$0xff] }
 0x4d3   :  { %2243 = vmatprep.subr.mxu0 %v5565_v2  ;;  %v5599_v2 = vld [vmem:[#allocation6 + $0x2b0] sm:$0xff] }
 0x4d4   :  { %2244 = vmatpush1.msra.mxu0 %v5566_v58  ;;  %v5600_v58 = vld [vmem:[#allocation6 + $0x378] sm:$0xff] }
 0x4d5   :  { %2245 = vmatprep.subr.mxu0 %v5567_v59  ;;  %v5601_v59 = vld [vmem:[#allocation6 + $0x2a8] sm:$0xff] }
 0x4d6   :  { %2246 = vmatpush1.msra.mxu0 %v5568_v30  ;;  %v5602_v30 = vld [vmem:[#allocation6 + $0x370] sm:$0xff] }
 0x4d7   :  { %2247 = vmatprep.subr.mxu0 %v5569_v61  ;;  %v5603_v61 = vld [vmem:[#allocation6 + $0x2a0] sm:$0xff] }
 0x4d8   :  { %2248 = vmatpush1.msra.mxu0 %v5570_v9  ;;  %v5604_v9 = vld [vmem:[#allocation6 + $0x368] sm:$0xff] }
 0x4d9   :  { %2249 = vmatprep.subr.mxu0 %v5571_v5  ;;  %v5605_v5 = vld [vmem:[#allocation6 + $0x298] sm:$0xff] }
 0x4da   :  { %2250 = vmatpush1.msra.mxu0 %v5572_v12  ;;  %v5606_v12 = vld [vmem:[#allocation6 + $0x360] sm:$0xff] }
 0x4db   :  { %2251 = vmatprep.subr.mxu0 %v5573_v16  ;;  %v5607_v16 = vld [vmem:[#allocation6 + $0x290] sm:$0xff] }
 0x4dc   :  { %2252 = vmatpush1.msra.mxu0 %v5574_v20  ;;  %v5608_v20 = vld [vmem:[#allocation6 + $0x358] sm:$0xff] }
 0x4dd   :  { %2389 = vmatprep.subr.mxu0 %v5575_v6  ;;  %v5609_v6 = vld [vmem:[#allocation6 + $0x288] sm:$0xff] }
 0x571   :  { %v2040_v21 = vpop.f32.mrf.mxu0 }
 0x573   :  { %v5361_v29 = vpop.f32.mrf.mxu0 }
 0x574   :  { %v5611_v29 = vld [vmem:[#allocation6 + $0x280] sm:$0xff] }
 0x575   :  { %v2045_v62 = vpop.f32.mrf.mxu0 }
 0x577   :  { %v5364_v23 = vpop.f32.mrf.mxu0 }
 0x578   :  { %v5613_v23 = vld [vmem:[#allocation6 + $0x278] sm:$0xff] }
 0x579   :  { %v2050_v18 = vpop.f32.mrf.mxu0 }
 0x57b   :  { %v5367_v22 = vpop.f32.mrf.mxu0 }
 0x57c   :  { %v5615_v22 = vld [vmem:[#allocation6 + $0x270] sm:$0xff] }
 0x57d   :  { %v2120_v63 = vpop.f32.mrf.mxu0 }
 0x57e   :  { %v6399_v24 = vmax.f32 %v2040_v21, %v2120_v63  ;;  %v5610_v21 = vld [vmem:[#allocation6 + $0x350] sm:$0xff]  ;;  %v5616_v63 = vld [vmem:[#allocation6 + $0x338] sm:$0xff] }
 0x57f   :  { %v5380_v1 = vpop.f32.mrf.mxu0 }
 0x580   :  { %2286 = vmatmul.mubr.f32.vlgmr.msra.gmra.mxu0 %v6399_v24  ;;  %v2139_v27 = vrot.slane %v6399_v24, 1  ;;  %v2471_v11 = vrot.slane %v6399_v24, 4  ;;  %v5617_v1 = vld [vmem:[#allocation6 + $0x268] sm:$0xff] }
 0x581   :  { %2390 = vmatpush1.msra.mxu0 %v5576_v25  ;;  %v2125_v10 = vpop.f32.mrf.mxu0  ;;  %2291 = vmatprep.mubr.f32.mxu0 %v5900_v0  ;;  %v5618_v25 = vld [vmem:[#allocation6 + $0x330] sm:$0xff] }
 0x582   :  { %v6403_v26 = vmax.f32 %v2045_v62, %v2125_v10  ;;  %2391 = vmatprep.subr.mxu0 %v5577_v13  ;;  %v5612_v62 = vld [vmem:[#allocation6 + $0x348] sm:$0xff]  ;;  %v5619_v10 = vld [vmem:[#allocation6 + $0x260] sm:$0xff] }
 0x583   :  { %2392 = vmatpush1.msra.mxu0 %v5578_v4  ;;  %v5383_v17 = vpop.f32.mrf.mxu0  ;;  %v5620_v13 = vld [vmem:[#allocation6 + $0x328] sm:$0xff]  ;;  %v5621_v4 = vld [vmem:[#allocation6 + $0x258] sm:$0xff] }
 0x584   :  { %2393 = vmatprep.subr.mxu0 %v5579_v46  ;;  %2292 = vmatmul.mubr.f32.gmra.mxu0 %v6403_v26  ;;  %v2140_v8 = vrot.slane %v6403_v26, 1  ;;  %v2472_v45 = vrot.slane %v6403_v26, 4  ;;  %v5622_v17 = vld [vmem:[#allocation6 + $0x320] sm:$0xff]  ;;  %v2385_v46 = vrot.slane %v6403_v26, 3 }
 0x585   :  { %2394 = vmatpush1.msra.mxu0 %v5580_v34  ;;  %v2130_v35 = vpop.f32.mrf.mxu0  ;;  %2453 = vmatprep.mubr.f32.mxu0 %v5900_v0  ;;  %v5626_v34 = vld [vmem:[#allocation6 + $0x310] sm:$0xff] }
 0x586   :  { %v2136_v36 = vmax.f32 %v2050_v18, %v2130_v35  ;;  %2395 = vmatprep.subr.mxu0 %v5581_v38  ;;  %v2141_v44 = vsel %vm261_vm0, %v2139_v27, %v2140_v8  ;;  %v6413_v39 = vsel %vm1340_vm5, %v2471_v11, %v2472_v45  ;;  %v5614_v18 = vld [vmem:[#allocation6 + $0x340] sm:$0xff]  ;;  %v5623_v27 = vld [vmem:[#allocation6 + $0x250] sm:$0xff]  ;;  %v2384_v35 = vrot.slane %v6399_v24, 3  ;;  %v5629_v38 = vld [vmem:[#allocation6 + $0x238] sm:$0xff] }
 0x587   :  { %2396 = vmatpush1.msra.mxu0 %v5582_v7  ;;  %2209 = vmatmul.mubr.f32.vlgmr.msra.gmra.mxu1 %v2141_v44  ;;  %v5386_v40 = vpop.f32.mrf.mxu0  ;;  %v5627_v11 = vld [vmem:[#allocation6 + $0x240] sm:$0xff] }
 0x588   :  { %v2474_v37 = vrot.slane %v2136_v36, 4  ;;  %2304 = vmatpush1.msra.mxu1 %v5583_v41  ;;  %2397 = vmatprep.subr.mxu0 %v5584_v42  ;;  %v5628_v36 = vld [vmem:[#allocation6 + $0x308] sm:$0xff]  ;;  %v5630_v44 = vld [vmem:[#allocation6 + $0x300] sm:$0xff]  ;;  %v2386_v7 = vsel %vm1219_vm6, %v2384_v35, %v2385_v46  ;;  %v5631_v40 = vld [vmem:[#allocation6 + $0x230] sm:$0xff]  ;;  %v2299_v42 = vrot.slane %v6403_v26, 2 }
 0x589   :  { %2305 = vmatprep.subr.mxu1 %v5585_v43  ;;  %2398 = vmatpush1.msra.mxu0 %v5586_v47  ;;  %v5633_v41 = vld [vmem:[#allocation6 + $0x220] sm:$0xff]  ;;  %v5634_v43 = vld [vmem:[#allocation6 + $0x218] sm:$0xff]  ;;  %v5635_v47 = vld [vmem:[#allocation6 + $0x210] sm:$0xff] }
 0x58a   :  { %2306 = vmatpush1.msra.mxu1 %v5587_v48  ;;  %2399 = vmatprep.subr.mxu0 %v5588_v49  ;;  %v6416_v50 = vsel %vm1340_vm5, %v2472_v45, %v2474_v37  ;;  %v5625_v45 = vld [vmem:[#allocation6 + $0x248] sm:$0xff]  ;;  %v2298_v48 = vrot.slane %v6399_v24, 2  ;;  %v5638_v26 = vld [vmem:[#allocation6 + $0x4f8] sm:$0xff] }
 0x58b   :  { %2214 = vmatprep.mubr.f32.mxu1 %v5900_v0  ;;  %2307 = vmatprep.subr.mxu1 %v5589_v51  ;;  %v5632_v37 = vld [vmem:[#allocation6 + $0x228] sm:$0xff]  ;;  %v5637_v51 = vld [vmem:[#allocation6 + $0x200] sm:$0xff]  ;;  %v5642_v24 = vld [vmem:[#allocation6 + $0x4d8] sm:$0xff] }
 0x58c   :  { %2400 = vmatpush1.msra.mxu0 %v5590_v52  ;;  %2215 = vmatmul.mubr.f32.gmra.mxu1 %v2140_v8  ;;  %v5624_v8 = vld [vmem:[#allocation6 + $0x318] sm:$0xff]  ;;  %v5636_v49 = vld [vmem:[#allocation6 + $0x208] sm:$0xff]  ;;  %v2300_v52 = vsel %vm499_vm1, %v2298_v48, %v2299_v42 }
 0x58d   :  { %2308 = vmatpush1.msra.mxu1 %v5591_v15  ;;  %2401 = vmatprep.subr.mxu0 %v5592_v53  ;;  %v5639_v15 = vld [vmem:[#allocation6 + $0x4f0] sm:$0xff]  ;;  %v5640_v53 = vld [vmem:[#allocation6 + $0x4e8] sm:$0xff] }
 0x58e   :  { %2309 = vmatprep.subr.mxu1 %v5593_v54  ;;  %2402 = vmatpush1.msra.mxu0 %v5594_v55  ;;  %v5641_v54 = vld [vmem:[#allocation6 + $0x4e0] sm:$0xff]  ;;  %v5643_v55 = vld [vmem:[#allocation6 + $0x4d0] sm:$0xff] }
 0x58f   :  { %2310 = vmatpush1.msra.mxu1 %v5595_v19  ;;  %2403 = vmatprep.subr.mxu0 %v5596_v56  ;;  %v5644_v19 = vld [vmem:[#allocation6 + $0x4c8] sm:$0xff]  ;;  %v5645_v56 = vld [vmem:[#allocation6 + $0x4c0] sm:$0xff] }
 0x590   :  { %2311 = vmatprep.subr.mxu1 %v5597_v57  ;;  %2404 = vmatpush1.msra.mxu0 %v5598_v60  ;;  %v5646_v57 = vld [vmem:[#allocation6 + $0x4b8] sm:$0xff]  ;;  %v5647_v60 = vld [vmem:[#allocation6 + $0x4b0] sm:$0xff]  ;;  %v3090_v35 = vld [vmem:[#allocation9 + $0xb00] sm:$0xff] }
 0x591   :  { %2312 = vmatpush1.msra.mxu1 %v5599_v2  ;;  %2405 = vmatprep.subr.mxu0 %v5600_v58  ;;  %v5648_v2 = vld [vmem:[#allocation6 + $0x4a8] sm:$0xff]  ;;  %v5649_v58 = vld [vmem:[#allocation6 + $0x4a0] sm:$0xff] }
 0x592   :  { %2313 = vmatprep.subr.mxu1 %v5601_v59  ;;  %2406 = vmatpush1.msra.mxu0 %v5602_v30  ;;  %v5650_v59 = vld [vmem:[#allocation6 + $0x498] sm:$0xff]  ;;  %v5651_v30 = vld [vmem:[#allocation6 + $0x490] sm:$0xff]  ;;  %v3034_v48 = vld [vmem:[#allocation9 + $0x940] sm:$0xff] }
 0x593   :  { %2314 = vmatpush1.msra.mxu1 %v5603_v61  ;;  %2407 = vmatprep.subr.mxu0 %v5604_v9  ;;  %v5652_v61 = vld [vmem:[#allocation6 + $0x488] sm:$0xff]  ;;  %v5653_v9 = vld [vmem:[#allocation6 + $0x480] sm:$0xff] }
 0x594   :  { %2315 = vmatprep.subr.mxu1 %v5605_v5  ;;  %2408 = vmatpush1.msra.mxu0 %v5606_v12  ;;  %v5654_v5 = vld [vmem:[#allocation6 + $0x478] sm:$0xff]  ;;  %v5655_v12 = vld [vmem:[#allocation6 + $0x470] sm:$0xff] }
 0x595   :  { %2316 = vmatpush1.msra.mxu1 %v5607_v16  ;;  %2409 = vmatprep.subr.mxu0 %v5608_v20  ;;  %v5656_v16 = vld [vmem:[#allocation6 + $0x468] sm:$0xff]  ;;  %v5657_v20 = vld [vmem:[#allocation6 + $0x460] sm:$0xff] }
 0x596   :  { %2317 = vmatprep.subr.mxu1 %v5609_v6  ;;  %2410 = vmatpush1.msra.mxu0 %v5610_v21  ;;  %v5658_v6 = vld [vmem:[#allocation6 + $0x458] sm:$0xff]  ;;  %v5659_v21 = vld [vmem:[#allocation6 + $0x450] sm:$0xff] }
 0x597   :  { %2318 = vmatpush1.msra.mxu1 %v5611_v29  ;;  %2411 = vmatprep.subr.mxu0 %v5612_v62  ;;  %v5660_v29 = vld [vmem:[#allocation6 + $0x448] sm:$0xff]  ;;  %v5661_v62 = vld [vmem:[#allocation6 + $0x440] sm:$0xff] }
 0x598   :  { %2319 = vmatprep.subr.mxu1 %v5613_v23  ;;  %2412 = vmatpush1.msra.mxu0 %v5614_v18  ;;  %v5662_v23 = vld [vmem:[#allocation6 + $0x438] sm:$0xff]  ;;  %v5663_v18 = vld [vmem:[#allocation6 + $0x430] sm:$0xff] }
 0x599   :  { %2320 = vmatpush1.msra.mxu1 %v5615_v22  ;;  %2413 = vmatprep.subr.mxu0 %v5616_v63  ;;  %v5664_v22 = vld [vmem:[#allocation6 + $0x428] sm:$0xff]  ;;  %v5665_v63 = vld [vmem:[#allocation6 + $0x420] sm:$0xff] }
 0x59a   :  { %2321 = vmatprep.subr.mxu1 %v5617_v1  ;;  %2414 = vmatpush1.msra.mxu0 %v5618_v25  ;;  %v5666_v1 = vld [vmem:[#allocation6 + $0x418] sm:$0xff]  ;;  %v5667_v25 = vld [vmem:[#allocation6 + $0x410] sm:$0xff] }
 0x59b   :  { %2322 = vmatpush1.msra.mxu1 %v5619_v10  ;;  %2415 = vmatprep.subr.mxu0 %v5620_v13  ;;  %v5668_v10 = vld [vmem:[#allocation6 + $0x408] sm:$0xff]  ;;  %v5669_v13 = vld [vmem:[#allocation6 + $0x400] sm:$0xff] }
 0x59c   :  { %2323 = vmatprep.subr.mxu1 %v5621_v4  ;;  %2416 = vmatpush1.msra.mxu0 %v5622_v17  ;;  %v3115_v4 = vld [vmem:[#allocation9 + $0xbc8] sm:$0xff]  ;;  %v3114_v17 = vld [vmem:[#allocation9 + $0xbc0] sm:$0xff] }
 0x59d   :  { %2324 = vmatpush1.msra.mxu1 %v5623_v27  ;;  %2417 = vmatprep.subr.mxu0 %v5624_v8  ;;  %v3106_v27 = vld [vmem:[#allocation9 + $0xb80] sm:$0xff]  ;;  %v3099_v8 = vld [vmem:[#allocation9 + $0xb48] sm:$0xff] }
 0x59e   :  { %2325 = vmatprep.subr.mxu1 %v5625_v45  ;;  %2418 = vmatpush1.msra.mxu0 %v5626_v34  ;;  %v3098_v45 = vld [vmem:[#allocation9 + $0xb40] sm:$0xff]  ;;  %v3091_v34 = vld [vmem:[#allocation9 + $0xb08] sm:$0xff] }
 0x59f   :  { %2326 = vmatpush1.msra.mxu1 %v5627_v11  ;;  %2419 = vmatprep.subr.mxu0 %v5628_v36  ;;  %v3082_v11 = vld [vmem:[#allocation9 + $0xac0] sm:$0xff] }
 0x5a0   :  { %2327 = vmatprep.subr.mxu1 %v5629_v38  ;;  %2420 = vmatpush1.msra.mxu0 %v5630_v44  ;;  %v3074_v36 = vld [vmem:[#allocation9 + $0xa80] sm:$0xff]  ;;  %v3067_v38 = vld [vmem:[#allocation9 + $0xa48] sm:$0xff] }
 0x5a1   :  { %2328 = vmatpush1.msra.mxu1 %v5631_v40  ;;  %2454 = vmatmul.mubr.f32.vlgmr.msra.gmra.mxu0 %v2386_v7  ;;  %v3066_v44 = vld [vmem:[#allocation9 + $0xa40] sm:$0xff]  ;;  %v3059_v7 = vld [vmem:[#allocation9 + $0xa08] sm:$0xff] }
 0x5a2   :  { %2329 = vmatprep.subr.mxu1 %v5632_v37  ;;  %2459 = vmatprep.mubr.f32.mxu0 %v5900_v0  ;;  %v3058_v40 = vld [vmem:[#allocation9 + $0xa00] sm:$0xff]  ;;  %v3051_v37 = vld [vmem:[#allocation9 + $0x9c8] sm:$0xff] }
 0x5a3   :  { %2330 = vmatpush1.msra.mxu1 %v5633_v41  ;;  %2367 = vmatprep.mubr.f32.mxu1 %v5900_v0  ;;  %v3050_v41 = vld [vmem:[#allocation9 + $0x9c0] sm:$0xff] }
 0x5a4   :  { %2331 = vmatprep.subr.mxu1 %v5634_v43  ;;  %5387 = vmatprep.subr.mxu0 %v5900_v0  ;;  %v3042_v43 = vld [vmem:[#allocation9 + $0x980] sm:$0xff] }
 0x5a5   :  { %2332 = vmatpush1.msra.mxu1 %v5635_v47  ;;  %2460 = vmatmul.mubr.f32.gmra.mxu0 %v2385_v46  ;;  %v3107_v46 = vld [vmem:[#allocation9 + $0xb88] sm:$0xff] }
 0x5a6   :  { %2333 = vmatprep.subr.mxu1 %v5636_v49  ;;  %5391 = vmatprep.mubr.msk.f32.mxu0 %vm5901_vm2, %v5900_v0  ;;  %v3035_v47 = vld [vmem:[#allocation9 + $0x948] sm:$0xff] }
 0x5a7   :  { %2334 = vmatpush1.msra.mxu1 %v5637_v51  ;;  %v3027_v49 = vld [vmem:[#allocation9 + $0x908] sm:$0xff]  ;;  %v3026_v51 = vld [vmem:[#allocation9 + $0x900] sm:$0xff] }
 0x5a8   :  { %2368 = vmatmul.mubr.f32.vlgmr.msra.gmra.mxu1 %v2300_v52  ;;  %2478 = vmatprep.subr.mxu1 %v5638_v26  ;;  %v3019_v52 = vld [vmem:[#allocation9 + $0x8c8] sm:$0xff]  ;;  %v3018_v26 = vld [vmem:[#allocation9 + $0x8c0] sm:$0xff] }
 0x5a9   :  { %2479 = vmatpush1.msra.mxu1 %v5639_v15  ;;  %2373 = vmatprep.mubr.f32.mxu1 %v5900_v0  ;;  %v3011_v15 = vld [vmem:[#allocation9 + $0x888] sm:$0xff] }
 0x5aa   :  { %2480 = vmatprep.subr.mxu1 %v5640_v53  ;;  %v3010_v53 = vld [vmem:[#allocation9 + $0x880] sm:$0xff] }
 0x5ab   :  { %2481 = vmatpush1.msra.mxu1 %v5641_v54  ;;  %v3003_v54 = vld [vmem:[#allocation9 + $0x848] sm:$0xff] }
 0x5ac   :  { %2374 = vmatmul.mubr.f32.gmra.mxu1 %v2299_v42  ;;  %2482 = vmatprep.subr.mxu1 %v5642_v24  ;;  %v3043_v42 = vld [vmem:[#allocation9 + $0x988] sm:$0xff]  ;;  %v3002_v24 = vld [vmem:[#allocation9 + $0x840] sm:$0xff] }
 0x5ad   :  { %2483 = vmatpush1.msra.mxu1 %v5643_v55  ;;  %2542 = vmatprep.mubr.f32.mxu1 %v5900_v0  ;;  %v2995_v55 = vld [vmem:[#allocation9 + $0x808] sm:$0xff] }
 0x5ae   :  { %2484 = vmatprep.subr.mxu1 %v5644_v19  ;;  %v2994_v19 = vld [vmem:[#allocation9 + $0x800] sm:$0xff] }
 0x5af   :  { %2485 = vmatpush1.msra.mxu1 %v5645_v56  ;;  %v3243_v56 = vld [vmem:[#allocation9 + $0xfc8] sm:$0xff] }
 0x5b0   :  { %2486 = vmatprep.subr.mxu1 %v5646_v57  ;;  %v3242_v57 = vld [vmem:[#allocation9 + $0xfc0] sm:$0xff] }
 0x5b1   :  { %2487 = vmatpush1.msra.mxu1 %v5647_v60  ;;  %v3235_v60 = vld [vmem:[#allocation9 + $0xf88] sm:$0xff] }
 0x5b2   :  { %2488 = vmatprep.subr.mxu1 %v5648_v2  ;;  %v3234_v2 = vld [vmem:[#allocation9 + $0xf80] sm:$0xff] }
 0x5b3   :  { %2489 = vmatpush1.msra.mxu1 %v5649_v58  ;;  %v3227_v58 = vld [vmem:[#allocation9 + $0xf48] sm:$0xff] }
 0x5b4   :  { %2490 = vmatprep.subr.mxu1 %v5650_v59  ;;  %v3226_v59 = vld [vmem:[#allocation9 + $0xf40] sm:$0xff] }
 0x5b5   :  { %2491 = vmatpush1.msra.mxu1 %v5651_v30  ;;  %v3219_v30 = vld [vmem:[#allocation9 + $0xf08] sm:$0xff] }
 0x5b6   :  { %2492 = vmatprep.subr.mxu1 %v5652_v61  ;;  %v3218_v61 = vld [vmem:[#allocation9 + $0xf00] sm:$0xff] }
 0x5b7   :  { %2493 = vmatpush1.msra.mxu1 %v5653_v9  ;;  %v3211_v9 = vld [vmem:[#allocation9 + $0xec8] sm:$0xff] }
 0x5b8   :  { %2494 = vmatprep.subr.mxu1 %v5654_v5  ;;  %v3210_v5 = vld [vmem:[#allocation9 + $0xec0] sm:$0xff] }
 0x5b9   :  { %2495 = vmatpush1.msra.mxu1 %v5655_v12  ;;  %v3203_v12 = vld [vmem:[#allocation9 + $0xe88] sm:$0xff] }
 0x5ba   :  { %2496 = vmatprep.subr.mxu1 %v5656_v16  ;;  %v3202_v16 = vld [vmem:[#allocation9 + $0xe80] sm:$0xff] }
 0x5bb   :  { %2497 = vmatpush1.msra.mxu1 %v5657_v20  ;;  %v3195_v20 = vld [vmem:[#allocation9 + $0xe48] sm:$0xff] }
 0x5bc   :  { %2498 = vmatprep.subr.mxu1 %v5658_v6  ;;  %v3194_v6 = vld [vmem:[#allocation9 + $0xe40] sm:$0xff] }
 0x5bd   :  { %2499 = vmatpush1.msra.mxu1 %v5659_v21  ;;  %v3187_v21 = vld [vmem:[#allocation9 + $0xe08] sm:$0xff] }
 0x5be   :  { %2500 = vmatprep.subr.mxu1 %v5660_v29  ;;  %v3186_v29 = vld [vmem:[#allocation9 + $0xe00] sm:$0xff] }
 0x5bf   :  { %2501 = vmatpush1.msra.mxu1 %v5661_v62  ;;  %v3179_v62 = vld [vmem:[#allocation9 + $0xdc8] sm:$0xff] }
 0x5c0   :  { %2502 = vmatprep.subr.mxu1 %v5662_v23  ;;  %v3178_v23 = vld [vmem:[#allocation9 + $0xdc0] sm:$0xff] }
 0x5c1   :  { %2503 = vmatpush1.msra.mxu1 %v5663_v18  ;;  %v3171_v18 = vld [vmem:[#allocation9 + $0xd88] sm:$0xff] }
 0x5c2   :  { %2504 = vmatprep.subr.mxu1 %v5664_v22  ;;  %v3170_v22 = vld [vmem:[#allocation9 + $0xd80] sm:$0xff] }
 0x5c3   :  { %2505 = vmatpush1.msra.mxu1 %v5665_v63  ;;  %v3163_v63 = vld [vmem:[#allocation9 + $0xd48] sm:$0xff] }
 0x5c4   :  { %2506 = vmatprep.subr.mxu1 %v5666_v1  ;;  %v3162_v1 = vld [vmem:[#allocation9 + $0xd40] sm:$0xff] }
 0x5c5   :  { %2507 = vmatpush1.msra.mxu1 %v5667_v25 }
 0x5c6   :  { %2508 = vmatprep.subr.mxu1 %v5668_v10 }
 0x5c7   :  { %2509 = vmatpush1.msra.mxu1 %v5669_v13 }
 0x5c8   :  { %2543 = vmatmul.mubr.f32.vlgmr.msra.gmra.mxu1 %v6413_v39  ;;  %3619 = vmatprep.subr.mxu1 %v3115_v4  ;;  %v3083_v39 = vld [vmem:[#allocation9 + $0xac8] sm:$0xff] }
 0x5c9   :  { %2548 = vmatprep.mubr.f32.mxu1 %v5900_v0  ;;  %3620 = vmatpush1.msra.mxu1 %v3114_v17 }
 0x5ca   :  { %3621 = vmatprep.subr.mxu1 %v3107_v46 }
 0x5cb   :  { %3622 = vmatpush1.msra.mxu1 %v3106_v27 }
 0x5cc   :  { %2549 = vmatmul.mubr.f32.gmra.mxu1 %v6416_v50  ;;  %3623 = vmatprep.subr.mxu1 %v3099_v8  ;;  %v3075_v50 = vld [vmem:[#allocation9 + $0xa88] sm:$0xff] }
 0x5cd   :  { %3624 = vmatpush1.msra.mxu1 %v3098_v45 }
 0x5ce   :  { %3625 = vmatprep.subr.mxu1 %v3091_v34 }
 0x5cf   :  { %3626 = vmatpush1.msra.mxu1 %v3090_v35 }
 0x5d0   :  { %3627 = vmatprep.subr.mxu1 %v3083_v39 }
 0x5d1   :  { %3628 = vmatpush1.msra.mxu1 %v3082_v11 }
 0x5d2   :  { %3629 = vmatprep.subr.mxu1 %v3075_v50 }
 0x5d3   :  { %3630 = vmatpush1.msra.mxu1 %v3074_v36 }
 0x5d4   :  { %3631 = vmatprep.subr.mxu1 %v3067_v38 }
 0x5d5   :  { %3632 = vmatpush1.msra.mxu1 %v3066_v44 }
 0x5d6   :  { %3633 = vmatprep.subr.mxu1 %v3059_v7 }
 0x5d7   :  { %3634 = vmatpush1.msra.mxu1 %v3058_v40 }
 0x5d8   :  { %3635 = vmatprep.subr.mxu1 %v3051_v37 }
 0x5d9   :  { %3636 = vmatpush1.msra.mxu1 %v3050_v41 }
 0x5da   :  { %3637 = vmatprep.subr.mxu1 %v3043_v42 }
 0x5db   :  { %3638 = vmatpush1.msra.mxu1 %v3042_v43 }
 0x5dc   :  { %3639 = vmatprep.subr.mxu1 %v3035_v47 }
 0x5dd   :  { %3640 = vmatpush1.msra.mxu1 %v3034_v48 }
 0x5de   :  { %3641 = vmatprep.subr.mxu1 %v3027_v49 }
 0x5df   :  { %3642 = vmatpush1.msra.mxu1 %v3026_v51 }
 0x5e0   :  { %3643 = vmatprep.subr.mxu1 %v3019_v52 }
 0x5e1   :  { %3644 = vmatpush1.msra.mxu1 %v3018_v26 }
 0x5e2   :  { %3645 = vmatprep.subr.mxu1 %v3011_v15 }
 0x5e3   :  { %3646 = vmatpush1.msra.mxu1 %v3010_v53 }
 0x5e4   :  { %3647 = vmatprep.subr.mxu1 %v3003_v54 }
 0x5e5   :  { %3648 = vmatpush1.msra.mxu1 %v3002_v24 }
 0x5e6   :  { %3649 = vmatprep.subr.mxu1 %v2995_v55 }
 0x5e7   :  { %3650 = vmatpush1.msra.mxu1 %v2994_v19 }
 0x5e8   :  { %3651 = vmatprep.subr.mxu1 %v3243_v56 }
 0x5e9   :  { %3652 = vmatpush2.msra.mxu1 %v3242_v57 }
 0x5ea   :  { %3653 = vmatprep.subr.mxu1 %v3235_v60 }
 0x5eb   :  { %3654 = vmatpush2.msra.mxu1 %v3234_v2 }
 0x5ec   :  { %3655 = vmatprep.subr.mxu1 %v3227_v58 }
 0x5ed   :  { %3656 = vmatpush2.msra.mxu1 %v3226_v59 }
 0x5ee   :  { %3657 = vmatprep.subr.mxu1 %v3219_v30 }
 0x5ef   :  { %3658 = vmatpush2.msra.mxu1 %v3218_v61 }
 0x5f0   :  { %3659 = vmatprep.subr.mxu1 %v3211_v9 }
 0x5f1   :  { %3660 = vmatpush2.msra.mxu1 %v3210_v5 }
 0x5f2   :  { %3661 = vmatprep.subr.mxu1 %v3203_v12 }
 0x5f3   :  { %3662 = vmatpush2.msra.mxu1 %v3202_v16  ;;  %v5670_v16 = vld [vmem:[%s7406_s6] sm:$0x3f] }
 0x5f4   :  { %3663 = vmatprep.subr.mxu1 %v3195_v20  ;;  %v2851_v20 = vld [vmem:[#allocation9 + $0x388] sm:$0xff] }
 0x5f5   :  { %3664 = vmatpush2.msra.mxu1 %v3194_v6  ;;  %v5671_v6 = vld [vmem:[%s7406_s6 + $0x8] sm:$0x3f] }
 0x5f6   :  { %3665 = vmatprep.subr.mxu1 %v3187_v21  ;;  %v2850_v21 = vld [vmem:[#allocation9 + $0x380] sm:$0xff] }
 0x5f7   :  { %3666 = vmatpush2.msra.mxu1 %v3186_v29  ;;  %v2843_v29 = vld [vmem:[#allocation9 + $0x348] sm:$0xff] }
 0x5f8   :  { %3667 = vmatprep.subr.mxu1 %v3179_v62  ;;  %v2842_v62 = vld [vmem:[#allocation9 + $0x340] sm:$0xff] }
 0x5f9   :  { %3668 = vmatpush2.msra.mxu1 %v3178_v23  ;;  %v2835_v23 = vld [vmem:[#allocation9 + $0x308] sm:$0xff] }
 0x5fa   :  { %3669 = vmatprep.subr.mxu1 %v3171_v18  ;;  %v2834_v18 = vld [vmem:[#allocation9 + $0x300] sm:$0xff] }
 0x5fb   :  { %3670 = vmatpush2.msra.mxu1 %v3170_v22  ;;  %v2827_v22 = vld [vmem:[#allocation9 + $0x2c8] sm:$0xff] }
 0x5fc   :  { %3671 = vmatprep.subr.mxu1 %v3163_v63  ;;  %v2826_v63 = vld [vmem:[#allocation9 + $0x2c0] sm:$0xff] }
 0x5fd   :  { %3672 = vmatpush2.msra.mxu1 %v3162_v1  ;;  %v2819_v1 = vld [vmem:[#allocation9 + $0x288] sm:$0xff] }
 0x640   :  { %v2287_v13 = vpop.f32.mrf.mxu0 }
 0x642   :  { %v2289_v17 = vpop.f32.mrf.mxu0 }
 0x644   :  { %v2293_v27 = vpop.f32.mrf.mxu0 }
 0x646   :  { %v2295_v45 = vpop.f32.mrf.mxu0 }
 0x647   :  { %v2210_v25 = vpop.f32.mrf.mxu1 }
 0x648   :  { %v2288_v36 = vadd.f32 %v2287_v13, %v2210_v25  ;;  %v2818_v25 = vld [vmem:[#allocation9 + $0x280] sm:$0xff] }
 0x649   :  { %v2212_v10 = vpop.f32.mrf.mxu1  ;;  %v2810_v13 = vld [vmem:[#allocation9 + $0x240] sm:$0xff] }
 0x64a   :  { %v2290_v11 = vadd.f32 %v2289_v17, %v2212_v10  ;;  %v2811_v10 = vld [vmem:[#allocation9 + $0x248] sm:$0xff]  ;;  %v2802_v17 = vld [vmem:[#allocation9 + $0x200] sm:$0xff] }
 0x64c   :  { %v2216_v4 = vpop.f32.mrf.mxu1 }
 0x64d   :  { %v2294_v38 = vadd.f32 %v2293_v27, %v2216_v4  ;;  %v2803_v4 = vld [vmem:[#allocation9 + $0x208] sm:$0xff]  ;;  %v2794_v27 = vld [vmem:[#allocation9 + $0x1c0] sm:$0xff] }
 0x64e   :  { %v2218_v46 = vpop.f32.mrf.mxu1 }
 0x64f   :  { %v2296_v40 = vadd.f32 %v2295_v45, %v2218_v46  ;;  %v2795_v46 = vld [vmem:[#allocation9 + $0x1c8] sm:$0xff]  ;;  %v2786_v45 = vld [vmem:[#allocation9 + $0x180] sm:$0xff] }
 0x661   :  { %v2455_v35 = vpop.f32.mrf.mxu0 }
 0x663   :  { %v2457_v50 = vpop.f32.mrf.mxu0 }
 0x665   :  { %v2461_v42 = vpop.f32.mrf.mxu0 }
 0x667   :  { %v2463_v15 = vpop.f32.mrf.mxu0 }
 0x668   :  { %v2369_v8 = vpop.f32.mrf.mxu1 }
 0x669   :  { %v2380_v37 = vadd.f32 %v2369_v8, %v2288_v36  ;;  %v2787_v8 = vld [vmem:[#allocation9 + $0x188] sm:$0xff]  ;;  %v2762_v36 = vld [vmem:[#allocation9 + $0xc0] sm:$0xff] }
 0x66a   :  { %v2371_v34 = vpop.f32.mrf.mxu1 }
 0x66b   :  { %v2381_v44 = vadd.f32 %v2371_v34, %v2290_v11  ;;  %v2466_v51 = vadd.f32 %v2455_v35, %v2380_v37  ;;  %v2779_v34 = vld [vmem:[#allocation9 + $0x148] sm:$0xff]  ;;  %v2778_v35 = vld [vmem:[#allocation9 + $0x140] sm:$0xff] }
 0x66c   :  { %v2375_v39 = vpop.f32.mrf.mxu1  ;;  %v2770_v11 = vld [vmem:[#allocation9 + $0x100] sm:$0xff]  ;;  %v2739_v37 = vld [vmem:[#allocation9 + $0x8] sm:$0xff] }
 0x66d   :  { %v2382_v41 = vadd.f32 %v2375_v39, %v2294_v38  ;;  %v2467_v48 = vadd.f32 %v2457_v50, %v2381_v44  ;;  %v2771_v39 = vld [vmem:[#allocation9 + $0x108] sm:$0xff]  ;;  %v2754_v44 = vld [vmem:[#allocation9 + $0x80] sm:$0xff] }
 0x66e   :  { %v2377_v7 = vpop.f32.mrf.mxu1  ;;  %v2763_v50 = vld [vmem:[#allocation9 + $0xc8] sm:$0xff] }
 0x66f   :  { %v2383_v47 = vadd.f32 %v2377_v7, %v2296_v40  ;;  %v2468_v26 = vadd.f32 %v2461_v42, %v2382_v41  ;;  %v2755_v38 = vld [vmem:[#allocation9 + $0x88] sm:$0xff]  ;;  %v2746_v40 = vld [vmem:[#allocation9 + $0x40] sm:$0xff] }
 0x670   :  { %v2747_v7 = vld [vmem:[#allocation9 + $0x48] sm:$0xff]  ;;  %v2738_v41 = vld [vmem:[#allocation9] sm:$0xff] }
 0x671   :  { %v2469_v55 = vadd.f32 %v2463_v15, %v2383_v47  ;;  %v2987_v42 = vld [vmem:[#allocation9 + $0x7c8] sm:$0xff] }
 0x672   :  { %v2979_v47 = vld [vmem:[#allocation9 + $0x788] sm:$0xff] }
 0x673   :  { %v2955_v15 = vld [vmem:[#allocation9 + $0x6c8] sm:$0xff] }
 0x688   :  { %v2544_v43 = vpop.f32.mrf.mxu1 }
 0x689   :  { %v2555_v54 = vadd.f32 %v2544_v43, %v2466_v51  ;;  %v2986_v43 = vld [vmem:[#allocation9 + $0x7c0] sm:$0xff] }
 0x68a   :  { %v2546_v49 = vpop.f32.mrf.mxu1  ;;  %v2970_v51 = vld [vmem:[#allocation9 + $0x740] sm:$0xff] }
 0x68b   :  { %v2556_v52 = vadd.f32 %v2546_v49, %v2467_v48  ;;  %v2559_v2 = vadd.f32 %v2555_v54, %v6284_v31  ;;  %v2978_v48 = vld [vmem:[#allocation9 + $0x780] sm:$0xff]  ;;  %v2971_v49 = vld [vmem:[#allocation9 + $0x748] sm:$0xff] }
 0x68c   :  { %v2550_v53 = vpop.f32.mrf.mxu1  ;;  %v2947_v54 = vld [vmem:[#allocation9 + $0x688] sm:$0xff] }
 0x68d   :  { %v2557_v24 = vadd.f32 %v2550_v53, %v2468_v26  ;;  %v2560_v56 = vadd.f32 %v2556_v52, %v6281_v3  ;;  %v2563_v9 = vmax.f32 %v2559_v2, 0.0  ;;  %v2963_v52 = vld [vmem:[#allocation9 + $0x708] sm:$0xff]  ;;  %v2962_v26 = vld [vmem:[#allocation9 + $0x700] sm:$0xff] }
 0x68e   :  { %v2552_v19 = vpop.f32.mrf.mxu1  ;;  %v2954_v53 = vld [vmem:[#allocation9 + $0x6c0] sm:$0xff] }
 0x68f   :  { %v2561_v57 = vadd.f32 %v2557_v24, %v6284_v31  ;;  %v2558_v60 = vadd.f32 %v2552_v19, %v2469_v55  ;;  %v2564_v59 = vmax.f32 %v2560_v56, 0.0  ;;  %v2858_v31 = vld [vmem:[#allocation9 + $0x3c0] sm:$0xff]  ;;  %v2939_v55 = vld [vmem:[#allocation9 + $0x648] sm:$0xff] }
 0x690   :  { %v2946_v24 = vld [vmem:[#allocation9 + $0x680] sm:$0xff]  ;;  %v2931_v56 = vld [vmem:[#allocation9 + $0x608] sm:$0xff] }
 0x691   :  { %v2562_v58 = vadd.f32 %v2558_v60, %v6281_v3  ;;  %v2565_v30 = vmax.f32 %v2561_v57, 0.0  ;;  %v2567_v12 = vmax.f32 %v2563_v9, %v2564_v59  ;;  %v2859_v3 = vld [vmem:[#allocation9 + $0x3c8] sm:$0xff]  ;;  %v2938_v19 = vld [vmem:[#allocation9 + $0x640] sm:$0xff] }
 0x692   :  { %v2930_v57 = vld [vmem:[#allocation9 + $0x600] sm:$0xff]  ;;  %v2923_v60 = vld [vmem:[#allocation9 + $0x5c8] sm:$0xff] }
 0x693   :  { %v2566_v61 = vmax.f32 %v2562_v58, 0.0  ;;  %v2922_v2 = vld [vmem:[#allocation9 + $0x5c0] sm:$0xff]  ;;  %v2915_v58 = vld [vmem:[#allocation9 + $0x588] sm:$0xff] }
 0x694   :  { %v2914_v59 = vld [vmem:[#allocation9 + $0x580] sm:$0xff]  ;;  %v2899_v9 = vld [vmem:[#allocation9 + $0x508] sm:$0xff] }
 0x695   :  { %v2568_v5 = vmax.f32 %v2565_v30, %v2566_v61  ;;  %v2907_v30 = vld [vmem:[#allocation9 + $0x548] sm:$0xff]  ;;  %v2906_v61 = vld [vmem:[#allocation9 + $0x540] sm:$0xff] }
 0x697   :  { %5388 = vmatpush3.msk.msra.mxu0 %vm1219_vm6, %v2568_v5 }
 0x698   :  { %5389 = vmatprep.subr.mxu0 %v5900_v0 }
 0x699   :  { %5390 = vmatpush3.msra.mxu0 %v2567_v12 }
 0x69a   :  { %5392 = vmatmul.mubr.msk.f32.vlgmr.msra.gmra.mxu0 %vm1450_vm7, %v5670_v16  ;;  %5394 = vmatprep.subr.mxu0 %v5900_v0  ;;  %v2891_v16 = vld [vmem:[#allocation9 + $0x4c8] sm:$0xff] }
 0x69b   :  { %5395 = vmatpush3.msk.msra.mxu0 %vm1219_vm6, %v2568_v5  ;;  %5398 = vmatprep.mubr.msk.f32.mxu0 %vm5901_vm2, %v5900_v0  ;;  %v2898_v5 = vld [vmem:[#allocation9 + $0x500] sm:$0xff] }
 0x69c   :  { %5396 = vmatprep.subr.mxu0 %v5900_v0 }
 0x69d   :  { %5397 = vmatpush3.msra.mxu0 %v2567_v12  ;;  %v3155_v12 = vld [vmem:[#allocation9 + $0xd08] sm:$0xff] }
 0x69e   :  { %5399 = vmatmul.mubr.msk.f32.vlgmr.msra.gmra.mxu0 %vm1450_vm7, %v5671_v6  ;;  %3548 = vmatprep.subr.mxu0 %v2859_v3  ;;  %v3154_v3 = vld [vmem:[#allocation9 + $0xd00] sm:$0xff]  ;;  %v2883_v6 = vld [vmem:[#allocation9 + $0x488] sm:$0xff] }
 0x69f   :  { %3549 = vmatpush1.msra.mxu0 %v2858_v31  ;;  %3673 = vmatprep.subr.mxu1 %v3155_v12  ;;  %v2890_v31 = vld [vmem:[#allocation9 + $0x4c0] sm:$0xff] }
 0x6a0   :  { %3550 = vmatprep.subr.mxu0 %v2851_v20  ;;  %3674 = vmatpush2.msra.mxu1 %v3154_v3  ;;  %v3147_v20 = vld [vmem:[#allocation9 + $0xcc8] sm:$0xff]  ;;  %v3330_v12 = vld [vmem:[#allocation9 + $0x1280] sm:$0xff] }
 0x6a1   :  { %3551 = vmatpush1.msra.mxu0 %v2850_v21  ;;  %3675 = vmatprep.subr.mxu1 %v3147_v20  ;;  %v3146_v21 = vld [vmem:[#allocation9 + $0xcc0] sm:$0xff]  ;;  %v3323_v3 = vld [vmem:[#allocation9 + $0x1248] sm:$0xff] }
 0x6a2   :  { %3552 = vmatprep.subr.mxu0 %v2843_v29  ;;  %3676 = vmatpush2.msra.mxu1 %v3146_v21  ;;  %v2882_v29 = vld [vmem:[#allocation9 + $0x480] sm:$0xff]  ;;  %v3315_v21 = vld [vmem:[#allocation9 + $0x1208] sm:$0xff] }
 0x6a3   :  { %3553 = vmatpush1.msra.mxu0 %v2842_v62  ;;  %v3139_v62 = vld [vmem:[#allocation9 + $0xc88] sm:$0xff]  ;;  %v3322_v20 = vld [vmem:[#allocation9 + $0x1240] sm:$0xff] }
 0x6a4   :  { %3554 = vmatprep.subr.mxu0 %v2835_v23  ;;  %3677 = vmatprep.subr.mxu1 %v3139_v62  ;;  %v2875_v23 = vld [vmem:[#allocation9 + $0x448] sm:$0xff]  ;;  %v3314_v62 = vld [vmem:[#allocation9 + $0x1200] sm:$0xff] }
 0x6a5   :  { %3555 = vmatpush1.msra.mxu0 %v2834_v18  ;;  %v3138_v18 = vld [vmem:[#allocation9 + $0xc80] sm:$0xff] }
 0x6a6   :  { %3556 = vmatprep.subr.mxu0 %v2827_v22  ;;  %3678 = vmatpush2.msra.mxu1 %v3138_v18  ;;  %v2874_v22 = vld [vmem:[#allocation9 + $0x440] sm:$0xff]  ;;  %v3307_v18 = vld [vmem:[#allocation9 + $0x11c8] sm:$0xff] }
 0x6a7   :  { %3557 = vmatpush1.msra.mxu0 %v2826_v63  ;;  %v3131_v63 = vld [vmem:[#allocation9 + $0xc48] sm:$0xff] }
 0x6a8   :  { %3558 = vmatprep.subr.mxu0 %v2819_v1  ;;  %v2867_v1 = vld [vmem:[#allocation9 + $0x408] sm:$0xff]  ;;  %3679 = vmatprep.subr.mxu1 %v3131_v63  ;;  %v3306_v63 = vld [vmem:[#allocation9 + $0x11c0] sm:$0xff] }
 0x6a9   :  { %3559 = vmatpush1.msra.mxu0 %v2818_v25  ;;  %v3130_v25 = vld [vmem:[#allocation9 + $0xc40] sm:$0xff] }
 0x6aa   :  { %3560 = vmatprep.subr.mxu0 %v2811_v10  ;;  %v2866_v10 = vld [vmem:[#allocation9 + $0x400] sm:$0xff]  ;;  %3680 = vmatpush2.msra.mxu1 %v3130_v25  ;;  %v3299_v25 = vld [vmem:[#allocation9 + $0x1188] sm:$0xff] }
 0x6ab   :  { %3561 = vmatpush1.msra.mxu0 %v2810_v13  ;;  %v3123_v13 = vld [vmem:[#allocation9 + $0xc08] sm:$0xff] }
 0x6ac   :  { %3562 = vmatprep.subr.mxu0 %v2803_v4  ;;  %3681 = vmatprep.subr.mxu1 %v3123_v13  ;;  %v3122_v4 = vld [vmem:[#allocation9 + $0xc00] sm:$0xff] }
 0x6ad   :  { %3563 = vmatpush1.msra.mxu0 %v2802_v17  ;;  %v3371_v17 = vld [vmem:[#allocation9 + $0x13c8] sm:$0xff]  ;;  %3682 = vmatpush2.msra.mxu1 %v3122_v4  ;;  %v3298_v13 = vld [vmem:[#allocation9 + $0x1180] sm:$0xff]  ;;  %v2789_v4 = vld [vmem:[#allocation9 + $0x198] sm:$0xff] }
 0x6ae   :  { %3564 = vmatprep.subr.mxu0 %v2795_v46  ;;  %v2861_v46 = vld [vmem:[#allocation9 + $0x3d8] sm:$0xff] }
 0x6af   :  { %3565 = vmatpush1.msra.mxu0 %v2794_v27  ;;  %3761 = vmatprep.subr.mxu1 %v2861_v46  ;;  %v2788_v46 = vld [vmem:[#allocation9 + $0x190] sm:$0xff] }
 0x6b0   :  { %3566 = vmatprep.subr.mxu0 %v2787_v8 }
 0x6b1   :  { %3567 = vmatpush1.msra.mxu0 %v2786_v45 }
 0x6b2   :  { %3568 = vmatprep.subr.mxu0 %v2779_v34 }
 0x6b3   :  { %3569 = vmatpush1.msra.mxu0 %v2778_v35  ;;  %v1602_v35 = vrot.slane %v6341_v14, 1 }
 0x6b4   :  { %3570 = vmatprep.subr.mxu0 %v2771_v39  ;;  %v1606_v39 = vrot.slane %v6341_v14, 3 }
 0x6b5   :  { %3571 = vmatpush1.msra.mxu0 %v2770_v11  ;;  %v1604_v11 = vrot.slane %v6341_v14, 2 }
 0x6b6   :  { %3572 = vmatprep.subr.mxu0 %v2763_v50 }
 0x6b7   :  { %3573 = vmatpush1.msra.mxu0 %v2762_v36 }
 0x6b8   :  { %3574 = vmatprep.subr.mxu0 %v2755_v38 }
 0x6b9   :  { %3575 = vmatpush1.msra.mxu0 %v2754_v44 }
 0x6ba   :  { %3576 = vmatprep.subr.mxu0 %v2747_v7 }
 0x6bb   :  { %3577 = vmatpush1.msra.mxu0 %v2746_v40  ;;  %v3370_v40 = vld [vmem:[#allocation9 + $0x13c0] sm:$0xff] }
 0x6bc   :  { %3578 = vmatprep.subr.mxu0 %v2739_v37  ;;  %v1610_v37 = vrot.slane %v6341_v14, 5 }
 0x6bd   :  { %3579 = vmatpush1.msra.mxu0 %v2738_v41 }
 0x6be   :  { %3580 = vmatprep.subr.mxu0 %v2987_v42  ;;  %v1608_v42 = vrot.slane %v6341_v14, 4 }
 0x6bf   :  { %3581 = vmatpush2.msra.mxu0 %v2986_v43 }
 0x6c0   :  { %3582 = vmatprep.subr.mxu0 %v2979_v47 }
 0x6c1   :  { %3583 = vmatpush2.msra.mxu0 %v2978_v48 }
 0x6c2   :  { %3584 = vmatprep.subr.mxu0 %v2971_v49 }
 0x6c3   :  { %3585 = vmatpush2.msra.mxu0 %v2970_v51  ;;  %v3363_v51 = vld [vmem:[#allocation9 + $0x1388] sm:$0xff] }
 0x6c4   :  { %3586 = vmatprep.subr.mxu0 %v2963_v52 }
 0x6c5   :  { %3587 = vmatpush2.msra.mxu0 %v2962_v26  ;;  %v2860_v26 = vld [vmem:[#allocation9 + $0x3d0] sm:$0xff] }
 0x6c6   :  { %3588 = vmatprep.subr.mxu0 %v2955_v15  ;;  %v3362_v15 = vld [vmem:[#allocation9 + $0x1380] sm:$0xff] }
 0x6c7   :  { %3589 = vmatpush2.msra.mxu0 %v2954_v53 }
 0x6c8   :  { %3590 = vmatprep.subr.mxu0 %v2947_v54  ;;  %v3355_v54 = vld [vmem:[#allocation9 + $0x1348] sm:$0xff] }
 0x6c9   :  { %3591 = vmatpush2.msra.mxu0 %v2946_v24  ;;  %v2852_v24 = vld [vmem:[#allocation9 + $0x390] sm:$0xff] }
 0x6ca   :  { %3592 = vmatprep.subr.mxu0 %v2939_v55  ;;  %v3354_v55 = vld [vmem:[#allocation9 + $0x1340] sm:$0xff] }
 0x6cb   :  { %3593 = vmatpush2.msra.mxu0 %v2938_v19  ;;  %v2845_v19 = vld [vmem:[#allocation9 + $0x358] sm:$0xff] }
 0x6cc   :  { %3594 = vmatprep.subr.mxu0 %v2931_v56  ;;  %v3347_v56 = vld [vmem:[#allocation9 + $0x1308] sm:$0xff] }
 0x6cd   :  { %3595 = vmatpush2.msra.mxu0 %v2930_v57  ;;  %v2844_v57 = vld [vmem:[#allocation9 + $0x350] sm:$0xff] }
 0x6ce   :  { %3596 = vmatprep.subr.mxu0 %v2923_v60  ;;  %v3346_v60 = vld [vmem:[#allocation9 + $0x1300] sm:$0xff] }
 0x6cf   :  { %3597 = vmatpush2.msra.mxu0 %v2922_v2  ;;  %v2837_v2 = vld [vmem:[#allocation9 + $0x318] sm:$0xff] }
 0x6d0   :  { %3598 = vmatprep.subr.mxu0 %v2915_v58  ;;  %v3339_v58 = vld [vmem:[#allocation9 + $0x12c8] sm:$0xff] }
 0x6d1   :  { %3599 = vmatpush2.msra.mxu0 %v2914_v59  ;;  %v2836_v59 = vld [vmem:[#allocation9 + $0x310] sm:$0xff] }
 0x6d2   :  { %3600 = vmatprep.subr.mxu0 %v2907_v30  ;;  %v3338_v30 = vld [vmem:[#allocation9 + $0x12c0] sm:$0xff] }
 0x6d3   :  { %3601 = vmatpush2.msra.mxu0 %v2906_v61  ;;  %v2829_v61 = vld [vmem:[#allocation9 + $0x2d8] sm:$0xff] }
 0x6d4   :  { %3602 = vmatprep.subr.mxu0 %v2899_v9  ;;  %v3331_v9 = vld [vmem:[#allocation9 + $0x1288] sm:$0xff] }
 0x6d5   :  { %3603 = vmatpush2.msra.mxu0 %v2898_v5  ;;  %v2828_v5 = vld [vmem:[#allocation9 + $0x2d0] sm:$0xff] }
 0x6d6   :  { %3604 = vmatprep.subr.mxu0 %v2891_v16  ;;  %v2821_v16 = vld [vmem:[#allocation9 + $0x298] sm:$0xff] }
 0x6d7   :  { %3605 = vmatpush2.msra.mxu0 %v2890_v31  ;;  %v2820_v31 = vld [vmem:[#allocation9 + $0x290] sm:$0xff] }
 0x6d8   :  { %3606 = vmatprep.subr.mxu0 %v2883_v6  ;;  %v2813_v6 = vld [vmem:[#allocation9 + $0x258] sm:$0xff] }
 0x6d9   :  { %3607 = vmatpush2.msra.mxu0 %v2882_v29  ;;  %v2812_v29 = vld [vmem:[#allocation9 + $0x250] sm:$0xff] }
 0x6da   :  { %3608 = vmatprep.subr.mxu0 %v2875_v23  ;;  %v2805_v23 = vld [vmem:[#allocation9 + $0x218] sm:$0xff] }
 0x6db   :  { %3609 = vmatpush2.msra.mxu0 %v2874_v22  ;;  %v2804_v22 = vld [vmem:[#allocation9 + $0x210] sm:$0xff] }
 0x6dc   :  { %3610 = vmatprep.subr.mxu0 %v2867_v1  ;;  %v2797_v1 = vld [vmem:[#allocation9 + $0x1d8] sm:$0xff] }
 0x6dd   :  { %3611 = vmatpush2.msra.mxu0 %v2866_v10  ;;  %v2796_v10 = vld [vmem:[#allocation9 + $0x1d0] sm:$0xff] }
 0x6de   :  { %3690 = vmatprep.subr.mxu0 %v3371_v17  ;;  %v3291_v17 = vld [vmem:[#allocation9 + $0x1148] sm:$0xff] }
 0x75a   :  { %v2638_v27 = vpop.f32.mrf.mxu0 }
 0x75c   :  { %v5393_v8 = vpop.f32.mrf.mxu0 }
 0x75d   :  { %v2781_v8 = vld [vmem:[#allocation9 + $0x158] sm:$0xff] }
 0x75e   :  { %v2708_v45 = vpop.f32.mrf.mxu0 }
 0x75f   :  { %v2712_v34 = vmax.f32 %v2638_v27, %v2708_v45  ;;  %v3290_v27 = vld [vmem:[#allocation9 + $0x1140] sm:$0xff]  ;;  %v3283_v45 = vld [vmem:[#allocation9 + $0x1108] sm:$0xff] }
 0x760   :  { %v5400_v50 = vpop.f32.mrf.mxu0 }
 0x761   :  { %v6458_v36 = vsel %vm2731_vm8, %v1602_v35, %v2712_v34  ;;  %v2719_v38 = vrot.slane %v2712_v34, 7  ;;  %v5247_v44 = vrot.slane %v2712_v34, 10  ;;  %v5246_v7 = vrot.slane %v2712_v34, 9  ;;  %v3282_v35 = vld [vmem:[#allocation9 + $0x1100] sm:$0xff]  ;;  %v2772_v50 = vld [vmem:[#allocation9 + $0x110] sm:$0xff] }
 0x762   :  { %3612 = vmatprep.mubr.f32.mxu0 %v6458_v36  ;;  %v5249_v41 = vrot.slane %v2712_v34, 12  ;;  %v5248_v43 = vrot.slane %v2712_v34, 11  ;;  %v2780_v34 = vld [vmem:[#allocation9 + $0x150] sm:$0xff] }
 0x763   :  { %v6465_v47 = vsel %vm2731_vm8, %v6341_v14, %v2719_v38  ;;  %v6468_v48 = vsel %vm2731_vm8, %v1606_v39, %v5247_v44  ;;  %v6471_v49 = vsel %vm2731_vm8, %v1604_v11, %v5246_v7  ;;  %v2853_v14 = vld [vmem:[#allocation9 + $0x398] sm:$0xff]  ;;  %v3275_v11 = vld [vmem:[#allocation9 + $0x10c8] sm:$0xff]  ;;  %v3274_v38 = vld [vmem:[#allocation9 + $0x10c0] sm:$0xff] }
 0x764   :  { %3613 = vmatmul.mubr.f32.vlgmr.msra.gmra.mxu0 %v6465_v47  ;;  %3683 = vmatprep.mubr.f32.mxu1 %v6468_v48  ;;  %v6476_v52 = vsel %vm2731_vm8, %v1610_v37, %v5249_v41  ;;  %v6479_v53 = vsel %vm2731_vm8, %v1608_v42, %v5248_v43  ;;  %v2773_v39 = vld [vmem:[#allocation9 + $0x118] sm:$0xff]  ;;  %v3267_v7 = vld [vmem:[#allocation9 + $0x1088] sm:$0xff]  ;;  %v3266_v37 = vld [vmem:[#allocation9 + $0x1080] sm:$0xff] }
 0x765   :  { %3691 = vmatpush1.msra.mxu0 %v3370_v40  ;;  %3684 = vmatmul.mubr.f32.vlgmr.msra.gmra.mxu1 %v6471_v49  ;;  %v2765_v44 = vld [vmem:[#allocation9 + $0xd8] sm:$0xff]  ;;  %v2764_v40 = vld [vmem:[#allocation9 + $0xd0] sm:$0xff]  ;;  %v3259_v42 = vld [vmem:[#allocation9 + $0x1048] sm:$0xff] }
 0x766   :  { %3692 = vmatprep.subr.mxu0 %v3363_v51  ;;  %3754 = vmatprep.mubr.f32.mxu0 %v6476_v52  ;;  %v2757_v41 = vld [vmem:[#allocation9 + $0x98] sm:$0xff]  ;;  %v2756_v43 = vld [vmem:[#allocation9 + $0x90] sm:$0xff]  ;;  %v3258_v51 = vld [vmem:[#allocation9 + $0x1040] sm:$0xff] }
 0x767   :  { %3762 = vmatpush1.msra.mxu1 %v2860_v26  ;;  %3693 = vmatpush1.msra.mxu0 %v3362_v15  ;;  %v2749_v26 = vld [vmem:[#allocation9 + $0x58] sm:$0xff]  ;;  %v3251_v15 = vld [vmem:[#allocation9 + $0x1008] sm:$0xff] }
 0x768   :  { %3763 = vmatprep.subr.mxu1 %v2853_v14  ;;  %3825 = vmatprep.mubr.f32.mxu1 %v6458_v36  ;;  %v2748_v14 = vld [vmem:[#allocation9 + $0x50] sm:$0xff] }
 0x769   :  { %3694 = vmatprep.subr.mxu0 %v3355_v54  ;;  %3764 = vmatpush1.msra.mxu1 %v2852_v24  ;;  %v3250_v54 = vld [vmem:[#allocation9 + $0x1000] sm:$0xff]  ;;  %v2741_v24 = vld [vmem:[#allocation9 + $0x18] sm:$0xff] }
 0x76a   :  { %3695 = vmatpush1.msra.mxu0 %v3354_v55  ;;  %3765 = vmatprep.subr.mxu1 %v2845_v19  ;;  %v3499_v55 = vld [vmem:[#allocation9 + $0x17c8] sm:$0xff]  ;;  %v2740_v19 = vld [vmem:[#allocation9 + $0x10] sm:$0xff] }
 0x76b   :  { %3696 = vmatprep.subr.mxu0 %v3347_v56  ;;  %3766 = vmatpush1.msra.mxu1 %v2844_v57  ;;  %v3498_v56 = vld [vmem:[#allocation9 + $0x17c0] sm:$0xff]  ;;  %v2989_v57 = vld [vmem:[#allocation9 + $0x7d8] sm:$0xff] }
 0x76c   :  { %3697 = vmatpush1.msra.mxu0 %v3346_v60  ;;  %3767 = vmatprep.subr.mxu1 %v2837_v2  ;;  %v3491_v60 = vld [vmem:[#allocation9 + $0x1788] sm:$0xff]  ;;  %v2988_v2 = vld [vmem:[#allocation9 + $0x7d0] sm:$0xff] }
 0x76d   :  { %3698 = vmatprep.subr.mxu0 %v3339_v58  ;;  %3768 = vmatpush1.msra.mxu1 %v2836_v59  ;;  %v3490_v58 = vld [vmem:[#allocation9 + $0x1780] sm:$0xff]  ;;  %v2981_v59 = vld [vmem:[#allocation9 + $0x798] sm:$0xff] }
 0x76e   :  { %3699 = vmatpush1.msra.mxu0 %v3338_v30  ;;  %3769 = vmatprep.subr.mxu1 %v2829_v61  ;;  %v3483_v30 = vld [vmem:[#allocation9 + $0x1748] sm:$0xff]  ;;  %v2980_v61 = vld [vmem:[#allocation9 + $0x790] sm:$0xff] }
 0x76f   :  { %3700 = vmatprep.subr.mxu0 %v3331_v9  ;;  %3770 = vmatpush1.msra.mxu1 %v2828_v5  ;;  %v3482_v9 = vld [vmem:[#allocation9 + $0x1740] sm:$0xff]  ;;  %v2973_v5 = vld [vmem:[#allocation9 + $0x758] sm:$0xff] }
 0x770   :  { %3701 = vmatpush1.msra.mxu0 %v3330_v12  ;;  %3771 = vmatprep.subr.mxu1 %v2821_v16  ;;  %v3475_v12 = vld [vmem:[#allocation9 + $0x1708] sm:$0xff]  ;;  %v2972_v16 = vld [vmem:[#allocation9 + $0x750] sm:$0xff] }
 0x771   :  { %3702 = vmatprep.subr.mxu0 %v3323_v3  ;;  %3772 = vmatpush1.msra.mxu1 %v2820_v31  ;;  %v3474_v3 = vld [vmem:[#allocation9 + $0x1700] sm:$0xff]  ;;  %v2965_v31 = vld [vmem:[#allocation9 + $0x718] sm:$0xff] }
 0x772   :  { %3703 = vmatpush1.msra.mxu0 %v3322_v20  ;;  %3773 = vmatprep.subr.mxu1 %v2813_v6  ;;  %v3467_v20 = vld [vmem:[#allocation9 + $0x16c8] sm:$0xff]  ;;  %v2964_v6 = vld [vmem:[#allocation9 + $0x710] sm:$0xff] }
 0x773   :  { %3704 = vmatprep.subr.mxu0 %v3315_v21  ;;  %3774 = vmatpush1.msra.mxu1 %v2812_v29  ;;  %v3466_v21 = vld [vmem:[#allocation9 + $0x16c0] sm:$0xff]  ;;  %v2957_v29 = vld [vmem:[#allocation9 + $0x6d8] sm:$0xff] }
 0x774   :  { %3705 = vmatpush1.msra.mxu0 %v3314_v62  ;;  %3775 = vmatprep.subr.mxu1 %v2805_v23  ;;  %v3459_v62 = vld [vmem:[#allocation9 + $0x1688] sm:$0xff]  ;;  %v2956_v23 = vld [vmem:[#allocation9 + $0x6d0] sm:$0xff] }
 0x775   :  { %3706 = vmatprep.subr.mxu0 %v3307_v18  ;;  %3776 = vmatpush1.msra.mxu1 %v2804_v22  ;;  %v3458_v18 = vld [vmem:[#allocation9 + $0x1680] sm:$0xff]  ;;  %v2949_v22 = vld [vmem:[#allocation9 + $0x698] sm:$0xff] }
 0x776   :  { %3707 = vmatpush1.msra.mxu0 %v3306_v63  ;;  %3777 = vmatprep.subr.mxu1 %v2797_v1  ;;  %v3451_v63 = vld [vmem:[#allocation9 + $0x1648] sm:$0xff]  ;;  %v2948_v1 = vld [vmem:[#allocation9 + $0x690] sm:$0xff] }
 0x777   :  { %3708 = vmatprep.subr.mxu0 %v3299_v25  ;;  %3778 = vmatpush1.msra.mxu1 %v2796_v10  ;;  %v3450_v25 = vld [vmem:[#allocation9 + $0x1640] sm:$0xff]  ;;  %v2941_v10 = vld [vmem:[#allocation9 + $0x658] sm:$0xff] }
 0x778   :  { %3709 = vmatpush1.msra.mxu0 %v3298_v13  ;;  %3779 = vmatprep.subr.mxu1 %v2789_v4  ;;  %v3443_v13 = vld [vmem:[#allocation9 + $0x1608] sm:$0xff]  ;;  %v2940_v4 = vld [vmem:[#allocation9 + $0x650] sm:$0xff] }
 0x779   :  { %3710 = vmatprep.subr.mxu0 %v3291_v17  ;;  %3780 = vmatpush1.msra.mxu1 %v2788_v46  ;;  %v3442_v17 = vld [vmem:[#allocation9 + $0x1600] sm:$0xff]  ;;  %v2933_v46 = vld [vmem:[#allocation9 + $0x618] sm:$0xff] }
 0x77a   :  { %3711 = vmatpush1.msra.mxu0 %v3290_v27  ;;  %3781 = vmatprep.subr.mxu1 %v2781_v8  ;;  %v3435_v27 = vld [vmem:[#allocation9 + $0x15c8] sm:$0xff]  ;;  %v2932_v8 = vld [vmem:[#allocation9 + $0x610] sm:$0xff] }
 0x77b   :  { %3712 = vmatprep.subr.mxu0 %v3283_v45  ;;  %3782 = vmatpush1.msra.mxu1 %v2780_v34  ;;  %v3434_v45 = vld [vmem:[#allocation9 + $0x15c0] sm:$0xff]  ;;  %v2925_v34 = vld [vmem:[#allocation9 + $0x5d8] sm:$0xff] }
 0x77c   :  { %3713 = vmatpush1.msra.mxu0 %v3282_v35  ;;  %3783 = vmatprep.subr.mxu1 %v2773_v39  ;;  %v3427_v35 = vld [vmem:[#allocation9 + $0x1588] sm:$0xff]  ;;  %v2924_v39 = vld [vmem:[#allocation9 + $0x5d0] sm:$0xff] }
 0x77d   :  { %3714 = vmatprep.subr.mxu0 %v3275_v11  ;;  %3784 = vmatpush1.msra.mxu1 %v2772_v50  ;;  %v3426_v11 = vld [vmem:[#allocation9 + $0x1580] sm:$0xff]  ;;  %v2917_v50 = vld [vmem:[#allocation9 + $0x598] sm:$0xff] }
 0x77e   :  { %3715 = vmatpush1.msra.mxu0 %v3274_v38  ;;  %3785 = vmatprep.subr.mxu1 %v2765_v44  ;;  %v3419_v38 = vld [vmem:[#allocation9 + $0x1548] sm:$0xff]  ;;  %v2916_v44 = vld [vmem:[#allocation9 + $0x590] sm:$0xff] }
 0x77f   :  { %3716 = vmatprep.subr.mxu0 %v3267_v7  ;;  %3786 = vmatpush1.msra.mxu1 %v2764_v40  ;;  %v3418_v7 = vld [vmem:[#allocation9 + $0x1540] sm:$0xff]  ;;  %v2909_v40 = vld [vmem:[#allocation9 + $0x558] sm:$0xff] }
 0x780   :  { %3717 = vmatpush1.msra.mxu0 %v3266_v37  ;;  %3787 = vmatprep.subr.mxu1 %v2757_v41  ;;  %v3411_v37 = vld [vmem:[#allocation9 + $0x1508] sm:$0xff]  ;;  %v2908_v41 = vld [vmem:[#allocation9 + $0x550] sm:$0xff] }
 0x781   :  { %3718 = vmatprep.subr.mxu0 %v3259_v42  ;;  %3788 = vmatpush1.msra.mxu1 %v2756_v43  ;;  %v3410_v42 = vld [vmem:[#allocation9 + $0x1500] sm:$0xff]  ;;  %v2901_v43 = vld [vmem:[#allocation9 + $0x518] sm:$0xff] }
 0x782   :  { %3719 = vmatpush1.msra.mxu0 %v3258_v51  ;;  %3789 = vmatprep.subr.mxu1 %v2749_v26  ;;  %v3403_v51 = vld [vmem:[#allocation9 + $0x14c8] sm:$0xff]  ;;  %v2900_v26 = vld [vmem:[#allocation9 + $0x510] sm:$0xff] }
 0x783   :  { %3720 = vmatprep.subr.mxu0 %v3251_v15  ;;  %3790 = vmatpush1.msra.mxu1 %v2748_v14  ;;  %v3402_v15 = vld [vmem:[#allocation9 + $0x14c0] sm:$0xff]  ;;  %v2893_v14 = vld [vmem:[#allocation9 + $0x4d8] sm:$0xff] }
 0x784   :  { %3721 = vmatpush1.msra.mxu0 %v3250_v54  ;;  %3791 = vmatprep.subr.mxu1 %v2741_v24  ;;  %v3395_v54 = vld [vmem:[#allocation9 + $0x1488] sm:$0xff]  ;;  %v2892_v24 = vld [vmem:[#allocation9 + $0x4d0] sm:$0xff] }
 0x785   :  { %3722 = vmatprep.subr.mxu0 %v3499_v55  ;;  %3792 = vmatpush1.msra.mxu1 %v2740_v19  ;;  %v3394_v55 = vld [vmem:[#allocation9 + $0x1480] sm:$0xff]  ;;  %v2885_v19 = vld [vmem:[#allocation9 + $0x498] sm:$0xff] }
 0x786   :  { %3723 = vmatpush2.msra.mxu0 %v3498_v56  ;;  %3793 = vmatprep.subr.mxu1 %v2989_v57  ;;  %v3387_v56 = vld [vmem:[#allocation9 + $0x1448] sm:$0xff]  ;;  %v2884_v57 = vld [vmem:[#allocation9 + $0x490] sm:$0xff] }
 0x787   :  { %3724 = vmatprep.subr.mxu0 %v3491_v60  ;;  %3794 = vmatpush2.msra.mxu1 %v2988_v2  ;;  %v3386_v60 = vld [vmem:[#allocation9 + $0x1440] sm:$0xff]  ;;  %v2877_v2 = vld [vmem:[#allocation9 + $0x458] sm:$0xff] }
 0x788   :  { %3725 = vmatpush2.msra.mxu0 %v3490_v58  ;;  %3795 = vmatprep.subr.mxu1 %v2981_v59  ;;  %v3379_v58 = vld [vmem:[#allocation9 + $0x1408] sm:$0xff]  ;;  %v2876_v59 = vld [vmem:[#allocation9 + $0x450] sm:$0xff] }
 0x789   :  { %3726 = vmatprep.subr.mxu0 %v3483_v30  ;;  %3796 = vmatpush2.msra.mxu1 %v2980_v61  ;;  %v3378_v30 = vld [vmem:[#allocation9 + $0x1400] sm:$0xff]  ;;  %v2869_v61 = vld [vmem:[#allocation9 + $0x418] sm:$0xff] }
 0x78a   :  { %3727 = vmatpush2.msra.mxu0 %v3482_v9  ;;  %3797 = vmatprep.subr.mxu1 %v2973_v5  ;;  %v2868_v9 = vld [vmem:[#allocation9 + $0x410] sm:$0xff]  ;;  %v3117_v5 = vld [vmem:[#allocation9 + $0xbd8] sm:$0xff] }
 0x78b   :  { %3728 = vmatprep.subr.mxu0 %v3475_v12  ;;  %3798 = vmatpush2.msra.mxu1 %v2972_v16  ;;  %v3116_v12 = vld [vmem:[#allocation9 + $0xbd0] sm:$0xff]  ;;  %v3373_v16 = vld [vmem:[#allocation9 + $0x13d8] sm:$0xff] }
 0x78c   :  { %3729 = vmatpush2.msra.mxu0 %v3474_v3  ;;  %3799 = vmatprep.subr.mxu1 %v2965_v31  ;;  %v3109_v3 = vld [vmem:[#allocation9 + $0xb98] sm:$0xff]  ;;  %v3372_v31 = vld [vmem:[#allocation9 + $0x13d0] sm:$0xff] }
 0x78d   :  { %3730 = vmatprep.subr.mxu0 %v3467_v20  ;;  %3800 = vmatpush2.msra.mxu1 %v2964_v6  ;;  %v3108_v20 = vld [vmem:[#allocation9 + $0xb90] sm:$0xff]  ;;  %v3365_v6 = vld [vmem:[#allocation9 + $0x1398] sm:$0xff] }
 0x78e   :  { %3731 = vmatpush2.msra.mxu0 %v3466_v21  ;;  %3801 = vmatprep.subr.mxu1 %v2957_v29  ;;  %v3101_v21 = vld [vmem:[#allocation9 + $0xb58] sm:$0xff]  ;;  %v3364_v29 = vld [vmem:[#allocation9 + $0x1390] sm:$0xff] }
 0x78f   :  { %3732 = vmatprep.subr.mxu0 %v3459_v62  ;;  %3802 = vmatpush2.msra.mxu1 %v2956_v23  ;;  %v3100_v62 = vld [vmem:[#allocation9 + $0xb50] sm:$0xff]  ;;  %v3357_v23 = vld [vmem:[#allocation9 + $0x1358] sm:$0xff] }
 0x790   :  { %3733 = vmatpush2.msra.mxu0 %v3458_v18  ;;  %3803 = vmatprep.subr.mxu1 %v2949_v22  ;;  %v3093_v18 = vld [vmem:[#allocation9 + $0xb18] sm:$0xff]  ;;  %v3356_v22 = vld [vmem:[#allocation9 + $0x1350] sm:$0xff] }
 0x791   :  { %3734 = vmatprep.subr.mxu0 %v3451_v63  ;;  %3804 = vmatpush2.msra.mxu1 %v2948_v1  ;;  %v3092_v63 = vld [vmem:[#allocation9 + $0xb10] sm:$0xff]  ;;  %v3349_v1 = vld [vmem:[#allocation9 + $0x1318] sm:$0xff] }
 0x792   :  { %3735 = vmatpush2.msra.mxu0 %v3450_v25  ;;  %3805 = vmatprep.subr.mxu1 %v2941_v10  ;;  %v3085_v25 = vld [vmem:[#allocation9 + $0xad8] sm:$0xff]  ;;  %v3348_v10 = vld [vmem:[#allocation9 + $0x1310] sm:$0xff] }
 0x793   :  { %3736 = vmatprep.subr.mxu0 %v3443_v13  ;;  %3806 = vmatpush2.msra.mxu1 %v2940_v4  ;;  %v3084_v13 = vld [vmem:[#allocation9 + $0xad0] sm:$0xff]  ;;  %v3341_v4 = vld [vmem:[#allocation9 + $0x12d8] sm:$0xff] }
 0x794   :  { %3737 = vmatpush2.msra.mxu0 %v3442_v17  ;;  %3807 = vmatprep.subr.mxu1 %v2933_v46  ;;  %v3077_v17 = vld [vmem:[#allocation9 + $0xa98] sm:$0xff]  ;;  %v3340_v46 = vld [vmem:[#allocation9 + $0x12d0] sm:$0xff] }
 0x795   :  { %3738 = vmatprep.subr.mxu0 %v3435_v27  ;;  %3808 = vmatpush2.msra.mxu1 %v2932_v8  ;;  %v3076_v27 = vld [vmem:[#allocation9 + $0xa90] sm:$0xff]  ;;  %v3333_v8 = vld [vmem:[#allocation9 + $0x1298] sm:$0xff] }
 0x796   :  { %3739 = vmatpush2.msra.mxu0 %v3434_v45  ;;  %3809 = vmatprep.subr.mxu1 %v2925_v34  ;;  %v3069_v45 = vld [vmem:[#allocation9 + $0xa58] sm:$0xff]  ;;  %v3332_v34 = vld [vmem:[#allocation9 + $0x1290] sm:$0xff] }
 0x797   :  { %3740 = vmatprep.subr.mxu0 %v3427_v35  ;;  %3810 = vmatpush2.msra.mxu1 %v2924_v39  ;;  %v3068_v35 = vld [vmem:[#allocation9 + $0xa50] sm:$0xff]  ;;  %v3325_v39 = vld [vmem:[#allocation9 + $0x1258] sm:$0xff] }
 0x798   :  { %3741 = vmatpush2.msra.mxu0 %v3426_v11  ;;  %3811 = vmatprep.subr.mxu1 %v2917_v50  ;;  %v3061_v11 = vld [vmem:[#allocation9 + $0xa18] sm:$0xff]  ;;  %v3324_v50 = vld [vmem:[#allocation9 + $0x1250] sm:$0xff] }
 0x799   :  { %3742 = vmatprep.subr.mxu0 %v3419_v38  ;;  %3812 = vmatpush2.msra.mxu1 %v2916_v44  ;;  %v3060_v38 = vld [vmem:[#allocation9 + $0xa10] sm:$0xff]  ;;  %v3317_v44 = vld [vmem:[#allocation9 + $0x1218] sm:$0xff] }
 0x79a   :  { %3743 = vmatpush2.msra.mxu0 %v3418_v7  ;;  %3813 = vmatprep.subr.mxu1 %v2909_v40  ;;  %v3053_v7 = vld [vmem:[#allocation9 + $0x9d8] sm:$0xff]  ;;  %v3316_v40 = vld [vmem:[#allocation9 + $0x1210] sm:$0xff] }
 0x79b   :  { %3744 = vmatprep.subr.mxu0 %v3411_v37  ;;  %3814 = vmatpush2.msra.mxu1 %v2908_v41  ;;  %v3052_v37 = vld [vmem:[#allocation9 + $0x9d0] sm:$0xff]  ;;  %v3309_v41 = vld [vmem:[#allocation9 + $0x11d8] sm:$0xff] }
 0x79c   :  { %3745 = vmatpush2.msra.mxu0 %v3410_v42  ;;  %3815 = vmatprep.subr.mxu1 %v2901_v43  ;;  %v3045_v42 = vld [vmem:[#allocation9 + $0x998] sm:$0xff]  ;;  %v3308_v43 = vld [vmem:[#allocation9 + $0x11d0] sm:$0xff] }
 0x79d   :  { %3746 = vmatprep.subr.mxu0 %v3403_v51  ;;  %3816 = vmatpush2.msra.mxu1 %v2900_v26  ;;  %v3044_v51 = vld [vmem:[#allocation9 + $0x990] sm:$0xff]  ;;  %v3301_v26 = vld [vmem:[#allocation9 + $0x1198] sm:$0xff] }
 0x79e   :  { %3747 = vmatpush2.msra.mxu0 %v3402_v15  ;;  %3817 = vmatprep.subr.mxu1 %v2893_v14  ;;  %v3037_v15 = vld [vmem:[#allocation9 + $0x958] sm:$0xff]  ;;  %v3300_v14 = vld [vmem:[#allocation9 + $0x1190] sm:$0xff] }
 0x79f   :  { %3748 = vmatprep.subr.mxu0 %v3395_v54  ;;  %3818 = vmatpush2.msra.mxu1 %v2892_v24  ;;  %v3036_v54 = vld [vmem:[#allocation9 + $0x950] sm:$0xff]  ;;  %v3293_v24 = vld [vmem:[#allocation9 + $0x1158] sm:$0xff] }
 0x7a0   :  { %3749 = vmatpush2.msra.mxu0 %v3394_v55  ;;  %3819 = vmatprep.subr.mxu1 %v2885_v19  ;;  %v3029_v55 = vld [vmem:[#allocation9 + $0x918] sm:$0xff]  ;;  %v3292_v19 = vld [vmem:[#allocation9 + $0x1150] sm:$0xff] }
 0x7a1   :  { %3750 = vmatprep.subr.mxu0 %v3387_v56  ;;  %3820 = vmatpush2.msra.mxu1 %v2884_v57  ;;  %v3028_v56 = vld [vmem:[#allocation9 + $0x910] sm:$0xff]  ;;  %v3285_v57 = vld [vmem:[#allocation9 + $0x1118] sm:$0xff] }
 0x7a2   :  { %3751 = vmatpush2.msra.mxu0 %v3386_v60  ;;  %3821 = vmatprep.subr.mxu1 %v2877_v2  ;;  %v3021_v60 = vld [vmem:[#allocation9 + $0x8d8] sm:$0xff]  ;;  %v3284_v2 = vld [vmem:[#allocation9 + $0x1110] sm:$0xff] }
 0x7a3   :  { %3752 = vmatprep.subr.mxu0 %v3379_v58  ;;  %3822 = vmatpush2.msra.mxu1 %v2876_v59  ;;  %v3020_v58 = vld [vmem:[#allocation9 + $0x8d0] sm:$0xff]  ;;  %v3277_v59 = vld [vmem:[#allocation9 + $0x10d8] sm:$0xff] }
 0x7a4   :  { %3753 = vmatpush2.msra.mxu0 %v3378_v30  ;;  %3823 = vmatprep.subr.mxu1 %v2869_v61  ;;  %v3013_v30 = vld [vmem:[#allocation9 + $0x898] sm:$0xff]  ;;  %v3276_v61 = vld [vmem:[#allocation9 + $0x10d0] sm:$0xff] }
 0x7a5   :  { %3755 = vmatmul.mubr.f32.vlgmr.msra.gmra.mxu0 %v6479_v53  ;;  %3824 = vmatpush2.msra.mxu1 %v2868_v9  ;;  %v3012_v9 = vld [vmem:[#allocation9 + $0x890] sm:$0xff] }
 0x7a6   :  { %3832 = vmatprep.subr.mxu0 %v3117_v5  ;;  %3826 = vmatmul.mubr.f32.vlgmr.msra.gmra.mxu1 %v6465_v47  ;;  %v3269_v5 = vld [vmem:[#allocation9 + $0x1098] sm:$0xff] }
 0x7a7   :  { %3833 = vmatpush1.msra.mxu0 %v3116_v12  ;;  %3896 = vmatprep.mubr.f32.mxu0 %v6468_v48  ;;  %v3005_v12 = vld [vmem:[#allocation9 + $0x858] sm:$0xff] }
 0x7a8   :  { %3903 = vmatprep.subr.mxu1 %v3373_v16  ;;  %3834 = vmatprep.subr.mxu0 %v3109_v3  ;;  %v3268_v16 = vld [vmem:[#allocation9 + $0x1090] sm:$0xff] }
 0x7a9   :  { %3904 = vmatpush1.msra.mxu1 %v3372_v31  ;;  %3967 = vmatprep.mubr.f32.mxu1 %v6476_v52  ;;  %v3004_v3 = vld [vmem:[#allocation9 + $0x850] sm:$0xff]  ;;  %v3261_v31 = vld [vmem:[#allocation9 + $0x1058] sm:$0xff] }
 0x7aa   :  { %3835 = vmatpush1.msra.mxu0 %v3108_v20  ;;  %3905 = vmatprep.subr.mxu1 %v3365_v6  ;;  %v2997_v20 = vld [vmem:[#allocation9 + $0x818] sm:$0xff]  ;;  %v3260_v6 = vld [vmem:[#allocation9 + $0x1050] sm:$0xff] }
 0x7ab   :  { %3836 = vmatprep.subr.mxu0 %v3101_v21  ;;  %3906 = vmatpush1.msra.mxu1 %v3364_v29  ;;  %v2996_v21 = vld [vmem:[#allocation9 + $0x810] sm:$0xff]  ;;  %v3253_v29 = vld [vmem:[#allocation9 + $0x1018] sm:$0xff] }
 0x7ac   :  { %3837 = vmatpush1.msra.mxu0 %v3100_v62  ;;  %3907 = vmatprep.subr.mxu1 %v3357_v23  ;;  %v3245_v62 = vld [vmem:[#allocation9 + $0xfd8] sm:$0xff]  ;;  %v3252_v23 = vld [vmem:[#allocation9 + $0x1010] sm:$0xff] }
 0x7ad   :  { %3838 = vmatprep.subr.mxu0 %v3093_v18  ;;  %3908 = vmatpush1.msra.mxu1 %v3356_v22  ;;  %v3244_v18 = vld [vmem:[#allocation9 + $0xfd0] sm:$0xff]  ;;  %v3501_v22 = vld [vmem:[#allocation9 + $0x17d8] sm:$0xff] }
 0x7ae   :  { %3839 = vmatpush1.msra.mxu0 %v3092_v63  ;;  %3909 = vmatprep.subr.mxu1 %v3349_v1  ;;  %v3237_v63 = vld [vmem:[#allocation9 + $0xf98] sm:$0xff]  ;;  %v3500_v1 = vld [vmem:[#allocation9 + $0x17d0] sm:$0xff] }
 0x7af   :  { %3840 = vmatprep.subr.mxu0 %v3085_v25  ;;  %3910 = vmatpush1.msra.mxu1 %v3348_v10  ;;  %v3236_v25 = vld [vmem:[#allocation9 + $0xf90] sm:$0xff]  ;;  %v3493_v10 = vld [vmem:[#allocation9 + $0x1798] sm:$0xff] }
 0x7b0   :  { %3841 = vmatpush1.msra.mxu0 %v3084_v13  ;;  %3911 = vmatprep.subr.mxu1 %v3341_v4  ;;  %v3229_v13 = vld [vmem:[#allocation9 + $0xf58] sm:$0xff]  ;;  %v3492_v4 = vld [vmem:[#allocation9 + $0x1790] sm:$0xff] }
 0x7b1   :  { %3842 = vmatprep.subr.mxu0 %v3077_v17  ;;  %3912 = vmatpush1.msra.mxu1 %v3340_v46  ;;  %v3228_v17 = vld [vmem:[#allocation9 + $0xf50] sm:$0xff]  ;;  %v3485_v46 = vld [vmem:[#allocation9 + $0x1758] sm:$0xff] }
 0x7b2   :  { %3843 = vmatpush1.msra.mxu0 %v3076_v27  ;;  %3913 = vmatprep.subr.mxu1 %v3333_v8  ;;  %v3221_v27 = vld [vmem:[#allocation9 + $0xf18] sm:$0xff]  ;;  %v3484_v8 = vld [vmem:[#allocation9 + $0x1750] sm:$0xff] }
 0x7b3   :  { %3844 = vmatprep.subr.mxu0 %v3069_v45  ;;  %3914 = vmatpush1.msra.mxu1 %v3332_v34  ;;  %v3220_v45 = vld [vmem:[#allocation9 + $0xf10] sm:$0xff]  ;;  %v3477_v34 = vld [vmem:[#allocation9 + $0x1718] sm:$0xff] }
 0x7b4   :  { %3845 = vmatpush1.msra.mxu0 %v3068_v35  ;;  %3915 = vmatprep.subr.mxu1 %v3325_v39  ;;  %v3213_v35 = vld [vmem:[#allocation9 + $0xed8] sm:$0xff]  ;;  %v3476_v39 = vld [vmem:[#allocation9 + $0x1710] sm:$0xff] }
 0x7b5   :  { %3846 = vmatprep.subr.mxu0 %v3061_v11  ;;  %3916 = vmatpush1.msra.mxu1 %v3324_v50  ;;  %v3212_v11 = vld [vmem:[#allocation9 + $0xed0] sm:$0xff]  ;;  %v3469_v50 = vld [vmem:[#allocation9 + $0x16d8] sm:$0xff] }
 0x7b6   :  { %3847 = vmatpush1.msra.mxu0 %v3060_v38  ;;  %3917 = vmatprep.subr.mxu1 %v3317_v44  ;;  %v3205_v38 = vld [vmem:[#allocation9 + $0xe98] sm:$0xff]  ;;  %v3468_v44 = vld [vmem:[#allocation9 + $0x16d0] sm:$0xff] }
 0x7b7   :  { %3848 = vmatprep.subr.mxu0 %v3053_v7  ;;  %3918 = vmatpush1.msra.mxu1 %v3316_v40  ;;  %v3204_v7 = vld [vmem:[#allocation9 + $0xe90] sm:$0xff]  ;;  %v3461_v40 = vld [vmem:[#allocation9 + $0x1698] sm:$0xff] }
 0x7b8   :  { %3849 = vmatpush1.msra.mxu0 %v3052_v37  ;;  %3919 = vmatprep.subr.mxu1 %v3309_v41  ;;  %v3197_v37 = vld [vmem:[#allocation9 + $0xe58] sm:$0xff]  ;;  %v3460_v41 = vld [vmem:[#allocation9 + $0x1690] sm:$0xff] }
 0x7b9   :  { %3850 = vmatprep.subr.mxu0 %v3045_v42  ;;  %3920 = vmatpush1.msra.mxu1 %v3308_v43  ;;  %v3196_v42 = vld [vmem:[#allocation9 + $0xe50] sm:$0xff]  ;;  %v3453_v43 = vld [vmem:[#allocation9 + $0x1658] sm:$0xff] }
 0x7ba   :  { %3851 = vmatpush1.msra.mxu0 %v3044_v51  ;;  %3921 = vmatprep.subr.mxu1 %v3301_v26  ;;  %v3189_v51 = vld [vmem:[#allocation9 + $0xe18] sm:$0xff]  ;;  %v3452_v26 = vld [vmem:[#allocation9 + $0x1650] sm:$0xff] }
 0x7bb   :  { %3852 = vmatprep.subr.mxu0 %v3037_v15  ;;  %3922 = vmatpush1.msra.mxu1 %v3300_v14  ;;  %v3188_v15 = vld [vmem:[#allocation9 + $0xe10] sm:$0xff]  ;;  %v3445_v14 = vld [vmem:[#allocation9 + $0x1618] sm:$0xff] }
 0x7bc   :  { %3853 = vmatpush1.msra.mxu0 %v3036_v54  ;;  %3923 = vmatprep.subr.mxu1 %v3293_v24  ;;  %v3181_v54 = vld [vmem:[#allocation9 + $0xdd8] sm:$0xff]  ;;  %v3444_v24 = vld [vmem:[#allocation9 + $0x1610] sm:$0xff] }
 0x7bd   :  { %3854 = vmatprep.subr.mxu0 %v3029_v55  ;;  %3924 = vmatpush1.msra.mxu1 %v3292_v19  ;;  %v3180_v55 = vld [vmem:[#allocation9 + $0xdd0] sm:$0xff]  ;;  %v3437_v19 = vld [vmem:[#allocation9 + $0x15d8] sm:$0xff] }
 0x7be   :  { %3855 = vmatpush1.msra.mxu0 %v3028_v56  ;;  %3925 = vmatprep.subr.mxu1 %v3285_v57  ;;  %v3173_v56 = vld [vmem:[#allocation9 + $0xd98] sm:$0xff]  ;;  %v3436_v57 = vld [vmem:[#allocation9 + $0x15d0] sm:$0xff] }
 0x7bf   :  { %3856 = vmatprep.subr.mxu0 %v3021_v60  ;;  %3926 = vmatpush1.msra.mxu1 %v3284_v2  ;;  %v3172_v60 = vld [vmem:[#allocation9 + $0xd90] sm:$0xff]  ;;  %v3429_v2 = vld [vmem:[#allocation9 + $0x1598] sm:$0xff] }
 0x7c0   :  { %3857 = vmatpush1.msra.mxu0 %v3020_v58  ;;  %3927 = vmatprep.subr.mxu1 %v3277_v59  ;;  %v3165_v58 = vld [vmem:[#allocation9 + $0xd58] sm:$0xff]  ;;  %v3428_v59 = vld [vmem:[#allocation9 + $0x1590] sm:$0xff] }
 0x7c1   :  { %3858 = vmatprep.subr.mxu0 %v3013_v30  ;;  %3928 = vmatpush1.msra.mxu1 %v3276_v61  ;;  %v3164_v30 = vld [vmem:[#allocation9 + $0xd50] sm:$0xff]  ;;  %v3421_v61 = vld [vmem:[#allocation9 + $0x1558] sm:$0xff] }
 0x7c2   :  { %3859 = vmatpush1.msra.mxu0 %v3012_v9  ;;  %3929 = vmatprep.subr.mxu1 %v3269_v5  ;;  %v3157_v9 = vld [vmem:[#allocation9 + $0xd18] sm:$0xff]  ;;  %v3420_v5 = vld [vmem:[#allocation9 + $0x1550] sm:$0xff] }
 0x7c3   :  { %3860 = vmatprep.subr.mxu0 %v3005_v12  ;;  %3930 = vmatpush1.msra.mxu1 %v3268_v16  ;;  %v3156_v12 = vld [vmem:[#allocation9 + $0xd10] sm:$0xff]  ;;  %v3413_v16 = vld [vmem:[#allocation9 + $0x1518] sm:$0xff] }
 0x7c4   :  { %3861 = vmatpush1.msra.mxu0 %v3004_v3  ;;  %3931 = vmatprep.subr.mxu1 %v3261_v31  ;;  %v3149_v3 = vld [vmem:[#allocation9 + $0xcd8] sm:$0xff]  ;;  %v3412_v31 = vld [vmem:[#allocation9 + $0x1510] sm:$0xff] }
 0x7c5   :  { %3862 = vmatprep.subr.mxu0 %v2997_v20  ;;  %3932 = vmatpush1.msra.mxu1 %v3260_v6  ;;  %v3148_v20 = vld [vmem:[#allocation9 + $0xcd0] sm:$0xff]  ;;  %v3405_v6 = vld [vmem:[#allocation9 + $0x14d8] sm:$0xff] }
 0x7c6   :  { %3863 = vmatpush1.msra.mxu0 %v2996_v21  ;;  %3933 = vmatprep.subr.mxu1 %v3253_v29  ;;  %v3141_v21 = vld [vmem:[#allocation9 + $0xc98] sm:$0xff]  ;;  %v3404_v29 = vld [vmem:[#allocation9 + $0x14d0] sm:$0xff] }
 0x7c7   :  { %3864 = vmatprep.subr.mxu0 %v3245_v62  ;;  %3934 = vmatpush1.msra.mxu1 %v3252_v23  ;;  %v3140_v62 = vld [vmem:[#allocation9 + $0xc90] sm:$0xff]  ;;  %v3397_v23 = vld [vmem:[#allocation9 + $0x1498] sm:$0xff] }
 0x7c8   :  { %3865 = vmatpush2.msra.mxu0 %v3244_v18  ;;  %3935 = vmatprep.subr.mxu1 %v3501_v22  ;;  %v3133_v18 = vld [vmem:[#allocation9 + $0xc58] sm:$0xff]  ;;  %v3396_v22 = vld [vmem:[#allocation9 + $0x1490] sm:$0xff] }
 0x7c9   :  { %3866 = vmatprep.subr.mxu0 %v3237_v63  ;;  %3936 = vmatpush2.msra.mxu1 %v3500_v1  ;;  %v3132_v63 = vld [vmem:[#allocation9 + $0xc50] sm:$0xff]  ;;  %v3389_v1 = vld [vmem:[#allocation9 + $0x1458] sm:$0xff] }
 0x7ca   :  { %3867 = vmatpush2.msra.mxu0 %v3236_v25  ;;  %3937 = vmatprep.subr.mxu1 %v3493_v10  ;;  %v3125_v25 = vld [vmem:[#allocation9 + $0xc18] sm:$0xff]  ;;  %v3388_v10 = vld [vmem:[#allocation9 + $0x1450] sm:$0xff] }
 0x7cb   :  { %3868 = vmatprep.subr.mxu0 %v3229_v13  ;;  %3938 = vmatpush2.msra.mxu1 %v3492_v4  ;;  %v3124_v13 = vld [vmem:[#allocation9 + $0xc10] sm:$0xff]  ;;  %v3381_v4 = vld [vmem:[#allocation9 + $0x1418] sm:$0xff] }
 0x7cc   :  { %3869 = vmatpush2.msra.mxu0 %v3228_v17  ;;  %3939 = vmatprep.subr.mxu1 %v3485_v46  ;;  %v3380_v17 = vld [vmem:[#allocation9 + $0x1410] sm:$0xff]  ;;  %v2863_v46 = vld [vmem:[#allocation9 + $0x3e8] sm:$0xff] }
 0x7cd   :  { %3870 = vmatprep.subr.mxu0 %v3221_v27  ;;  %3940 = vmatpush2.msra.mxu1 %v3484_v8  ;;  %v2862_v27 = vld [vmem:[#allocation9 + $0x3e0] sm:$0xff]  ;;  %v3119_v8 = vld [vmem:[#allocation9 + $0xbe8] sm:$0xff] }
 0x7ce   :  { %3871 = vmatpush2.msra.mxu0 %v3220_v45  ;;  %3941 = vmatprep.subr.mxu1 %v3477_v34  ;;  %v2855_v45 = vld [vmem:[#allocation9 + $0x3a8] sm:$0xff]  ;;  %v3118_v34 = vld [vmem:[#allocation9 + $0xbe0] sm:$0xff] }
 0x7cf   :  { %3872 = vmatprep.subr.mxu0 %v3213_v35  ;;  %3942 = vmatpush2.msra.mxu1 %v3476_v39  ;;  %v2854_v35 = vld [vmem:[#allocation9 + $0x3a0] sm:$0xff]  ;;  %v3111_v39 = vld [vmem:[#allocation9 + $0xba8] sm:$0xff] }
 0x7d0   :  { %3873 = vmatpush2.msra.mxu0 %v3212_v11  ;;  %3943 = vmatprep.subr.mxu1 %v3469_v50  ;;  %v2847_v11 = vld [vmem:[#allocation9 + $0x368] sm:$0xff]  ;;  %v3110_v50 = vld [vmem:[#allocation9 + $0xba0] sm:$0xff] }
 0x7d1   :  { %3874 = vmatprep.subr.mxu0 %v3205_v38  ;;  %3944 = vmatpush2.msra.mxu1 %v3468_v44  ;;  %v2846_v38 = vld [vmem:[#allocation9 + $0x360] sm:$0xff]  ;;  %v3103_v44 = vld [vmem:[#allocation9 + $0xb68] sm:$0xff] }
 0x7d2   :  { %3875 = vmatpush2.msra.mxu0 %v3204_v7  ;;  %3945 = vmatprep.subr.mxu1 %v3461_v40  ;;  %v2839_v7 = vld [vmem:[#allocation9 + $0x328] sm:$0xff]  ;;  %v3102_v40 = vld [vmem:[#allocation9 + $0xb60] sm:$0xff] }
 0x7d3   :  { %3876 = vmatprep.subr.mxu0 %v3197_v37  ;;  %3946 = vmatpush2.msra.mxu1 %v3460_v41  ;;  %v2838_v37 = vld [vmem:[#allocation9 + $0x320] sm:$0xff]  ;;  %v3095_v41 = vld [vmem:[#allocation9 + $0xb28] sm:$0xff] }
 0x7d4   :  { %3877 = vmatpush2.msra.mxu0 %v3196_v42  ;;  %3947 = vmatprep.subr.mxu1 %v3453_v43  ;;  %v2831_v42 = vld [vmem:[#allocation9 + $0x2e8] sm:$0xff]  ;;  %v3094_v43 = vld [vmem:[#allocation9 + $0xb20] sm:$0xff] }
 0x7d5   :  { %3878 = vmatprep.subr.mxu0 %v3189_v51  ;;  %3948 = vmatpush2.msra.mxu1 %v3452_v26  ;;  %v2830_v51 = vld [vmem:[#allocation9 + $0x2e0] sm:$0xff]  ;;  %v3087_v26 = vld [vmem:[#allocation9 + $0xae8] sm:$0xff] }
 0x7d6   :  { %3879 = vmatpush2.msra.mxu0 %v3188_v15  ;;  %3949 = vmatprep.subr.mxu1 %v3445_v14  ;;  %v2823_v15 = vld [vmem:[#allocation9 + $0x2a8] sm:$0xff]  ;;  %v3086_v14 = vld [vmem:[#allocation9 + $0xae0] sm:$0xff] }
 0x7d7   :  { %3880 = vmatprep.subr.mxu0 %v3181_v54  ;;  %3950 = vmatpush2.msra.mxu1 %v3444_v24  ;;  %v2822_v54 = vld [vmem:[#allocation9 + $0x2a0] sm:$0xff]  ;;  %v3079_v24 = vld [vmem:[#allocation9 + $0xaa8] sm:$0xff] }
 0x7d8   :  { %3881 = vmatpush2.msra.mxu0 %v3180_v55  ;;  %3951 = vmatprep.subr.mxu1 %v3437_v19  ;;  %v2815_v55 = vld [vmem:[#allocation9 + $0x268] sm:$0xff]  ;;  %v3078_v19 = vld [vmem:[#allocation9 + $0xaa0] sm:$0xff] }
 0x7d9   :  { %3882 = vmatprep.subr.mxu0 %v3173_v56  ;;  %3952 = vmatpush2.msra.mxu1 %v3436_v57  ;;  %v2814_v56 = vld [vmem:[#allocation9 + $0x260] sm:$0xff]  ;;  %v3071_v57 = vld [vmem:[#allocation9 + $0xa68] sm:$0xff] }
 0x7da   :  { %3883 = vmatpush2.msra.mxu0 %v3172_v60  ;;  %3953 = vmatprep.subr.mxu1 %v3429_v2  ;;  %v2807_v60 = vld [vmem:[#allocation9 + $0x228] sm:$0xff]  ;;  %v3070_v2 = vld [vmem:[#allocation9 + $0xa60] sm:$0xff] }
 0x7db   :  { %3884 = vmatprep.subr.mxu0 %v3165_v58  ;;  %3954 = vmatpush2.msra.mxu1 %v3428_v59  ;;  %v2806_v58 = vld [vmem:[#allocation9 + $0x220] sm:$0xff]  ;;  %v3063_v59 = vld [vmem:[#allocation9 + $0xa28] sm:$0xff] }
 0x7dc   :  { %3885 = vmatpush2.msra.mxu0 %v3164_v30  ;;  %3955 = vmatprep.subr.mxu1 %v3421_v61  ;;  %v2799_v30 = vld [vmem:[#allocation9 + $0x1e8] sm:$0xff]  ;;  %v3062_v61 = vld [vmem:[#allocation9 + $0xa20] sm:$0xff] }
 0x7dd   :  { %3886 = vmatprep.subr.mxu0 %v3157_v9  ;;  %3956 = vmatpush2.msra.mxu1 %v3420_v5  ;;  %v2798_v9 = vld [vmem:[#allocation9 + $0x1e0] sm:$0xff]  ;;  %v3055_v5 = vld [vmem:[#allocation9 + $0x9e8] sm:$0xff] }
 0x7de   :  { %3887 = vmatpush2.msra.mxu0 %v3156_v12  ;;  %3957 = vmatprep.subr.mxu1 %v3413_v16  ;;  %v2791_v12 = vld [vmem:[#allocation9 + $0x1a8] sm:$0xff]  ;;  %v3054_v16 = vld [vmem:[#allocation9 + $0x9e0] sm:$0xff] }
 0x7df   :  { %3888 = vmatprep.subr.mxu0 %v3149_v3  ;;  %3958 = vmatpush2.msra.mxu1 %v3412_v31  ;;  %v2790_v3 = vld [vmem:[#allocation9 + $0x1a0] sm:$0xff]  ;;  %v3047_v31 = vld [vmem:[#allocation9 + $0x9a8] sm:$0xff] }
 0x7e0   :  { %3889 = vmatpush2.msra.mxu0 %v3148_v20  ;;  %3959 = vmatprep.subr.mxu1 %v3405_v6  ;;  %v2783_v20 = vld [vmem:[#allocation9 + $0x168] sm:$0xff]  ;;  %v3046_v6 = vld [vmem:[#allocation9 + $0x9a0] sm:$0xff] }
 0x7e1   :  { %3890 = vmatprep.subr.mxu0 %v3141_v21  ;;  %3960 = vmatpush2.msra.mxu1 %v3404_v29  ;;  %v2782_v21 = vld [vmem:[#allocation9 + $0x160] sm:$0xff]  ;;  %v3039_v29 = vld [vmem:[#allocation9 + $0x968] sm:$0xff] }
 0x7e2   :  { %3891 = vmatpush2.msra.mxu0 %v3140_v62  ;;  %3961 = vmatprep.subr.mxu1 %v3397_v23  ;;  %v2775_v62 = vld [vmem:[#allocation9 + $0x128] sm:$0xff]  ;;  %v3038_v23 = vld [vmem:[#allocation9 + $0x960] sm:$0xff] }
 0x7e3   :  { %3892 = vmatprep.subr.mxu0 %v3133_v18  ;;  %3962 = vmatpush2.msra.mxu1 %v3396_v22  ;;  %v2774_v18 = vld [vmem:[#allocation9 + $0x120] sm:$0xff]  ;;  %v3031_v22 = vld [vmem:[#allocation9 + $0x928] sm:$0xff] }
 0x7e4   :  { %3893 = vmatpush2.msra.mxu0 %v3132_v63  ;;  %3963 = vmatprep.subr.mxu1 %v3389_v1  ;;  %v2767_v63 = vld [vmem:[#allocation9 + $0xe8] sm:$0xff]  ;;  %v3030_v1 = vld [vmem:[#allocation9 + $0x920] sm:$0xff] }
 0x7e5   :  { %3894 = vmatprep.subr.mxu0 %v3125_v25  ;;  %3964 = vmatpush2.msra.mxu1 %v3388_v10  ;;  %v2766_v25 = vld [vmem:[#allocation9 + $0xe0] sm:$0xff]  ;;  %v3023_v10 = vld [vmem:[#allocation9 + $0x8e8] sm:$0xff] }
 0x7e6   :  { %3895 = vmatpush2.msra.mxu0 %v3124_v13  ;;  %3965 = vmatprep.subr.mxu1 %v3381_v4  ;;  %v2759_v13 = vld [vmem:[#allocation9 + $0xa8] sm:$0xff]  ;;  %v3022_v4 = vld [vmem:[#allocation9 + $0x8e0] sm:$0xff] }
 0x7e7   :  { %3897 = vmatmul.mubr.f32.vlgmr.msra.gmra.mxu0 %v6471_v49  ;;  %3966 = vmatpush2.msra.mxu1 %v3380_v17  ;;  %v2758_v17 = vld [vmem:[#allocation9 + $0xa0] sm:$0xff] }
 0x7e8   :  { %3974 = vmatprep.subr.mxu0 %v2863_v46  ;;  %3968 = vmatmul.mubr.f32.vlgmr.msra.gmra.mxu1 %v6479_v53  ;;  %v3015_v46 = vld [vmem:[#allocation9 + $0x8a8] sm:$0xff] }
 0x7e9   :  { %3975 = vmatpush1.msra.mxu0 %v2862_v27  ;;  %4038 = vmatprep.mubr.f32.mxu0 %v6458_v36  ;;  %v2751_v27 = vld [vmem:[#allocation9 + $0x68] sm:$0xff] }
 0x7ea   :  { %4045 = vmatprep.subr.mxu1 %v3119_v8  ;;  %3976 = vmatprep.subr.mxu0 %v2855_v45  ;;  %v3014_v8 = vld [vmem:[#allocation9 + $0x8a0] sm:$0xff] }
 0x7eb   :  { %4046 = vmatpush1.msra.mxu1 %v3118_v34  ;;  %4109 = vmatprep.mubr.f32.mxu1 %v6468_v48  ;;  %v2750_v45 = vld [vmem:[#allocation9 + $0x60] sm:$0xff]  ;;  %v3007_v34 = vld [vmem:[#allocation9 + $0x868] sm:$0xff] }
 0x7ec   :  { %3977 = vmatpush1.msra.mxu0 %v2854_v35  ;;  %4047 = vmatprep.subr.mxu1 %v3111_v39  ;;  %v2743_v35 = vld [vmem:[#allocation9 + $0x28] sm:$0xff]  ;;  %v3006_v39 = vld [vmem:[#allocation9 + $0x860] sm:$0xff] }
 0x7ed   :  { %3978 = vmatprep.subr.mxu0 %v2847_v11  ;;  %4048 = vmatpush1.msra.mxu1 %v3110_v50  ;;  %v2742_v11 = vld [vmem:[#allocation9 + $0x20] sm:$0xff]  ;;  %v2999_v50 = vld [vmem:[#allocation9 + $0x828] sm:$0xff] }
 0x7ee   :  { %3979 = vmatpush1.msra.mxu0 %v2846_v38  ;;  %4049 = vmatprep.subr.mxu1 %v3103_v44  ;;  %v2991_v38 = vld [vmem:[#allocation9 + $0x7e8] sm:$0xff]  ;;  %v2998_v44 = vld [vmem:[#allocation9 + $0x820] sm:$0xff] }
 0x7ef   :  { %3980 = vmatprep.subr.mxu0 %v2839_v7  ;;  %4050 = vmatpush1.msra.mxu1 %v3102_v40  ;;  %v2990_v7 = vld [vmem:[#allocation9 + $0x7e0] sm:$0xff]  ;;  %v3247_v40 = vld [vmem:[#allocation9 + $0xfe8] sm:$0xff] }
 0x7f0   :  { %3981 = vmatpush1.msra.mxu0 %v2838_v37  ;;  %4051 = vmatprep.subr.mxu1 %v3095_v41  ;;  %v2983_v37 = vld [vmem:[#allocation9 + $0x7a8] sm:$0xff]  ;;  %v3246_v41 = vld [vmem:[#allocation9 + $0xfe0] sm:$0xff] }
 0x7f1   :  { %3982 = vmatprep.subr.mxu0 %v2831_v42  ;;  %4052 = vmatpush1.msra.mxu1 %v3094_v43  ;;  %v2982_v42 = vld [vmem:[#allocation9 + $0x7a0] sm:$0xff]  ;;  %v3239_v43 = vld [vmem:[#allocation9 + $0xfa8] sm:$0xff] }
 0x7f2   :  { %3983 = vmatpush1.msra.mxu0 %v2830_v51  ;;  %4053 = vmatprep.subr.mxu1 %v3087_v26  ;;  %v2975_v51 = vld [vmem:[#allocation9 + $0x768] sm:$0xff]  ;;  %v3238_v26 = vld [vmem:[#allocation9 + $0xfa0] sm:$0xff] }
 0x7f3   :  { %3984 = vmatprep.subr.mxu0 %v2823_v15  ;;  %4054 = vmatpush1.msra.mxu1 %v3086_v14  ;;  %v2974_v15 = vld [vmem:[#allocation9 + $0x760] sm:$0xff]  ;;  %v3231_v14 = vld [vmem:[#allocation9 + $0xf68] sm:$0xff] }
 0x7f4   :  { %3985 = vmatpush1.msra.mxu0 %v2822_v54  ;;  %4055 = vmatprep.subr.mxu1 %v3079_v24  ;;  %v2967_v54 = vld [vmem:[#allocation9 + $0x728] sm:$0xff]  ;;  %v3230_v24 = vld [vmem:[#allocation9 + $0xf60] sm:$0xff] }
 0x7f5   :  { %3986 = vmatprep.subr.mxu0 %v2815_v55  ;;  %4056 = vmatpush1.msra.mxu1 %v3078_v19  ;;  %v2966_v55 = vld [vmem:[#allocation9 + $0x720] sm:$0xff]  ;;  %v3223_v19 = vld [vmem:[#allocation9 + $0xf28] sm:$0xff] }
 0x7f6   :  { %3987 = vmatpush1.msra.mxu0 %v2814_v56  ;;  %4057 = vmatprep.subr.mxu1 %v3071_v57  ;;  %v2959_v56 = vld [vmem:[#allocation9 + $0x6e8] sm:$0xff]  ;;  %v3222_v57 = vld [vmem:[#allocation9 + $0xf20] sm:$0xff] }
 0x7f7   :  { %3988 = vmatprep.subr.mxu0 %v2807_v60  ;;  %4058 = vmatpush1.msra.mxu1 %v3070_v2  ;;  %v2958_v60 = vld [vmem:[#allocation9 + $0x6e0] sm:$0xff]  ;;  %v3215_v2 = vld [vmem:[#allocation9 + $0xee8] sm:$0xff] }
 0x7f8   :  { %3989 = vmatpush1.msra.mxu0 %v2806_v58  ;;  %4059 = vmatprep.subr.mxu1 %v3063_v59  ;;  %v2951_v58 = vld [vmem:[#allocation9 + $0x6a8] sm:$0xff]  ;;  %v3214_v59 = vld [vmem:[#allocation9 + $0xee0] sm:$0xff] }
 0x7f9   :  { %3990 = vmatprep.subr.mxu0 %v2799_v30  ;;  %4060 = vmatpush1.msra.mxu1 %v3062_v61  ;;  %v2950_v30 = vld [vmem:[#allocation9 + $0x6a0] sm:$0xff]  ;;  %v3207_v61 = vld [vmem:[#allocation9 + $0xea8] sm:$0xff] }
 0x7fa   :  { %3991 = vmatpush1.msra.mxu0 %v2798_v9  ;;  %4061 = vmatprep.subr.mxu1 %v3055_v5  ;;  %v2943_v9 = vld [vmem:[#allocation9 + $0x668] sm:$0xff]  ;;  %v3206_v5 = vld [vmem:[#allocation9 + $0xea0] sm:$0xff] }
 0x7fb   :  { %3992 = vmatprep.subr.mxu0 %v2791_v12  ;;  %4062 = vmatpush1.msra.mxu1 %v3054_v16  ;;  %v2942_v12 = vld [vmem:[#allocation9 + $0x660] sm:$0xff]  ;;  %v3199_v16 = vld [vmem:[#allocation9 + $0xe68] sm:$0xff] }
 0x7fc   :  { %3993 = vmatpush1.msra.mxu0 %v2790_v3  ;;  %4063 = vmatprep.subr.mxu1 %v3047_v31  ;;  %v2935_v3 = vld [vmem:[#allocation9 + $0x628] sm:$0xff]  ;;  %v3198_v31 = vld [vmem:[#allocation9 + $0xe60] sm:$0xff] }
 0x7fd   :  { %3994 = vmatprep.subr.mxu0 %v2783_v20  ;;  %4064 = vmatpush1.msra.mxu1 %v3046_v6  ;;  %v2934_v20 = vld [vmem:[#allocation9 + $0x620] sm:$0xff]  ;;  %v3191_v6 = vld [vmem:[#allocation9 + $0xe28] sm:$0xff] }
 0x7fe   :  { %3995 = vmatpush1.msra.mxu0 %v2782_v21  ;;  %4065 = vmatprep.subr.mxu1 %v3039_v29  ;;  %v2927_v21 = vld [vmem:[#allocation9 + $0x5e8] sm:$0xff]  ;;  %v3190_v29 = vld [vmem:[#allocation9 + $0xe20] sm:$0xff] }
 0x7ff   :  { %3996 = vmatprep.subr.mxu0 %v2775_v62  ;;  %4066 = vmatpush1.msra.mxu1 %v3038_v23  ;;  %v2926_v62 = vld [vmem:[#allocation9 + $0x5e0] sm:$0xff]  ;;  %v3183_v23 = vld [vmem:[#allocation9 + $0xde8] sm:$0xff] }
 0x800   :  { %3997 = vmatpush1.msra.mxu0 %v2774_v18  ;;  %4067 = vmatprep.subr.mxu1 %v3031_v22  ;;  %v2919_v18 = vld [vmem:[#allocation9 + $0x5a8] sm:$0xff]  ;;  %v3182_v22 = vld [vmem:[#allocation9 + $0xde0] sm:$0xff] }
 0x801   :  { %3998 = vmatprep.subr.mxu0 %v2767_v63  ;;  %4068 = vmatpush1.msra.mxu1 %v3030_v1  ;;  %v2918_v63 = vld [vmem:[#allocation9 + $0x5a0] sm:$0xff]  ;;  %v3175_v1 = vld [vmem:[#allocation9 + $0xda8] sm:$0xff] }
 0x802   :  { %3999 = vmatpush1.msra.mxu0 %v2766_v25  ;;  %4069 = vmatprep.subr.mxu1 %v3023_v10  ;;  %v2911_v25 = vld [vmem:[#allocation9 + $0x568] sm:$0xff]  ;;  %v3174_v10 = vld [vmem:[#allocation9 + $0xda0] sm:$0xff] }
 0x803   :  { %4000 = vmatprep.subr.mxu0 %v2759_v13  ;;  %4070 = vmatpush1.msra.mxu1 %v3022_v4  ;;  %v2910_v13 = vld [vmem:[#allocation9 + $0x560] sm:$0xff]  ;;  %v3167_v4 = vld [vmem:[#allocation9 + $0xd68] sm:$0xff] }
 0x804   :  { %4001 = vmatpush1.msra.mxu0 %v2758_v17  ;;  %4071 = vmatprep.subr.mxu1 %v3015_v46  ;;  %v2903_v17 = vld [vmem:[#allocation9 + $0x528] sm:$0xff]  ;;  %v3166_v46 = vld [vmem:[#allocation9 + $0xd60] sm:$0xff] }
 0x805   :  { %4002 = vmatprep.subr.mxu0 %v2751_v27  ;;  %4072 = vmatpush1.msra.mxu1 %v3014_v8  ;;  %v2902_v27 = vld [vmem:[#allocation9 + $0x520] sm:$0xff]  ;;  %v3159_v8 = vld [vmem:[#allocation9 + $0xd28] sm:$0xff] }
 0x806   :  { %4003 = vmatpush1.msra.mxu0 %v2750_v45  ;;  %4073 = vmatprep.subr.mxu1 %v3007_v34  ;;  %v2895_v45 = vld [vmem:[#allocation9 + $0x4e8] sm:$0xff]  ;;  %v3158_v34 = vld [vmem:[#allocation9 + $0xd20] sm:$0xff] }
 0x807   :  { %4004 = vmatprep.subr.mxu0 %v2743_v35  ;;  %4074 = vmatpush1.msra.mxu1 %v3006_v39  ;;  %v3506_v35 = vld [vmem:[#allocation10] sm:$0xff] }
 0x808   :  { %4005 = vmatpush1.msra.mxu0 %v2742_v11  ;;  %4075 = vmatprep.subr.mxu1 %v2999_v50  ;;  %v2894_v39 = vld [vmem:[#allocation9 + $0x4e0] sm:$0xff]  ;;  %v3151_v11 = vld [vmem:[#allocation9 + $0xce8] sm:$0xff] }
 0x809   :  { %4006 = vmatprep.subr.mxu0 %v2991_v38  ;;  %4076 = vmatpush1.msra.mxu1 %v2998_v44  ;;  %v2887_v50 = vld [vmem:[#allocation9 + $0x4a8] sm:$0xff]  ;;  %v3150_v38 = vld [vmem:[#allocation9 + $0xce0] sm:$0xff] }
 0x80a   :  { %4007 = vmatpush2.msra.mxu0 %v2990_v7  ;;  %4077 = vmatprep.subr.mxu1 %v3247_v40  ;;  %v2886_v44 = vld [vmem:[#allocation9 + $0x4a0] sm:$0xff]  ;;  %v3143_v7 = vld [vmem:[#allocation9 + $0xca8] sm:$0xff]  ;;  %v3511_v40 = vrot.slane %v3506_v35, %v6082_v32  ;;  %v2801_v35 = vld [vmem:[#allocation9 + $0x1f8] sm:$0xff] }
 0x80b   :  { %4008 = vmatprep.subr.mxu0 %v2983_v37  ;;  %4078 = vmatpush2.msra.mxu1 %v3246_v41  ;;  %v2879_v37 = vld [vmem:[#allocation9 + $0x468] sm:$0xff]  ;;  %v3142_v41 = vld [vmem:[#allocation9 + $0xca0] sm:$0xff] }
 0x80c   :  { %4009 = vmatpush2.msra.mxu0 %v2982_v42  ;;  %4079 = vmatprep.subr.mxu1 %v3239_v43  ;;  %v2878_v42 = vld [vmem:[#allocation9 + $0x460] sm:$0xff]  ;;  %v3135_v43 = vld [vmem:[#allocation9 + $0xc68] sm:$0xff] }
 0x80d   :  { %4010 = vmatprep.subr.mxu0 %v2975_v51  ;;  %4080 = vmatpush2.msra.mxu1 %v3238_v26  ;;  %v2871_v51 = vld [vmem:[#allocation9 + $0x428] sm:$0xff]  ;;  %v3134_v26 = vld [vmem:[#allocation9 + $0xc60] sm:$0xff] }
 0x80e   :  { %4011 = vmatpush2.msra.mxu0 %v2974_v15  ;;  %4081 = vmatprep.subr.mxu1 %v3231_v14  ;;  %v2870_v14 = vld [vmem:[#allocation9 + $0x420] sm:$0xff] }
 0x80f   :  { %4012 = vmatprep.subr.mxu0 %v2967_v54  ;;  %4082 = vmatpush2.msra.mxu1 %v3230_v24  ;;  %v3127_v54 = vld [vmem:[#allocation9 + $0xc28] sm:$0xff] }
 0x810   :  { %4013 = vmatpush2.msra.mxu0 %v2966_v55  ;;  %4083 = vmatprep.subr.mxu1 %v3223_v19  ;;  %v3126_v19 = vld [vmem:[#allocation9 + $0xc20] sm:$0xff] }
 0x811   :  { %4014 = vmatprep.subr.mxu0 %v2959_v56  ;;  %4084 = vmatpush2.msra.mxu1 %v3222_v57  ;;  %v3375_v56 = vld [vmem:[#allocation9 + $0x13e8] sm:$0xff] }
 0x812   :  { %4015 = vmatpush2.msra.mxu0 %v2958_v60  ;;  %4085 = vmatprep.subr.mxu1 %v3215_v2  ;;  %v3374_v60 = vld [vmem:[#allocation9 + $0x13e0] sm:$0xff]  ;;  %v2865_v2 = vld [vmem:[#allocation9 + $0x3f8] sm:$0xff] }
 0x813   :  { %4016 = vmatprep.subr.mxu0 %v2951_v58  ;;  %4086 = vmatpush2.msra.mxu1 %v3214_v59  ;;  %v3367_v58 = vld [vmem:[#allocation9 + $0x13a8] sm:$0xff]  ;;  %v2864_v59 = vld [vmem:[#allocation9 + $0x3f0] sm:$0xff] }
 0x814   :  { %4017 = vmatpush2.msra.mxu0 %v2950_v30  ;;  %4087 = vmatprep.subr.mxu1 %v3207_v61  ;;  %v3366_v30 = vld [vmem:[#allocation9 + $0x13a0] sm:$0xff]  ;;  %v2857_v61 = vld [vmem:[#allocation9 + $0x3b8] sm:$0xff] }
 0x815   :  { %4018 = vmatprep.subr.mxu0 %v2943_v9  ;;  %4088 = vmatpush2.msra.mxu1 %v3206_v5  ;;  %v3359_v9 = vld [vmem:[#allocation9 + $0x1368] sm:$0xff]  ;;  %v2856_v5 = vld [vmem:[#allocation9 + $0x3b0] sm:$0xff] }
 0x816   :  { %4019 = vmatpush2.msra.mxu0 %v2942_v12  ;;  %4089 = vmatprep.subr.mxu1 %v3199_v16  ;;  %v3358_v12 = vld [vmem:[#allocation9 + $0x1360] sm:$0xff]  ;;  %v2849_v16 = vld [vmem:[#allocation9 + $0x378] sm:$0xff] }
 0x817   :  { %4020 = vmatprep.subr.mxu0 %v2935_v3  ;;  %4090 = vmatpush2.msra.mxu1 %v3198_v31  ;;  %v3351_v3 = vld [vmem:[#allocation9 + $0x1328] sm:$0xff]  ;;  %v2848_v31 = vld [vmem:[#allocation9 + $0x370] sm:$0xff] }
 0x818   :  { %4021 = vmatpush2.msra.mxu0 %v2934_v20  ;;  %4091 = vmatprep.subr.mxu1 %v3191_v6  ;;  %v3350_v20 = vld [vmem:[#allocation9 + $0x1320] sm:$0xff]  ;;  %v2841_v6 = vld [vmem:[#allocation9 + $0x338] sm:$0xff] }
 0x819   :  { %4022 = vmatprep.subr.mxu0 %v2927_v21  ;;  %4092 = vmatpush2.msra.mxu1 %v3190_v29  ;;  %v3343_v21 = vld [vmem:[#allocation9 + $0x12e8] sm:$0xff]  ;;  %v2840_v29 = vld [vmem:[#allocation9 + $0x330] sm:$0xff] }
 0x81a   :  { %4023 = vmatpush2.msra.mxu0 %v2926_v62  ;;  %4093 = vmatprep.subr.mxu1 %v3183_v23  ;;  %v3342_v62 = vld [vmem:[#allocation9 + $0x12e0] sm:$0xff]  ;;  %v2833_v23 = vld [vmem:[#allocation9 + $0x2f8] sm:$0xff] }
 0x81b   :  { %4024 = vmatprep.subr.mxu0 %v2919_v18  ;;  %4094 = vmatpush2.msra.mxu1 %v3182_v22  ;;  %v2832_v18 = vld [vmem:[#allocation9 + $0x2f0] sm:$0xff]  ;;  %v3334_v22 = vld [vmem:[#allocation9 + $0x12a0] sm:$0xff] }
 0x81c   :  { %4025 = vmatpush2.msra.mxu0 %v2918_v63  ;;  %4095 = vmatprep.subr.mxu1 %v3175_v1  ;;  %v2825_v63 = vld [vmem:[#allocation9 + $0x2b8] sm:$0xff]  ;;  %v3327_v1 = vld [vmem:[#allocation9 + $0x1268] sm:$0xff] }
 0x81d   :  { %4026 = vmatprep.subr.mxu0 %v2911_v25  ;;  %4096 = vmatpush2.msra.mxu1 %v3174_v10  ;;  %v2824_v25 = vld [vmem:[#allocation9 + $0x2b0] sm:$0xff]  ;;  %v3326_v10 = vld [vmem:[#allocation9 + $0x1260] sm:$0xff] }
 0x81e   :  { %4027 = vmatpush2.msra.mxu0 %v2910_v13  ;;  %4097 = vmatprep.subr.mxu1 %v3167_v4  ;;  %v2817_v13 = vld [vmem:[#allocation9 + $0x278] sm:$0xff]  ;;  %v3319_v4 = vld [vmem:[#allocation9 + $0x1228] sm:$0xff] }
 0x81f   :  { %4028 = vmatprep.subr.mxu0 %v2903_v17  ;;  %4098 = vmatpush2.msra.mxu1 %v3166_v46  ;;  %v2816_v17 = vld [vmem:[#allocation9 + $0x270] sm:$0xff]  ;;  %v3318_v46 = vld [vmem:[#allocation9 + $0x1220] sm:$0xff] }
 0x820   :  { %4029 = vmatpush2.msra.mxu0 %v2902_v27  ;;  %4099 = vmatprep.subr.mxu1 %v3159_v8  ;;  %v2809_v27 = vld [vmem:[#allocation9 + $0x238] sm:$0xff]  ;;  %v3311_v8 = vld [vmem:[#allocation9 + $0x11e8] sm:$0xff] }
 0x821   :  { %4030 = vmatprep.subr.mxu0 %v2895_v45  ;;  %4100 = vmatpush2.msra.mxu1 %v3158_v34  ;;  %v2808_v45 = vld [vmem:[#allocation9 + $0x230] sm:$0xff]  ;;  %v3310_v34 = vld [vmem:[#allocation9 + $0x11e0] sm:$0xff] }
 0x822   :  { %4031 = vmatpush2.msra.mxu0 %v2894_v39  ;;  %4101 = vmatprep.subr.mxu1 %v3151_v11  ;;  %v3303_v39 = vld [vmem:[#allocation9 + $0x11a8] sm:$0xff]  ;;  %v2800_v11 = vld [vmem:[#allocation9 + $0x1f0] sm:$0xff] }
 0x823   :  { %4032 = vmatprep.subr.mxu0 %v2887_v50  ;;  %4102 = vmatpush2.msra.mxu1 %v3150_v38  ;;  %v3302_v50 = vld [vmem:[#allocation9 + $0x11a0] sm:$0xff]  ;;  %v2793_v38 = vld [vmem:[#allocation9 + $0x1b8] sm:$0xff] }
 0x824   :  { %4033 = vmatpush2.msra.mxu0 %v2886_v44  ;;  %4103 = vmatprep.subr.mxu1 %v3143_v7  ;;  %v3614_v15 = vpop.f32.mrf.mxu0  ;;  %v3295_v44 = vld [vmem:[#allocation9 + $0x1168] sm:$0xff]  ;;  %v2792_v7 = vld [vmem:[#allocation9 + $0x1b0] sm:$0xff] }
 0x825   :  { %4034 = vmatprep.subr.mxu0 %v2879_v37  ;;  %4104 = vmatpush2.msra.mxu1 %v3142_v41  ;;  %v3615_v24 = vadd.f32 %v3614_v15, %v3511_v40  ;;  %v3685_v55 = vpop.f32.mrf.mxu1  ;;  %v3294_v40 = vld [vmem:[#allocation9 + $0x1160] sm:$0xff]  ;;  %v2785_v37 = vld [vmem:[#allocation9 + $0x178] sm:$0xff]  ;;  %v3287_v41 = vld [vmem:[#allocation9 + $0x1128] sm:$0xff] }
 0x826   :  { %4035 = vmatpush2.msra.mxu0 %v2878_v42  ;;  %4105 = vmatprep.subr.mxu1 %v3135_v43  ;;  %v2784_v42 = vld [vmem:[#allocation9 + $0x170] sm:$0xff]  ;;  %v3286_v43 = vld [vmem:[#allocation9 + $0x1120] sm:$0xff] }
 0x827   :  { %4036 = vmatprep.subr.mxu0 %v2871_v51  ;;  %4106 = vmatpush2.msra.mxu1 %v3134_v26  ;;  %v6493_v57 = vadd.f32 %v3685_v55, %v3615_v24  ;;  %v2777_v51 = vld [vmem:[#allocation9 + $0x138] sm:$0xff]  ;;  %v3279_v26 = vld [vmem:[#allocation9 + $0x10e8] sm:$0xff]  ;;  %v2776_v15 = vld [vmem:[#allocation9 + $0x130] sm:$0xff] }
 0x828   :  { %4037 = vmatpush2.msra.mxu0 %v2870_v14  ;;  %4107 = vmatprep.subr.mxu1 %v3127_v54  ;;  %v3278_v14 = vld [vmem:[#allocation9 + $0x10e0] sm:$0xff]  ;;  %v2769_v54 = vld [vmem:[#allocation9 + $0xf8] sm:$0xff]  ;;  %v3271_v24 = vld [vmem:[#allocation9 + $0x10a8] sm:$0xff] }
 0x829   :  { %4039 = vmatmul.mubr.f32.vlgmr.msra.gmra.mxu0 %v6465_v47  ;;  %4108 = vmatpush2.msra.mxu1 %v3126_v19  ;;  %v2768_v55 = vld [vmem:[#allocation9 + $0xf0] sm:$0xff]  ;;  %v3270_v19 = vld [vmem:[#allocation9 + $0x10a0] sm:$0xff] }
 0x82a   :  { %4116 = vmatprep.subr.mxu0 %v3375_v56  ;;  %4110 = vmatmul.mubr.f32.vlgmr.msra.gmra.mxu1 %v6471_v49  ;;  %v2761_v56 = vld [vmem:[#allocation9 + $0xb8] sm:$0xff] }
 0x82b   :  { %4117 = vmatpush1.msra.mxu0 %v3374_v60  ;;  %4180 = vmatprep.mubr.f32.mxu0 %v6476_v52  ;;  %v3263_v60 = vld [vmem:[#allocation9 + $0x1068] sm:$0xff] }
 0x82c   :  { %4187 = vmatprep.subr.mxu1 %v2865_v2  ;;  %4118 = vmatprep.subr.mxu0 %v3367_v58  ;;  %v2760_v2 = vld [vmem:[#allocation9 + $0xb0] sm:$0xff]  ;;  %v3262_v58 = vld [vmem:[#allocation9 + $0x1060] sm:$0xff] }
 0x82d   :  { %4188 = vmatpush1.msra.mxu1 %v2864_v59  ;;  %4251 = vmatprep.mubr.f32.mxu1 %v6458_v36  ;;  %v3335_v36 = vld [vmem:[#allocation9 + $0x12a8] sm:$0xff]  ;;  %v2753_v59 = vld [vmem:[#allocation9 + $0x78] sm:$0xff] }
 0x82e   :  { %4119 = vmatpush1.msra.mxu0 %v3366_v30  ;;  %4189 = vmatprep.subr.mxu1 %v2857_v61  ;;  %v3255_v30 = vld [vmem:[#allocation9 + $0x1028] sm:$0xff]  ;;  %v2752_v61 = vld [vmem:[#allocation9 + $0x70] sm:$0xff] }
 0x82f   :  { %4120 = vmatprep.subr.mxu0 %v3359_v9  ;;  %4190 = vmatpush1.msra.mxu1 %v2856_v5  ;;  %v3254_v9 = vld [vmem:[#allocation9 + $0x1020] sm:$0xff]  ;;  %v2745_v5 = vld [vmem:[#allocation9 + $0x38] sm:$0xff] }
 0x830   :  { %4121 = vmatpush1.msra.mxu0 %v3358_v12  ;;  %4191 = vmatprep.subr.mxu1 %v2849_v16  ;;  %v3503_v12 = vld [vmem:[#allocation9 + $0x17e8] sm:$0xff]  ;;  %v2744_v16 = vld [vmem:[#allocation9 + $0x30] sm:$0xff] }
 0x831   :  { %4122 = vmatprep.subr.mxu0 %v3351_v3  ;;  %4192 = vmatpush1.msra.mxu1 %v2848_v31  ;;  %v3502_v3 = vld [vmem:[#allocation9 + $0x17e0] sm:$0xff]  ;;  %v2993_v31 = vld [vmem:[#allocation9 + $0x7f8] sm:$0xff] }
 0x832   :  { %4123 = vmatpush1.msra.mxu0 %v3350_v20  ;;  %4193 = vmatprep.subr.mxu1 %v2841_v6  ;;  %v3495_v20 = vld [vmem:[#allocation9 + $0x17a8] sm:$0xff]  ;;  %v2992_v6 = vld [vmem:[#allocation9 + $0x7f0] sm:$0xff] }
 0x833   :  { %4124 = vmatprep.subr.mxu0 %v3343_v21  ;;  %4194 = vmatpush1.msra.mxu1 %v2840_v29  ;;  %v3494_v21 = vld [vmem:[#allocation9 + $0x17a0] sm:$0xff]  ;;  %v2985_v29 = vld [vmem:[#allocation9 + $0x7b8] sm:$0xff] }
 0x834   :  { %4125 = vmatpush1.msra.mxu0 %v3342_v62  ;;  %4195 = vmatprep.subr.mxu1 %v2833_v23  ;;  %v3487_v62 = vld [vmem:[#allocation9 + $0x1768] sm:$0xff]  ;;  %v2984_v23 = vld [vmem:[#allocation9 + $0x7b0] sm:$0xff] }
 0x835   :  { %4126 = vmatprep.subr.mxu0 %v3335_v36  ;;  %4196 = vmatpush1.msra.mxu1 %v2832_v18  ;;  %v3486_v36 = vld [vmem:[#allocation9 + $0x1760] sm:$0xff]  ;;  %v2977_v18 = vld [vmem:[#allocation9 + $0x778] sm:$0xff] }
 0x836   :  { %4127 = vmatpush1.msra.mxu0 %v3334_v22  ;;  %4197 = vmatprep.subr.mxu1 %v2825_v63  ;;  %v3479_v22 = vld [vmem:[#allocation9 + $0x1728] sm:$0xff]  ;;  %v2976_v63 = vld [vmem:[#allocation9 + $0x770] sm:$0xff] }
 0x837   :  { %4128 = vmatprep.subr.mxu0 %v3327_v1  ;;  %4198 = vmatpush1.msra.mxu1 %v2824_v25  ;;  %v3478_v1 = vld [vmem:[#allocation9 + $0x1720] sm:$0xff]  ;;  %v2969_v25 = vld [vmem:[#allocation9 + $0x738] sm:$0xff] }
 0x838   :  { %4129 = vmatpush1.msra.mxu0 %v3326_v10  ;;  %4199 = vmatprep.subr.mxu1 %v2817_v13  ;;  %v3471_v10 = vld [vmem:[#allocation9 + $0x16e8] sm:$0xff]  ;;  %v2968_v13 = vld [vmem:[#allocation9 + $0x730] sm:$0xff] }
 0x839   :  { %4130 = vmatprep.subr.mxu0 %v3319_v4  ;;  %4200 = vmatpush1.msra.mxu1 %v2816_v17  ;;  %v3470_v4 = vld [vmem:[#allocation9 + $0x16e0] sm:$0xff]  ;;  %v2961_v17 = vld [vmem:[#allocation9 + $0x6f8] sm:$0xff] }
 0x83a   :  { %4131 = vmatpush1.msra.mxu0 %v3318_v46  ;;  %4201 = vmatprep.subr.mxu1 %v2809_v27  ;;  %v3463_v46 = vld [vmem:[#allocation9 + $0x16a8] sm:$0xff]  ;;  %v2960_v27 = vld [vmem:[#allocation9 + $0x6f0] sm:$0xff] }
 0x83b   :  { %4132 = vmatprep.subr.mxu0 %v3311_v8  ;;  %4202 = vmatpush1.msra.mxu1 %v2808_v45  ;;  %v3462_v8 = vld [vmem:[#allocation9 + $0x16a0] sm:$0xff]  ;;  %v2953_v45 = vld [vmem:[#allocation9 + $0x6b8] sm:$0xff] }
 0x83c   :  { %4133 = vmatpush1.msra.mxu0 %v3310_v34  ;;  %4203 = vmatprep.subr.mxu1 %v2801_v35  ;;  %v3455_v34 = vld [vmem:[#allocation9 + $0x1668] sm:$0xff]  ;;  %v2952_v35 = vld [vmem:[#allocation9 + $0x6b0] sm:$0xff] }
 0x83d   :  { %4134 = vmatprep.subr.mxu0 %v3303_v39  ;;  %4204 = vmatpush1.msra.mxu1 %v2800_v11  ;;  %v3454_v39 = vld [vmem:[#allocation9 + $0x1660] sm:$0xff]  ;;  %v2945_v11 = vld [vmem:[#allocation9 + $0x678] sm:$0xff] }
 0x83e   :  { %4135 = vmatpush1.msra.mxu0 %v3302_v50  ;;  %4205 = vmatprep.subr.mxu1 %v2793_v38  ;;  %v3447_v50 = vld [vmem:[#allocation9 + $0x1628] sm:$0xff]  ;;  %v2944_v38 = vld [vmem:[#allocation9 + $0x670] sm:$0xff] }
 0x83f   :  { %4136 = vmatprep.subr.mxu0 %v3295_v44  ;;  %4206 = vmatpush1.msra.mxu1 %v2792_v7  ;;  %v3446_v44 = vld [vmem:[#allocation9 + $0x1620] sm:$0xff]  ;;  %v2937_v7 = vld [vmem:[#allocation9 + $0x638] sm:$0xff] }
 0x840   :  { %4137 = vmatpush1.msra.mxu0 %v3294_v40  ;;  %4207 = vmatprep.subr.mxu1 %v2785_v37  ;;  %v3439_v40 = vld [vmem:[#allocation9 + $0x15e8] sm:$0xff]  ;;  %v2936_v37 = vld [vmem:[#allocation9 + $0x630] sm:$0xff] }
 0x841   :  { %4138 = vmatprep.subr.mxu0 %v3287_v41  ;;  %4208 = vmatpush1.msra.mxu1 %v2784_v42  ;;  %v3438_v41 = vld [vmem:[#allocation9 + $0x15e0] sm:$0xff]  ;;  %v2929_v42 = vld [vmem:[#allocation9 + $0x5f8] sm:$0xff] }
 0x842   :  { %4139 = vmatpush1.msra.mxu0 %v3286_v43  ;;  %4209 = vmatprep.subr.mxu1 %v2777_v51  ;;  %v3431_v43 = vld [vmem:[#allocation9 + $0x15a8] sm:$0xff]  ;;  %v2928_v51 = vld [vmem:[#allocation9 + $0x5f0] sm:$0xff] }
 0x843   :  { %4140 = vmatprep.subr.mxu0 %v3279_v26  ;;  %4210 = vmatpush1.msra.mxu1 %v2776_v15  ;;  %v3430_v26 = vld [vmem:[#allocation9 + $0x15a0] sm:$0xff]  ;;  %v2921_v15 = vld [vmem:[#allocation9 + $0x5b8] sm:$0xff] }
 0x844   :  { %4141 = vmatpush1.msra.mxu0 %v3278_v14  ;;  %4211 = vmatprep.subr.mxu1 %v2769_v54  ;;  %v3423_v14 = vld [vmem:[#allocation9 + $0x1568] sm:$0xff]  ;;  %v2920_v54 = vld [vmem:[#allocation9 + $0x5b0] sm:$0xff] }
 0x845   :  { %4142 = vmatprep.subr.mxu0 %v3271_v24  ;;  %4212 = vmatpush1.msra.mxu1 %v2768_v55  ;;  %v3422_v24 = vld [vmem:[#allocation9 + $0x1560] sm:$0xff]  ;;  %v2913_v55 = vld [vmem:[#allocation9 + $0x578] sm:$0xff] }
 0x846   :  { %4143 = vmatpush1.msra.mxu0 %v3270_v19  ;;  %4213 = vmatprep.subr.mxu1 %v2761_v56  ;;  %v3415_v19 = vld [vmem:[#allocation9 + $0x1528] sm:$0xff]  ;;  %v2912_v56 = vld [vmem:[#allocation9 + $0x570] sm:$0xff] }
 0x847   :  { %4144 = vmatprep.subr.mxu0 %v3263_v60  ;;  %4214 = vmatpush1.msra.mxu1 %v2760_v2  ;;  %v3414_v60 = vld [vmem:[#allocation9 + $0x1520] sm:$0xff]  ;;  %v2905_v2 = vld [vmem:[#allocation9 + $0x538] sm:$0xff] }
 0x848   :  { %4145 = vmatpush1.msra.mxu0 %v3262_v58  ;;  %4215 = vmatprep.subr.mxu1 %v2753_v59  ;;  %v3407_v58 = vld [vmem:[#allocation9 + $0x14e8] sm:$0xff]  ;;  %v2904_v59 = vld [vmem:[#allocation9 + $0x530] sm:$0xff] }
 0x849   :  { %4146 = vmatprep.subr.mxu0 %v3255_v30  ;;  %4216 = vmatpush1.msra.mxu1 %v2752_v61  ;;  %v3406_v30 = vld [vmem:[#allocation9 + $0x14e0] sm:$0xff]  ;;  %v2897_v61 = vld [vmem:[#allocation9 + $0x4f8] sm:$0xff] }
 0x84a   :  { %4147 = vmatpush1.msra.mxu0 %v3254_v9  ;;  %4217 = vmatprep.subr.mxu1 %v2745_v5  ;;  %v3399_v9 = vld [vmem:[#allocation9 + $0x14a8] sm:$0xff]  ;;  %v2896_v5 = vld [vmem:[#allocation9 + $0x4f0] sm:$0xff] }
 0x84b   :  { %4148 = vmatprep.subr.mxu0 %v3503_v12  ;;  %4218 = vmatpush1.msra.mxu1 %v2744_v16  ;;  %v6499_v12 = vpop.f32.mrf.mxu0  ;;  %v3398_v16 = vld [vmem:[#allocation9 + $0x14a0] sm:$0xff] }
 0x84c   :  { %4149 = vmatpush2.msra.mxu0 %v3502_v3  ;;  %4219 = vmatprep.subr.mxu1 %v2993_v31  ;;  %v2889_v3 = vld [vmem:[#allocation9 + $0x4b8] sm:$0xff]  ;;  %v3391_v31 = vld [vmem:[#allocation9 + $0x1468] sm:$0xff] }
 0x84d   :  { %4150 = vmatprep.subr.mxu0 %v3495_v20  ;;  %4220 = vmatpush2.msra.mxu1 %v2992_v6  ;;  %v2888_v20 = vld [vmem:[#allocation9 + $0x4b0] sm:$0xff]  ;;  %v3390_v6 = vld [vmem:[#allocation9 + $0x1460] sm:$0xff] }
 0x84e   :  { %4151 = vmatpush2.msra.mxu0 %v3494_v21  ;;  %4221 = vmatprep.subr.mxu1 %v2985_v29  ;;  %v2881_v21 = vld [vmem:[#allocation9 + $0x478] sm:$0xff] }
 0x84f   :  { %4152 = vmatprep.subr.mxu0 %v3487_v62  ;;  %4222 = vmatpush2.msra.mxu1 %v2984_v23  ;;  %v3383_v62 = vld [vmem:[#allocation9 + $0x1428] sm:$0xff]  ;;  %v2880_v23 = vld [vmem:[#allocation9 + $0x470] sm:$0xff] }
 0x850   :  { %4153 = vmatpush2.msra.mxu0 %v3486_v36  ;;  %4223 = vmatprep.subr.mxu1 %v2977_v18  ;;  %v3382_v18 = vld [vmem:[#allocation9 + $0x1420] sm:$0xff] }
 0x851   :  { %4154 = vmatprep.subr.mxu0 %v3479_v22  ;;  %4224 = vmatpush2.msra.mxu1 %v2976_v63  ;;  %v2873_v22 = vld [vmem:[#allocation9 + $0x438] sm:$0xff]  ;;  %v2872_v63 = vld [vmem:[#allocation9 + $0x430] sm:$0xff] }
 0x852   :  { %4155 = vmatpush2.msra.mxu0 %v3478_v1  ;;  %4225 = vmatprep.subr.mxu1 %v2969_v25  ;;  %v3121_v1 = vld [vmem:[#allocation9 + $0xbf8] sm:$0xff]  ;;  %v3120_v25 = vld [vmem:[#allocation9 + $0xbf0] sm:$0xff] }
 0x853   :  { %4156 = vmatprep.subr.mxu0 %v3471_v10  ;;  %4226 = vmatpush2.msra.mxu1 %v2968_v13  ;;  %v3377_v10 = vld [vmem:[#allocation9 + $0x13f8] sm:$0xff] }
 0x854   :  { %4157 = vmatpush2.msra.mxu0 %v3470_v4  ;;  %4227 = vmatprep.subr.mxu1 %v2961_v17  ;;  %v3113_v13 = vld [vmem:[#allocation9 + $0xbb8] sm:$0xff]  ;;  %v3112_v4 = vld [vmem:[#allocation9 + $0xbb0] sm:$0xff] }
 0x855   :  { %4158 = vmatprep.subr.mxu0 %v3463_v46  ;;  %4228 = vmatpush2.msra.mxu1 %v2960_v27  ;;  %v3369_v17 = vld [vmem:[#allocation9 + $0x13b8] sm:$0xff]  ;;  %v3368_v27 = vld [vmem:[#allocation9 + $0x13b0] sm:$0xff] }
 0x856   :  { %4159 = vmatpush2.msra.mxu0 %v3462_v8  ;;  %4229 = vmatprep.subr.mxu1 %v2953_v45  ;;  %v3105_v46 = vld [vmem:[#allocation9 + $0xb78] sm:$0xff]  ;;  %v3104_v8 = vld [vmem:[#allocation9 + $0xb70] sm:$0xff] }
 0x857   :  { %4160 = vmatprep.subr.mxu0 %v3455_v34  ;;  %4230 = vmatpush2.msra.mxu1 %v2952_v35  ;;  %v3361_v45 = vld [vmem:[#allocation9 + $0x1378] sm:$0xff]  ;;  %v3360_v35 = vld [vmem:[#allocation9 + $0x1370] sm:$0xff] }
 0x858   :  { %4161 = vmatpush2.msra.mxu0 %v3454_v39  ;;  %4231 = vmatprep.subr.mxu1 %v2945_v11  ;;  %v3097_v34 = vld [vmem:[#allocation9 + $0xb38] sm:$0xff]  ;;  %v3352_v11 = vld [vmem:[#allocation9 + $0x1330] sm:$0xff] }
 0x859   :  { %4162 = vmatprep.subr.mxu0 %v3447_v50  ;;  %4232 = vmatpush2.msra.mxu1 %v2944_v38  ;;  %v3353_v39 = vld [vmem:[#allocation9 + $0x1338] sm:$0xff]  ;;  %v3088_v50 = vld [vmem:[#allocation9 + $0xaf0] sm:$0xff] }
 0x85a   :  { %4163 = vmatpush2.msra.mxu0 %v3446_v44  ;;  %4233 = vmatprep.subr.mxu1 %v2937_v7  ;;  %v3345_v38 = vld [vmem:[#allocation9 + $0x12f8] sm:$0xff]  ;;  %v3344_v44 = vld [vmem:[#allocation9 + $0x12f0] sm:$0xff] }
 0x85b   :  { %4164 = vmatprep.subr.mxu0 %v3439_v40  ;;  %4234 = vmatpush2.msra.mxu1 %v2936_v37  ;;  %v3080_v7 = vld [vmem:[#allocation9 + $0xab0] sm:$0xff]  ;;  %v3337_v40 = vld [vmem:[#allocation9 + $0x12b8] sm:$0xff] }
 0x85c   :  { %4165 = vmatpush2.msra.mxu0 %v3438_v41  ;;  %4235 = vmatprep.subr.mxu1 %v2929_v42  ;;  %v3073_v37 = vld [vmem:[#allocation9 + $0xa78] sm:$0xff]  ;;  %v3336_v41 = vld [vmem:[#allocation9 + $0x12b0] sm:$0xff] }
 0x85d   :  { %4166 = vmatprep.subr.mxu0 %v3431_v43  ;;  %4236 = vmatpush2.msra.mxu1 %v2928_v51  ;;  %v3072_v42 = vld [vmem:[#allocation9 + $0xa70] sm:$0xff]  ;;  %v3329_v43 = vld [vmem:[#allocation9 + $0x1278] sm:$0xff] }
 0x85e   :  { %4167 = vmatpush2.msra.mxu0 %v3430_v26  ;;  %4237 = vmatprep.subr.mxu1 %v2921_v15  ;;  %v3065_v51 = vld [vmem:[#allocation9 + $0xa38] sm:$0xff]  ;;  %v3328_v26 = vld [vmem:[#allocation9 + $0x1270] sm:$0xff] }
 0x85f   :  { %4168 = vmatprep.subr.mxu0 %v3423_v14  ;;  %4238 = vmatpush2.msra.mxu1 %v2920_v54  ;;  %v3064_v15 = vld [vmem:[#allocation9 + $0xa30] sm:$0xff]  ;;  %v3321_v14 = vld [vmem:[#allocation9 + $0x1238] sm:$0xff] }
 0x860   :  { %4169 = vmatpush2.msra.mxu0 %v3422_v24  ;;  %4239 = vmatprep.subr.mxu1 %v2913_v55  ;;  %v3057_v54 = vld [vmem:[#allocation9 + $0x9f8] sm:$0xff]  ;;  %v3320_v24 = vld [vmem:[#allocation9 + $0x1230] sm:$0xff] }
 0x861   :  { %4170 = vmatprep.subr.mxu0 %v3415_v19  ;;  %4240 = vmatpush2.msra.mxu1 %v2912_v56  ;;  %v3056_v55 = vld [vmem:[#allocation9 + $0x9f0] sm:$0xff]  ;;  %v3313_v19 = vld [vmem:[#allocation9 + $0x11f8] sm:$0xff] }
 0x862   :  { %4171 = vmatpush2.msra.mxu0 %v3414_v60  ;;  %4241 = vmatprep.subr.mxu1 %v2905_v2  ;;  %v3049_v56 = vld [vmem:[#allocation9 + $0x9b8] sm:$0xff]  ;;  %v3312_v60 = vld [vmem:[#allocation9 + $0x11f0] sm:$0xff] }
 0x863   :  { %4172 = vmatprep.subr.mxu0 %v3407_v58  ;;  %4242 = vmatpush2.msra.mxu1 %v2904_v59  ;;  %v3048_v2 = vld [vmem:[#allocation9 + $0x9b0] sm:$0xff]  ;;  %v3305_v58 = vld [vmem:[#allocation9 + $0x11b8] sm:$0xff] }
 0x864   :  { %4173 = vmatpush2.msra.mxu0 %v3406_v30  ;;  %4243 = vmatprep.subr.mxu1 %v2897_v61  ;;  %v3041_v59 = vld [vmem:[#allocation9 + $0x978] sm:$0xff]  ;;  %v3304_v30 = vld [vmem:[#allocation9 + $0x11b0] sm:$0xff] }
 0x865   :  { %4174 = vmatprep.subr.mxu0 %v3399_v9  ;;  %4244 = vmatpush2.msra.mxu1 %v2896_v5  ;;  %v3756_v29 = vpop.f32.mrf.mxu0  ;;  %v3040_v61 = vld [vmem:[#allocation9 + $0x970] sm:$0xff]  ;;  %v3297_v9 = vld [vmem:[#allocation9 + $0x1178] sm:$0xff] }
 0x866   :  { %4175 = vmatpush2.msra.mxu0 %v3398_v16  ;;  %4245 = vmatprep.subr.mxu1 %v2889_v3  ;;  %v6502_v36 = vadd.f32 %v3756_v29, %v6493_v57  ;;  %v3376_v57 = vld [vmem:[#allocation9 + $0x13f0] sm:$0xff]  ;;  %v3033_v5 = vld [vmem:[#allocation9 + $0x938] sm:$0xff] }
 0x867   :  { %4176 = vmatprep.subr.mxu0 %v3391_v31  ;;  %4246 = vmatpush2.msra.mxu1 %v2888_v20  ;;  %v3296_v16 = vld [vmem:[#allocation9 + $0x1170] sm:$0xff]  ;;  %v3289_v31 = vld [vmem:[#allocation9 + $0x1138] sm:$0xff] }
 0x868   :  { %4177 = vmatpush2.msra.mxu0 %v3390_v6  ;;  %4247 = vmatprep.subr.mxu1 %v2881_v21  ;;  %v3032_v3 = vld [vmem:[#allocation9 + $0x930] sm:$0xff]  ;;  %v3025_v20 = vld [vmem:[#allocation9 + $0x8f8] sm:$0xff] }
 0x869   :  { %4178 = vmatprep.subr.mxu0 %v3383_v62  ;;  %4248 = vmatpush2.msra.mxu1 %v2880_v23  ;;  %v3288_v6 = vld [vmem:[#allocation9 + $0x1130] sm:$0xff]  ;;  %v3281_v29 = vld [vmem:[#allocation9 + $0x10f8] sm:$0xff] }
 0x86a   :  { %4179 = vmatpush2.msra.mxu0 %v3382_v18  ;;  %4249 = vmatprep.subr.mxu1 %v2873_v22  ;;  %v3024_v21 = vld [vmem:[#allocation9 + $0x8f0] sm:$0xff]  ;;  %v3017_v62 = vld [vmem:[#allocation9 + $0x8b8] sm:$0xff] }
 0x86b   :  { %4181 = vmatmul.mubr.f32.vlgmr.msra.gmra.mxu0 %v6479_v53  ;;  %4250 = vmatpush2.msra.mxu1 %v2872_v63  ;;  %v3280_v23 = vld [vmem:[#allocation9 + $0x10f0] sm:$0xff]  ;;  %v3273_v22 = vld [vmem:[#allocation9 + $0x10b8] sm:$0xff] }
 0x86c   :  { %4258 = vmatprep.subr.mxu0 %v3121_v1  ;;  %4252 = vmatmul.mubr.f32.vlgmr.msra.gmra.mxu1 %v6465_v47  ;;  %v3096_v47 = vld [vmem:[#allocation9 + $0xb30] sm:$0xff]  ;;  %v3009_v63 = vld [vmem:[#allocation9 + $0x878] sm:$0xff] }
 0x86d   :  { %4259 = vmatpush1.msra.mxu0 %v3120_v25  ;;  %4322 = vmatprep.mubr.f32.mxu0 %v6468_v48  ;;  %v3089_v48 = vld [vmem:[#allocation9 + $0xaf8] sm:$0xff]  ;;  %v3016_v18 = vld [vmem:[#allocation9 + $0x8b0] sm:$0xff] }
 0x86e   :  { %4329 = vmatprep.subr.mxu1 %v3377_v10  ;;  %4260 = vmatprep.subr.mxu0 %v3113_v13  ;;  %v3272_v1 = vld [vmem:[#allocation9 + $0x10b0] sm:$0xff]  ;;  %v3265_v10 = vld [vmem:[#allocation9 + $0x1078] sm:$0xff] }
 0x86f   :  { %4330 = vmatpush1.msra.mxu1 %v3376_v57  ;;  %4393 = vmatprep.mubr.f32.mxu1 %v6476_v52  ;;  %v3081_v52 = vld [vmem:[#allocation9 + $0xab8] sm:$0xff]  ;;  %v3008_v25 = vld [vmem:[#allocation9 + $0x870] sm:$0xff] }
 0x870   :  { %4261 = vmatpush1.msra.mxu0 %v3112_v4  ;;  %4331 = vmatprep.subr.mxu1 %v3369_v17  ;;  %v3001_v13 = vld [vmem:[#allocation9 + $0x838] sm:$0xff]  ;;  %v3264_v57 = vld [vmem:[#allocation9 + $0x1070] sm:$0xff] }
 0x871   :  { %4262 = vmatprep.subr.mxu0 %v3105_v46  ;;  %4332 = vmatpush1.msra.mxu1 %v3368_v27  ;;  %v3000_v4 = vld [vmem:[#allocation9 + $0x830] sm:$0xff]  ;;  %v3257_v17 = vld [vmem:[#allocation9 + $0x1038] sm:$0xff] }
 0x872   :  { %4263 = vmatpush1.msra.mxu0 %v3104_v8  ;;  %4333 = vmatprep.subr.mxu1 %v3361_v45  ;;  %v3249_v46 = vld [vmem:[#allocation9 + $0xff8] sm:$0xff]  ;;  %v3256_v27 = vld [vmem:[#allocation9 + $0x1030] sm:$0xff] }
 0x873   :  { %4264 = vmatprep.subr.mxu0 %v3097_v34  ;;  %4334 = vmatpush1.msra.mxu1 %v3360_v35  ;;  %v3248_v8 = vld [vmem:[#allocation9 + $0xff0] sm:$0xff]  ;;  %v3505_v45 = vld [vmem:[#allocation9 + $0x17f8] sm:$0xff] }
 0x874   :  { %4265 = vmatpush1.msra.mxu0 %v3096_v47  ;;  %4335 = vmatprep.subr.mxu1 %v3353_v39  ;;  %v3241_v34 = vld [vmem:[#allocation9 + $0xfb8] sm:$0xff]  ;;  %v3504_v35 = vld [vmem:[#allocation9 + $0x17f0] sm:$0xff] }
 0x875   :  { %4266 = vmatprep.subr.mxu0 %v3089_v48  ;;  %4336 = vmatpush1.msra.mxu1 %v3352_v11  ;;  %v3240_v47 = vld [vmem:[#allocation9 + $0xfb0] sm:$0xff]  ;;  %v3497_v39 = vld [vmem:[#allocation9 + $0x17b8] sm:$0xff] }
 0x876   :  { %4267 = vmatpush1.msra.mxu0 %v3088_v50  ;;  %4337 = vmatprep.subr.mxu1 %v3345_v38  ;;  %v3233_v48 = vld [vmem:[#allocation9 + $0xf78] sm:$0xff]  ;;  %v3496_v11 = vld [vmem:[#allocation9 + $0x17b0] sm:$0xff] }
 0x877   :  { %4268 = vmatprep.subr.mxu0 %v3081_v52  ;;  %4338 = vmatpush1.msra.mxu1 %v3344_v44  ;;  %v3232_v50 = vld [vmem:[#allocation9 + $0xf70] sm:$0xff]  ;;  %v3489_v38 = vld [vmem:[#allocation9 + $0x1778] sm:$0xff] }
 0x878   :  { %4269 = vmatpush1.msra.mxu0 %v3080_v7  ;;  %4339 = vmatprep.subr.mxu1 %v3337_v40  ;;  %v3225_v52 = vld [vmem:[#allocation9 + $0xf38] sm:$0xff]  ;;  %v3488_v44 = vld [vmem:[#allocation9 + $0x1770] sm:$0xff] }
 0x879   :  { %4270 = vmatprep.subr.mxu0 %v3073_v37  ;;  %4340 = vmatpush1.msra.mxu1 %v3336_v41  ;;  %v3224_v7 = vld [vmem:[#allocation9 + $0xf30] sm:$0xff]  ;;  %v3481_v40 = vld [vmem:[#allocation9 + $0x1738] sm:$0xff] }
 0x87a   :  { %4271 = vmatpush1.msra.mxu0 %v3072_v42  ;;  %4341 = vmatprep.subr.mxu1 %v3329_v43  ;;  %v3217_v37 = vld [vmem:[#allocation9 + $0xef8] sm:$0xff]  ;;  %v3480_v41 = vld [vmem:[#allocation9 + $0x1730] sm:$0xff] }
 0x87b   :  { %4272 = vmatprep.subr.mxu0 %v3065_v51  ;;  %4342 = vmatpush1.msra.mxu1 %v3328_v26  ;;  %v3216_v42 = vld [vmem:[#allocation9 + $0xef0] sm:$0xff]  ;;  %v3473_v43 = vld [vmem:[#allocation9 + $0x16f8] sm:$0xff] }
 0x87c   :  { %4273 = vmatpush1.msra.mxu0 %v3064_v15  ;;  %4343 = vmatprep.subr.mxu1 %v3321_v14  ;;  %v3209_v51 = vld [vmem:[#allocation9 + $0xeb8] sm:$0xff]  ;;  %v3472_v26 = vld [vmem:[#allocation9 + $0x16f0] sm:$0xff] }
 0x87d   :  { %4274 = vmatprep.subr.mxu0 %v3057_v54  ;;  %4344 = vmatpush1.msra.mxu1 %v3320_v24  ;;  %v3208_v15 = vld [vmem:[#allocation9 + $0xeb0] sm:$0xff]  ;;  %v3465_v14 = vld [vmem:[#allocation9 + $0x16b8] sm:$0xff] }
 0x87e   :  { %4275 = vmatpush1.msra.mxu0 %v3056_v55  ;;  %4345 = vmatprep.subr.mxu1 %v3313_v19  ;;  %v3201_v54 = vld [vmem:[#allocation9 + $0xe78] sm:$0xff]  ;;  %v3464_v24 = vld [vmem:[#allocation9 + $0x16b0] sm:$0xff] }
 0x87f   :  { %4276 = vmatprep.subr.mxu0 %v3049_v56  ;;  %4346 = vmatpush1.msra.mxu1 %v3312_v60  ;;  %v3200_v55 = vld [vmem:[#allocation9 + $0xe70] sm:$0xff]  ;;  %v3457_v19 = vld [vmem:[#allocation9 + $0x1678] sm:$0xff] }
 0x880   :  { %4277 = vmatpush1.msra.mxu0 %v3048_v2  ;;  %4347 = vmatprep.subr.mxu1 %v3305_v58  ;;  %v3193_v56 = vld [vmem:[#allocation9 + $0xe38] sm:$0xff]  ;;  %v3456_v60 = vld [vmem:[#allocation9 + $0x1670] sm:$0xff] }
 0x881   :  { %4278 = vmatprep.subr.mxu0 %v3041_v59  ;;  %4348 = vmatpush1.msra.mxu1 %v3304_v30  ;;  %v3192_v2 = vld [vmem:[#allocation9 + $0xe30] sm:$0xff]  ;;  %v3449_v58 = vld [vmem:[#allocation9 + $0x1638] sm:$0xff] }
 0x882   :  { %4279 = vmatpush1.msra.mxu0 %v3040_v61  ;;  %4349 = vmatprep.subr.mxu1 %v3297_v9  ;;  %v3185_v59 = vld [vmem:[#allocation9 + $0xdf8] sm:$0xff]  ;;  %v3448_v30 = vld [vmem:[#allocation9 + $0x1630] sm:$0xff] }
 0x883   :  { %4280 = vmatprep.subr.mxu0 %v3033_v5  ;;  %4350 = vmatpush1.msra.mxu1 %v3296_v16  ;;  %v3184_v61 = vld [vmem:[#allocation9 + $0xdf0] sm:$0xff]  ;;  %v3441_v9 = vld [vmem:[#allocation9 + $0x15f8] sm:$0xff] }
 0x884   :  { %4281 = vmatpush1.msra.mxu0 %v3032_v3  ;;  %4351 = vmatprep.subr.mxu1 %v3289_v31  ;;  %v3177_v5 = vld [vmem:[#allocation9 + $0xdb8] sm:$0xff]  ;;  %v3440_v16 = vld [vmem:[#allocation9 + $0x15f0] sm:$0xff] }
 0x885   :  { %4282 = vmatprep.subr.mxu0 %v3025_v20  ;;  %4352 = vmatpush1.msra.mxu1 %v3288_v6  ;;  %v3176_v3 = vld [vmem:[#allocation9 + $0xdb0] sm:$0xff]  ;;  %v3433_v31 = vld [vmem:[#allocation9 + $0x15b8] sm:$0xff] }
 0x886   :  { %4283 = vmatpush1.msra.mxu0 %v3024_v21  ;;  %4353 = vmatprep.subr.mxu1 %v3281_v29  ;;  %v3169_v20 = vld [vmem:[#allocation9 + $0xd78] sm:$0xff]  ;;  %v3432_v6 = vld [vmem:[#allocation9 + $0x15b0] sm:$0xff]  ;;  %v6508_v21 = vld [vmem:[#allocation10] sm:$0xff] }
 0x887   :  { %4284 = vmatprep.subr.mxu0 %v3017_v62  ;;  %4354 = vmatpush1.msra.mxu1 %v3280_v23  ;;  %v3515_v29 = vrot.slane %v6508_v21, %v6085_v33  ;;  %v3168_v62 = vld [vmem:[#allocation9 + $0xd70] sm:$0xff]  ;;  %v3425_v23 = vld [vmem:[#allocation9 + $0x1578] sm:$0xff] }
 0x888   :  { %4285 = vmatpush1.msra.mxu0 %v3016_v18  ;;  %4355 = vmatprep.subr.mxu1 %v3273_v22  ;;  %v3161_v18 = vld [vmem:[#allocation9 + $0xd38] sm:$0xff]  ;;  %v3424_v22 = vld [vmem:[#allocation9 + $0x1570] sm:$0xff] }
 0x889   :  { %4286 = vmatprep.subr.mxu0 %v3009_v63  ;;  %4356 = vmatpush1.msra.mxu1 %v3272_v1  ;;  %v3687_v63 = vpop.f32.mrf.mxu1  ;;  %v3160_v1 = vld [vmem:[#allocation9 + $0xd30] sm:$0xff] }
 0x88a   :  { %4287 = vmatpush1.msra.mxu0 %v3008_v25  ;;  %4357 = vmatprep.subr.mxu1 %v3265_v10  ;;  %v3417_v25 = vld [vmem:[#allocation9 + $0x1538] sm:$0xff]  ;;  %v3522_v10 = vsub.s32 3, %v6079_v28 }
 0x88b   :  { %4288 = vmatprep.subr.mxu0 %v3001_v13  ;;  %4358 = vmatpush1.msra.mxu1 %v3264_v57  ;;  %v3153_v13 = vld [vmem:[#allocation9 + $0xcf8] sm:$0xff]  ;;  %v3416_v57 = vld [vmem:[#allocation9 + $0x1530] sm:$0xff] }
 0x88c   :  { %4289 = vmatpush1.msra.mxu0 %v3000_v4  ;;  %4359 = vmatprep.subr.mxu1 %v3257_v17  ;;  %v3617_v4 = vadd.f32 %v6499_v12, %v3515_v29  ;;  %v6514_v17 = vpop.f32.mrf.mxu1  ;;  %v3137_v12 = vld [vmem:[#allocation9 + $0xc78] sm:$0xff] }
 0x88d   :  { %4290 = vmatprep.subr.mxu0 %v3249_v46  ;;  %4360 = vmatpush1.msra.mxu1 %v3256_v27  ;;  %v3152_v46 = vld [vmem:[#allocation9 + $0xcf0] sm:$0xff]  ;;  %v3409_v27 = vld [vmem:[#allocation9 + $0x14f8] sm:$0xff] }
 0x88e   :  { %4291 = vmatpush2.msra.mxu0 %v3248_v8  ;;  %4361 = vmatprep.subr.mxu1 %v3505_v45  ;;  %v3145_v8 = vld [vmem:[#allocation9 + $0xcb8] sm:$0xff]  ;;  %v3408_v45 = vld [vmem:[#allocation9 + $0x14f0] sm:$0xff] }
 0x88f   :  { %4292 = vmatprep.subr.mxu0 %v3241_v34  ;;  %4362 = vmatpush2.msra.mxu1 %v3504_v35  ;;  %v3758_v34 = vpop.f32.mrf.mxu0  ;;  %v3144_v35 = vld [vmem:[#allocation9 + $0xcb0] sm:$0xff]  ;;  %v4496_v29 = vld [vmem:[%s7409_s9 + $0x2c0] sm:$0xff] }
 0x890   :  { %4293 = vmatpush2.msra.mxu0 %v3240_v47  ;;  %4363 = vmatprep.subr.mxu1 %v3497_v39  ;;  %v3401_v47 = vld [vmem:[#allocation9 + $0x14b8] sm:$0xff]  ;;  %v3523_v39 = vrot.slane %v6508_v21, %v3522_v10 }
 0x891   :  { %4294 = vmatprep.subr.mxu0 %v3233_v48  ;;  %4364 = vmatpush2.msra.mxu1 %v3496_v11  ;;  %v3400_v48 = vld [vmem:[#allocation9 + $0x14b0] sm:$0xff]  ;;  %v3688_v11 = vadd.f32 %v3687_v63, %v3617_v4  ;;  %v4428_v63 = vld [vmem:[%s7409_s9 + $0xa0] sm:$0xff]  ;;  %v4425_v4 = vld [vmem:[%s7409_s9 + $0x88] sm:$0xff] }
 0x892   :  { %4295 = vmatpush2.msra.mxu0 %v3232_v50  ;;  %4365 = vmatprep.subr.mxu1 %v3489_v38  ;;  %v3829_v50 = vpop.f32.mrf.mxu1  ;;  %v3136_v38 = vld [vmem:[#allocation9 + $0xc70] sm:$0xff]  ;;  %v4492_v10 = vld [vmem:[%s7409_s9 + $0x2a0] sm:$0xff] }
 0x893   :  { %4296 = vmatprep.subr.mxu0 %v3225_v52  ;;  %4366 = vmatpush2.msra.mxu1 %v3488_v44  ;;  %v3393_v52 = vld [vmem:[#allocation9 + $0x1478] sm:$0xff] }
 0x894   :  { %4297 = vmatpush2.msra.mxu0 %v3224_v7  ;;  %4367 = vmatprep.subr.mxu1 %v3481_v40  ;;  %v3129_v7 = vld [vmem:[#allocation9 + $0xc38] sm:$0xff]  ;;  %v3392_v40 = vld [vmem:[#allocation9 + $0x1470] sm:$0xff] }
 0x895   :  { %4298 = vmatprep.subr.mxu0 %v3217_v37  ;;  %4368 = vmatpush2.msra.mxu1 %v3480_v41  ;;  %v3759_v37 = vadd.f32 %v3758_v34, %v3688_v11  ;;  %v3128_v41 = vld [vmem:[#allocation9 + $0xc30] sm:$0xff]  ;;  %v4488_v34 = vld [vmem:[%s7409_s9 + $0x280] sm:$0xff]  ;;  %v4485_v11 = vld [vmem:[%s7409_s9 + $0x268] sm:$0xff] }
 0x896   :  { %4299 = vmatpush2.msra.mxu0 %v3216_v42  ;;  %4369 = vmatprep.subr.mxu1 %v3473_v43  ;;  %v3385_v42 = vld [vmem:[#allocation9 + $0x1438] sm:$0xff] }
 0x897   :  { %4300 = vmatprep.subr.mxu0 %v3209_v51  ;;  %4370 = vmatpush2.msra.mxu1 %v3472_v26  ;;  %v3830_v26 = vadd.f32 %v3829_v50, %v3523_v39  ;;  %v4421_v39 = vld [vmem:[%s7409_s9 + $0x68] sm:$0xff]  ;;  %v4419_v50 = vld [vmem:[%s7409_s9 + $0x58] sm:$0xff] }
 0x898   :  { %4301 = vmatpush2.msra.mxu0 %v3208_v15  ;;  %4371 = vmatprep.subr.mxu1 %v3465_v14  ;;  %v3384_v15 = vld [vmem:[#allocation9 + $0x1430] sm:$0xff] }
 0x899   :  { %4302 = vmatprep.subr.mxu0 %v3201_v54  ;;  %4372 = vmatpush2.msra.mxu1 %v3464_v24  ;;  %v4439_v14 = vld [vmem:[%s7409_s9 + $0xf8] sm:$0xff]  ;;  %v4438_v54 = vld [vmem:[%s7409_s9 + $0xf0] sm:$0xff] }
 0x89a   :  { %4303 = vmatpush2.msra.mxu0 %v3200_v55  ;;  %4373 = vmatprep.subr.mxu1 %v3457_v19  ;;  %v4401_v55 = vmax.f32 %v3759_v37, 0.0  ;;  %v4503_v19 = vld [vmem:[%s7409_s9 + $0x2f8] sm:$0xff]  ;;  %v4482_v37 = vld [vmem:[%s7409_s9 + $0x250] sm:$0xff] }
 0x89b   :  { %4304 = vmatprep.subr.mxu0 %v3193_v56  ;;  %4374 = vmatpush2.msra.mxu1 %v3456_v60  ;;  %v4437_v56 = vld [vmem:[%s7409_s9 + $0xe8] sm:$0xff] }
 0x89c   :  { %4305 = vmatpush2.msra.mxu0 %v3192_v2  ;;  %4375 = vmatprep.subr.mxu1 %v3449_v58  ;;  %v4502_v2 = vld [vmem:[%s7409_s9 + $0x2f0] sm:$0xff]  ;;  %v4501_v58 = vld [vmem:[%s7409_s9 + $0x2e8] sm:$0xff] }
 0x89d   :  { %4306 = vmatprep.subr.mxu0 %v3185_v59  ;;  %4376 = vmatpush2.msra.mxu1 %v3448_v30  ;;  %v4435_v59 = vld [vmem:[%s7409_s9 + $0xd8] sm:$0xff]  ;;  %v4500_v30 = vld [vmem:[%s7409_s9 + $0x2e0] sm:$0xff] }
 0x89e   :  { %4307 = vmatpush2.msra.mxu0 %v3184_v61  ;;  %4377 = vmatprep.subr.mxu1 %v3441_v9  ;;  %v4434_v61 = vld [vmem:[%s7409_s9 + $0xd0] sm:$0xff]  ;;  %v4499_v9 = vld [vmem:[%s7409_s9 + $0x2d8] sm:$0xff] }
 0x89f   :  { %4308 = vmatprep.subr.mxu0 %v3177_v5  ;;  %4378 = vmatpush2.msra.mxu1 %v3440_v16  ;;  %v4433_v5 = vld [vmem:[%s7409_s9 + $0xc8] sm:$0xff]  ;;  %v4498_v16 = vld [vmem:[%s7409_s9 + $0x2d0] sm:$0xff] }
 0x8a0   :  { %4309 = vmatpush2.msra.mxu0 %v3176_v3  ;;  %4379 = vmatprep.subr.mxu1 %v3433_v31  ;;  %v4432_v3 = vld [vmem:[%s7409_s9 + $0xc0] sm:$0xff]  ;;  %v4497_v31 = vld [vmem:[%s7409_s9 + $0x2c8] sm:$0xff] }
 0x8a1   :  { %4310 = vmatprep.subr.mxu0 %v3169_v20  ;;  %4380 = vmatpush2.msra.mxu1 %v3432_v6  ;;  %v4431_v20 = vld [vmem:[%s7409_s9 + $0xb8] sm:$0xff] }
 0x8a2   :  { %4311 = vmatpush2.msra.mxu0 %v3168_v62  ;;  %4381 = vmatprep.subr.mxu1 %v3425_v23  ;;  %v4430_v62 = vld [vmem:[%s7409_s9 + $0xb0] sm:$0xff]  ;;  %v4495_v23 = vld [vmem:[%s7409_s9 + $0x2b8] sm:$0xff] }
 0x8a3   :  { %4312 = vmatprep.subr.mxu0 %v3161_v18  ;;  %4382 = vmatpush2.msra.mxu1 %v3424_v22  ;;  %v4429_v18 = vld [vmem:[%s7409_s9 + $0xa8] sm:$0xff]  ;;  %v4494_v22 = vld [vmem:[%s7409_s9 + $0x2b0] sm:$0xff] }
 0x8a4   :  { %4313 = vmatpush2.msra.mxu0 %v3160_v1  ;;  %4383 = vmatprep.subr.mxu1 %v3417_v25  ;;  %v4493_v1 = vld [vmem:[%s7409_s9 + $0x2a8] sm:$0xff]  ;;  %v4427_v25 = vld [vmem:[%s7409_s9 + $0x98] sm:$0xff] }
 0x8a5   :  { %4314 = vmatprep.subr.mxu0 %v3153_v13  ;;  %4384 = vmatpush2.msra.mxu1 %v3416_v57  ;;  %v4426_v13 = vld [vmem:[%s7409_s9 + $0x90] sm:$0xff]  ;;  %v4491_v57 = vld [vmem:[%s7409_s9 + $0x298] sm:$0xff] }
 0x8a6   :  { %4315 = vmatpush2.msra.mxu0 %v3152_v46  ;;  %4385 = vmatprep.subr.mxu1 %v3409_v27  ;;  %v4490_v46 = vld [vmem:[%s7409_s9 + $0x290] sm:$0xff]  ;;  %v4424_v27 = vld [vmem:[%s7409_s9 + $0x80] sm:$0xff] }
 0x8a7   :  { %4316 = vmatprep.subr.mxu0 %v3145_v8  ;;  %4386 = vmatpush2.msra.mxu1 %v3408_v45  ;;  %v6517_v44 = vpop.f32.mrf.mxu0  ;;  %v4489_v8 = vld [vmem:[%s7409_s9 + $0x288] sm:$0xff]  ;;  %v4423_v45 = vld [vmem:[%s7409_s9 + $0x78] sm:$0xff] }
 0x8a8   :  { %4317 = vmatpush2.msra.mxu0 %v3144_v35  ;;  %4387 = vmatprep.subr.mxu1 %v3401_v47  ;;  %v6519_v43 = vpop.f32.mrf.mxu1  ;;  %v4422_v35 = vld [vmem:[%s7409_s9 + $0x70] sm:$0xff]  ;;  %v4487_v47 = vld [vmem:[%s7409_s9 + $0x278] sm:$0xff] }
 0x8a9   :  { %4318 = vmatprep.subr.mxu0 %v3137_v12  ;;  %4388 = vmatpush2.msra.mxu1 %v3400_v48  ;;  %v3900_v51 = vpop.f32.mrf.mxu0  ;;  %v4486_v12 = vld [vmem:[%s7409_s9 + $0x270] sm:$0xff]  ;;  %v4420_v48 = vld [vmem:[%s7409_s9 + $0x60] sm:$0xff] }
 0x8aa   :  { %4319 = vmatpush2.msra.mxu0 %v3136_v38  ;;  %4389 = vmatprep.subr.mxu1 %v3393_v52  ;;  %v3901_v24 = vadd.f32 %v3900_v51, %v3830_v26  ;;  %v3971_v60 = vpop.f32.mrf.mxu1  ;;  %v4484_v38 = vld [vmem:[%s7409_s9 + $0x260] sm:$0xff]  ;;  %v4418_v52 = vld [vmem:[%s7409_s9 + $0x50] sm:$0xff]  ;;  %v4415_v51 = vld [vmem:[%s7409_s9 + $0x38] sm:$0xff] }
 0x8ab   :  { %4320 = vmatprep.subr.mxu0 %v3129_v7  ;;  %4390 = vmatpush2.msra.mxu1 %v3392_v40  ;;  %v4483_v7 = vld [vmem:[%s7409_s9 + $0x258] sm:$0xff]  ;;  %v4417_v40 = vld [vmem:[%s7409_s9 + $0x48] sm:$0xff]  ;;  %v4480_v26 = vld [vmem:[%s7409_s9 + $0x240] sm:$0xff] }
 0x8ac   :  { %4321 = vmatpush2.msra.mxu0 %v3128_v41  ;;  %4391 = vmatprep.subr.mxu1 %v3385_v42  ;;  %v4416_v41 = vld [vmem:[%s7409_s9 + $0x40] sm:$0xff]  ;;  %v4481_v42 = vld [vmem:[%s7409_s9 + $0x248] sm:$0xff] }
 0x8ad   :  { %4323 = vmatmul.mubr.f32.vlgmr.msra.gmra.mxu0 %v6471_v49  ;;  %4392 = vmatpush2.msra.mxu1 %v3384_v15  ;;  %v4436_v49 = vld [vmem:[%s7409_s9 + $0xe0] sm:$0xff]  ;;  %v4414_v15 = vld [vmem:[%s7409_s9 + $0x30] sm:$0xff] }
 0x8ae   :  { %4676 = vmatprep.subr.mxu0 %v4439_v14  ;;  %4394 = vmatmul.mubr.f32.vlgmr.msra.gmra.mxu1 %v6479_v53  ;;  %v3972_v53 = vadd.f32 %v3971_v60, %v3901_v24  ;;  %v4479_v14 = vld [vmem:[%s7409_s9 + $0x238] sm:$0xff]  ;;  %v4478_v24 = vld [vmem:[%s7409_s9 + $0x230] sm:$0xff]  ;;  %v4476_v60 = vld [vmem:[%s7409_s9 + $0x220] sm:$0xff] }
 0x8af   :  { %4677 = vmatpush1.msra.mxu0 %v4438_v54  ;;  %4740 = vmatprep.mubr.f32.mxu0 %v4401_v55  ;;  %v4413_v54 = vld [vmem:[%s7409_s9 + $0x28] sm:$0xff]  ;;  %v4412_v55 = vld [vmem:[%s7409_s9 + $0x20] sm:$0xff] }
 0x8b0   :  { %4747 = vmatprep.subr.mxu1 %v4503_v19  ;;  %4678 = vmatprep.subr.mxu0 %v4437_v56  ;;  %v4403_v6 = vmax.f32 %v3972_v53, 0.0  ;;  %v4477_v19 = vld [vmem:[%s7409_s9 + $0x228] sm:$0xff]  ;;  %v4411_v56 = vld [vmem:[%s7409_s9 + $0x18] sm:$0xff]  ;;  %v4408_v53 = vld [vmem:[%s7409_s9] sm:$0xff] }
 0x8b1   :  { %4748 = vmatpush1.msra.mxu1 %v4502_v2  ;;  %4679 = vmatpush1.msra.mxu0 %v4436_v49  ;;  %v4410_v2 = vld [vmem:[%s7409_s9 + $0x10] sm:$0xff]  ;;  %v4475_v49 = vld [vmem:[%s7409_s9 + $0x218] sm:$0xff] }
 0x8b2   :  { %4749 = vmatprep.subr.mxu1 %v4501_v58  ;;  %4680 = vmatprep.subr.mxu0 %v4435_v59  ;;  %v4409_v58 = vld [vmem:[%s7409_s9 + $0x8] sm:$0xff]  ;;  %v4474_v59 = vld [vmem:[%s7409_s9 + $0x210] sm:$0xff] }
 0x8b3   :  { %4750 = vmatpush1.msra.mxu1 %v4500_v30  ;;  %4681 = vmatpush1.msra.mxu0 %v4434_v61  ;;  %v4473_v30 = vld [vmem:[%s7409_s9 + $0x208] sm:$0xff]  ;;  %v4471_v61 = vld [vmem:[%s7409_s9 + $0x1f8] sm:$0xff] }
 0x8b4   :  { %4751 = vmatprep.subr.mxu1 %v4499_v9  ;;  %4682 = vmatprep.subr.mxu0 %v4433_v5  ;;  %v4472_v9 = vld [vmem:[%s7409_s9 + $0x200] sm:$0xff]  ;;  %v4470_v5 = vld [vmem:[%s7409_s9 + $0x1f0] sm:$0xff] }
 0x8b5   :  { %4752 = vmatpush1.msra.mxu1 %v4498_v16  ;;  %4683 = vmatpush1.msra.mxu0 %v4432_v3  ;;  %v4535_v16 = vld [vmem:[%s7409_s9 + $0x3f8] sm:$0xff]  ;;  %v4469_v3 = vld [vmem:[%s7409_s9 + $0x1e8] sm:$0xff] }
 0x8b6   :  { %4753 = vmatprep.subr.mxu1 %v4497_v31  ;;  %4684 = vmatprep.subr.mxu0 %v4431_v20  ;;  %v4534_v31 = vld [vmem:[%s7409_s9 + $0x3f0] sm:$0xff]  ;;  %v4468_v20 = vld [vmem:[%s7409_s9 + $0x1e0] sm:$0xff] }
 0x8b7   :  { %4754 = vmatpush1.msra.mxu1 %v4496_v29  ;;  %4685 = vmatpush1.msra.mxu0 %v4430_v62  ;;  %v4467_v29 = vld [vmem:[%s7409_s9 + $0x1d8] sm:$0xff]  ;;  %v4532_v62 = vld [vmem:[%s7409_s9 + $0x3e0] sm:$0xff] }
 0x8b8   :  { %4755 = vmatprep.subr.mxu1 %v4495_v23  ;;  %4811 = vmatprep.mubr.f32.mxu1 %v4403_v6  ;;  %v4533_v6 = vld [vmem:[%s7409_s9 + $0x3e8] sm:$0xff]  ;;  %v4466_v23 = vld [vmem:[%s7409_s9 + $0x1d0] sm:$0xff] }
 0x8b9   :  { %4686 = vmatprep.subr.mxu0 %v4429_v18  ;;  %4756 = vmatpush1.msra.mxu1 %v4494_v22  ;;  %v4531_v18 = vld [vmem:[%s7409_s9 + $0x3d8] sm:$0xff]  ;;  %v4465_v22 = vld [vmem:[%s7409_s9 + $0x1c8] sm:$0xff] }
 0x8ba   :  { %4687 = vmatpush1.msra.mxu0 %v4428_v63  ;;  %4757 = vmatprep.subr.mxu1 %v4493_v1  ;;  %v4530_v63 = vld [vmem:[%s7409_s9 + $0x3d0] sm:$0xff]  ;;  %v4464_v1 = vld [vmem:[%s7409_s9 + $0x1c0] sm:$0xff] }
 0x8bb   :  { %4688 = vmatprep.subr.mxu0 %v4427_v25  ;;  %4758 = vmatpush1.msra.mxu1 %v4492_v10  ;;  %v4529_v25 = vld [vmem:[%s7409_s9 + $0x3c8] sm:$0xff]  ;;  %v4463_v10 = vld [vmem:[%s7409_s9 + $0x1b8] sm:$0xff] }
 0x8bc   :  { %4689 = vmatpush1.msra.mxu0 %v4426_v13  ;;  %4759 = vmatprep.subr.mxu1 %v4491_v57  ;;  %v4528_v13 = vld [vmem:[%s7409_s9 + $0x3c0] sm:$0xff]  ;;  %v4462_v57 = vld [vmem:[%s7409_s9 + $0x1b0] sm:$0xff] }
 0x8bd   :  { %4690 = vmatprep.subr.mxu0 %v4425_v4  ;;  %4760 = vmatpush1.msra.mxu1 %v4490_v46  ;;  %v4527_v4 = vld [vmem:[%s7409_s9 + $0x3b8] sm:$0xff]  ;;  %v4461_v46 = vld [vmem:[%s7409_s9 + $0x1a8] sm:$0xff] }
 0x8be   :  { %4691 = vmatpush1.msra.mxu0 %v4424_v27  ;;  %4761 = vmatprep.subr.mxu1 %v4489_v8  ;;  %v4526_v27 = vld [vmem:[%s7409_s9 + $0x3b0] sm:$0xff]  ;;  %v4460_v8 = vld [vmem:[%s7409_s9 + $0x1a0] sm:$0xff] }
 0x8bf   :  { %4692 = vmatprep.subr.mxu0 %v4423_v45  ;;  %4762 = vmatpush1.msra.mxu1 %v4488_v34  ;;  %v4525_v45 = vld [vmem:[%s7409_s9 + $0x3a8] sm:$0xff]  ;;  %v4459_v34 = vld [vmem:[%s7409_s9 + $0x198] sm:$0xff] }
 0x8c0   :  { %4693 = vmatpush1.msra.mxu0 %v4422_v35  ;;  %4763 = vmatprep.subr.mxu1 %v4487_v47  ;;  %v4524_v35 = vld [vmem:[%s7409_s9 + $0x3a0] sm:$0xff]  ;;  %v4458_v47 = vld [vmem:[%s7409_s9 + $0x190] sm:$0xff] }
 0x8c1   :  { %4694 = vmatprep.subr.mxu0 %v4421_v39  ;;  %4764 = vmatpush1.msra.mxu1 %v4486_v12  ;;  %v4523_v39 = vld [vmem:[%s7409_s9 + $0x398] sm:$0xff]  ;;  %v4457_v12 = vld [vmem:[%s7409_s9 + $0x188] sm:$0xff] }
 0x8c2   :  { %4695 = vmatpush1.msra.mxu0 %v4420_v48  ;;  %4765 = vmatprep.subr.mxu1 %v4485_v11  ;;  %v4522_v48 = vld [vmem:[%s7409_s9 + $0x390] sm:$0xff]  ;;  %v4456_v11 = vld [vmem:[%s7409_s9 + $0x180] sm:$0xff] }
 0x8c3   :  { %4696 = vmatprep.subr.mxu0 %v4419_v50  ;;  %4766 = vmatpush1.msra.mxu1 %v4484_v38  ;;  %v4521_v50 = vld [vmem:[%s7409_s9 + $0x388] sm:$0xff]  ;;  %v3518_v38 = vsub.s32 2, %v6079_v28 }
 0x8c4   :  { %4697 = vmatpush1.msra.mxu0 %v4418_v52  ;;  %4767 = vmatprep.subr.mxu1 %v4483_v7  ;;  %v4455_v52 = vld [vmem:[%s7409_s9 + $0x178] sm:$0xff]  ;;  %v4520_v7 = vld [vmem:[%s7409_s9 + $0x380] sm:$0xff] }
 0x8c5   :  { %4698 = vmatprep.subr.mxu0 %v4417_v40  ;;  %4768 = vmatpush1.msra.mxu1 %v4482_v37  ;;  %v4454_v40 = vld [vmem:[%s7409_s9 + $0x170] sm:$0xff]  ;;  %v4519_v37 = vld [vmem:[%s7409_s9 + $0x378] sm:$0xff] }
 0x8c6   :  { %4699 = vmatpush1.msra.mxu0 %v4416_v41  ;;  %4769 = vmatprep.subr.mxu1 %v4481_v42  ;;  %v4453_v41 = vld [vmem:[%s7409_s9 + $0x168] sm:$0xff]  ;;  %v4518_v42 = vld [vmem:[%s7409_s9 + $0x370] sm:$0xff] }
 0x8c7   :  { %4700 = vmatprep.subr.mxu0 %v4415_v51  ;;  %4770 = vmatpush1.msra.mxu1 %v4480_v26  ;;  %v4452_v51 = vld [vmem:[%s7409_s9 + $0x160] sm:$0xff]  ;;  %v4517_v26 = vld [vmem:[%s7409_s9 + $0x368] sm:$0xff] }
 0x8c8   :  { %4701 = vmatpush1.msra.mxu0 %v4414_v15  ;;  %4771 = vmatprep.subr.mxu1 %v4479_v14  ;;  %v3519_v15 = vrot.slane %v6508_v21, %v3518_v38  ;;  %v4451_v14 = vld [vmem:[%s7409_s9 + $0x158] sm:$0xff]  ;;  %v4622_v38 = vld [vmem:[%s7409_s9 + $0x6b0] sm:$0xff] }
 0x8c9   :  { %4702 = vmatprep.subr.mxu0 %v4413_v54  ;;  %4772 = vmatpush1.msra.mxu1 %v4478_v24  ;;  %v4516_v54 = vld [vmem:[%s7409_s9 + $0x360] sm:$0xff]  ;;  %v4450_v24 = vld [vmem:[%s7409_s9 + $0x150] sm:$0xff]  ;;  %v4515_v21 = vld [vmem:[%s7409_s9 + $0x358] sm:$0xff] }
 0x8ca   :  { %4703 = vmatpush1.msra.mxu0 %v4412_v55  ;;  %4773 = vmatprep.subr.mxu1 %v4477_v19  ;;  %v4449_v55 = vld [vmem:[%s7409_s9 + $0x148] sm:$0xff]  ;;  %v4514_v19 = vld [vmem:[%s7409_s9 + $0x350] sm:$0xff] }
 0x8cb   :  { %4704 = vmatprep.subr.mxu0 %v4411_v56  ;;  %4774 = vmatpush1.msra.mxu1 %v4476_v60  ;;  %v4448_v56 = vld [vmem:[%s7409_s9 + $0x140] sm:$0xff]  ;;  %v4513_v60 = vld [vmem:[%s7409_s9 + $0x348] sm:$0xff] }
 0x8cc   :  { %4705 = vmatpush1.msra.mxu0 %v4410_v2  ;;  %4775 = vmatprep.subr.mxu1 %v4475_v49  ;;  %v3828_v2 = vadd.f32 %v6514_v17, %v3519_v15  ;;  %v4447_v49 = vld [vmem:[%s7409_s9 + $0x138] sm:$0xff]  ;;  %v4552_v15 = vld [vmem:[%s7409_s9 + $0x480] sm:$0xff] }
 0x8cd   :  { %4706 = vmatprep.subr.mxu0 %v4409_v58  ;;  %4776 = vmatpush1.msra.mxu1 %v4474_v59  ;;  %v4512_v58 = vld [vmem:[%s7409_s9 + $0x340] sm:$0xff]  ;;  %v4446_v59 = vld [vmem:[%s7409_s9 + $0x130] sm:$0xff]  ;;  %v4511_v17 = vld [vmem:[%s7409_s9 + $0x338] sm:$0xff] }
 0x8ce   :  { %4707 = vmatpush1.msra.mxu0 %v4408_v53  ;;  %4777 = vmatprep.subr.mxu1 %v4473_v30  ;;  %v3899_v53 = vadd.f32 %v6517_v44, %v3828_v2  ;;  %v4445_v30 = vld [vmem:[%s7409_s9 + $0x128] sm:$0xff] }
 0x8cf   :  { %4708 = vmatprep.subr.mxu0 %v4471_v61  ;;  %4778 = vmatpush1.msra.mxu1 %v4472_v9  ;;  %v4510_v61 = vld [vmem:[%s7409_s9 + $0x330] sm:$0xff]  ;;  %v4444_v9 = vld [vmem:[%s7409_s9 + $0x120] sm:$0xff]  ;;  %v4509_v44 = vld [vmem:[%s7409_s9 + $0x328] sm:$0xff] }
 0x8d0   :  { %4709 = vmatpush2.msra.mxu0 %v4470_v5  ;;  %4779 = vmatprep.subr.mxu1 %v4535_v16  ;;  %v4443_v5 = vld [vmem:[%s7409_s9 + $0x118] sm:$0xff]  ;;  %v4508_v16 = vld [vmem:[%s7409_s9 + $0x320] sm:$0xff]  ;;  %v4613_v2 = vld [vmem:[%s7409_s9 + $0x668] sm:$0xff] }
 0x8d1   :  { %4710 = vmatprep.subr.mxu0 %v4469_v3  ;;  %4780 = vmatpush2.msra.mxu1 %v4534_v31  ;;  %v4442_v3 = vld [vmem:[%s7409_s9 + $0x110] sm:$0xff]  ;;  %v4507_v31 = vld [vmem:[%s7409_s9 + $0x318] sm:$0xff] }
 0x8d2   :  { %4711 = vmatpush2.msra.mxu0 %v4468_v20  ;;  %4781 = vmatprep.subr.mxu1 %v4533_v6  ;;  %v3970_v20 = vadd.f32 %v6519_v43, %v3899_v53  ;;  %v4441_v6 = vld [vmem:[%s7409_s9 + $0x108] sm:$0xff] }
 0x8d3   :  { %4712 = vmatprep.subr.mxu0 %v4467_v29  ;;  %4782 = vmatpush2.msra.mxu1 %v4532_v62  ;;  %v4506_v29 = vld [vmem:[%s7409_s9 + $0x310] sm:$0xff]  ;;  %v4440_v62 = vld [vmem:[%s7409_s9 + $0x100] sm:$0xff]  ;;  %v4505_v43 = vld [vmem:[%s7409_s9 + $0x308] sm:$0xff] }
 0x8d4   :  { %4713 = vmatpush2.msra.mxu0 %v4466_v23  ;;  %4783 = vmatprep.subr.mxu1 %v4531_v18  ;;  %v4504_v23 = vld [vmem:[%s7409_s9 + $0x300] sm:$0xff]  ;;  %v4400_v18 = vmax.f32 %v6502_v36, 0.0  ;;  %v4565_v36 = vld [vmem:[%s7409_s9 + $0x4e8] sm:$0xff] }
 0x8d5   :  { %4714 = vmatprep.subr.mxu0 %v4465_v22  ;;  %4784 = vmatpush2.msra.mxu1 %v4530_v63  ;;  %v4567_v22 = vld [vmem:[%s7409_s9 + $0x4f8] sm:$0xff]  ;;  %v4402_v63 = vmax.f32 %v3970_v20, 0.0  ;;  %v4545_v53 = vld [vmem:[%s7409_s9 + $0x448] sm:$0xff]  ;;  %v4606_v20 = vld [vmem:[%s7409_s9 + $0x630] sm:$0xff] }
 0x8d6   :  { %4715 = vmatpush2.msra.mxu0 %v4464_v1  ;;  %4785 = vmatprep.subr.mxu1 %v4529_v25  ;;  %v4566_v1 = vld [vmem:[%s7409_s9 + $0x4f0] sm:$0xff]  ;;  %v4631_v25 = vld [vmem:[%s7409_s9 + $0x6f8] sm:$0xff] }
 0x8d7   :  { %4716 = vmatprep.subr.mxu0 %v4463_v10  ;;  %4786 = vmatpush2.msra.mxu1 %v4528_v13  ;;  %v4630_v10 = vld [vmem:[%s7409_s9 + $0x6f0] sm:$0xff]  ;;  %v4564_v13 = vld [vmem:[%s7409_s9 + $0x4e0] sm:$0xff] }
 0x8d8   :  { %4717 = vmatpush2.msra.mxu0 %v4462_v57  ;;  %4787 = vmatprep.subr.mxu1 %v4527_v4  ;;  %v4629_v57 = vld [vmem:[%s7409_s9 + $0x6e8] sm:$0xff]  ;;  %v4563_v4 = vld [vmem:[%s7409_s9 + $0x4d8] sm:$0xff] }
 0x8d9   :  { %4718 = vmatprep.subr.mxu0 %v4461_v46  ;;  %4788 = vmatpush2.msra.mxu1 %v4526_v27  ;;  %v4628_v46 = vld [vmem:[%s7409_s9 + $0x6e0] sm:$0xff]  ;;  %v4562_v27 = vld [vmem:[%s7409_s9 + $0x4d0] sm:$0xff] }
 0x8da   :  { %4719 = vmatpush2.msra.mxu0 %v4460_v8  ;;  %4789 = vmatprep.subr.mxu1 %v4525_v45  ;;  %v4627_v8 = vld [vmem:[%s7409_s9 + $0x6d8] sm:$0xff]  ;;  %v4561_v45 = vld [vmem:[%s7409_s9 + $0x4c8] sm:$0xff] }
 0x8db   :  { %4720 = vmatprep.subr.mxu0 %v4459_v34  ;;  %4790 = vmatpush2.msra.mxu1 %v4524_v35  ;;  %v4626_v34 = vld [vmem:[%s7409_s9 + $0x6d0] sm:$0xff]  ;;  %v4560_v35 = vld [vmem:[%s7409_s9 + $0x4c0] sm:$0xff] }
 0x8dc   :  { %4721 = vmatpush2.msra.mxu0 %v4458_v47  ;;  %4791 = vmatprep.subr.mxu1 %v4523_v39  ;;  %v4625_v47 = vld [vmem:[%s7409_s9 + $0x6c8] sm:$0xff]  ;;  %v4559_v39 = vld [vmem:[%s7409_s9 + $0x4b8] sm:$0xff] }
 0x8dd   :  { %4722 = vmatprep.subr.mxu0 %v4457_v12  ;;  %4792 = vmatpush2.msra.mxu1 %v4522_v48  ;;  %v4624_v12 = vld [vmem:[%s7409_s9 + $0x6c0] sm:$0xff]  ;;  %v4558_v48 = vld [vmem:[%s7409_s9 + $0x4b0] sm:$0xff] }
 0x8de   :  { %4723 = vmatpush2.msra.mxu0 %v4456_v11  ;;  %4793 = vmatprep.subr.mxu1 %v4521_v50  ;;  %v4623_v11 = vld [vmem:[%s7409_s9 + $0x6b8] sm:$0xff]  ;;  %v4557_v50 = vld [vmem:[%s7409_s9 + $0x4a8] sm:$0xff] }
 0x8df   :  { %4724 = vmatprep.subr.mxu0 %v4455_v52  ;;  %4794 = vmatpush2.msra.mxu1 %v4520_v7  ;;  %v4556_v52 = vld [vmem:[%s7409_s9 + $0x4a0] sm:$0xff]  ;;  %v4621_v7 = vld [vmem:[%s7409_s9 + $0x6a8] sm:$0xff] }
 0x8e0   :  { %4725 = vmatpush2.msra.mxu0 %v4454_v40  ;;  %4795 = vmatprep.subr.mxu1 %v4519_v37  ;;  %v4555_v40 = vld [vmem:[%s7409_s9 + $0x498] sm:$0xff]  ;;  %v4620_v37 = vld [vmem:[%s7409_s9 + $0x6a0] sm:$0xff] }
 0x8e1   :  { %4726 = vmatprep.subr.mxu0 %v4453_v41  ;;  %4796 = vmatpush2.msra.mxu1 %v4518_v42  ;;  %v4554_v41 = vld [vmem:[%s7409_s9 + $0x490] sm:$0xff]  ;;  %v4619_v42 = vld [vmem:[%s7409_s9 + $0x698] sm:$0xff] }
 0x8e2   :  { %4727 = vmatpush2.msra.mxu0 %v4452_v51  ;;  %4797 = vmatprep.subr.mxu1 %v4517_v26  ;;  %v4553_v51 = vld [vmem:[%s7409_s9 + $0x488] sm:$0xff]  ;;  %v4618_v26 = vld [vmem:[%s7409_s9 + $0x690] sm:$0xff] }
 0x8e3   :  { %4728 = vmatprep.subr.mxu0 %v4451_v14  ;;  %4798 = vmatpush2.msra.mxu1 %v4516_v54  ;;  %v4617_v14 = vld [vmem:[%s7409_s9 + $0x688] sm:$0xff]  ;;  %v4551_v54 = vld [vmem:[%s7409_s9 + $0x478] sm:$0xff] }
 0x8e4   :  { %4729 = vmatpush2.msra.mxu0 %v4450_v24  ;;  %4799 = vmatprep.subr.mxu1 %v4515_v21  ;;  %v4616_v24 = vld [vmem:[%s7409_s9 + $0x680] sm:$0xff]  ;;  %v4550_v21 = vld [vmem:[%s7409_s9 + $0x470] sm:$0xff] }
 0x8e5   :  { %4730 = vmatprep.subr.mxu0 %v4449_v55  ;;  %4800 = vmatpush2.msra.mxu1 %v4514_v19  ;;  %v4615_v55 = vld [vmem:[%s7409_s9 + $0x678] sm:$0xff]  ;;  %v4549_v19 = vld [vmem:[%s7409_s9 + $0x468] sm:$0xff] }
 0x8e6   :  { %4731 = vmatpush2.msra.mxu0 %v4448_v56  ;;  %4801 = vmatprep.subr.mxu1 %v4513_v60  ;;  %v4614_v56 = vld [vmem:[%s7409_s9 + $0x670] sm:$0xff]  ;;  %v4548_v60 = vld [vmem:[%s7409_s9 + $0x460] sm:$0xff] }
 0x8e7   :  { %4732 = vmatprep.subr.mxu0 %v4447_v49  ;;  %4802 = vmatpush2.msra.mxu1 %v4512_v58  ;;  %v4547_v49 = vld [vmem:[%s7409_s9 + $0x458] sm:$0xff]  ;;  %v4612_v58 = vld [vmem:[%s7409_s9 + $0x660] sm:$0xff] }
 0x8e8   :  { %4733 = vmatpush2.msra.mxu0 %v4446_v59  ;;  %4803 = vmatprep.subr.mxu1 %v4511_v17  ;;  %v4546_v59 = vld [vmem:[%s7409_s9 + $0x450] sm:$0xff]  ;;  %v4611_v17 = vld [vmem:[%s7409_s9 + $0x658] sm:$0xff] }
 0x8e9   :  { %4734 = vmatprep.subr.mxu0 %v4445_v30  ;;  %4804 = vmatpush2.msra.mxu1 %v4510_v61  ;;  %v4610_v30 = vld [vmem:[%s7409_s9 + $0x650] sm:$0xff]  ;;  %v4544_v61 = vld [vmem:[%s7409_s9 + $0x440] sm:$0xff] }
 0x8ea   :  { %4735 = vmatpush2.msra.mxu0 %v4444_v9  ;;  %4805 = vmatprep.subr.mxu1 %v4509_v44  ;;  %v4609_v9 = vld [vmem:[%s7409_s9 + $0x648] sm:$0xff]  ;;  %v4543_v44 = vld [vmem:[%s7409_s9 + $0x438] sm:$0xff] }
 0x8eb   :  { %4736 = vmatprep.subr.mxu0 %v4443_v5  ;;  %4806 = vmatpush2.msra.mxu1 %v4508_v16  ;;  %v4608_v5 = vld [vmem:[%s7409_s9 + $0x640] sm:$0xff]  ;;  %v4542_v16 = vld [vmem:[%s7409_s9 + $0x430] sm:$0xff] }
 0x8ec   :  { %4737 = vmatpush2.msra.mxu0 %v4442_v3  ;;  %4807 = vmatprep.subr.mxu1 %v4507_v31  ;;  %v4607_v3 = vld [vmem:[%s7409_s9 + $0x638] sm:$0xff]  ;;  %v4541_v31 = vld [vmem:[%s7409_s9 + $0x428] sm:$0xff] }
 0x8ed   :  { %4738 = vmatprep.subr.mxu0 %v4441_v6  ;;  %4808 = vmatpush2.msra.mxu1 %v4506_v29  ;;  %v4540_v6 = vld [vmem:[%s7409_s9 + $0x420] sm:$0xff]  ;;  %v4605_v29 = vld [vmem:[%s7409_s9 + $0x628] sm:$0xff] }
 0x8ee   :  { %4739 = vmatpush2.msra.mxu0 %v4440_v62  ;;  %4809 = vmatprep.subr.mxu1 %v4505_v43  ;;  %v4539_v62 = vld [vmem:[%s7409_s9 + $0x418] sm:$0xff]  ;;  %v4604_v43 = vld [vmem:[%s7409_s9 + $0x620] sm:$0xff] }
 0x8ef   :  { %4741 = vmatmul.mubr.f32.vlgmr.msra.gmra.mxu0 %v4400_v18  ;;  %4810 = vmatpush2.msra.mxu1 %v4504_v23  ;;  %v4538_v23 = vld [vmem:[%s7409_s9 + $0x410] sm:$0xff]  ;;  %v4603_v18 = vld [vmem:[%s7409_s9 + $0x618] sm:$0xff] }
 0x8f0   :  { %4812 = vmatmul.mubr.f32.vlgmr.msra.gmra.mxu1 %v4402_v63  ;;  %4818 = vmatprep.subr.mxu0 %v4567_v22  ;;  %v4537_v22 = vld [vmem:[%s7409_s9 + $0x408] sm:$0xff]  ;;  %v4602_v63 = vld [vmem:[%s7409_s9 + $0x610] sm:$0xff] }
 0x8f1   :  { %4819 = vmatpush1.msra.mxu0 %v4566_v1  ;;  %4889 = vmatprep.subr.mxu1 %v4631_v25  ;;  %v4536_v1 = vld [vmem:[%s7409_s9 + $0x400] sm:$0xff]  ;;  %v4601_v25 = vld [vmem:[%s7409_s9 + $0x608] sm:$0xff] }
 0x8f2   :  { %4820 = vmatprep.subr.mxu0 %v4565_v36  ;;  %4890 = vmatpush1.msra.mxu1 %v4630_v10  ;;  %v4599_v36 = vld [vmem:[%s7409_s9 + $0x5f8] sm:$0xff]  ;;  %v4600_v10 = vld [vmem:[%s7409_s9 + $0x600] sm:$0xff] }
 0x8f3   :  { %4821 = vmatpush1.msra.mxu0 %v4564_v13  ;;  %4891 = vmatprep.subr.mxu1 %v4629_v57  ;;  %v4598_v13 = vld [vmem:[%s7409_s9 + $0x5f0] sm:$0xff]  ;;  %v4663_v57 = vld [vmem:[%s7409_s9 + $0x7f8] sm:$0xff] }
 0x8f4   :  { %4822 = vmatprep.subr.mxu0 %v4563_v4  ;;  %4892 = vmatpush1.msra.mxu1 %v4628_v46  ;;  %v4597_v4 = vld [vmem:[%s7409_s9 + $0x5e8] sm:$0xff]  ;;  %v4662_v46 = vld [vmem:[%s7409_s9 + $0x7f0] sm:$0xff] }
 0x8f5   :  { %4823 = vmatpush1.msra.mxu0 %v4562_v27  ;;  %4893 = vmatprep.subr.mxu1 %v4627_v8  ;;  %v4596_v27 = vld [vmem:[%s7409_s9 + $0x5e0] sm:$0xff]  ;;  %v4661_v8 = vld [vmem:[%s7409_s9 + $0x7e8] sm:$0xff] }
 0x8f6   :  { %4824 = vmatprep.subr.mxu0 %v4561_v45  ;;  %4894 = vmatpush1.msra.mxu1 %v4626_v34  ;;  %v4595_v45 = vld [vmem:[%s7409_s9 + $0x5d8] sm:$0xff]  ;;  %v4660_v34 = vld [vmem:[%s7409_s9 + $0x7e0] sm:$0xff] }
 0x8f7   :  { %4825 = vmatpush1.msra.mxu0 %v4560_v35  ;;  %4895 = vmatprep.subr.mxu1 %v4625_v47  ;;  %v4594_v35 = vld [vmem:[%s7409_s9 + $0x5d0] sm:$0xff]  ;;  %v4659_v47 = vld [vmem:[%s7409_s9 + $0x7d8] sm:$0xff] }
 0x8f8   :  { %4826 = vmatprep.subr.mxu0 %v4559_v39  ;;  %4896 = vmatpush1.msra.mxu1 %v4624_v12  ;;  %v4593_v39 = vld [vmem:[%s7409_s9 + $0x5c8] sm:$0xff]  ;;  %v4658_v12 = vld [vmem:[%s7409_s9 + $0x7d0] sm:$0xff] }
 0x8f9   :  { %4827 = vmatpush1.msra.mxu0 %v4558_v48  ;;  %4897 = vmatprep.subr.mxu1 %v4623_v11  ;;  %v4592_v48 = vld [vmem:[%s7409_s9 + $0x5c0] sm:$0xff]  ;;  %v4657_v11 = vld [vmem:[%s7409_s9 + $0x7c8] sm:$0xff] }
 0x8fa   :  { %4828 = vmatprep.subr.mxu0 %v4557_v50  ;;  %4898 = vmatpush1.msra.mxu1 %v4622_v38  ;;  %v4591_v50 = vld [vmem:[%s7409_s9 + $0x5b8] sm:$0xff]  ;;  %v4656_v38 = vld [vmem:[%s7409_s9 + $0x7c0] sm:$0xff] }
 0x8fb   :  { %4829 = vmatpush1.msra.mxu0 %v4556_v52  ;;  %4899 = vmatprep.subr.mxu1 %v4621_v7  ;;  %v4590_v52 = vld [vmem:[%s7409_s9 + $0x5b0] sm:$0xff]  ;;  %v4655_v7 = vld [vmem:[%s7409_s9 + $0x7b8] sm:$0xff] }
 0x8fc   :  { %4830 = vmatprep.subr.mxu0 %v4555_v40  ;;  %4900 = vmatpush1.msra.mxu1 %v4620_v37  ;;  %v4589_v40 = vld [vmem:[%s7409_s9 + $0x5a8] sm:$0xff]  ;;  %v4654_v37 = vld [vmem:[%s7409_s9 + $0x7b0] sm:$0xff] }
 0x8fd   :  { %4831 = vmatpush1.msra.mxu0 %v4554_v41  ;;  %4901 = vmatprep.subr.mxu1 %v4619_v42  ;;  %v4588_v41 = vld [vmem:[%s7409_s9 + $0x5a0] sm:$0xff]  ;;  %v4653_v42 = vld [vmem:[%s7409_s9 + $0x7a8] sm:$0xff] }
 0x8fe   :  { %4832 = vmatprep.subr.mxu0 %v4553_v51  ;;  %4902 = vmatpush1.msra.mxu1 %v4618_v26  ;;  %v4587_v51 = vld [vmem:[%s7409_s9 + $0x598] sm:$0xff]  ;;  %v4652_v26 = vld [vmem:[%s7409_s9 + $0x7a0] sm:$0xff] }
 0x8ff   :  { %4833 = vmatpush1.msra.mxu0 %v4552_v15  ;;  %4903 = vmatprep.subr.mxu1 %v4617_v14  ;;  %v4586_v15 = vld [vmem:[%s7409_s9 + $0x590] sm:$0xff]  ;;  %v4651_v14 = vld [vmem:[%s7409_s9 + $0x798] sm:$0xff] }
 0x900   :  { %4834 = vmatprep.subr.mxu0 %v4551_v54  ;;  %4904 = vmatpush1.msra.mxu1 %v4616_v24  ;;  %v4585_v54 = vld [vmem:[%s7409_s9 + $0x588] sm:$0xff]  ;;  %v4650_v24 = vld [vmem:[%s7409_s9 + $0x790] sm:$0xff] }
 0x901   :  { %4835 = vmatpush1.msra.mxu0 %v4550_v21  ;;  %4905 = vmatprep.subr.mxu1 %v4615_v55  ;;  %v4584_v21 = vld [vmem:[%s7409_s9 + $0x580] sm:$0xff]  ;;  %v4649_v55 = vld [vmem:[%s7409_s9 + $0x788] sm:$0xff] }
 0x902   :  { %4836 = vmatprep.subr.mxu0 %v4549_v19  ;;  %4906 = vmatpush1.msra.mxu1 %v4614_v56  ;;  %v4583_v19 = vld [vmem:[%s7409_s9 + $0x578] sm:$0xff]  ;;  %v4648_v56 = vld [vmem:[%s7409_s9 + $0x780] sm:$0xff] }
 0x903   :  { %4837 = vmatpush1.msra.mxu0 %v4548_v60  ;;  %4907 = vmatprep.subr.mxu1 %v4613_v2  ;;  %v4582_v60 = vld [vmem:[%s7409_s9 + $0x570] sm:$0xff]  ;;  %v4647_v2 = vld [vmem:[%s7409_s9 + $0x778] sm:$0xff] }
 0x904   :  { %4838 = vmatprep.subr.mxu0 %v4547_v49  ;;  %4908 = vmatpush1.msra.mxu1 %v4612_v58  ;;  %v3526_v49 = vsub.s32 4, %v6079_v28  ;;  %v4581_v58 = vld [vmem:[%s7409_s9 + $0x568] sm:$0xff] }
 0x905   :  { %4839 = vmatpush1.msra.mxu0 %v4546_v59  ;;  %4909 = vmatprep.subr.mxu1 %v4611_v17  ;;  %v4646_v59 = vld [vmem:[%s7409_s9 + $0x770] sm:$0xff]  ;;  %v3530_v17 = vsub.s32 5, %v6079_v28 }
 0x906   :  { %4840 = vmatprep.subr.mxu0 %v4545_v53  ;;  %4910 = vmatpush1.msra.mxu1 %v4610_v30  ;;  %v4580_v53 = vld [vmem:[%s7409_s9 + $0x560] sm:$0xff]  ;;  %v4645_v30 = vld [vmem:[%s7409_s9 + $0x768] sm:$0xff] }
 0x907   :  { %4841 = vmatpush1.msra.mxu0 %v4544_v61  ;;  %4911 = vmatprep.subr.mxu1 %v4609_v9  ;;  %v4040_v61 = vpop.f32.mrf.mxu0  ;;  %v4579_v9 = vld [vmem:[%s7409_s9 + $0x558] sm:$0xff] }
 0x908   :  { %4842 = vmatprep.subr.mxu0 %v4543_v44  ;;  %4912 = vmatpush1.msra.mxu1 %v4608_v5  ;;  %v4644_v44 = vld [vmem:[%s7409_s9 + $0x760] sm:$0xff]  ;;  %v4578_v5 = vld [vmem:[%s7409_s9 + $0x550] sm:$0xff] }
 0x909   :  { %4843 = vmatpush1.msra.mxu0 %v4542_v16  ;;  %4913 = vmatprep.subr.mxu1 %v4607_v3  ;;  %v4643_v16 = vld [vmem:[%s7409_s9 + $0x758] sm:$0xff]  ;;  %v7236_v3 = vld [vmem:[#allocation10] sm:$0xff] }
 0x90a   :  { %4844 = vmatprep.subr.mxu0 %v4541_v31  ;;  %4914 = vmatpush1.msra.mxu1 %v4606_v20  ;;  %v3527_v31 = vrot.slane %v7236_v3, %v3526_v49  ;;  %v4577_v20 = vld [vmem:[%s7409_s9 + $0x548] sm:$0xff] }
 0x90b   :  { %4845 = vmatpush1.msra.mxu0 %v4540_v6  ;;  %4915 = vmatprep.subr.mxu1 %v4605_v29  ;;  %v4642_v6 = vld [vmem:[%s7409_s9 + $0x750] sm:$0xff]  ;;  %v3531_v29 = vrot.slane %v7236_v3, %v3530_v17 }
 0x90c   :  { %4846 = vmatprep.subr.mxu0 %v4539_v62  ;;  %4916 = vmatpush1.msra.mxu1 %v4604_v43  ;;  %v4576_v62 = vld [vmem:[%s7409_s9 + $0x540] sm:$0xff]  ;;  %v4641_v43 = vld [vmem:[%s7409_s9 + $0x748] sm:$0xff] }
 0x90d   :  { %4847 = vmatpush1.msra.mxu0 %v4538_v23  ;;  %4917 = vmatprep.subr.mxu1 %v4603_v18  ;;  %v4111_v23 = vpop.f32.mrf.mxu1  ;;  %v4042_v18 = vpop.f32.mrf.mxu0 }
 0x90e   :  { %4848 = vmatprep.subr.mxu0 %v4537_v22  ;;  %4918 = vmatpush1.msra.mxu1 %v4602_v63  ;;  %v4575_v22 = vld [vmem:[%s7409_s9 + $0x538] sm:$0xff]  ;;  %v4640_v63 = vld [vmem:[%s7409_s9 + $0x740] sm:$0xff] }
 0x90f   :  { %4849 = vmatpush1.msra.mxu0 %v4536_v1  ;;  %4919 = vmatprep.subr.mxu1 %v4601_v25  ;;  %v4574_v1 = vld [vmem:[%s7409_s9 + $0x530] sm:$0xff]  ;;  %v4639_v25 = vld [vmem:[%s7409_s9 + $0x738] sm:$0xff] }
 0x910   :  { %4850 = vmatprep.subr.mxu0 %v4599_v36  ;;  %4920 = vmatpush1.msra.mxu1 %v4600_v10  ;;  %v4041_v36 = vadd.f32 %v4040_v61, %v3527_v31  ;;  %v4573_v10 = vld [vmem:[%s7409_s9 + $0x528] sm:$0xff]  ;;  %v4992_v61 = vld [vmem:[#allocation13 + $0xf0] sm:$0xff] }
 0x911   :  { %4851 = vmatpush2.msra.mxu0 %v4598_v13  ;;  %4921 = vmatprep.subr.mxu1 %v4663_v57  ;;  %v4638_v13 = vld [vmem:[%s7409_s9 + $0x730] sm:$0xff]  ;;  %v4043_v57 = vadd.f32 %v4042_v18, %v3531_v29 }
 0x912   :  { %4852 = vmatprep.subr.mxu0 %v4597_v4  ;;  %4922 = vmatpush2.msra.mxu1 %v4662_v46  ;;  %v4572_v4 = vld [vmem:[%s7409_s9 + $0x520] sm:$0xff]  ;;  %v4637_v46 = vld [vmem:[%s7409_s9 + $0x728] sm:$0xff]  ;;  %v4983_v29 = vld [vmem:[#allocation13 + $0xa8] sm:$0xff] }
 0x913   :  { %4853 = vmatpush2.msra.mxu0 %v4596_v27  ;;  %4923 = vmatprep.subr.mxu1 %v4661_v8  ;;  %v4113_v27 = vpop.f32.mrf.mxu1  ;;  %v4571_v8 = vld [vmem:[%s7409_s9 + $0x518] sm:$0xff]  ;;  %v4986_v31 = vld [vmem:[#allocation13 + $0xc0] sm:$0xff] }
 0x914   :  { %4854 = vmatprep.subr.mxu0 %v4595_v45  ;;  %4924 = vmatpush2.msra.mxu1 %v4660_v34  ;;  %v4636_v45 = vld [vmem:[%s7409_s9 + $0x720] sm:$0xff]  ;;  %v4570_v34 = vld [vmem:[%s7409_s9 + $0x510] sm:$0xff] }
 0x915   :  { %4855 = vmatpush2.msra.mxu0 %v4594_v35  ;;  %4925 = vmatprep.subr.mxu1 %v4659_v47  ;;  %v4635_v35 = vld [vmem:[%s7409_s9 + $0x718] sm:$0xff]  ;;  %v4112_v47 = vadd.f32 %v4111_v23, %v4041_v36  ;;  %v4974_v36 = vld [vmem:[#allocation13 + $0x60] sm:$0xff] }
 0x916   :  { %4856 = vmatprep.subr.mxu0 %v4593_v39  ;;  %4926 = vmatpush2.msra.mxu1 %v4658_v12  ;;  %v4569_v12 = vld [vmem:[%s7409_s9 + $0x508] sm:$0xff]  ;;  %v4980_v23 = vld [vmem:[#allocation13 + $0x90] sm:$0xff]  ;;  %v4979_v18 = vld [vmem:[#allocation13 + $0x88] sm:$0xff] }
 0x917   :  { %4857 = vmatpush2.msra.mxu0 %v4592_v48  ;;  %4927 = vmatprep.subr.mxu1 %v4657_v11  ;;  %v4634_v48 = vld [vmem:[%s7409_s9 + $0x710] sm:$0xff]  ;;  %v4114_v11 = vadd.f32 %v4113_v27, %v4043_v57  ;;  %v4968_v27 = vld [vmem:[#allocation13 + $0x30] sm:$0xff] }
 0x918   :  { %4858 = vmatprep.subr.mxu0 %v4591_v50  ;;  %4928 = vmatpush2.msra.mxu1 %v4656_v38  ;;  %v4568_v50 = vld [vmem:[%s7409_s9 + $0x500] sm:$0xff]  ;;  %v4633_v38 = vld [vmem:[%s7409_s9 + $0x708] sm:$0xff]  ;;  %v4971_v57 = vld [vmem:[#allocation13 + $0x48] sm:$0xff] }
 0x919   :  { %4859 = vmatpush2.msra.mxu0 %v4590_v52  ;;  %4929 = vmatprep.subr.mxu1 %v4655_v7 }
 0x91a   :  { %4860 = vmatprep.subr.mxu0 %v4589_v40  ;;  %4930 = vmatpush2.msra.mxu1 %v4654_v37  ;;  %v4632_v40 = vld [vmem:[%s7409_s9 + $0x700] sm:$0xff] }
 0x91b   :  { %4861 = vmatpush2.msra.mxu0 %v4588_v41  ;;  %4931 = vmatprep.subr.mxu1 %v4653_v42 }
 0x91c   :  { %4862 = vmatprep.subr.mxu0 %v4587_v51  ;;  %4932 = vmatpush2.msra.mxu1 %v4652_v26  ;;  %v3534_v51 = vsub.s32 6, %v6079_v28  ;;  %v3538_v26 = vsub.s32 7, %v6079_v28  ;;  %v4993_v28 = vld [vmem:[#allocation13 + $0xf8] sm:$0xff] }
 0x91d   :  { %4863 = vmatpush2.msra.mxu0 %v4586_v15  ;;  %4933 = vmatprep.subr.mxu1 %v4651_v14 }
 0x91e   :  { %4864 = vmatprep.subr.mxu0 %v4585_v54  ;;  %4934 = vmatpush2.msra.mxu1 %v4650_v24  ;;  %v3535_v14 = vrot.slane %v7236_v3, %v3534_v51  ;;  %v3539_v54 = vrot.slane %v7236_v3, %v3538_v26  ;;  %v4987_v3 = vld [vmem:[#allocation13 + $0xc8] sm:$0xff]  ;;  %v5106_v26 = vld [vmem:[%s7413_s13 + $0x68] sm:$0xff] }
 0x91f   :  { %4865 = vmatpush2.msra.mxu0 %v4584_v21  ;;  %4935 = vmatprep.subr.mxu1 %v4649_v55  ;;  %v5107_v51 = vld [vmem:[%s7413_s13 + $0x70] sm:$0xff] }
 0x920   :  { %4866 = vmatprep.subr.mxu0 %v4583_v19  ;;  %4936 = vmatpush2.msra.mxu1 %v4648_v56 }
 0x921   :  { %4867 = vmatpush2.msra.mxu0 %v4582_v60  ;;  %4937 = vmatprep.subr.mxu1 %v4647_v2 }
 0x922   :  { %4868 = vmatprep.subr.mxu0 %v4581_v58  ;;  %4938 = vmatpush2.msra.mxu1 %v4646_v59 }
 0x923   :  { %4869 = vmatpush2.msra.mxu0 %v4580_v53  ;;  %4939 = vmatprep.subr.mxu1 %v4645_v30 }
 0x924   :  { %4870 = vmatprep.subr.mxu0 %v4579_v9  ;;  %4940 = vmatpush2.msra.mxu1 %v4644_v44  ;;  %v4991_v9 = vld [vmem:[#allocation13 + $0xe8] sm:$0xff]  ;;  %v4990_v44 = vld [vmem:[#allocation13 + $0xe0] sm:$0xff] }
 0x925   :  { %4871 = vmatpush2.msra.mxu0 %v4578_v5  ;;  %4941 = vmatprep.subr.mxu1 %v4643_v16  ;;  %v4989_v5 = vld [vmem:[#allocation13 + $0xd8] sm:$0xff]  ;;  %v4988_v16 = vld [vmem:[#allocation13 + $0xd0] sm:$0xff] }
 0x926   :  { %4872 = vmatprep.subr.mxu0 %v4577_v20  ;;  %4942 = vmatpush2.msra.mxu1 %v4642_v6  ;;  %v4985_v20 = vld [vmem:[#allocation13 + $0xb8] sm:$0xff]  ;;  %v4984_v6 = vld [vmem:[#allocation13 + $0xb0] sm:$0xff] }
 0x927   :  { %4873 = vmatpush2.msra.mxu0 %v4576_v62  ;;  %4943 = vmatprep.subr.mxu1 %v4641_v43  ;;  %v4982_v62 = vld [vmem:[#allocation13 + $0xa0] sm:$0xff]  ;;  %v4981_v43 = vld [vmem:[#allocation13 + $0x98] sm:$0xff] }
 0x928   :  { %4874 = vmatprep.subr.mxu0 %v4575_v22  ;;  %4944 = vmatpush2.msra.mxu1 %v4640_v63  ;;  %v4978_v22 = vld [vmem:[#allocation13 + $0x80] sm:$0xff]  ;;  %v4977_v63 = vld [vmem:[#allocation13 + $0x78] sm:$0xff] }
 0x929   :  { %4875 = vmatpush2.msra.mxu0 %v4574_v1  ;;  %4945 = vmatprep.subr.mxu1 %v4639_v25  ;;  %v4976_v1 = vld [vmem:[#allocation13 + $0x70] sm:$0xff]  ;;  %v4975_v25 = vld [vmem:[#allocation13 + $0x68] sm:$0xff] }
 0x92a   :  { %4876 = vmatprep.subr.mxu0 %v4573_v10  ;;  %4946 = vmatpush2.msra.mxu1 %v4638_v13  ;;  %v4973_v10 = vld [vmem:[#allocation13 + $0x58] sm:$0xff]  ;;  %v4972_v13 = vld [vmem:[#allocation13 + $0x50] sm:$0xff] }
 0x92b   :  { %v4182_v39 = vpop.f32.mrf.mxu0  ;;  %4877 = vmatpush2.msra.mxu0 %v4572_v4  ;;  %4947 = vmatprep.subr.mxu1 %v4637_v46  ;;  %v4970_v4 = vld [vmem:[#allocation13 + $0x40] sm:$0xff]  ;;  %v4969_v46 = vld [vmem:[#allocation13 + $0x38] sm:$0xff] }
 0x92c   :  { %4878 = vmatprep.subr.mxu0 %v4571_v8  ;;  %4948 = vmatpush2.msra.mxu1 %v4636_v45  ;;  %v4183_v52 = vadd.f32 %v4182_v39, %v4112_v47  ;;  %v4253_v15 = vpop.f32.mrf.mxu1  ;;  %v4967_v8 = vld [vmem:[#allocation13 + $0x28] sm:$0xff]  ;;  %v4966_v45 = vld [vmem:[#allocation13 + $0x20] sm:$0xff] }
 0x92d   :  { %v4184_v7 = vpop.f32.mrf.mxu0  ;;  %4879 = vmatpush2.msra.mxu0 %v4570_v34  ;;  %4949 = vmatprep.subr.mxu1 %v4635_v35  ;;  %v4254_v21 = vadd.f32 %v4253_v15, %v3535_v14  ;;  %v4965_v34 = vld [vmem:[#allocation13 + $0x18] sm:$0xff]  ;;  %v4964_v35 = vld [vmem:[#allocation13 + $0x10] sm:$0xff]  ;;  %v4963_v47 = vld [vmem:[#allocation13 + $0x8] sm:$0xff] }
 0x92e   :  { %v4185_v37 = vadd.f32 %v4184_v7, %v4114_v11  ;;  %4880 = vmatprep.subr.mxu0 %v4569_v12  ;;  %4950 = vmatpush2.msra.mxu1 %v4634_v48  ;;  %v4404_v42 = vmax.f32 %v4183_v52, 0.0  ;;  %v4255_v24 = vpop.f32.mrf.mxu1  ;;  %v4962_v39 = vld [vmem:[#allocation13] sm:$0xff]  ;;  %v5003_v12 = vld [vmem:[#allocation13 + $0x148] sm:$0xff]  ;;  %v5001_v11 = vld [vmem:[#allocation13 + $0x138] sm:$0xff] }
 0x92f   :  { %4881 = vmatpush2.msra.mxu0 %v4568_v50  ;;  %4951 = vmatprep.subr.mxu1 %v4633_v38  ;;  %v4256_v19 = vadd.f32 %v4255_v24, %v3539_v54  ;;  %v5002_v48 = vld [vmem:[#allocation13 + $0x140] sm:$0xff]  ;;  %v5000_v50 = vld [vmem:[#allocation13 + $0x130] sm:$0xff]  ;;  %v4999_v38 = vld [vmem:[#allocation13 + $0x128] sm:$0xff] }
 0x930   :  { %v4405_v41 = vmax.f32 %v4185_v37, 0.0  ;;  %4952 = vmatpush2.msra.mxu1 %v4632_v40  ;;  %5020 = vmatprep.subr.mxu0 %v4993_v28  ;;  %v4998_v52 = vld [vmem:[#allocation13 + $0x120] sm:$0xff]  ;;  %v4997_v7 = vld [vmem:[#allocation13 + $0x118] sm:$0xff]  ;;  %v4996_v40 = vld [vmem:[#allocation13 + $0x110] sm:$0xff] }
 0x931   :  { %5124 = vmatprep.subr.mxu1 %v5900_v0  ;;  %v4995_v37 = vld [vmem:[#allocation13 + $0x108] sm:$0xff]  ;;  %v5105_v15 = vld [vmem:[%s7413_s13 + $0x60] sm:$0xff]  ;;  %v5102_v24 = vld [vmem:[%s7413_s13 + $0x48] sm:$0xff] }
 0x932   :  { %4882 = vmatprep.mubr.f32.mxu0 %v4405_v41  ;;  %v4994_v41 = vld [vmem:[#allocation13 + $0x100] sm:$0xff]  ;;  %v5104_v14 = vld [vmem:[%s7413_s13 + $0x58] sm:$0xff] }
 0x933   :  { %4883 = vmatmul.mubr.f32.vlgmr.msra.gmra.mxu0 %v4404_v42  ;;  %v5108_v42 = vld [vmem:[%s7413_s13 + $0x78] sm:$0xff]  ;;  %v5103_v54 = vld [vmem:[%s7413_s13 + $0x50] sm:$0xff] }
 0x934   :  { %5021 = vmatpush1.msra.mxu0 %v4992_v61 }
 0x935   :  { %5022 = vmatprep.subr.mxu0 %v4991_v9 }
 0x936   :  { %5023 = vmatpush1.msra.mxu0 %v4990_v44 }
 0x937   :  { %5024 = vmatprep.subr.mxu0 %v4989_v5 }
 0x938   :  { %5025 = vmatpush1.msra.mxu0 %v4988_v16 }
 0x939   :  { %5026 = vmatprep.subr.mxu0 %v4987_v3 }
 0x93a   :  { %5027 = vmatpush1.msra.mxu0 %v4986_v31 }
 0x93b   :  { %5028 = vmatprep.subr.mxu0 %v4985_v20 }
 0x93c   :  { %5029 = vmatpush1.msra.mxu0 %v4984_v6 }
 0x93d   :  { %5030 = vmatprep.subr.mxu0 %v4983_v29 }
 0x93e   :  { %5031 = vmatpush1.msra.mxu0 %v4982_v62 }
 0x93f   :  { %5032 = vmatprep.subr.mxu0 %v4981_v43 }
 0x940   :  { %5033 = vmatpush1.msra.mxu0 %v4980_v23 }
 0x941   :  { %5034 = vmatprep.subr.mxu0 %v4979_v18 }
 0x942   :  { %5035 = vmatpush1.msra.mxu0 %v4978_v22 }
 0x943   :  { %5036 = vmatprep.subr.mxu0 %v4977_v63 }
 0x944   :  { %5037 = vmatpush1.msra.mxu0 %v4976_v1 }
 0x945   :  { %5038 = vmatprep.subr.mxu0 %v4975_v25 }
 0x946   :  { %5039 = vmatpush1.msra.mxu0 %v4974_v36  ;;  %v5112_v36 = vld [vmem:[%s7413_s13 + $0x98] sm:$0xff] }
 0x947   :  { %5040 = vmatprep.subr.mxu0 %v4973_v10  ;;  %v5111_v10 = vld [vmem:[%s7413_s13 + $0x90] sm:$0xff] }
 0x948   :  { %5041 = vmatpush1.msra.mxu0 %v4972_v13  ;;  %v5110_v13 = vld [vmem:[%s7413_s13 + $0x88] sm:$0xff] }
 0x949   :  { %5042 = vmatprep.subr.mxu0 %v4971_v57  ;;  %v5109_v57 = vld [vmem:[%s7413_s13 + $0x80] sm:$0xff] }
 0x94a   :  { %5043 = vmatpush1.msra.mxu0 %v4970_v4  ;;  %v5004_v4 = vld [vmem:[#allocation15] sm:$0x3] }
 0x94b   :  { %5044 = vmatprep.subr.mxu0 %v4969_v46  ;;  %v5009_v46 = vrot.slane %v5004_v4, %v6082_v32 }
 0x94c   :  { %5045 = vmatpush1.msra.mxu0 %v4968_v27  ;;  %v5013_v27 = vrot.slane %v5004_v4, %v6085_v33 }
 0x94d   :  { %5046 = vmatprep.subr.mxu0 %v4967_v8 }
 0x94e   :  { %5047 = vmatpush1.msra.mxu0 %v4966_v45 }
 0x94f   :  { %5048 = vmatprep.subr.mxu0 %v4965_v34 }
 0x950   :  { %5049 = vmatpush1.msra.mxu0 %v4964_v35 }
 0x951   :  { %5050 = vmatprep.subr.mxu0 %v4963_v47 }
 0x952   :  { %5051 = vmatpush1.msra.mxu0 %v4962_v39 }
 0x953   :  { %5074 = vmatprep.subr.mxu0 %v5003_v12  ;;  %v5251_v12 = vld [vmem:[#allocation16] ss:$0 sm:$0xff] }
 0x954   :  { %5075 = vmatpush2.msra.mxu0 %v5002_v48 }
 0x955   :  { %5076 = vmatprep.subr.mxu0 %v5001_v11 }
 0x956   :  { %5077 = vmatpush2.msra.mxu0 %v5000_v50 }
 0x957   :  { %5078 = vmatprep.subr.mxu0 %v4999_v38 }
 0x958   :  { %5079 = vmatpush2.msra.mxu0 %v4998_v52 }
 0x959   :  { %5080 = vmatprep.subr.mxu0 %v4997_v7 }
 0x95a   :  { %5081 = vmatpush2.msra.mxu0 %v4996_v40 }
 0x95b   :  { %5082 = vmatprep.subr.mxu0 %v4995_v37 }
 0x95c   :  { %5083 = vmatpush2.msra.mxu0 %v4994_v41 }
 0x96d   :  { %v4324_v55 = vpop.f32.mrf.mxu0 }
 0x96e   :  { %v4325_v56 = vadd.f32 %v4324_v55, %v4254_v21  ;;  %v4395_v60 = vpop.f32.mrf.mxu1  ;;  %v5101_v21 = vld [vmem:[%s7413_s13 + $0x40] sm:$0xff]  ;;  %v5100_v55 = vld [vmem:[%s7413_s13 + $0x38] sm:$0xff] }
 0x96f   :  { %v4326_v2 = vpop.f32.mrf.mxu0 }
 0x970   :  { %v4327_v49 = vadd.f32 %v4326_v2, %v4256_v19  ;;  %v4397_v58 = vpop.f32.mrf.mxu1  ;;  %v4396_v59 = vadd.f32 %v4395_v60, %v4325_v56  ;;  %v5099_v19 = vld [vmem:[%s7413_s13 + $0x30] sm:$0xff]  ;;  %v5098_v56 = vld [vmem:[%s7413_s13 + $0x28] sm:$0xff]  ;;  %v5097_v60 = vld [vmem:[%s7413_s13 + $0x20] sm:$0xff] }
 0x971   :  { %v5096_v2 = vld [vmem:[%s7413_s13 + $0x18] sm:$0xff] }
 0x972   :  { %v4398_v17 = vadd.f32 %v4397_v58, %v4327_v49  ;;  %v4406_v30 = vmax.f32 %v4396_v59, 0.0  ;;  %v5095_v49 = vld [vmem:[%s7413_s13 + $0x10] sm:$0xff]  ;;  %v5094_v58 = vld [vmem:[%s7413_s13 + $0x8] sm:$0xff]  ;;  %v5093_v59 = vld [vmem:[%s7413_s13] sm:$0xff] }
 0x974   :  { %v4407_v53 = vmax.f32 %v4398_v17, 0.0  ;;  %v5113_v17 = vld [vmem:[%s7413_s13 + $0xa0] sm:$0xff] }
 0x976   :  { %4953 = vmatprep.mubr.f32.mxu1 %v4407_v53  ;;  %v4664_v53 = vld [vmem:[#allocation12] sm:$0x3] }
 0x977   :  { %4954 = vmatmul.mubr.f32.vlgmr.msra.gmra.mxu1 %v4406_v30  ;;  %v4669_v28 = vrot.slane %v4664_v53, %v6082_v32  ;;  %v4673_v61 = vrot.slane %v4664_v53, %v6085_v33 }
 0x978   :  { %5125 = vmatpush1.msra.mxu1 %v5108_v42 }
 0x979   :  { %5126 = vmatprep.subr.mxu1 %v5900_v0 }
 0x97a   :  { %5127 = vmatpush1.msra.mxu1 %v5107_v51 }
 0x97b   :  { %5128 = vmatprep.subr.mxu1 %v5900_v0 }
 0x97c   :  { %5129 = vmatpush1.msra.mxu1 %v5106_v26 }
 0x97d   :  { %5130 = vmatprep.subr.mxu1 %v5900_v0 }
 0x97e   :  { %5131 = vmatpush1.msra.mxu1 %v5105_v15 }
 0x97f   :  { %5132 = vmatprep.subr.mxu1 %v5900_v0 }
 0x980   :  { %5133 = vmatpush1.msra.mxu1 %v5104_v14 }
 0x981   :  { %5134 = vmatprep.subr.mxu1 %v5900_v0 }
 0x982   :  { %5135 = vmatpush1.msra.mxu1 %v5103_v54 }
 0x983   :  { %5136 = vmatprep.subr.mxu1 %v5900_v0 }
 0x984   :  { %5137 = vmatpush1.msra.mxu1 %v5102_v24 }
 0x985   :  { %5138 = vmatprep.subr.mxu1 %v5900_v0 }
 0x986   :  { %5139 = vmatpush1.msra.mxu1 %v5101_v21 }
 0x987   :  { %5140 = vmatprep.subr.mxu1 %v5900_v0 }
 0x988   :  { %5141 = vmatpush1.msra.mxu1 %v5100_v55 }
 0x989   :  { %5142 = vmatprep.subr.mxu1 %v5900_v0 }
 0x98a   :  { %5143 = vmatpush1.msra.mxu1 %v5099_v19 }
 0x98b   :  { %5144 = vmatprep.subr.mxu1 %v5900_v0 }
 0x98c   :  { %5145 = vmatpush1.msra.mxu1 %v5098_v56 }
 0x98d   :  { %5146 = vmatprep.subr.mxu1 %v5900_v0 }
 0x98e   :  { %5147 = vmatpush1.msra.mxu1 %v5097_v60 }
 0x98f   :  { %5148 = vmatprep.subr.mxu1 %v5900_v0 }
 0x990   :  { %5149 = vmatpush1.msra.mxu1 %v5096_v2 }
 0x991   :  { %5150 = vmatprep.subr.mxu1 %v5900_v0 }
 0x992   :  { %5151 = vmatpush1.msra.mxu1 %v5095_v49 }
 0x993   :  { %5152 = vmatprep.subr.mxu1 %v5900_v0 }
 0x994   :  { %5153 = vmatpush1.msra.mxu1 %v5094_v58 }
 0x995   :  { %5154 = vmatprep.subr.mxu1 %v5900_v0 }
 0x996   :  { %5155 = vmatpush1.msra.mxu1 %v5093_v59 }
 0x997   :  { %5178 = vmatprep.subr.mxu1 %v5900_v0 }
 0x998   :  { %5179 = vmatpush2.msra.mxu1 %v5113_v17 }
 0x999   :  { %5180 = vmatprep.subr.mxu1 %v5900_v0 }
 0x99a   :  { %5181 = vmatpush2.msra.mxu1 %v5112_v36 }
 0x99b   :  { %5182 = vmatprep.subr.mxu1 %v5900_v0 }
 0x99c   :  { %5183 = vmatpush2.msra.mxu1 %v5111_v10 }
 0x99d   :  { %5184 = vmatprep.subr.mxu1 %v5900_v0 }
 0x99e   :  { %5185 = vmatpush2.msra.mxu1 %v5110_v13 }
 0x99f   :  { %5186 = vmatprep.subr.mxu1 %v5900_v0 }
 0x9a0   :  { %5187 = vmatpush2.msra.mxu1 %v5109_v57 }
 0x9af   :  { %v4742_v30 = vpop.f32.mrf.mxu0 }
 0x9b0   :  { %v4813_v9 = vpop.f32.mrf.mxu1  ;;  %v4743_v5 = vadd.f32 %v4742_v30, %v4669_v28 }
 0x9b1   :  { %v4744_v44 = vpop.f32.mrf.mxu0 }
 0x9b2   :  { %v4745_v3 = vadd.f32 %v4744_v44, %v4673_v61  ;;  %v4815_v31 = vpop.f32.mrf.mxu1  ;;  %v4814_v20 = vadd.f32 %v4813_v9, %v4743_v5 }
 0x9b4   :  { %v4816_v29 = vadd.f32 %v4815_v31, %v4745_v3 }
 0x9f3   :  { %v4884_v16 = vpop.f32.mrf.mxu0 }
 0x9f4   :  { %v4885_v62 = vadd.f32 %v4884_v16, %v4814_v20 }
 0x9f5   :  { %v4886_v6 = vpop.f32.mrf.mxu0 }
 0x9f6   :  { %v4887_v23 = vadd.f32 %v4886_v6, %v4816_v29 }
 0xa37   :  { %v4955_v43 = vpop.f32.mrf.mxu1 }
 0xa38   :  { %v4956_v18 = vadd.f32 %v4955_v43, %v4885_v62 }
 0xa39   :  { %v4957_v22 = vpop.f32.mrf.mxu1 }
 0xa3a   :  { %v4958_v63 = vadd.f32 %v4957_v22, %v4887_v23  ;;  %v4960_v25 = vmax.f32 %v4956_v18, 0.0 }
 0xa3c   :  { %v4961_v1 = vmax.f32 %v4958_v63, 0.0 }
 0xa3e   :  { %5250 = vmatprep.mubr.msk.f32.mxu0 %vm5016_vm9, %v4961_v1 }
 0xa3f   :  { %5085 = vmatmul.mubr.f32.vlgmr.msra.gmra.mxu0 %v4960_v25 }
 0xaff   :  { %v5086_v8 = vpop.f32.mrf.mxu0 }
 0xb00   :  { %v5087_v45 = vadd.f32 %v5086_v8, %v5009_v46 }
 0xb01   :  { %v5088_v34 = vpop.f32.mrf.mxu0 }
 0xb02   :  { %v5089_v35 = vadd.f32 %v5088_v34, %v5013_v27  ;;  %v5091_v39 = vmax.f32 %v5087_v45, 0.0 }
 0xb04   :  { %v5092_v47 = vmax.f32 %v5089_v35, 0.0 }
 0xb06   :  { %5252 = vmatprep.mubr.msk.f32.mxu1 %vm5016_vm9, %v5092_v47 }
 0xb07   :  { %5189 = vmatmul.mubr.f32.vlgmr.msra.gmra.mxu1 %v5091_v39 }
 0xbc7   :  { %v5190_v48 = vpop.f32.mrf.mxu1 }
 0xbc8   :  { %v5191_v11 = vadd.f32 %v5251_v12, %v5190_v48 }
 0xbc9   :  { %v5192_v50 = vpop.f32.mrf.mxu1 }
 0xbca   :  { %v5194_v0 = vsub.f32 0.0, %v5191_v11 }
 0xbcc   :  { %v5195_v38 = vmul.f32 1.442695, %v5194_v0 }
 0xbce   :  { %5417 = vpow2.f32 %v5195_v38 }
 0xbdb   :  { %v5418_v52 = vpop.eup %5417 }
 0xbdc   :  { %v5197_v32 = vadd.f32 1.0, %v5418_v52 }
 0xbde   :  { %5419 = vrcp.f32 %v5197_v32 }
 0xbeb   :  { %v5420_v33 = vpop.eup %5419 }
 0xbec   :  { %5201 = vst.msk [vmem:[%s7415_s15] sm:$0x3] %vm5200_vm10, %v5420_v33 }
 0xbed   :  { %5206 = vsyncpa [#allocation3], 1 }
 0xbee   :  { %5207 = vsyncpa [#allocation5], 1 }
 0xbef   :  { %5208 = vsyncpa [#allocation8], 1 }
 0xbf0   :  { %5209 = vsyncpa [#allocation11], 1 }
 0xbf1   :  { %5210 = vsyncpa [#allocation14], 1 }
 0xbf2   :  { %5211 = vsyncpa [#allocation17], 1 }

</bundles_post_ra>
